<compile_context>
chip_gen: v6e
topology: v6e:2x2x1
jax: 0.10.0
libtpu: 0.0.40
codegen_flags: <defaults>
</compile_context>

<pallas_src>
import functools

import jax
import jax.numpy as jnp
from jax import lax
from jax.experimental import pallas as pl
from jax.experimental.pallas import tpu as pltpu


def _round_up(x, m):
    return ((x + m - 1) // m) * m


# ----------------------------------------------------------------------------------
# Pallas kernels
# ----------------------------------------------------------------------------------
def _linear_kernel(relu):
    def kernel(x_ref, w_ref, b_ref, o_ref):
        y = jnp.dot(x_ref[...], w_ref[...], preferred_element_type=jnp.float32)
        y = y + b_ref[...]
        if relu:
            y = jnp.maximum(y, 0.0)
        o_ref[...] = y.astype(o_ref.dtype)
    return kernel


def pallas_linear(x, w, b, relu=True, tm=256):
    """(M, Cin) @ (Cin, Cout) + b  [+ReLU]  -- 1x1 Conv1d heads.

    bf16 matmul operands, f32 accumulation.  Cout is padded to a multiple of 128
    lanes so the store is full-width; the pad is sliced off in the wrapper.
    """
    M, cin = x.shape
    cout = w.shape[1]
    tm = max(8, min(tm, _round_up(M, 8)))
    mp = _round_up(M, tm)
    coutp = _round_up(cout, 128)
    xp = jnp.pad(x, ((0, mp - M), (0, 0))).astype(jnp.bfloat16)
    wp = jnp.pad(w, ((0, 0), (0, coutp - cout))).astype(jnp.bfloat16)
    bp = jnp.pad(b, (0, coutp - cout)).reshape(1, coutp).astype(jnp.float32)
    out = pl.pallas_call(
        _linear_kernel(relu),
        out_shape=jax.ShapeDtypeStruct((mp, coutp), jnp.float32),
        grid=(mp // tm,),
        in_specs=[
            pl.BlockSpec((tm, cin), lambda i: (i, 0)),
            pl.BlockSpec((cin, coutp), lambda i: (0, 0)),
            pl.BlockSpec((1, coutp), lambda i: (0, 0)),
        ],
        out_specs=pl.BlockSpec((tm, coutp), lambda i: (i, 0)),
        compiler_params=pltpu.CompilerParams(
            dimension_semantics=("parallel",),
            vmem_limit_bytes=48 * 1024 * 1024),
    )(xp, wp, bp)
    return out[:M, :cout]


def _fused_msg_kernel(scale_meta, tg, agg_cout):
    """Fused multi-scale shared-MLP + neighbor max-pool + aggregation 1x1 conv.

    scale_meta: tuple of (nsample, num_layers) per scale.
    refs layout: per scale [grouped_flat, (w, b) * L, agg_w_slice], then agg_b, out.
    """
    def kernel(*refs):
        out_ref = refs[-1]
        aggb_ref = refs[-2]
        acc = jnp.zeros((tg, agg_cout), jnp.float32)
        pos = 0
        for nsample, num_layers in scale_meta:
            x = refs[pos][...]                        # (tg*nsample, Cin) bf16
            pos += 1
            xf = None
            for _ in range(num_layers):
                w = refs[pos][...]                    # bf16
                b = refs[pos + 1][...]                # f32 (1, cout)
                pos += 2
                xf = jnp.dot(x, w, preferred_element_type=jnp.float32) + b
                xf = jnp.maximum(xf, 0.0)             # conv1x1 + (folded) BN + ReLU
                x = xf.astype(jnp.bfloat16)
            agg_w = refs[pos][...]                    # (cout_last, agg_cout) bf16
            pos += 1
            cout = xf.shape[-1]
            pooled = jnp.max(xf.reshape(tg, nsample, cout), axis=1)  # f32 max-pool
            acc = acc + jnp.dot(pooled.astype(jnp.bfloat16), agg_w,
                                preferred_element_type=jnp.float32)
        out_ref[...] = jnp.maximum(acc + aggb_ref[...], 0.0).astype(out_ref.dtype)
    return kernel


def pallas_fused_msg(grouped_list, mlps, agg_w_splits, agg_b, tg):
    """grouped_list[s]: (G, S_s, Cin).

    Returns ReLU(sum_s maxpool_S(MLP_s(grouped_s)) @ Wagg_s + b_agg): (G, agg_cs),
    which equals ReLU(concat_s(pooled_s) @ Wagg + b_agg).
    """
    G = grouped_list[0].shape[0]
    gp = _round_up(G, tg)
    agg_cout = agg_b.shape[0]

    args, in_specs, scale_meta = [], [], []
    for grouped, (ws, bs), agg_w in zip(grouped_list, mlps, agg_w_splits):
        _, S, cin = grouped.shape
        # flatten group x neighbor once in the wrapper (layout plumbing) so the
        # kernel never reshapes the odd-Cin input across (8,128) tile boundaries
        flat = grouped.reshape(G * S, cin)
        flat = jnp.pad(flat, ((0, (gp - G) * S), (0, 0))).astype(jnp.bfloat16)
        args.append(flat)
        in_specs.append(pl.BlockSpec((tg * S, cin), lambda i: (i, 0)))
        for w, b in zip(ws, bs):
            args.append(w.astype(jnp.bfloat16))
            in_specs.append(pl.BlockSpec(w.shape, lambda i: (0, 0)))
            args.append(b.reshape(1, -1).astype(jnp.float32))
            in_specs.append(pl.BlockSpec((1, b.shape[0]), lambda i: (0, 0)))
        args.append(agg_w.astype(jnp.bfloat16))
        in_specs.append(pl.BlockSpec(agg_w.shape, lambda i: (0, 0)))
        scale_meta.append((S, len(ws)))
    args.append(agg_b.reshape(1, -1).astype(jnp.float32))
    in_specs.append(pl.BlockSpec((1, agg_cout), lambda i: (0, 0)))

    out = pl.pallas_call(
        _fused_msg_kernel(tuple(scale_meta), tg, agg_cout),
        out_shape=jax.ShapeDtypeStruct((gp, agg_cout), jnp.float32),
        grid=(gp // tg,),
        in_specs=in_specs,
        out_specs=pl.BlockSpec((tg, agg_cout), lambda i: (i, 0)),
        compiler_params=pltpu.CompilerParams(
            dimension_semantics=("parallel",),
            vmem_limit_bytes=48 * 1024 * 1024),
    )(*args)
    return out[:G]


def _pick_group_tile(nsamples):
    # Aim for >= 512 matmul rows per grid step; cap so the multi-scale grouped blocks
    # (double-buffered) stay comfortably under v7x's 64 MiB VMEM.
    tg = _round_up(max(1, -(-512 // min(nsamples))), 8)
    return max(8, min(tg, 128))


# ----------------------------------------------------------------------------------
# Non-kernel glue (index arithmetic / sequential sampling)
# ----------------------------------------------------------------------------------
def farthest_point_sample(xyz, k):
    # TODO(synk): D-FPS is an inherently sequential argmax chain; kept in plain JAX.
    #             A Pallas variant keeping dists/xyz resident in VMEM is future work.
    B, N, _ = xyz.shape

    def body(i, state):
        dists, idxs, farthest = state
        idxs = idxs.at[:, i].set(farthest)
        centroid = xyz[jnp.arange(B), farthest][:, None, :]        # (B,1,3)
        d = jnp.sum((xyz - centroid) ** 2, axis=-1)                # (B,N)
        dists = jnp.minimum(dists, d)
        farthest = jnp.argmax(dists, axis=-1).astype(jnp.int32)
        return dists, idxs, farthest

    dists = jnp.full((B, N), 1e10, jnp.float32)
    idxs = jnp.zeros((B, k), jnp.int32)
    farthest = jnp.zeros((B,), jnp.int32)
    _, idxs, _ = lax.fori_loop(0, k, body, (dists, idxs, farthest))
    return idxs


def ball_query(radius, nsample, xyz, new_xyz):
    # TODO(synk): fuse distance + selection into a Pallas kernel so the (B,K,N)
    #             distance tensor never hits HBM at production point counts.
    # xyz (B,N,3), new_xyz (B,K,3) -> (B,K,nsample) indices into N
    N = xyz.shape[1]
    d2 = jnp.sum((new_xyz[:, :, None, :] - xyz[:, None, :, :]) ** 2, axis=-1)  # (B,K,N)
    mask = d2 <= radius * radius
    keyed = jnp.where(mask, jnp.arange(N, dtype=jnp.int32)[None, None, :], N)
    # partial selection of the nsample smallest keys instead of a full O(N log N) sort
    neg_vals, _ = lax.top_k(-keyed, nsample)
    sel = -neg_vals                                                # ascending keys
    first = sel[..., :1]
    sel = jnp.where(sel < N, sel, first)                           # replicate first hit
    sel = jnp.where(first < N, sel, 0)                             # no hit -> index 0
    return sel.astype(jnp.int32)


def group_points(points, features, idx, new_xyz):
    # TODO(synk): the gather could move in-kernel (PrefetchScalarGridSpec + manual
    #             DMA from memory_space=pl.ANY refs) to avoid materializing the
    #             grouped tensor in HBM; kept as an XLA gather here.
    # points (B,N,3), features (B,C,N), idx (B,K,S) -> (B,K,S,3+C)
    B = points.shape[0]
    bidx = jnp.arange(B)[:, None, None]
    grouped_xyz = points[bidx, idx] - new_xyz[:, :, None, :]       # relative xyz
    feats_t = jnp.transpose(features, (0, 2, 1))                   # (B,N,C)
    grouped_feats = feats_t[bidx, idx]                             # (B,K,S,C)
    return jnp.concatenate([grouped_xyz, grouped_feats], axis=-1)


# ----------------------------------------------------------------------------------
# IA-SSD encoder (parameters initialised deterministically in-script; BN folded)
# ----------------------------------------------------------------------------------
def init_ia_ssd_encoder(key, in_channels, num_classes, num_points_list, sampling_methods,
                        num_neighbors_list, radii_list, mlps_channels_list,
                        aggregation_channels_list):
    in_channels_list = [in_channels, *aggregation_channels_list[:-1]]
    modules = []
    for n_points, s_method, n_neighbors, radii, in_cs, mlps_cs, agg_cs in zip(
            num_points_list, sampling_methods, num_neighbors_list, radii_list,
            in_channels_list, mlps_channels_list, aggregation_channels_list):
        mod = {"num_points": n_points, "method": s_method,
               "nsamples": n_neighbors, "radii": radii, "mlps": []}
        out_channels = []
        for channels in mlps_cs:
            ws, bs = [], []
            cin = in_cs + 3
            for cout in channels:
                key, k1, k2 = jax.random.split(key, 3)
                ws.append(jax.random.normal(k1, (cin, cout), jnp.float32) * 0.1)
                bs.append(jax.random.normal(k2, (cout,), jnp.float32) * 0.01)
                cin = cout
            mod["mlps"].append((ws, bs))
            out_channels.append(channels[-1])
        out_sum = sum(out_channels)
        key, k1, k2 = jax.random.split(key, 3)
        agg_w = jax.random.normal(k1, (out_sum, agg_cs), jnp.float32) * 0.1
        mod["agg_b"] = jax.random.normal(k2, (agg_cs,), jnp.float32) * 0.01
        # split the aggregation conv row-wise per scale so it can be fused into the
        # grouped-MLP kernel:  sum_s pooled_s @ W_s  ==  concat_s(pooled_s) @ W.
        splits, off = [], 0
        for c in out_channels:
            splits.append(agg_w[off:off + c])
            off += c
        mod["agg_w_splits"] = splits
        if s_method == "ctr_aware":
            key, k1, k2 = jax.random.split(key, 3)
            mod["cls_w"] = jax.random.normal(k1, (in_cs, num_classes), jnp.float32) * 0.1
            mod["cls_b"] = jax.random.normal(k2, (num_classes,), jnp.float32) * 0.01
        modules.append(mod)
    return modules


def sa_module_forward(points, features, cfg):
    B, N, _ = points.shape
    K = cfg["num_points"]
    cls_preds = None

    # --- sampling -----------------------------------------------------------------
    if cfg["method"] == "ctr_aware":
        flat = jnp.transpose(features, (0, 2, 1)).reshape(B * N, -1)
        logits = pallas_linear(flat, cfg["cls_w"], cfg["cls_b"], relu=False)
        cls_preds = logits.reshape(B, N, -1)                       # (B, N, num_classes)
        scores = jnp.max(cls_preds, axis=-1)                       # sigmoid is monotone
        _, idx = lax.top_k(scores, K)
        idx = idx.astype(jnp.int32)
    else:  # "d-fps"
        idx = farthest_point_sample(points, K)

    new_xyz = points[jnp.arange(B)[:, None], idx]                  # (B, K, 3)

    # --- multi-scale grouping (XLA gather) ------------------------------------------
    grouped_list = []
    for radius, nsample in zip(cfg["radii"], cfg["nsamples"]):
        nidx = ball_query(radius, nsample, points, new_xyz)        # (B,K,S)
        grouped = group_points(points, features, nidx, new_xyz)    # (B,K,S,3+C)
        grouped_list.append(grouped.reshape(B * K, nsample, grouped.shape[-1]))

    # --- fused shared-MLP + max-pool + aggregation conv (single Pallas call) --------
    tg = _pick_group_tile(cfg["nsamples"])
    agg = pallas_fused_msg(grouped_list, cfg["mlps"], cfg["agg_w_splits"],
                           cfg["agg_b"], tg)                       # (B*K, agg_cs)
    new_features = jnp.transpose(agg.reshape(B, K, -1), (0, 2, 1))  # (B, agg_cs, K)
    return new_xyz, new_features, cls_preds


def ia_ssd_encoder_forward(modules, points, features):
    cls_preds_list = []
    points_list = []
    for cfg in modules:
        in_points = points
        points, features, cls_preds = sa_module_forward(points, features, cfg)
        if cls_preds is not None:
            cls_preds_list.append(cls_preds)
            points_list.append(in_points)
    return points, features, cls_preds_list, points_list


# ----------------------------------------------------------------------------------
if __name__ == "__main__":
    key = jax.random.PRNGKey(0)
    k_pts, k_feat, k_params = jax.random.split(key, 3)

    B, N, D = 2, 128, 3
    in_channels = 4
    num_classes = 3

    points = jax.random.normal(k_pts, (B, N, D), jnp.float32)
    features = jax.random.normal(k_feat, (B, in_channels, N), jnp.float32)

    modules = init_ia_ssd_encoder(
        k_params,
        in_channels=in_channels,
        num_classes=num_classes,
        num_points_list=(64, 32),
        sampling_methods=("d-fps", "ctr_aware"),
        num_neighbors_list=((8, 16), (16,)),
        radii_list=((0.5, 1.0), (2.0,)),
        mlps_channels_list=(((16, 16, 32), (16, 16, 32)), ((64, 64),)),
        aggregation_channels_list=(64, 128),
    )

    fwd = jax.jit(functools.partial(ia_ssd_encoder_forward, modules))
    out_points, out_features, cls_preds_list, points_list = fwd(points, features)

    jax.block_until_ready((out_points, out_features, cls_preds_list, points_list))

    assert out_points.shape == (B, 32, 3)
    assert out_features.shape == (B, 128, 32)
    assert len(cls_preds_list) == 1 and cls_preds_list[0].shape == (B, 64, num_classes)
    assert len(points_list) == 1 and points_list[0].shape == (B, 64, 3)

    print("KERNEL_OK")
</pallas_src>

<mosaic_0001>
module attributes {stable_mosaic.version = 11 : i64} {
  func.func @kernel(%arg0: i32, %arg1: memref<512x7xbf16, #tpu.memory_space<vmem>>, %arg2: memref<7x16xbf16, #tpu.memory_space<vmem>>, %arg3: memref<1x16xf32, #tpu.memory_space<vmem>>, %arg4: memref<16x16xbf16, #tpu.memory_space<vmem>>, %arg5: memref<1x16xf32, #tpu.memory_space<vmem>>, %arg6: memref<16x32xbf16, #tpu.memory_space<vmem>>, %arg7: memref<1x32xf32, #tpu.memory_space<vmem>>, %arg8: memref<32x64xbf16, #tpu.memory_space<vmem>>, %arg9: memref<1024x7xbf16, #tpu.memory_space<vmem>>, %arg10: memref<7x16xbf16, #tpu.memory_space<vmem>>, %arg11: memref<1x16xf32, #tpu.memory_space<vmem>>, %arg12: memref<16x16xbf16, #tpu.memory_space<vmem>>, %arg13: memref<1x16xf32, #tpu.memory_space<vmem>>, %arg14: memref<16x32xbf16, #tpu.memory_space<vmem>>, %arg15: memref<1x32xf32, #tpu.memory_space<vmem>>, %arg16: memref<32x64xbf16, #tpu.memory_space<vmem>>, %arg17: memref<1x64xf32, #tpu.memory_space<vmem>>, %arg18: memref<64x64xf32, #tpu.memory_space<vmem>>) attributes {dimension_semantics = [#tpu.dimension_semantics<parallel>], iteration_bounds = array<i64: 2>, scalar_prefetch = 0 : i64, scratch_operands = 0 : i64, tpu.core_type = #tpu.core_type<tc>, window_params = [{transform_indices = @transform_0, window_bounds = array<i64: 512, 7>}, {pipeline_mode = #tpu.pipeline_mode<synchronous>, transform_indices = @transform_1, window_bounds = array<i64: 7, 16>}, {pipeline_mode = #tpu.pipeline_mode<synchronous>, transform_indices = @transform_2, window_bounds = array<i64: 1, 16>}, {pipeline_mode = #tpu.pipeline_mode<synchronous>, transform_indices = @transform_3, window_bounds = array<i64: 16, 16>}, {pipeline_mode = #tpu.pipeline_mode<synchronous>, transform_indices = @transform_4, window_bounds = array<i64: 1, 16>}, {pipeline_mode = #tpu.pipeline_mode<synchronous>, transform_indices = @transform_5, window_bounds = array<i64: 16, 32>}, {pipeline_mode = #tpu.pipeline_mode<synchronous>, transform_indices = @transform_6, window_bounds = array<i64: 1, 32>}, {pipeline_mode = #tpu.pipeline_mode<synchronous>, transform_indices = @transform_7, window_bounds = array<i64: 32, 64>}, {transform_indices = @transform_8, window_bounds = array<i64: 1024, 7>}, {pipeline_mode = #tpu.pipeline_mode<synchronous>, transform_indices = @transform_9, window_bounds = array<i64: 7, 16>}, {pipeline_mode = #tpu.pipeline_mode<synchronous>, transform_indices = @transform_10, window_bounds = array<i64: 1, 16>}, {pipeline_mode = #tpu.pipeline_mode<synchronous>, transform_indices = @transform_11, window_bounds = array<i64: 16, 16>}, {pipeline_mode = #tpu.pipeline_mode<synchronous>, transform_indices = @transform_12, window_bounds = array<i64: 1, 16>}, {pipeline_mode = #tpu.pipeline_mode<synchronous>, transform_indices = @transform_13, window_bounds = array<i64: 16, 32>}, {pipeline_mode = #tpu.pipeline_mode<synchronous>, transform_indices = @transform_14, window_bounds = array<i64: 1, 32>}, {pipeline_mode = #tpu.pipeline_mode<synchronous>, transform_indices = @transform_15, window_bounds = array<i64: 32, 64>}, {pipeline_mode = #tpu.pipeline_mode<synchronous>, transform_indices = @transform_16, window_bounds = array<i64: 1, 64>}, {transform_indices = @transform_17, window_bounds = array<i64: 64, 64>}]} {
    %cst = arith.constant 0.000000e+00 : f32
    %0 = vector.broadcast %cst : f32 to vector<64x64xf32>
    %c0 = arith.constant 0 : index
    %c0_0 = arith.constant 0 : index
    %1 = vector.load %arg1[%c0, %c0_0] : memref<512x7xbf16, #tpu.memory_space<vmem>>, vector<512x7xbf16>
    %c0_1 = arith.constant 0 : index
    %c0_2 = arith.constant 0 : index
    %2 = vector.load %arg2[%c0_1, %c0_2] : memref<7x16xbf16, #tpu.memory_space<vmem>>, vector<7x16xbf16>
    %c0_3 = arith.constant 0 : index
    %c0_4 = arith.constant 0 : index
    %3 = vector.load %arg3[%c0_3, %c0_4] : memref<1x16xf32, #tpu.memory_space<vmem>>, vector<1x16xf32>
    %cst_5 = arith.constant dense<0.000000e+00> : vector<512x16xf32>
    %4 = tpu.matmul %1, %2, %cst_5 {dimension_numbers = #tpu.dot_dimension_numbers<[1], [0], [0], [1], [0, 0, 1, 1], [], []>} : vector<512x7xbf16>, vector<7x16xbf16>, vector<512x16xf32> -> vector<512x16xf32>
    %5 = vector.broadcast %3 : vector<1x16xf32> to vector<512x16xf32>
    %6 = arith.addf %4, %5 : vector<512x16xf32>
    %cst_6 = arith.constant 0.000000e+00 : f32
    %7 = vector.broadcast %cst_6 : f32 to vector<512x16xf32>
    %8 = arith.maximumf %6, %7 : vector<512x16xf32>
    %9 = arith.truncf %8 : vector<512x16xf32> to vector<512x16xbf16>
    %c0_7 = arith.constant 0 : index
    %c0_8 = arith.constant 0 : index
    %10 = vector.load %arg4[%c0_7, %c0_8] : memref<16x16xbf16, #tpu.memory_space<vmem>>, vector<16x16xbf16>
    %c0_9 = arith.constant 0 : index
    %c0_10 = arith.constant 0 : index
    %11 = vector.load %arg5[%c0_9, %c0_10] : memref<1x16xf32, #tpu.memory_space<vmem>>, vector<1x16xf32>
    %cst_11 = arith.constant dense<0.000000e+00> : vector<512x16xf32>
    %12 = tpu.matmul %9, %10, %cst_11 {dimension_numbers = #tpu.dot_dimension_numbers<[1], [0], [0], [1], [0, 0, 1, 1], [], []>} : vector<512x16xbf16>, vector<16x16xbf16>, vector<512x16xf32> -> vector<512x16xf32>
    %13 = vector.broadcast %11 : vector<1x16xf32> to vector<512x16xf32>
    %14 = arith.addf %12, %13 : vector<512x16xf32>
    %cst_12 = arith.constant 0.000000e+00 : f32
    %15 = vector.broadcast %cst_12 : f32 to vector<512x16xf32>
    %16 = arith.maximumf %14, %15 : vector<512x16xf32>
    %17 = arith.truncf %16 : vector<512x16xf32> to vector<512x16xbf16>
    %c0_13 = arith.constant 0 : index
    %c0_14 = arith.constant 0 : index
    %18 = vector.load %arg6[%c0_13, %c0_14] : memref<16x32xbf16, #tpu.memory_space<vmem>>, vector<16x32xbf16>
    %c0_15 = arith.constant 0 : index
    %c0_16 = arith.constant 0 : index
    %19 = vector.load %arg7[%c0_15, %c0_16] : memref<1x32xf32, #tpu.memory_space<vmem>>, vector<1x32xf32>
    %cst_17 = arith.constant dense<0.000000e+00> : vector<512x32xf32>
    %20 = tpu.matmul %17, %18, %cst_17 {dimension_numbers = #tpu.dot_dimension_numbers<[1], [0], [0], [1], [0, 0, 1, 1], [], []>} : vector<512x16xbf16>, vector<16x32xbf16>, vector<512x32xf32> -> vector<512x32xf32>
    %21 = vector.broadcast %19 : vector<1x32xf32> to vector<512x32xf32>
    %22 = arith.addf %20, %21 : vector<512x32xf32>
    %cst_18 = arith.constant 0.000000e+00 : f32
    %23 = vector.broadcast %cst_18 : f32 to vector<512x32xf32>
    %24 = arith.maximumf %22, %23 : vector<512x32xf32>
    %c0_19 = arith.constant 0 : index
    %c0_20 = arith.constant 0 : index
    %25 = vector.load %arg8[%c0_19, %c0_20] : memref<32x64xbf16, #tpu.memory_space<vmem>>, vector<32x64xbf16>
    %26 = vector.shape_cast %24 : vector<512x32xf32> to vector<64x8x32xf32>
    %cst_21 = arith.constant dense<0xFF800000> : vector<64x32xf32>
    %27 = vector.multi_reduction <maximumf>, %26, %cst_21 [1] : vector<64x8x32xf32> to vector<64x32xf32>
    %28 = arith.truncf %27 : vector<64x32xf32> to vector<64x32xbf16>
    %cst_22 = arith.constant dense<0.000000e+00> : vector<64x64xf32>
    %29 = tpu.matmul %28, %25, %cst_22 {dimension_numbers = #tpu.dot_dimension_numbers<[1], [0], [0], [1], [0, 0, 1, 1], [], []>} : vector<64x32xbf16>, vector<32x64xbf16>, vector<64x64xf32> -> vector<64x64xf32>
    %30 = arith.addf %0, %29 : vector<64x64xf32>
    %c0_23 = arith.constant 0 : index
    %c0_24 = arith.constant 0 : index
    %31 = vector.load %arg9[%c0_23, %c0_24] : memref<1024x7xbf16, #tpu.memory_space<vmem>>, vector<1024x7xbf16>
    %c0_25 = arith.constant 0 : index
    %c0_26 = arith.constant 0 : index
    %32 = vector.load %arg10[%c0_25, %c0_26] : memref<7x16xbf16, #tpu.memory_space<vmem>>, vector<7x16xbf16>
    %c0_27 = arith.constant 0 : index
    %c0_28 = arith.constant 0 : index
    %33 = vector.load %arg11[%c0_27, %c0_28] : memref<1x16xf32, #tpu.memory_space<vmem>>, vector<1x16xf32>
    %cst_29 = arith.constant dense<0.000000e+00> : vector<1024x16xf32>
    %34 = tpu.matmul %31, %32, %cst_29 {dimension_numbers = #tpu.dot_dimension_numbers<[1], [0], [0], [1], [0, 0, 1, 1], [], []>} : vector<1024x7xbf16>, vector<7x16xbf16>, vector<1024x16xf32> -> vector<1024x16xf32>
    %35 = vector.broadcast %33 : vector<1x16xf32> to vector<1024x16xf32>
    %36 = arith.addf %34, %35 : vector<1024x16xf32>
    %cst_30 = arith.constant 0.000000e+00 : f32
    %37 = vector.broadcast %cst_30 : f32 to vector<1024x16xf32>
    %38 = arith.maximumf %36, %37 : vector<1024x16xf32>
    %39 = arith.truncf %38 : vector<1024x16xf32> to vector<1024x16xbf16>
    %c0_31 = arith.constant 0 : index
    %c0_32 = arith.constant 0 : index
    %40 = vector.load %arg12[%c0_31, %c0_32] : memref<16x16xbf16, #tpu.memory_space<vmem>>, vector<16x16xbf16>
    %c0_33 = arith.constant 0 : index
    %c0_34 = arith.constant 0 : index
    %41 = vector.load %arg13[%c0_33, %c0_34] : memref<1x16xf32, #tpu.memory_space<vmem>>, vector<1x16xf32>
    %cst_35 = arith.constant dense<0.000000e+00> : vector<1024x16xf32>
    %42 = tpu.matmul %39, %40, %cst_35 {dimension_numbers = #tpu.dot_dimension_numbers<[1], [0], [0], [1], [0, 0, 1, 1], [], []>} : vector<1024x16xbf16>, vector<16x16xbf16>, vector<1024x16xf32> -> vector<1024x16xf32>
    %43 = vector.broadcast %41 : vector<1x16xf32> to vector<1024x16xf32>
    %44 = arith.addf %42, %43 : vector<1024x16xf32>
    %cst_36 = arith.constant 0.000000e+00 : f32
    %45 = vector.broadcast %cst_36 : f32 to vector<1024x16xf32>
    %46 = arith.maximumf %44, %45 : vector<1024x16xf32>
    %47 = arith.truncf %46 : vector<1024x16xf32> to vector<1024x16xbf16>
    %c0_37 = arith.constant 0 : index
    %c0_38 = arith.constant 0 : index
    %48 = vector.load %arg14[%c0_37, %c0_38] : memref<16x32xbf16, #tpu.memory_space<vmem>>, vector<16x32xbf16>
    %c0_39 = arith.constant 0 : index
    %c0_40 = arith.constant 0 : index
    %49 = vector.load %arg15[%c0_39, %c0_40] : memref<1x32xf32, #tpu.memory_space<vmem>>, vector<1x32xf32>
    %cst_41 = arith.constant dense<0.000000e+00> : vector<1024x32xf32>
    %50 = tpu.matmul %47, %48, %cst_41 {dimension_numbers = #tpu.dot_dimension_numbers<[1], [0], [0], [1], [0, 0, 1, 1], [], []>} : vector<1024x16xbf16>, vector<16x32xbf16>, vector<1024x32xf32> -> vector<1024x32xf32>
    %51 = vector.broadcast %49 : vector<1x32xf32> to vector<1024x32xf32>
    %52 = arith.addf %50, %51 : vector<1024x32xf32>
    %cst_42 = arith.constant 0.000000e+00 : f32
    %53 = vector.broadcast %cst_42 : f32 to vector<1024x32xf32>
    %54 = arith.maximumf %52, %53 : vector<1024x32xf32>
    %c0_43 = arith.constant 0 : index
    %c0_44 = arith.constant 0 : index
    %55 = vector.load %arg16[%c0_43, %c0_44] : memref<32x64xbf16, #tpu.memory_space<vmem>>, vector<32x64xbf16>
    %56 = vector.shape_cast %54 : vector<1024x32xf32> to vector<64x16x32xf32>
    %cst_45 = arith.constant dense<0xFF800000> : vector<64x32xf32>
    %57 = vector.multi_reduction <maximumf>, %56, %cst_45 [1] : vector<64x16x32xf32> to vector<64x32xf32>
    %58 = arith.truncf %57 : vector<64x32xf32> to vector<64x32xbf16>
    %cst_46 = arith.constant dense<0.000000e+00> : vector<64x64xf32>
    %59 = tpu.matmul %58, %55, %cst_46 {dimension_numbers = #tpu.dot_dimension_numbers<[1], [0], [0], [1], [0, 0, 1, 1], [], []>} : vector<64x32xbf16>, vector<32x64xbf16>, vector<64x64xf32> -> vector<64x64xf32>
    %60 = arith.addf %30, %59 : vector<64x64xf32>
    %c0_47 = arith.constant 0 : index
    %c0_48 = arith.constant 0 : index
    %61 = vector.load %arg17[%c0_47, %c0_48] : memref<1x64xf32, #tpu.memory_space<vmem>>, vector<1x64xf32>
    %62 = vector.broadcast %61 : vector<1x64xf32> to vector<64x64xf32>
    %63 = arith.addf %60, %62 : vector<64x64xf32>
    %cst_49 = arith.constant 0.000000e+00 : f32
    %64 = vector.broadcast %cst_49 : f32 to vector<64x64xf32>
    %65 = arith.maximumf %63, %64 : vector<64x64xf32>
    %c0_50 = arith.constant 0 : index
    %c0_51 = arith.constant 0 : index
    %66 = vector.load %arg18[%c0_50, %c0_51] : memref<64x64xf32, #tpu.memory_space<vmem>>, vector<64x64xf32>
    tpu.vector_store %arg18[%c0_50, %c0_51], %65 {strides = array<i32>} : memref<64x64xf32, #tpu.memory_space<vmem>>, vector<64x64xf32>,
    return
  }
  func.func @transform_0(%arg0: i32) -> (i32, i32) {
    %c0_i32 = arith.constant 0 : i32
    %c0_i32_0 = arith.constant 0 : i32
    return %arg0, %c0_i32 : i32, i32
  }
  func.func @transform_1(%arg0: i32) -> (i32, i32) {
    %c0_i32 = arith.constant 0 : i32
    %c0_i32_0 = arith.constant 0 : i32
    %c0_i32_1 = arith.constant 0 : i32
    return %c0_i32, %c0_i32_0 : i32, i32
  }
  func.func @transform_2(%arg0: i32) -> (i32, i32) {
    %c0_i32 = arith.constant 0 : i32
    %c0_i32_0 = arith.constant 0 : i32
    %c0_i32_1 = arith.constant 0 : i32
    return %c0_i32, %c0_i32_0 : i32, i32
  }
  func.func @transform_3(%arg0: i32) -> (i32, i32) {
    %c0_i32 = arith.constant 0 : i32
    %c0_i32_0 = arith.constant 0 : i32
    %c0_i32_1 = arith.constant 0 : i32
    return %c0_i32, %c0_i32_0 : i32, i32
  }
  func.func @transform_4(%arg0: i32) -> (i32, i32) {
    %c0_i32 = arith.constant 0 : i32
    %c0_i32_0 = arith.constant 0 : i32
    %c0_i32_1 = arith.constant 0 : i32
    return %c0_i32, %c0_i32_0 : i32, i32
  }
  func.func @transform_5(%arg0: i32) -> (i32, i32) {
    %c0_i32 = arith.constant 0 : i32
    %c0_i32_0 = arith.constant 0 : i32
    %c0_i32_1 = arith.constant 0 : i32
    return %c0_i32, %c0_i32_0 : i32, i32
  }
  func.func @transform_6(%arg0: i32) -> (i32, i32) {
    %c0_i32 = arith.constant 0 : i32
    %c0_i32_0 = arith.constant 0 : i32
    %c0_i32_1 = arith.constant 0 : i32
    return %c0_i32, %c0_i32_0 : i32, i32
  }
  func.func @transform_7(%arg0: i32) -> (i32, i32) {
    %c0_i32 = arith.constant 0 : i32
    %c0_i32_0 = arith.constant 0 : i32
    %c0_i32_1 = arith.constant 0 : i32
    return %c0_i32, %c0_i32_0 : i32, i32
  }
  func.func @transform_8(%arg0: i32) -> (i32, i32) {
    %c0_i32 = arith.constant 0 : i32
    %c0_i32_0 = arith.constant 0 : i32
    return %arg0, %c0_i32 : i32, i32
  }
  func.func @transform_9(%arg0: i32) -> (i32, i32) {
    %c0_i32 = arith.constant 0 : i32
    %c0_i32_0 = arith.constant 0 : i32
    %c0_i32_1 = arith.constant 0 : i32
    return %c0_i32, %c0_i32_0 : i32, i32
  }
  func.func @transform_10(%arg0: i32) -> (i32, i32) {
    %c0_i32 = arith.constant 0 : i32
    %c0_i32_0 = arith.constant 0 : i32
    %c0_i32_1 = arith.constant 0 : i32
    return %c0_i32, %c0_i32_0 : i32, i32
  }
  func.func @transform_11(%arg0: i32) -> (i32, i32) {
    %c0_i32 = arith.constant 0 : i32
    %c0_i32_0 = arith.constant 0 : i32
    %c0_i32_1 = arith.constant 0 : i32
    return %c0_i32, %c0_i32_0 : i32, i32
  }
  func.func @transform_12(%arg0: i32) -> (i32, i32) {
    %c0_i32 = arith.constant 0 : i32
    %c0_i32_0 = arith.constant 0 : i32
    %c0_i32_1 = arith.constant 0 : i32
    return %c0_i32, %c0_i32_0 : i32, i32
  }
  func.func @transform_13(%arg0: i32) -> (i32, i32) {
    %c0_i32 = arith.constant 0 : i32
    %c0_i32_0 = arith.constant 0 : i32
    %c0_i32_1 = arith.constant 0 : i32
    return %c0_i32, %c0_i32_0 : i32, i32
  }
  func.func @transform_14(%arg0: i32) -> (i32, i32) {
    %c0_i32 = arith.constant 0 : i32
    %c0_i32_0 = arith.constant 0 : i32
    %c0_i32_1 = arith.constant 0 : i32
    return %c0_i32, %c0_i32_0 : i32, i32
  }
  func.func @transform_15(%arg0: i32) -> (i32, i32) {
    %c0_i32 = arith.constant 0 : i32
    %c0_i32_0 = arith.constant 0 : i32
    %c0_i32_1 = arith.constant 0 : i32
    return %c0_i32, %c0_i32_0 : i32, i32
  }
  func.func @transform_16(%arg0: i32) -> (i32, i32) {
    %c0_i32 = arith.constant 0 : i32
    %c0_i32_0 = arith.constant 0 : i32
    %c0_i32_1 = arith.constant 0 : i32
    return %c0_i32, %c0_i32_0 : i32, i32
  }
  func.func @transform_17(%arg0: i32) -> (i32, i32) {
    %c0_i32 = arith.constant 0 : i32
    %c0_i32_0 = arith.constant 0 : i32
    return %arg0, %c0_i32 : i32, i32
  }
}

module attributes {stable_mosaic.version = 11 : i64} {
  func.func @kernel(%arg0: i32, %arg1: memref<128x64xbf16, #tpu.memory_space<vmem>>, %arg2: memref<64x128xbf16, #tpu.memory_space<vmem>>, %arg3: memref<1x128xf32, #tpu.memory_space<vmem>>, %arg4: memref<128x128xf32, #tpu.memory_space<vmem>>) attributes {dimension_semantics = [#tpu.dimension_semantics<parallel>], iteration_bounds = array<i64: 1>, scalar_prefetch = 0 : i64, scratch_operands = 0 : i64, tpu.core_type = #tpu.core_type<tc>, window_params = [{transform_indices = @transform_0, window_bounds = array<i64: 128, 64>}, {pipeline_mode = #tpu.pipeline_mode<synchronous>, transform_indices = @transform_1, window_bounds = array<i64: 64, 128>}, {pipeline_mode = #tpu.pipeline_mode<synchronous>, transform_indices = @transform_2, window_bounds = array<i64: 1, 128>}, {transform_indices = @transform_3, window_bounds = array<i64: 128, 128>}]} {
    %c0 = arith.constant 0 : index
    %c0_0 = arith.constant 0 : index
    %0 = vector.load %arg1[%c0, %c0_0] : memref<128x64xbf16, #tpu.memory_space<vmem>>, vector<128x64xbf16>
    %c0_1 = arith.constant 0 : index
    %c0_2 = arith.constant 0 : index
    %1 = vector.load %arg2[%c0_1, %c0_2] : memref<64x128xbf16, #tpu.memory_space<vmem>>, vector<64x128xbf16>
    %cst = arith.constant dense<0.000000e+00> : vector<128x128xf32>
    %2 = tpu.matmul %0, %1, %cst {dimension_numbers = #tpu.dot_dimension_numbers<[1], [0], [0], [1], [0, 0, 1, 1], [], []>} : vector<128x64xbf16>, vector<64x128xbf16>, vector<128x128xf32> -> vector<128x128xf32>
    %c0_3 = arith.constant 0 : index
    %c0_4 = arith.constant 0 : index
    %3 = vector.load %arg3[%c0_3, %c0_4] : memref<1x128xf32, #tpu.memory_space<vmem>>, vector<1x128xf32>
    %4 = vector.broadcast %3 : vector<1x128xf32> to vector<128x128xf32>
    %5 = arith.addf %2, %4 : vector<128x128xf32>
    %c0_5 = arith.constant 0 : index
    %c0_6 = arith.constant 0 : index
    %6 = vector.load %arg4[%c0_5, %c0_6] : memref<128x128xf32, #tpu.memory_space<vmem>>, vector<128x128xf32>
    tpu.vector_store %arg4[%c0_5, %c0_6], %5 {strides = array<i32>} : memref<128x128xf32, #tpu.memory_space<vmem>>, vector<128x128xf32>,
    return
  }
  func.func @transform_0(%arg0: i32) -> (i32, i32) {
    %c0_i32 = arith.constant 0 : i32
    %c0_i32_0 = arith.constant 0 : i32
    return %arg0, %c0_i32 : i32, i32
  }
  func.func @transform_1(%arg0: i32) -> (i32, i32) {
    %c0_i32 = arith.constant 0 : i32
    %c0_i32_0 = arith.constant 0 : i32
    %c0_i32_1 = arith.constant 0 : i32
    return %c0_i32, %c0_i32_0 : i32, i32
  }
  func.func @transform_2(%arg0: i32) -> (i32, i32) {
    %c0_i32 = arith.constant 0 : i32
    %c0_i32_0 = arith.constant 0 : i32
    %c0_i32_1 = arith.constant 0 : i32
    return %c0_i32, %c0_i32_0 : i32, i32
  }
  func.func @transform_3(%arg0: i32) -> (i32, i32) {
    %c0_i32 = arith.constant 0 : i32
    %c0_i32_0 = arith.constant 0 : i32
    return %arg0, %c0_i32 : i32, i32
  }
}

module attributes {stable_mosaic.version = 11 : i64} {
  func.func @kernel(%arg0: i32, %arg1: memref<512x67xbf16, #tpu.memory_space<vmem>>, %arg2: memref<67x64xbf16, #tpu.memory_space<vmem>>, %arg3: memref<1x64xf32, #tpu.memory_space<vmem>>, %arg4: memref<64x64xbf16, #tpu.memory_space<vmem>>, %arg5: memref<1x64xf32, #tpu.memory_space<vmem>>, %arg6: memref<64x128xbf16, #tpu.memory_space<vmem>>, %arg7: memref<1x128xf32, #tpu.memory_space<vmem>>, %arg8: memref<32x128xf32, #tpu.memory_space<vmem>>) attributes {dimension_semantics = [#tpu.dimension_semantics<parallel>], iteration_bounds = array<i64: 2>, scalar_prefetch = 0 : i64, scratch_operands = 0 : i64, tpu.core_type = #tpu.core_type<tc>, window_params = [{transform_indices = @transform_0, window_bounds = array<i64: 512, 67>}, {pipeline_mode = #tpu.pipeline_mode<synchronous>, transform_indices = @transform_1, window_bounds = array<i64: 67, 64>}, {pipeline_mode = #tpu.pipeline_mode<synchronous>, transform_indices = @transform_2, window_bounds = array<i64: 1, 64>}, {pipeline_mode = #tpu.pipeline_mode<synchronous>, transform_indices = @transform_3, window_bounds = array<i64: 64, 64>}, {pipeline_mode = #tpu.pipeline_mode<synchronous>, transform_indices = @transform_4, window_bounds = array<i64: 1, 64>}, {pipeline_mode = #tpu.pipeline_mode<synchronous>, transform_indices = @transform_5, window_bounds = array<i64: 64, 128>}, {pipeline_mode = #tpu.pipeline_mode<synchronous>, transform_indices = @transform_6, window_bounds = array<i64: 1, 128>}, {transform_indices = @transform_7, window_bounds = array<i64: 32, 128>}]} {
    %cst = arith.constant 0.000000e+00 : f32
    %0 = vector.broadcast %cst : f32 to vector<32x128xf32>
    %c0 = arith.constant 0 : index
    %c0_0 = arith.constant 0 : index
    %1 = vector.load %arg1[%c0, %c0_0] : memref<512x67xbf16, #tpu.memory_space<vmem>>, vector<512x67xbf16>
    %c0_1 = arith.constant 0 : index
    %c0_2 = arith.constant 0 : index
    %2 = vector.load %arg2[%c0_1, %c0_2] : memref<67x64xbf16, #tpu.memory_space<vmem>>, vector<67x64xbf16>
    %c0_3 = arith.constant 0 : index
    %c0_4 = arith.constant 0 : index
    %3 = vector.load %arg3[%c0_3, %c0_4] : memref<1x64xf32, #tpu.memory_space<vmem>>, vector<1x64xf32>
    %cst_5 = arith.constant dense<0.000000e+00> : vector<512x64xf32>
    %4 = tpu.matmul %1, %2, %cst_5 {dimension_numbers = #tpu.dot_dimension_numbers<[1], [0], [0], [1], [0, 0, 1, 1], [], []>} : vector<512x67xbf16>, vector<67x64xbf16>, vector<512x64xf32> -> vector<512x64xf32>
    %5 = vector.broadcast %3 : vector<1x64xf32> to vector<512x64xf32>
    %6 = arith.addf %4, %5 : vector<512x64xf32>
    %cst_6 = arith.constant 0.000000e+00 : f32
    %7 = vector.broadcast %cst_6 : f32 to vector<512x64xf32>
    %8 = arith.maximumf %6, %7 : vector<512x64xf32>
    %9 = arith.truncf %8 : vector<512x64xf32> to vector<512x64xbf16>
    %c0_7 = arith.constant 0 : index
    %c0_8 = arith.constant 0 : index
    %10 = vector.load %arg4[%c0_7, %c0_8] : memref<64x64xbf16, #tpu.memory_space<vmem>>, vector<64x64xbf16>
    %c0_9 = arith.constant 0 : index
    %c0_10 = arith.constant 0 : index
    %11 = vector.load %arg5[%c0_9, %c0_10] : memref<1x64xf32, #tpu.memory_space<vmem>>, vector<1x64xf32>
    %cst_11 = arith.constant dense<0.000000e+00> : vector<512x64xf32>
    %12 = tpu.matmul %9, %10, %cst_11 {dimension_numbers = #tpu.dot_dimension_numbers<[1], [0], [0], [1], [0, 0, 1, 1], [], []>} : vector<512x64xbf16>, vector<64x64xbf16>, vector<512x64xf32> -> vector<512x64xf32>
    %13 = vector.broadcast %11 : vector<1x64xf32> to vector<512x64xf32>
    %14 = arith.addf %12, %13 : vector<512x64xf32>
    %cst_12 = arith.constant 0.000000e+00 : f32
    %15 = vector.broadcast %cst_12 : f32 to vector<512x64xf32>
    %16 = arith.maximumf %14, %15 : vector<512x64xf32>
    %c0_13 = arith.constant 0 : index
    %c0_14 = arith.constant 0 : index
    %17 = vector.load %arg6[%c0_13, %c0_14] : memref<64x128xbf16, #tpu.memory_space<vmem>>, vector<64x128xbf16>
    %18 = vector.shape_cast %16 : vector<512x64xf32> to vector<32x16x64xf32>
    %cst_15 = arith.constant dense<0xFF800000> : vector<32x64xf32>
    %19 = vector.multi_reduction <maximumf>, %18, %cst_15 [1] : vector<32x16x64xf32> to vector<32x64xf32>
    %20 = arith.truncf %19 : vector<32x64xf32> to vector<32x64xbf16>
    %cst_16 = arith.constant dense<0.000000e+00> : vector<32x128xf32>
    %21 = tpu.matmul %20, %17, %cst_16 {dimension_numbers = #tpu.dot_dimension_numbers<[1], [0], [0], [1], [0, 0, 1, 1], [], []>} : vector<32x64xbf16>, vector<64x128xbf16>, vector<32x128xf32> -> vector<32x128xf32>
    %22 = arith.addf %0, %21 : vector<32x128xf32>
    %c0_17 = arith.constant 0 : index
    %c0_18 = arith.constant 0 : index
    %23 = vector.load %arg7[%c0_17, %c0_18] : memref<1x128xf32, #tpu.memory_space<vmem>>, vector<1x128xf32>
    %24 = vector.broadcast %23 : vector<1x128xf32> to vector<32x128xf32>
    %25 = arith.addf %22, %24 : vector<32x128xf32>
    %cst_19 = arith.constant 0.000000e+00 : f32
    %26 = vector.broadcast %cst_19 : f32 to vector<32x128xf32>
    %27 = arith.maximumf %25, %26 : vector<32x128xf32>
    %c0_20 = arith.constant 0 : index
    %c0_21 = arith.constant 0 : index
    %28 = vector.load %arg8[%c0_20, %c0_21] : memref<32x128xf32, #tpu.memory_space<vmem>>, vector<32x128xf32>
    tpu.vector_store %arg8[%c0_20, %c0_21], %27 {strides = array<i32>} : memref<32x128xf32, #tpu.memory_space<vmem>>, vector<32x128xf32>,
    return
  }
  func.func @transform_0(%arg0: i32) -> (i32, i32) {
    %c0_i32 = arith.constant 0 : i32
    %c0_i32_0 = arith.constant 0 : i32
    return %arg0, %c0_i32 : i32, i32
  }
  func.func @transform_1(%arg0: i32) -> (i32, i32) {
    %c0_i32 = arith.constant 0 : i32
    %c0_i32_0 = arith.constant 0 : i32
    %c0_i32_1 = arith.constant 0 : i32
    return %c0_i32, %c0_i32_0 : i32, i32
  }
  func.func @transform_2(%arg0: i32) -> (i32, i32) {
    %c0_i32 = arith.constant 0 : i32
    %c0_i32_0 = arith.constant 0 : i32
    %c0_i32_1 = arith.constant 0 : i32
    return %c0_i32, %c0_i32_0 : i32, i32
  }
  func.func @transform_3(%arg0: i32) -> (i32, i32) {
    %c0_i32 = arith.constant 0 : i32
    %c0_i32_0 = arith.constant 0 : i32
    %c0_i32_1 = arith.constant 0 : i32
    return %c0_i32, %c0_i32_0 : i32, i32
  }
  func.func @transform_4(%arg0: i32) -> (i32, i32) {
    %c0_i32 = arith.constant 0 : i32
    %c0_i32_0 = arith.constant 0 : i32
    %c0_i32_1 = arith.constant 0 : i32
    return %c0_i32, %c0_i32_0 : i32, i32
  }
  func.func @transform_5(%arg0: i32) -> (i32, i32) {
    %c0_i32 = arith.constant 0 : i32
    %c0_i32_0 = arith.constant 0 : i32
    %c0_i32_1 = arith.constant 0 : i32
    return %c0_i32, %c0_i32_0 : i32, i32
  }
  func.func @transform_6(%arg0: i32) -> (i32, i32) {
    %c0_i32 = arith.constant 0 : i32
    %c0_i32_0 = arith.constant 0 : i32
    %c0_i32_1 = arith.constant 0 : i32
    return %c0_i32, %c0_i32_0 : i32, i32
  }
  func.func @transform_7(%arg0: i32) -> (i32, i32) {
    %c0_i32 = arith.constant 0 : i32
    %c0_i32_0 = arith.constant 0 : i32
    return %arg0, %c0_i32 : i32, i32
  }
}

</mosaic_0001>

<bundles_post_ra>
// kernel: custom-call.18
= control target key start
LH: loop header
LB: loop body
LE: loop exit
PB: predicated region body
PF: predicated region fallthrough
CT: control target
= control target key end

     0   :  { %s6_s0 = inlined_call_operand.vmem [shape: f32[2,128], index: 0, kind: output, shape index: {}]  }

// kernel: ia_ssd_encoder_forward.4
= control target key start
LH: loop header
LB: loop body
LE: loop exit
PB: predicated region body
PF: predicated region fallthrough
CT: control target
= control target key end

     0   :  { %vm110_vm0 = vcmask 523264   ;;  %s444_s1 = inlined_call_operand.vmem [shape: bf16[64,128], index: 1, kind: input, shape index: {}]   ;;  %s445_s0 = inlined_call_operand.vmem [shape: bf16[128,64], index: 0, kind: input, shape index: {}]   ;;  %s446_s2 = inlined_call_operand.vmem [shape: f32[1,128], index: 2, kind: input, shape index: {}]   ;;  %s447_s3 = inlined_call_operand.vmem [shape: f32[128,128], index: 3, kind: output, shape index: {}]  }
   0x1   :  { %v317_v0 = vld [vmem:[%s444_s1 + $0x18] sm:$0xff]   ;;  %v318_v1 = vld [vmem:[%s444_s1 + $0x10] sm:$0xff]   ;;  %v319_v2 = vld [vmem:[%s444_s1 + $0x8] sm:$0xff]  }
   0x2   :  { %285 = vmatprep.subr.bf16.mxu0 %v317_v0  ;;  %309 = vmatprep.subr.bf16.mxu1 %v317_v0  ;;  %v321_v3 = vld [vmem:[%s445_s0] sm:$0xff]   ;;  %v323_v6 = vld [vmem:[%s445_s0 + $0x8] sm:$0xff]   ;;  %v325_v8 = vld [vmem:[%s445_s0 + $0x10] sm:$0xff]  }
   0x3   :  { %286 = vmatpush3.bf16.msra.mxu0 %v317_v0  ;;  %313 = vmatpush3.bf16.msra.mxu1 %v317_v0  ;;  %v322_v4 = vld [vmem:[%s445_s0 + $0x20] sm:$0xff]   ;;  %v324_v7 = vld [vmem:[%s445_s0 + $0x28] sm:$0xff]   ;;  %v326_v9 = vld [vmem:[%s445_s0 + $0x30] sm:$0xff]  }
   0x4   :  { %287 = vmatprep.subr.bf16.mxu0 %v318_v1  ;;  %310 = vmatprep.subr.bf16.mxu1 %v318_v1  ;;  %v320_v5 = vld [vmem:[%s444_s1] sm:$0xff]   ;;  %v327_v10 = vld [vmem:[%s445_s0 + $0x18] sm:$0xff]  }
   0x5   :  { %293 = vmatprep.mubr.msk.bf16.mxu0 %vm110_vm0, %v321_v3  ;;  %301 = vmatprep.mubr.msk.bf16.mxu1 %vm110_vm0, %v322_v4  ;;  %v328_v11 = vld [vmem:[%s445_s0 + $0x38] sm:$0xff]   ;;  %v252_v12 = vld [vmem:[%s446_s2] ss:$0 sm:$0xff] }
   0x7   :  { %288 = vmatpush3.bf16.msra.mxu0 %v318_v1  ;;  %314 = vmatpush3.bf16.msra.mxu1 %v318_v1 }
   0x8   :  { %289 = vmatprep.subr.bf16.mxu0 %v319_v2  ;;  %311 = vmatprep.subr.bf16.mxu1 %v319_v2 }
   0xb   :  { %290 = vmatpush3.bf16.msra.mxu0 %v319_v2  ;;  %315 = vmatpush3.bf16.msra.mxu1 %v319_v2 }
   0xc   :  { %291 = vmatprep.subr.bf16.mxu0 %v320_v5  ;;  %312 = vmatprep.subr.bf16.mxu1 %v320_v5 }
   0xf   :  { %292 = vmatpush3.bf16.msra.mxu0 %v320_v5  ;;  %316 = vmatpush3.bf16.msra.mxu1 %v320_v5 }
  0x12   :  { %294 = vmatmul.mubr.msk.bf16.vlgmr.msra.gmra.mxu0 %vm110_vm0, %v323_v6  ;;  %302 = vmatmul.mubr.msk.bf16.vlgmr.msra.gmra.mxu1 %vm110_vm0, %v324_v7 }
  0x13   :  { %297 = vmatprep.mubr.msk.bf16.mxu0 %vm110_vm0, %v325_v8  ;;  %305 = vmatprep.mubr.msk.bf16.mxu1 %vm110_vm0, %v326_v9 }
  0x1a   :  { %298 = vmatmul.mubr.msk.bf16.gmra.mxu0 %vm110_vm0, %v327_v10  ;;  %306 = vmatmul.mubr.msk.bf16.gmra.mxu1 %vm110_vm0, %v328_v11 }
  0xd2   :  { %v295_v13 = vpop.f32.mrf.mxu0  ;;  %v303_v14 = vpop.f32.mrf.mxu1 }
  0xd3   :  { %v178_v15 = vadd.f32 %v295_v13, %v252_v12  ;;  %v210_v16 = vadd.f32 %v303_v14, %v252_v12 }
  0xd4   :  { %v169_v17 = vpop.f32.mrf.mxu0  ;;  %v201_v18 = vpop.f32.mrf.mxu1 }
  0xd5   :  { %234 = vst [vmem:[%s447_s3 + $0x10] sm:$0xff] %v178_v15  ;;  %242 = vst [vmem:[%s447_s3 + $0x50] sm:$0xff] %v210_v16  ;;  %v170_v19 = vadd.f32 %v252_v12, %v169_v17  ;;  %v202_v20 = vadd.f32 %v252_v12, %v201_v18 }
  0xd6   :  { %v296_v21 = vpop.f32.mrf.mxu0  ;;  %v304_v22 = vpop.f32.mrf.mxu1 }
  0xd7   :  { %232 = vst [vmem:[%s447_s3] sm:$0xff] %v170_v19  ;;  %240 = vst [vmem:[%s447_s3 + $0x40] sm:$0xff] %v202_v20  ;;  %v181_v23 = vadd.f32 %v296_v21, %v252_v12  ;;  %v213_v24 = vadd.f32 %v304_v22, %v252_v12 }
  0xd8   :  { %v172_v25 = vpop.f32.mrf.mxu0  ;;  %v204_v26 = vpop.f32.mrf.mxu1 }
  0xd9   :  { %235 = vst [vmem:[%s447_s3 + $0x18] sm:$0xff] %v181_v23  ;;  %243 = vst [vmem:[%s447_s3 + $0x58] sm:$0xff] %v213_v24  ;;  %v173_v27 = vadd.f32 %v252_v12, %v172_v25  ;;  %v205_v28 = vadd.f32 %v252_v12, %v204_v26 }
  0xda   :  { %v299_v29 = vpop.f32.mrf.mxu0  ;;  %v307_v30 = vpop.f32.mrf.mxu1 }
  0xdb   :  { %233 = vst [vmem:[%s447_s3 + $0x8] sm:$0xff] %v173_v27  ;;  %241 = vst [vmem:[%s447_s3 + $0x48] sm:$0xff] %v205_v28  ;;  %v194_v31 = vadd.f32 %v299_v29, %v252_v12  ;;  %v226_v32 = vadd.f32 %v307_v30, %v252_v12 }
  0xdc   :  { %v185_v33 = vpop.f32.mrf.mxu0  ;;  %v217_v34 = vpop.f32.mrf.mxu1 }
  0xdd   :  { %238 = vst [vmem:[%s447_s3 + $0x30] sm:$0xff] %v194_v31  ;;  %246 = vst [vmem:[%s447_s3 + $0x70] sm:$0xff] %v226_v32  ;;  %v186_v35 = vadd.f32 %v252_v12, %v185_v33  ;;  %v218_v36 = vadd.f32 %v252_v12, %v217_v34 }
  0xde   :  { %v300_v37 = vpop.f32.mrf.mxu0  ;;  %v308_v38 = vpop.f32.mrf.mxu1 }
  0xdf   :  { %236 = vst [vmem:[%s447_s3 + $0x20] sm:$0xff] %v186_v35  ;;  %244 = vst [vmem:[%s447_s3 + $0x60] sm:$0xff] %v218_v36  ;;  %v197_v39 = vadd.f32 %v300_v37, %v252_v12  ;;  %v229_v40 = vadd.f32 %v308_v38, %v252_v12 }
  0xe0   :  { %v188_v41 = vpop.f32.mrf.mxu0  ;;  %v220_v42 = vpop.f32.mrf.mxu1 }
  0xe1   :  { %239 = vst [vmem:[%s447_s3 + $0x38] sm:$0xff] %v197_v39  ;;  %247 = vst [vmem:[%s447_s3 + $0x78] sm:$0xff] %v229_v40  ;;  %v189_v43 = vadd.f32 %v252_v12, %v188_v41  ;;  %v221_v44 = vadd.f32 %v252_v12, %v220_v42 }
  0xe3   :  { %237 = vst [vmem:[%s447_s3 + $0x28] sm:$0xff] %v189_v43  ;;  %245 = vst [vmem:[%s447_s3 + $0x68] sm:$0xff] %v221_v44 }

// kernel: ia_ssd_encoder_forward.3
= control target key start
LH: loop header
LB: loop body
LE: loop exit
PB: predicated region body
PF: predicated region fallthrough
CT: control target
= control target key end

     0   :  { %s8851_s24 = smov 0   ;;  %s11258_s0 = inlined_call_operand.vmem [shape: bf16[1024,7], index: 0, kind: input, shape index: {}]   ;;  %s11259_s1 = inlined_call_operand.vmem [shape: bf16[7,16], index: 1, kind: input, shape index: {}]   ;;  %s11260_s2 = inlined_call_operand.vmem [shape: f32[1,16], index: 2, kind: input, shape index: {}]   ;;  %s11261_s3 = inlined_call_operand.vmem [shape: bf16[16,16], index: 3, kind: input, shape index: {}]   ;;  %s11262_s4 = inlined_call_operand.vmem [shape: f32[1,16], index: 4, kind: input, shape index: {}]   ;;  %s11263_s5 = inlined_call_operand.vmem [shape: bf16[16,32], index: 5, kind: input, shape index: {}]   ;;  %s11264_s6 = inlined_call_operand.vmem [shape: f32[1,32], index: 6, kind: input, shape index: {}]   ;;  %s11265_s7 = inlined_call_operand.vmem [shape: bf16[32,64], index: 7, kind: input, shape index: {}]   ;;  %s11266_s8 = inlined_call_operand.vmem [shape: bf16[2048,7], index: 8, kind: input, shape index: {}]   ;;  %s11267_s9 = inlined_call_operand.vmem [shape: bf16[7,16], index: 9, kind: input, shape index: {}]   ;;  %s11268_s10 = inlined_call_operand.vmem [shape: f32[1,16], index: 10, kind: input, shape index: {}]   ;;  %s11269_s11 = inlined_call_operand.vmem [shape: bf16[16,16], index: 11, kind: input, shape index: {}]   ;;  %s11270_s12 = inlined_call_operand.vmem [shape: f32[1,16], index: 12, kind: input, shape index: {}]   ;;  %s11271_s13 = inlined_call_operand.vmem [shape: bf16[16,32], index: 13, kind: input, shape index: {}]   ;;  %s11272_s14 = inlined_call_operand.vmem [shape: f32[1,32], index: 14, kind: input, shape index: {}]   ;;  %s11273_s15 = inlined_call_operand.vmem [shape: bf16[32,64], index: 15, kind: input, shape index: {}]   ;;  %s11274_s16 = inlined_call_operand.vmem [shape: f32[1,64], index: 16, kind: input, shape index: {}]   ;;  %s11275_s17 = inlined_call_operand.vmem [shape: f32[128,64], index: 17, kind: output, shape index: {}]  }
   0x1   :  { %11284 = sst [smem:[#allocation58_spill]] %s11258_s0 }
   0x2   :  { %11285 = sst [smem:[#allocation59_spill]] %s11259_s1 }
   0x3 LB: > { %s8857_s25 = sadd.s32 4294967295, %s8758_s24   ;;  %p7295_p0 = scmp.ge.s32.totalorder %s8758_s24, 1  ;;  %s8758_s24 = sphi %s8851_s24, %s27_s24  }
   0x4   : > { %p499_p1 = scmp.lt.s32.totalorder %s8758_s24, 3 }
   0x6   : > { %p500_p2 = pnand %p7295_p0, %p499_p1 }
   0x8   : > { %503 = sbr.rel (%p500_p2) target bundleno = 1560 (0x618), region = 88 }
   0xd   : > { %s11286_s28 = sld [smem:[#allocation59_spill]]  ;;  %vm904_vm0 = vcmask 1042432   ;;  %vm905_vm1 = vcmask 1043456   ;;  %s7296_s29 = sshll.u32 %s8857_s25, 6  ;;  %v8760_v1 = vmov 65535   ;;  %v8660_v4 = vld [vmem:[%s11261_s3] sm:$0xff]  }
   0xe   : > { %v906_v2 = vsel %vm904_vm0, 4294967295, %v8760_v1  ;;  %v2902_v3 = vld [vmem:[%s11267_s9] sm:$0xf]  ;;  %p557_p3 = scmp.lt.s32.totalorder %s7296_s29, 127  ;;  %8629 = vmatprep.subr.bf16.mxu1 %v8660_v4  ;;  %vm807_vm2 = vcmask 56320   ;;  %s11287_s22 = sld [smem:[#allocation58_spill]] }
   0xf   : > { %v907_v5 = vsel %vm905_vm1, %v906_v2, 0  ;;  %8630 = vmatpush3.bf16.msra.mxu1 %v8660_v4  ;;  %v8946_v42 = vld [vmem:[%s11260_s2] ss:$0 sm:$0xff]  ;;  %vm1311_vm3 = vcmask 130048   ;;  %vm2261_vm4 = vcmask 261120   ;;  %vm6758_vm5 = vcmask 1041409  }
  0x10   : > { %v8871_v7 = vand.u32 %v2902_v3, %v907_v5  ;;  %s11445_s29 = smov (!%p557_p3, %s7296_s29), 127  ;;  %vm6760_vm6 = vcmask 1042434   ;;  %vm6762_vm7 = vcmask 1043459   ;;  %vm6764_vm8 = vcmask 1044484  }
  0x11   : > { %s7297_s1 = sshll.u32 %s11445_s29, 2  ;;  %vm6766_vm9 = vcmask 1045509   ;;  %vm6768_vm10 = vcmask 1046534   ;;  %vm6770_vm11 = vcmask 1047559   ;;  %vm7214_vm12 = vcmask 523264  }
  0x12   : > { %8215 = vmatprep.subr.bf16.mxu1 %v8871_v7 }
  0x13   : > { %v639_v0 = vld [vmem:[%s11286_s28] sm:$0xf]  ;;  %s7298_s28 = sshll.u32 %s8857_s25, 7 }
  0x14   : > { %v909_v6 = vand.u32 %v907_v5, %v639_v0  ;;  %s8877_s23 = scalar_lea.vmem %s11287_s22, %s7297_s1  ;;  %p563_p4 = scmp.lt.s32.totalorder %s7298_s28, 255 }
  0x15   : > { %v8640_v8 = vld [vmem:[%s8877_s23] sm:$0xff]   ;;  %v8641_v9 = vld [vmem:[%s8877_s23 + $0x8] sm:$0xff]   ;;  %v8642_v10 = vld [vmem:[%s8877_s23 + $0x10] sm:$0xff]   ;;  %s7300_s1 = sshll.u32 %s8857_s25, 3 }
  0x16   : > { %8017 = vmatprep.subr.bf16.mxu0 %v909_v6  ;;  %8019 = vmatprep.mubr.msk.bf16.mxu0 %vm807_vm2, %v8640_v8  ;;  %v8643_v11 = vld [vmem:[%s8877_s23 + $0x18] sm:$0xff]   ;;  %v8644_v12 = vld [vmem:[%s8877_s23 + $0x20] sm:$0xff]   ;;  %v8645_v13 = vld [vmem:[%s8877_s23 + $0x28] sm:$0xff]   ;;  %s11447_s28 = smov (!%p563_p4, %s7298_s28), 255  ;;  %p569_p5 = scmp.lt.s32.totalorder %s7300_s1, 15 }
  0x17   : > { %8018 = vmatpush3.bf16.msra.mxu0 %v909_v6  ;;  %v8646_v14 = vld [vmem:[%s8877_s23 + $0x30] sm:$0xff]   ;;  %v8647_v15 = vld [vmem:[%s8877_s23 + $0x38] sm:$0xff]   ;;  %v8648_v16 = vld [vmem:[%s8877_s23 + $0x40] sm:$0xff]   ;;  %s7299_s29 = sshll.u32 %s11447_s28, 2 }
  0x18   : > { %8083 = vmatprep.subr.bf16.mxu0 %v8660_v4  ;;  %v8649_v17 = vld [vmem:[%s8877_s23 + $0x48] sm:$0xff]   ;;  %v8650_v18 = vld [vmem:[%s8877_s23 + $0x50] sm:$0xff]   ;;  %v8651_v19 = vld [vmem:[%s8877_s23 + $0x58] sm:$0xff]   ;;  %s8956_s18 = scalar_lea.vmem %s11266_s8, %s7299_s29  ;;  %s11449_s1 = smov (!%p569_p5, %s7300_s1), 15 }
  0x19   : > { %v8652_v20 = vld [vmem:[%s8877_s23 + $0x60] sm:$0xff]   ;;  %v8653_v21 = vld [vmem:[%s8877_s23 + $0x68] sm:$0xff]   ;;  %v8654_v22 = vld [vmem:[%s8877_s23 + $0x70] sm:$0xff]   ;;  %s7301_s22 = sshll.u32 %s11449_s1, 3 }
  0x1a   : > { %8020 = vmatmul.mubr.msk.bf16.vlgmr.msra.gmra.mxu0 %vm807_vm2, %v8641_v9  ;;  %v8655_v23 = vld [vmem:[%s8877_s23 + $0x78] sm:$0xff]   ;;  %v8656_v24 = vld [vmem:[%s8877_s23 + $0x80] sm:$0xff]   ;;  %v8657_v25 = vld [vmem:[%s8877_s23 + $0x88] sm:$0xff]   ;;  %s11237_s25 = scalar_lea.vmem %s11275_s17, %s7301_s22 }
  0x1b   : > { %8023 = vmatprep.mubr.msk.bf16.mxu0 %vm807_vm2, %v8642_v10  ;;  %8084 = vmatpush3.bf16.msra.mxu0 %v8660_v4  ;;  %v8658_v26 = vld [vmem:[%s8877_s23 + $0x90] sm:$0xff]   ;;  %v8659_v27 = vld [vmem:[%s8877_s23 + $0x98] sm:$0xff]   ;;  %v8661_v28 = vld [vmem:[%s8877_s23 + $0xa0] sm:$0xff]  }
  0x1c   : > { %v8662_v29 = vld [vmem:[%s8877_s23 + $0xa8] sm:$0xff]   ;;  %v8663_v30 = vld [vmem:[%s8877_s23 + $0xb0] sm:$0xff]   ;;  %v8664_v31 = vld [vmem:[%s8877_s23 + $0xb8] sm:$0xff]  }
  0x1d   : > { %v8665_v32 = vld [vmem:[%s8877_s23 + $0xc0] sm:$0xff]   ;;  %v8666_v33 = vld [vmem:[%s8877_s23 + $0xc8] sm:$0xff]   ;;  %v8667_v34 = vld [vmem:[%s8877_s23 + $0xd0] sm:$0xff]  }
  0x1e   : > { %v8668_v35 = vld [vmem:[%s8877_s23 + $0xd8] sm:$0xff]   ;;  %v8669_v36 = vld [vmem:[%s8877_s23 + $0xe0] sm:$0xff]   ;;  %v8670_v37 = vld [vmem:[%s8877_s23 + $0xe8] sm:$0xff]  }
  0x1f   : > { %v8671_v38 = vld [vmem:[%s8877_s23 + $0xf0] sm:$0xff]   ;;  %v8672_v39 = vld [vmem:[%s8877_s23 + $0xf8] sm:$0xff]  }
  0x22   : > { %8024 = vmatmul.mubr.msk.bf16.gmra.mxu0 %vm807_vm2, %v8643_v11 }
  0x23   : > { %8027 = vmatprep.mubr.msk.bf16.mxu0 %vm807_vm2, %v8644_v12 }
  0x2a   : > { %8028 = vmatmul.mubr.msk.bf16.gmra.mxu0 %vm807_vm2, %v8645_v13 }
  0x2b   : > { %8031 = vmatprep.mubr.msk.bf16.mxu0 %vm807_vm2, %v8646_v14 }
  0x32   : > { %8032 = vmatmul.mubr.msk.bf16.gmra.mxu0 %vm807_vm2, %v8647_v15 }
  0x33   : > { %8035 = vmatprep.mubr.msk.bf16.mxu0 %vm807_vm2, %v8648_v16 }
  0x3a   : > { %8036 = vmatmul.mubr.msk.bf16.gmra.mxu0 %vm807_vm2, %v8649_v17 }
  0x3b   : > { %8039 = vmatprep.mubr.msk.bf16.mxu0 %vm807_vm2, %v8650_v18 }
  0x42   : > { %8040 = vmatmul.mubr.msk.bf16.gmra.mxu0 %vm807_vm2, %v8651_v19 }
  0x43   : > { %8043 = vmatprep.mubr.msk.bf16.mxu0 %vm807_vm2, %v8652_v20 }
  0x4a   : > { %8044 = vmatmul.mubr.msk.bf16.gmra.mxu0 %vm807_vm2, %v8653_v21 }
  0x4b   : > { %8047 = vmatprep.mubr.msk.bf16.mxu0 %vm807_vm2, %v8654_v22 }
  0x52   : > { %8048 = vmatmul.mubr.msk.bf16.gmra.mxu0 %vm807_vm2, %v8655_v23 }
  0x53   : > { %8051 = vmatprep.mubr.msk.bf16.mxu0 %vm807_vm2, %v8656_v24 }
  0x5a   : > { %8052 = vmatmul.mubr.msk.bf16.gmra.mxu0 %vm807_vm2, %v8657_v25 }
  0x5b   : > { %8055 = vmatprep.mubr.msk.bf16.mxu0 %vm807_vm2, %v8658_v26 }
  0x62   : > { %8056 = vmatmul.mubr.msk.bf16.gmra.mxu0 %vm807_vm2, %v8659_v27 }
  0x63   : > { %8059 = vmatprep.mubr.msk.bf16.mxu0 %vm807_vm2, %v8661_v28 }
  0x6a   : > { %8060 = vmatmul.mubr.msk.bf16.gmra.mxu0 %vm807_vm2, %v8662_v29 }
  0x6b   : > { %8063 = vmatprep.mubr.msk.bf16.mxu0 %vm807_vm2, %v8663_v30 }
  0x72   : > { %8064 = vmatmul.mubr.msk.bf16.gmra.mxu0 %vm807_vm2, %v8664_v31 }
  0x73   : > { %8067 = vmatprep.mubr.msk.bf16.mxu0 %vm807_vm2, %v8665_v32 }
  0x7a   : > { %8068 = vmatmul.mubr.msk.bf16.gmra.mxu0 %vm807_vm2, %v8666_v33 }
  0x7b   : > { %8071 = vmatprep.mubr.msk.bf16.mxu0 %vm807_vm2, %v8667_v34 }
  0x82   : > { %8072 = vmatmul.mubr.msk.bf16.gmra.mxu0 %vm807_vm2, %v8668_v35 }
  0x83   : > { %8075 = vmatprep.mubr.msk.bf16.mxu0 %vm807_vm2, %v8669_v36 }
  0x8a   : > { %8076 = vmatmul.mubr.msk.bf16.gmra.mxu0 %vm807_vm2, %v8670_v37 }
  0x8b   : > { %8079 = vmatprep.mubr.msk.bf16.mxu0 %vm807_vm2, %v8671_v38 }
  0x92   : > { %8080 = vmatmul.mubr.msk.bf16.gmra.mxu0 %vm807_vm2, %v8672_v39 }
  0xda   : > { %v8021_v40 = vpop.f32.mrf.mxu0 }
  0xdb   : > { %v954_v46 = vadd.f32 %v8021_v40, %v8946_v42 }
  0xdc   : > { %v945_v41 = vpop.f32.mrf.mxu0 }
  0xdd   : > { %v946_v44 = vadd.f32 %v8946_v42, %v945_v41  ;;  %v1202_v53 = vmax.f32 %v954_v46, 0.0  ;;  %v8681_v41 = vld [vmem:[%s11263_s5] sm:$0xff]  }
  0xde   : > { %v8022_v43 = vpop.f32.mrf.mxu0  ;;  %8149 = vmatprep.subr.bf16.mxu0 %v8681_v41 }
  0xdf   : > { %v957_v45 = vadd.f32 %v8022_v43, %v8946_v42  ;;  %v1200_v51 = vmax.f32 %v946_v44, 0.0 }
  0xe0   : > { %v948_v47 = vpop.f32.mrf.mxu0 }
  0xe1   : > { %v949_v48 = vadd.f32 %v8946_v42, %v948_v47  ;;  %v1203_v49 = vmax.f32 %v957_v45, 0.0 }
  0xe2   : > { %v8025_v50 = vpop.f32.mrf.mxu0 }
  0xe3   : > { %v1201_v52 = vmax.f32 %v949_v48, 0.0  ;;  %v970_v56 = vadd.f32 %v8025_v50, %v8946_v42  ;;  %v1265_v57 = vpack.c.bf16 %v1203_v49, %v1202_v53 }
  0xe4   : > { %v961_v54 = vpop.f32.mrf.mxu0 }
  0xe5   : > { %v1264_v55 = vpack.c.bf16 %v1201_v52, %v1200_v51  ;;  %v962_v59 = vadd.f32 %v8946_v42, %v961_v54  ;;  %v1206_v62 = vmax.f32 %v970_v56, 0.0 }
  0xe6   : > { %v8026_v58 = vpop.f32.mrf.mxu0 }
  0xe7   : > { %v973_v60 = vadd.f32 %v8026_v58, %v8946_v42  ;;  %8085 = vmatprep.mubr.msk.bf16.mxu0 %vm1311_vm3, %v1264_v55  ;;  %v1204_v2 = vmax.f32 %v962_v59, 0.0 }
  0xe8   : > { %v964_v61 = vpop.f32.mrf.mxu0  ;;  %8086 = vmatmul.mubr.msk.bf16.vlgmr.msra.gmra.mxu0 %vm1311_vm3, %v1265_v57 }
  0xe9   : > { %v1207_v63 = vmax.f32 %v973_v60, 0.0  ;;  %v965_v0 = vadd.f32 %v8946_v42, %v964_v61  ;;  %8150 = vmatpush3.bf16.msra.mxu0 %v8681_v41 }
  0xea   : > { %v8029_v1 = vpop.f32.mrf.mxu0 }
  0xeb   : > { %v1205_v3 = vmax.f32 %v965_v0, 0.0  ;;  %v986_v6 = vadd.f32 %v8029_v1, %v8946_v42  ;;  %v1267_v8 = vpack.c.bf16 %v1207_v63, %v1206_v62 }
  0xec   : > { %v977_v4 = vpop.f32.mrf.mxu0 }
  0xed   : > { %v1266_v5 = vpack.c.bf16 %v1205_v3, %v1204_v2  ;;  %v978_v10 = vadd.f32 %v8946_v42, %v977_v4  ;;  %v1210_v13 = vmax.f32 %v986_v6, 0.0 }
  0xee   : > { %v8030_v9 = vpop.f32.mrf.mxu0 }
  0xef   : > { %v989_v11 = vadd.f32 %v8030_v9, %v8946_v42  ;;  %8089 = vmatprep.mubr.msk.bf16.mxu0 %vm1311_vm3, %v1266_v5  ;;  %v1208_v17 = vmax.f32 %v978_v10, 0.0 }
  0xf0   : > { %v980_v12 = vpop.f32.mrf.mxu0  ;;  %8090 = vmatmul.mubr.msk.bf16.gmra.mxu0 %vm1311_vm3, %v1267_v8 }
  0xf1   : > { %v1211_v14 = vmax.f32 %v989_v11, 0.0  ;;  %v981_v15 = vadd.f32 %v8946_v42, %v980_v12 }
  0xf2   : > { %v8033_v16 = vpop.f32.mrf.mxu0 }
  0xf3   : > { %v1209_v18 = vmax.f32 %v981_v15, 0.0  ;;  %v1002_v21 = vadd.f32 %v8033_v16, %v8946_v42  ;;  %v1269_v22 = vpack.c.bf16 %v1211_v14, %v1210_v13 }
  0xf4   : > { %v993_v19 = vpop.f32.mrf.mxu0 }
  0xf5   : > { %v1268_v20 = vpack.c.bf16 %v1209_v18, %v1208_v17  ;;  %v994_v24 = vadd.f32 %v8946_v42, %v993_v19  ;;  %v1214_v27 = vmax.f32 %v1002_v21, 0.0 }
  0xf6   : > { %v8034_v23 = vpop.f32.mrf.mxu0 }
  0xf7   : > { %v1005_v25 = vadd.f32 %v8034_v23, %v8946_v42  ;;  %8093 = vmatprep.mubr.msk.bf16.mxu0 %vm1311_vm3, %v1268_v20  ;;  %v1212_v31 = vmax.f32 %v994_v24, 0.0 }
  0xf8   : > { %v996_v26 = vpop.f32.mrf.mxu0  ;;  %8094 = vmatmul.mubr.msk.bf16.gmra.mxu0 %vm1311_vm3, %v1269_v22 }
  0xf9   : > { %v1215_v28 = vmax.f32 %v1005_v25, 0.0  ;;  %v997_v29 = vadd.f32 %v8946_v42, %v996_v26 }
  0xfa   : > { %v8037_v30 = vpop.f32.mrf.mxu0 }
  0xfb   : > { %v1213_v32 = vmax.f32 %v997_v29, 0.0  ;;  %v1018_v35 = vadd.f32 %v8037_v30, %v8946_v42  ;;  %v1271_v36 = vpack.c.bf16 %v1215_v28, %v1214_v27 }
  0xfc   : > { %v1009_v33 = vpop.f32.mrf.mxu0 }
  0xfd   : > { %v1270_v34 = vpack.c.bf16 %v1213_v32, %v1212_v31  ;;  %v1010_v38 = vadd.f32 %v8946_v42, %v1009_v33  ;;  %v1218_v43 = vmax.f32 %v1018_v35, 0.0 }
  0xfe   : > { %v8038_v37 = vpop.f32.mrf.mxu0 }
  0xff   : > { %v1021_v39 = vadd.f32 %v8038_v37, %v8946_v42  ;;  %8097 = vmatprep.mubr.msk.bf16.mxu0 %vm1311_vm3, %v1270_v34  ;;  %v1216_v47 = vmax.f32 %v1010_v38, 0.0 }
 0x100   : > { %v1012_v40 = vpop.f32.mrf.mxu0  ;;  %8098 = vmatmul.mubr.msk.bf16.gmra.mxu0 %vm1311_vm3, %v1271_v36 }
 0x101   : > { %v1219_v44 = vmax.f32 %v1021_v39, 0.0  ;;  %v1013_v45 = vadd.f32 %v8946_v42, %v1012_v40 }
 0x102   : > { %v8041_v46 = vpop.f32.mrf.mxu0 }
 0x103   : > { %v1217_v48 = vmax.f32 %v1013_v45, 0.0  ;;  %v1034_v51 = vadd.f32 %v8041_v46, %v8946_v42  ;;  %v1273_v52 = vpack.c.bf16 %v1219_v44, %v1218_v43 }
 0x104   : > { %v1025_v49 = vpop.f32.mrf.mxu0 }
 0x105   : > { %v1272_v50 = vpack.c.bf16 %v1217_v48, %v1216_v47  ;;  %v1026_v54 = vadd.f32 %v8946_v42, %v1025_v49  ;;  %v1222_v57 = vmax.f32 %v1034_v51, 0.0 }
 0x106   : > { %v8042_v53 = vpop.f32.mrf.mxu0 }
 0x107   : > { %v1037_v55 = vadd.f32 %v8042_v53, %v8946_v42  ;;  %8101 = vmatprep.mubr.msk.bf16.mxu0 %vm1311_vm3, %v1272_v50  ;;  %v1220_v61 = vmax.f32 %v1026_v54, 0.0 }
 0x108   : > { %v1028_v56 = vpop.f32.mrf.mxu0  ;;  %8102 = vmatmul.mubr.msk.bf16.gmra.mxu0 %vm1311_vm3, %v1273_v52 }
 0x109   : > { %v1223_v58 = vmax.f32 %v1037_v55, 0.0  ;;  %v1029_v59 = vadd.f32 %v8946_v42, %v1028_v56 }
 0x10a   : > { %v8045_v60 = vpop.f32.mrf.mxu0 }
 0x10b   : > { %v1221_v62 = vmax.f32 %v1029_v59, 0.0  ;;  %v1050_v1 = vadd.f32 %v8045_v60, %v8946_v42  ;;  %v1275_v2 = vpack.c.bf16 %v1223_v58, %v1222_v57 }
 0x10c   : > { %v1041_v63 = vpop.f32.mrf.mxu0 }
 0x10d   : > { %v1274_v0 = vpack.c.bf16 %v1221_v62, %v1220_v61  ;;  %v1042_v4 = vadd.f32 %v8946_v42, %v1041_v63  ;;  %v1226_v8 = vmax.f32 %v1050_v1, 0.0 }
 0x10e   : > { %v8046_v3 = vpop.f32.mrf.mxu0 }
 0x10f   : > { %v1053_v5 = vadd.f32 %v8046_v3, %v8946_v42  ;;  %8105 = vmatprep.mubr.msk.bf16.mxu0 %vm1311_vm3, %v1274_v0  ;;  %v1224_v12 = vmax.f32 %v1042_v4, 0.0 }
 0x110   : > { %v1044_v6 = vpop.f32.mrf.mxu0  ;;  %8106 = vmatmul.mubr.msk.bf16.gmra.mxu0 %vm1311_vm3, %v1275_v2 }
 0x111   : > { %v1227_v9 = vmax.f32 %v1053_v5, 0.0  ;;  %v1045_v10 = vadd.f32 %v8946_v42, %v1044_v6 }
 0x112   : > { %v8049_v11 = vpop.f32.mrf.mxu0 }
 0x113   : > { %v1225_v13 = vmax.f32 %v1045_v10, 0.0  ;;  %v1277_v16 = vpack.c.bf16 %v1227_v9, %v1226_v8  ;;  %v1066_v20 = vadd.f32 %v8049_v11, %v8946_v42 }
 0x114   : > { %v1057_v14 = vpop.f32.mrf.mxu0 }
 0x115   : > { %v1276_v15 = vpack.c.bf16 %v1225_v13, %v1224_v12  ;;  %v1058_v18 = vadd.f32 %v8946_v42, %v1057_v14  ;;  %v1230_v27 = vmax.f32 %v1066_v20, 0.0 }
 0x116   : > { %v8050_v17 = vpop.f32.mrf.mxu0 }
 0x117   : > { %v1069_v19 = vadd.f32 %v8050_v17, %v8946_v42  ;;  %8109 = vmatprep.mubr.msk.bf16.mxu1 %vm1311_vm3, %v1276_v15  ;;  %v1228_v25 = vmax.f32 %v1058_v18, 0.0 }
 0x118   : > { %v1060_v21 = vpop.f32.mrf.mxu0  ;;  %8110 = vmatmul.mubr.msk.bf16.vlgmr.msra.gmra.mxu1 %vm1311_vm3, %v1277_v16  ;;  %v9031_v16 = vld [vmem:[%s11269_s11] sm:$0xff]  }
 0x119   : > { %v1231_v22 = vmax.f32 %v1069_v19, 0.0  ;;  %v1061_v23 = vadd.f32 %v8946_v42, %v1060_v21  ;;  %8216 = vmatpush3.bf16.msra.mxu1 %v8871_v7  ;;  %8345 = vmatprep.subr.bf16.mxu0 %v9031_v16 }
 0x11a   : > { %v8053_v24 = vpop.f32.mrf.mxu0 }
 0x11b   : > { %v1229_v26 = vmax.f32 %v1061_v23, 0.0  ;;  %v1279_v30 = vpack.c.bf16 %v1231_v22, %v1230_v27  ;;  %v1082_v34 = vadd.f32 %v8053_v24, %v8946_v42 }
 0x11c   : > { %v1073_v28 = vpop.f32.mrf.mxu0 }
 0x11d   : > { %v1278_v29 = vpack.c.bf16 %v1229_v26, %v1228_v25  ;;  %v1074_v32 = vadd.f32 %v8946_v42, %v1073_v28  ;;  %v1234_v40 = vmax.f32 %v1082_v34, 0.0 }
 0x11e   : > { %v8054_v31 = vpop.f32.mrf.mxu0 }
 0x11f   : > { %v1085_v33 = vadd.f32 %v8054_v31, %v8946_v42  ;;  %8113 = vmatprep.mubr.msk.bf16.mxu1 %vm1311_vm3, %v1278_v29  ;;  %v1232_v38 = vmax.f32 %v1074_v32, 0.0 }
 0x120   : > { %v1076_v35 = vpop.f32.mrf.mxu0  ;;  %8114 = vmatmul.mubr.msk.bf16.gmra.mxu1 %vm1311_vm3, %v1279_v30 }
 0x121   : > { %v1077_v7 = vadd.f32 %v8946_v42, %v1076_v35  ;;  %v1235_v36 = vmax.f32 %v1085_v33, 0.0 }
 0x122   : > { %v8057_v37 = vpop.f32.mrf.mxu0 }
 0x123   : > { %v1233_v39 = vmax.f32 %v1077_v7, 0.0  ;;  %v1281_v44 = vpack.c.bf16 %v1235_v36, %v1234_v40  ;;  %v1098_v48 = vadd.f32 %v8057_v37, %v8946_v42 }
 0x124   : > { %v1089_v41 = vpop.f32.mrf.mxu0 }
 0x125   : > { %v1280_v43 = vpack.c.bf16 %v1233_v39, %v1232_v38  ;;  %v1090_v46 = vadd.f32 %v8946_v42, %v1089_v41  ;;  %v1238_v55 = vmax.f32 %v1098_v48, 0.0 }
 0x126   : > { %v8058_v45 = vpop.f32.mrf.mxu0 }
 0x127   : > { %v1101_v47 = vadd.f32 %v8058_v45, %v8946_v42  ;;  %8117 = vmatprep.mubr.msk.bf16.mxu1 %vm1311_vm3, %v1280_v43  ;;  %v1236_v53 = vmax.f32 %v1090_v46, 0.0 }
 0x128   : > { %v1092_v49 = vpop.f32.mrf.mxu0  ;;  %8118 = vmatmul.mubr.msk.bf16.gmra.mxu1 %vm1311_vm3, %v1281_v44 }
 0x129   : > { %v1093_v50 = vadd.f32 %v8946_v42, %v1092_v49  ;;  %v1239_v51 = vmax.f32 %v1101_v47, 0.0 }
 0x12a   : > { %v8061_v52 = vpop.f32.mrf.mxu0 }
 0x12b   : > { %v1237_v54 = vmax.f32 %v1093_v50, 0.0  ;;  %v1283_v58 = vpack.c.bf16 %v1239_v51, %v1238_v55  ;;  %v1114_v62 = vadd.f32 %v8061_v52, %v8946_v42 }
 0x12c   : > { %v1105_v56 = vpop.f32.mrf.mxu0 }
 0x12d   : > { %v1282_v57 = vpack.c.bf16 %v1237_v54, %v1236_v53  ;;  %v1106_v60 = vadd.f32 %v8946_v42, %v1105_v56  ;;  %v1242_v5 = vmax.f32 %v1114_v62, 0.0 }
 0x12e   : > { %v8062_v59 = vpop.f32.mrf.mxu0 }
 0x12f   : > { %v1117_v61 = vadd.f32 %v8062_v59, %v8946_v42  ;;  %8121 = vmatprep.mubr.msk.bf16.mxu1 %vm1311_vm3, %v1282_v57  ;;  %v1240_v3 = vmax.f32 %v1106_v60, 0.0 }
 0x130   : > { %v1108_v63 = vpop.f32.mrf.mxu0  ;;  %8122 = vmatmul.mubr.msk.bf16.gmra.mxu1 %vm1311_vm3, %v1283_v58 }
 0x131   : > { %v1109_v0 = vadd.f32 %v8946_v42, %v1108_v63  ;;  %v1243_v1 = vmax.f32 %v1117_v61, 0.0 }
 0x132   : > { %v8065_v2 = vpop.f32.mrf.mxu0 }
 0x133   : > { %v1241_v4 = vmax.f32 %v1109_v0, 0.0  ;;  %v1285_v9 = vpack.c.bf16 %v1243_v1, %v1242_v5  ;;  %v1130_v13 = vadd.f32 %v8065_v2, %v8946_v42 }
 0x134   : > { %v1121_v6 = vpop.f32.mrf.mxu0 }
 0x135   : > { %v1284_v8 = vpack.c.bf16 %v1241_v4, %v1240_v3  ;;  %v1122_v11 = vadd.f32 %v8946_v42, %v1121_v6  ;;  %v1246_v21 = vmax.f32 %v1130_v13, 0.0 }
 0x136   : > { %v8066_v10 = vpop.f32.mrf.mxu0 }
 0x137   : > { %v1133_v12 = vadd.f32 %v8066_v10, %v8946_v42  ;;  %8125 = vmatprep.mubr.msk.bf16.mxu1 %vm1311_vm3, %v1284_v8  ;;  %v1244_v19 = vmax.f32 %v1122_v11, 0.0 }
 0x138   : > { %v1124_v14 = vpop.f32.mrf.mxu0  ;;  %8126 = vmatmul.mubr.msk.bf16.gmra.mxu1 %vm1311_vm3, %v1285_v9 }
 0x139   : > { %v1125_v15 = vadd.f32 %v8946_v42, %v1124_v14  ;;  %v1247_v17 = vmax.f32 %v1133_v12, 0.0 }
 0x13a   : > { %v8069_v18 = vpop.f32.mrf.mxu0 }
 0x13b   : > { %v1245_v20 = vmax.f32 %v1125_v15, 0.0  ;;  %v1287_v24 = vpack.c.bf16 %v1247_v17, %v1246_v21  ;;  %v1146_v28 = vadd.f32 %v8069_v18, %v8946_v42  ;;  %v8673_v15 = vld [vmem:[%s8956_s18] sm:$0xff]   ;;  %v8674_v18 = vld [vmem:[%s8956_s18 + $0x8] sm:$0xff]  }
 0x13c   : > { %v1137_v22 = vpop.f32.mrf.mxu0  ;;  %v8678_v21 = vld [vmem:[%s8956_s18 + $0x28] sm:$0xff]  }
 0x13d   : > { %v1286_v23 = vpack.c.bf16 %v1245_v20, %v1244_v19  ;;  %v1138_v26 = vadd.f32 %v8946_v42, %v1137_v22  ;;  %v1250_v35 = vmax.f32 %v1146_v28, 0.0  ;;  %v8676_v19 = vld [vmem:[%s8956_s18 + $0x18] sm:$0xff]   ;;  %v8677_v20 = vld [vmem:[%s8956_s18 + $0x20] sm:$0xff]   ;;  %v8679_v22 = vld [vmem:[%s8956_s18 + $0x30] sm:$0xff]  }
 0x13e   : > { %v8070_v25 = vpop.f32.mrf.mxu0  ;;  %v8685_v28 = vld [vmem:[%s8956_s18 + $0x58] sm:$0xff]  }
 0x13f   : > { %v1149_v27 = vadd.f32 %v8070_v25, %v8946_v42  ;;  %8129 = vmatprep.mubr.msk.bf16.mxu1 %vm1311_vm3, %v1286_v23  ;;  %v1248_v33 = vmax.f32 %v1138_v26, 0.0  ;;  %v8680_v23 = vld [vmem:[%s8956_s18 + $0x38] sm:$0xff]   ;;  %v8683_v25 = vld [vmem:[%s8956_s18 + $0x48] sm:$0xff]   ;;  %v8684_v26 = vld [vmem:[%s8956_s18 + $0x50] sm:$0xff]  }
 0x140   : > { %v1140_v29 = vpop.f32.mrf.mxu0  ;;  %8130 = vmatmul.mubr.msk.bf16.gmra.mxu1 %vm1311_vm3, %v1287_v24  ;;  %v8682_v24 = vld [vmem:[%s8956_s18 + $0x40] sm:$0xff]  }
 0x141   : > { %v1141_v30 = vadd.f32 %v8946_v42, %v1140_v29  ;;  %v1251_v31 = vmax.f32 %v1149_v27, 0.0  ;;  %v8715_v27 = vld [vmem:[%s11271_s13] sm:$0xff]  }
 0x142   : > { %v8073_v32 = vpop.f32.mrf.mxu0  ;;  %8475 = vmatprep.subr.bf16.mxu1 %v8715_v27  ;;  %v8686_v29 = vld [vmem:[%s8956_s18 + $0x60] sm:$0xff]  }
 0x143   : > { %v1249_v34 = vmax.f32 %v1141_v30, 0.0  ;;  %v1289_v37 = vpack.c.bf16 %v1251_v31, %v1250_v35  ;;  %v1162_v41 = vadd.f32 %v8073_v32, %v8946_v42  ;;  %v8687_v30 = vld [vmem:[%s8956_s18 + $0x68] sm:$0xff]   ;;  %v8688_v31 = vld [vmem:[%s8956_s18 + $0x70] sm:$0xff]   ;;  %v8689_v32 = vld [vmem:[%s8956_s18 + $0x78] sm:$0xff]  }
 0x144   : > { %v1153_v7 = vpop.f32.mrf.mxu0  ;;  %v8692_v35 = vld [vmem:[%s8956_s18 + $0x90] sm:$0xff]  }
 0x145   : > { %v1288_v36 = vpack.c.bf16 %v1249_v34, %v1248_v33  ;;  %v1154_v39 = vadd.f32 %v8946_v42, %v1153_v7  ;;  %v1254_v49 = vmax.f32 %v1162_v41, 0.0  ;;  %v8690_v33 = vld [vmem:[%s8956_s18 + $0x80] sm:$0xff]   ;;  %v8691_v34 = vld [vmem:[%s8956_s18 + $0x88] sm:$0xff]  }
 0x146   : > { %v8074_v38 = vpop.f32.mrf.mxu0 }
 0x147   : > { %v1165_v40 = vadd.f32 %v8074_v38, %v8946_v42  ;;  %8133 = vmatprep.mubr.msk.bf16.mxu1 %vm1311_vm3, %v1288_v36  ;;  %v1252_v47 = vmax.f32 %v1154_v39, 0.0  ;;  %v8693_v39 = vld [vmem:[%s8956_s18 + $0x98] sm:$0xff]  }
 0x148   : > { %v1156_v43 = vpop.f32.mrf.mxu0  ;;  %8134 = vmatmul.mubr.msk.bf16.gmra.mxu1 %vm1311_vm3, %v1289_v37  ;;  %v9104_v37 = vld [vmem:[%s11262_s4] ss:$0 sm:$0xff] }
 0x149   : > { %v1157_v44 = vadd.f32 %v8946_v42, %v1156_v43  ;;  %v1255_v45 = vmax.f32 %v1165_v40, 0.0  ;;  %v8695_v43 = vld [vmem:[%s8956_s18 + $0xa0] sm:$0xff]  }
 0x14a   : > { %v8077_v46 = vpop.f32.mrf.mxu0 }
 0x14b   : > { %v1253_v48 = vmax.f32 %v1157_v44, 0.0  ;;  %v1291_v52 = vpack.c.bf16 %v1255_v45, %v1254_v49  ;;  %v1178_v56 = vadd.f32 %v8077_v46, %v8946_v42 }
 0x14c   : > { %v1169_v50 = vpop.f32.mrf.mxu0 }
 0x14d   : > { %v1290_v51 = vpack.c.bf16 %v1253_v48, %v1252_v47  ;;  %v1170_v54 = vadd.f32 %v8946_v42, %v1169_v50  ;;  %v1258_v63 = vmax.f32 %v1178_v56, 0.0  ;;  %v8696_v56 = vld [vmem:[%s8956_s18 + $0xa8] sm:$0xff]  }
 0x14e   : > { %v8078_v53 = vpop.f32.mrf.mxu0 }
 0x14f   : > { %v1181_v55 = vadd.f32 %v8078_v53, %v8946_v42  ;;  %8137 = vmatprep.mubr.msk.bf16.mxu1 %vm1311_vm3, %v1290_v51  ;;  %v1256_v61 = vmax.f32 %v1170_v54, 0.0 }
 0x150   : > { %v1172_v57 = vpop.f32.mrf.mxu0  ;;  %8138 = vmatmul.mubr.msk.bf16.gmra.mxu1 %vm1311_vm3, %v1291_v52 }
 0x151   : > { %v1173_v58 = vadd.f32 %v8946_v42, %v1172_v57  ;;  %v1259_v59 = vmax.f32 %v1181_v55, 0.0 }
 0x152   : > { %v8081_v60 = vpop.f32.mrf.mxu0 }
 0x153   : > { %v1257_v62 = vmax.f32 %v1173_v58, 0.0  ;;  %v1293_v2 = vpack.c.bf16 %v1259_v59, %v1258_v63  ;;  %v1194_v6 = vadd.f32 %v8081_v60, %v8946_v42  ;;  %v8697_v59 = vld [vmem:[%s8956_s18 + $0xb0] sm:$0xff]  }
 0x154   : > { %v1185_v0 = vpop.f32.mrf.mxu0 }
 0x155   : > { %v1292_v1 = vpack.c.bf16 %v1257_v62, %v1256_v61  ;;  %v1186_v4 = vadd.f32 %v8946_v42, %v1185_v0  ;;  %v1262_v13 = vmax.f32 %v1194_v6, 0.0 }
 0x156   : > { %v8082_v3 = vpop.f32.mrf.mxu0 }
 0x157   : > { %v1197_v5 = vadd.f32 %v8082_v3, %v8946_v42  ;;  %8141 = vmatprep.mubr.msk.bf16.mxu1 %vm1311_vm3, %v1292_v1  ;;  %v1260_v11 = vmax.f32 %v1186_v4, 0.0 }
 0x158   : > { %v1188_v8 = vpop.f32.mrf.mxu0  ;;  %8142 = vmatmul.mubr.msk.bf16.gmra.mxu1 %vm1311_vm3, %v1293_v2 }
 0x159   : > { %v1189_v9 = vadd.f32 %v8946_v42, %v1188_v8  ;;  %v1263_v10 = vmax.f32 %v1197_v5, 0.0  ;;  %v8675_v42 = vld [vmem:[%s8956_s18 + $0x10] sm:$0xff]  }
 0x15b   : > { %v1261_v12 = vmax.f32 %v1189_v9, 0.0  ;;  %v1295_v17 = vpack.c.bf16 %v1263_v10, %v1262_v13  ;;  %v8698_v9 = vld [vmem:[%s8956_s18 + $0xb8] sm:$0xff]  }
 0x15d   : > { %v1294_v14 = vpack.c.bf16 %v1261_v12, %v1260_v11 }
 0x15f   : > { %8145 = vmatprep.mubr.msk.bf16.mxu1 %vm1311_vm3, %v1294_v14 }
 0x160   : > { %8146 = vmatmul.mubr.msk.bf16.gmra.mxu1 %vm1311_vm3, %v1295_v17 }
 0x161   : > { %8217 = vmatprep.mubr.msk.bf16.mxu1 %vm807_vm2, %v8673_v15 }
 0x168   : > { %8218 = vmatmul.mubr.msk.bf16.vlgmr.msra.gmra.mxu1 %vm807_vm2, %v8674_v18 }
 0x169   : > { %8221 = vmatprep.mubr.msk.bf16.mxu1 %vm807_vm2, %v8675_v42  ;;  %8476 = vmatpush3.bf16.msra.mxu1 %v8715_v27  ;;  %v8701_v27 = vld [vmem:[%s8956_s18 + $0xd0] sm:$0xff]  }
 0x170   : > { %8222 = vmatmul.mubr.msk.bf16.gmra.mxu1 %vm807_vm2, %v8676_v19 }
 0x171   : > { %8225 = vmatprep.mubr.msk.bf16.mxu1 %vm807_vm2, %v8677_v20 }
 0x178   : > { %8226 = vmatmul.mubr.msk.bf16.gmra.mxu1 %vm807_vm2, %v8678_v21 }
 0x179   : > { %8229 = vmatprep.mubr.msk.bf16.mxu1 %vm807_vm2, %v8679_v22 }
 0x180   : > { %8230 = vmatmul.mubr.msk.bf16.gmra.mxu1 %vm807_vm2, %v8680_v23 }
 0x181   : > { %8233 = vmatprep.mubr.msk.bf16.mxu1 %vm807_vm2, %v8682_v24  ;;  %v8700_v24 = vld [vmem:[%s8956_s18 + $0xc8] sm:$0xff]  }
 0x188   : > { %8234 = vmatmul.mubr.msk.bf16.gmra.mxu1 %vm807_vm2, %v8683_v25 }
 0x189   : > { %8237 = vmatprep.mubr.msk.bf16.mxu1 %vm807_vm2, %v8684_v26 }
 0x190   : > { %8238 = vmatmul.mubr.msk.bf16.gmra.mxu1 %vm807_vm2, %v8685_v28 }
 0x191   : > { %8241 = vmatprep.mubr.msk.bf16.mxu1 %vm807_vm2, %v8686_v29 }
 0x198   : > { %8242 = vmatmul.mubr.msk.bf16.gmra.mxu1 %vm807_vm2, %v8687_v30 }
 0x199   : > { %8245 = vmatprep.mubr.msk.bf16.mxu1 %vm807_vm2, %v8688_v31 }
 0x1a0   : > { %8246 = vmatmul.mubr.msk.bf16.gmra.mxu1 %vm807_vm2, %v8689_v32 }
 0x1a1   : > { %8249 = vmatprep.mubr.msk.bf16.mxu1 %vm807_vm2, %v8690_v33 }
 0x1a8   : > { %v8087_v7 = vpop.f32.mrf.mxu0  ;;  %8250 = vmatmul.mubr.msk.bf16.gmra.mxu1 %vm807_vm2, %v8691_v34 }
 0x1a9   : > { %8253 = vmatprep.mubr.msk.bf16.mxu1 %vm807_vm2, %v8692_v35  ;;  %v1451_v44 = vadd.f32 %v8087_v7, %v9104_v37 }
 0x1aa   : > { %v1442_v36 = vpop.f32.mrf.mxu0 }
 0x1ab   : > { %v1443_v40 = vadd.f32 %v9104_v37, %v1442_v36  ;;  %v1699_v51 = vmax.f32 %v1451_v44, 0.0  ;;  %v8703_v44 = vld [vmem:[%s8956_s18 + $0xe0] sm:$0xff]  }
 0x1ac   : > { %v8088_v38 = vpop.f32.mrf.mxu0 }
 0x1ad   : > { %v1454_v41 = vadd.f32 %v8088_v38, %v9104_v37  ;;  %v1697_v49 = vmax.f32 %v1443_v40, 0.0  ;;  %v8702_v40 = vld [vmem:[%s8956_s18 + $0xd8] sm:$0xff]  }
 0x1ae   : > { %v1445_v45 = vpop.f32.mrf.mxu0 }
 0x1af   : > { %v1446_v46 = vadd.f32 %v9104_v37, %v1445_v45  ;;  %v1700_v47 = vmax.f32 %v1454_v41, 0.0 }
 0x1b0   : > { %v8091_v48 = vpop.f32.mrf.mxu0  ;;  %8254 = vmatmul.mubr.msk.bf16.gmra.mxu1 %vm807_vm2, %v8693_v39 }
 0x1b1   : > { %v1698_v50 = vmax.f32 %v1446_v46, 0.0  ;;  %8257 = vmatprep.mubr.msk.bf16.mxu1 %vm807_vm2, %v8695_v43  ;;  %v1762_v54 = vpack.c.bf16 %v1700_v47, %v1699_v51  ;;  %v1467_v60 = vadd.f32 %v8091_v48, %v9104_v37 }
 0x1b2   : > { %v1458_v52 = vpop.f32.mrf.mxu0 }
 0x1b3   : > { %v1761_v53 = vpack.c.bf16 %v1698_v50, %v1697_v49  ;;  %v1459_v57 = vadd.f32 %v9104_v37, %v1458_v52  ;;  %v1703_v3 = vmax.f32 %v1467_v60, 0.0  ;;  %v8705_v60 = vld [vmem:[%s8956_s18 + $0xf0] sm:$0xff]  }
 0x1b4   : > { %v8092_v55 = vpop.f32.mrf.mxu0 }
 0x1b5   : > { %v1470_v58 = vadd.f32 %v8092_v55, %v9104_v37  ;;  %8151 = vmatprep.mubr.msk.bf16.mxu0 %vm1311_vm3, %v1761_v53  ;;  %v1701_v1 = vmax.f32 %v1459_v57, 0.0  ;;  %v8704_v57 = vld [vmem:[%s8956_s18 + $0xe8] sm:$0xff]  }
 0x1b6   : > { %v1461_v61 = vpop.f32.mrf.mxu0  ;;  %8152 = vmatmul.mubr.msk.bf16.vlgmr.msra.gmra.mxu0 %vm1311_vm3, %v1762_v54 }
 0x1b7   : > { %v1462_v62 = vadd.f32 %v9104_v37, %v1461_v61  ;;  %8346 = vmatpush3.bf16.msra.mxu0 %v9031_v16  ;;  %v1704_v63 = vmax.f32 %v1470_v58, 0.0  ;;  %v8699_v16 = vld [vmem:[%s8956_s18 + $0xc0] sm:$0xff]  }
 0x1b8   : > { %v8095_v0 = vpop.f32.mrf.mxu0  ;;  %8258 = vmatmul.mubr.msk.bf16.gmra.mxu1 %vm807_vm2, %v8696_v56 }
 0x1b9   : > { %v1702_v2 = vmax.f32 %v1462_v62, 0.0  ;;  %8261 = vmatprep.mubr.msk.bf16.mxu1 %vm807_vm2, %v8697_v59  ;;  %v1764_v6 = vpack.c.bf16 %v1704_v63, %v1703_v3  ;;  %v1483_v12 = vadd.f32 %v8095_v0, %v9104_v37 }
 0x1ba   : > { %v1474_v4 = vpop.f32.mrf.mxu0 }
 0x1bb   : > { %v1763_v5 = vpack.c.bf16 %v1702_v2, %v1701_v1  ;;  %v1475_v10 = vadd.f32 %v9104_v37, %v1474_v4  ;;  %v1707_v19 = vmax.f32 %v1483_v12, 0.0  ;;  %v8707_v12 = vld [vmem:[%s8956_s18 + $0x100] sm:$0xff]  }
 0x1bc   : > { %v8096_v8 = vpop.f32.mrf.mxu0 }
 0x1bd   : > { %v1486_v11 = vadd.f32 %v8096_v8, %v9104_v37  ;;  %8155 = vmatprep.mubr.msk.bf16.mxu0 %vm1311_vm3, %v1763_v5  ;;  %v1705_v18 = vmax.f32 %v1475_v10, 0.0  ;;  %v8706_v10 = vld [vmem:[%s8956_s18 + $0xf8] sm:$0xff]  }
 0x1be   : > { %v1477_v13 = vpop.f32.mrf.mxu0  ;;  %8156 = vmatmul.mubr.msk.bf16.gmra.mxu0 %vm1311_vm3, %v1764_v6 }
 0x1bf   : > { %v1478_v14 = vadd.f32 %v9104_v37, %v1477_v13  ;;  %v1708_v15 = vmax.f32 %v1486_v11, 0.0 }
 0x1c0   : > { %v8099_v17 = vpop.f32.mrf.mxu0  ;;  %8262 = vmatmul.mubr.msk.bf16.gmra.mxu1 %vm807_vm2, %v8698_v9 }
 0x1c1   : > { %v1706_v42 = vmax.f32 %v1478_v14, 0.0  ;;  %8265 = vmatprep.mubr.msk.bf16.mxu1 %vm807_vm2, %v8699_v16  ;;  %v1766_v22 = vpack.c.bf16 %v1708_v15, %v1707_v19  ;;  %v1499_v28 = vadd.f32 %v8099_v17, %v9104_v37 }
 0x1c2   : > { %v1490_v20 = vpop.f32.mrf.mxu0 }
 0x1c3   : > { %v1765_v21 = vpack.c.bf16 %v1706_v42, %v1705_v18  ;;  %v1491_v25 = vadd.f32 %v9104_v37, %v1490_v20  ;;  %v1711_v35 = vmax.f32 %v1499_v28, 0.0  ;;  %v8709_v28 = vld [vmem:[%s8956_s18 + $0x110] sm:$0xff]  }
 0x1c4   : > { %v8100_v23 = vpop.f32.mrf.mxu0 }
 0x1c5   : > { %v1502_v26 = vadd.f32 %v8100_v23, %v9104_v37  ;;  %8159 = vmatprep.mubr.msk.bf16.mxu0 %vm1311_vm3, %v1765_v21  ;;  %v1709_v33 = vmax.f32 %v1491_v25, 0.0  ;;  %v8708_v25 = vld [vmem:[%s8956_s18 + $0x108] sm:$0xff]  }
 0x1c6   : > { %v1493_v29 = vpop.f32.mrf.mxu0  ;;  %8160 = vmatmul.mubr.msk.bf16.gmra.mxu0 %vm1311_vm3, %v1766_v22 }
 0x1c7   : > { %v1494_v30 = vadd.f32 %v9104_v37, %v1493_v29  ;;  %v1712_v31 = vmax.f32 %v1502_v26, 0.0 }
 0x1c8   : > { %v8103_v32 = vpop.f32.mrf.mxu0  ;;  %8266 = vmatmul.mubr.msk.bf16.gmra.mxu1 %vm807_vm2, %v8700_v24 }
 0x1c9   : > { %v1710_v34 = vmax.f32 %v1494_v30, 0.0  ;;  %8269 = vmatprep.mubr.msk.bf16.mxu1 %vm807_vm2, %v8701_v27  ;;  %v1768_v38 = vpack.c.bf16 %v1712_v31, %v1711_v35  ;;  %v1515_v45 = vadd.f32 %v8103_v32, %v9104_v37 }
 0x1ca   : > { %v1506_v7 = vpop.f32.mrf.mxu0 }
 0x1cb   : > { %v1767_v36 = vpack.c.bf16 %v1710_v34, %v1709_v33  ;;  %v1507_v41 = vadd.f32 %v9104_v37, %v1506_v7  ;;  %v1715_v52 = vmax.f32 %v1515_v45, 0.0  ;;  %v8711_v45 = vld [vmem:[%s8956_s18 + $0x120] sm:$0xff]  }
 0x1cc   : > { %v8104_v39 = vpop.f32.mrf.mxu0 }
 0x1cd   : > { %v1518_v43 = vadd.f32 %v8104_v39, %v9104_v37  ;;  %8163 = vmatprep.mubr.msk.bf16.mxu0 %vm1311_vm3, %v1767_v36  ;;  %v1713_v50 = vmax.f32 %v1507_v41, 0.0  ;;  %v8710_v41 = vld [vmem:[%s8956_s18 + $0x118] sm:$0xff]  }
 0x1ce   : > { %v1509_v46 = vpop.f32.mrf.mxu0  ;;  %8164 = vmatmul.mubr.msk.bf16.gmra.mxu0 %vm1311_vm3, %v1768_v38 }
 0x1cf   : > { %v1510_v47 = vadd.f32 %v9104_v37, %v1509_v46  ;;  %v1716_v48 = vmax.f32 %v1518_v43, 0.0 }
 0x1d0   : > { %v8107_v49 = vpop.f32.mrf.mxu0  ;;  %8270 = vmatmul.mubr.msk.bf16.gmra.mxu1 %vm807_vm2, %v8702_v40 }
 0x1d1   : > { %v1714_v51 = vmax.f32 %v1510_v47, 0.0  ;;  %8273 = vmatprep.mubr.msk.bf16.mxu1 %vm807_vm2, %v8703_v44  ;;  %v1770_v55 = vpack.c.bf16 %v1716_v48, %v1715_v52  ;;  %v1531_v61 = vadd.f32 %v8107_v49, %v9104_v37 }
 0x1d2   : > { %v1522_v53 = vpop.f32.mrf.mxu0 }
 0x1d3   : > { %v1769_v54 = vpack.c.bf16 %v1714_v51, %v1713_v50  ;;  %v1523_v58 = vadd.f32 %v9104_v37, %v1522_v53  ;;  %v1719_v4 = vmax.f32 %v1531_v61, 0.0  ;;  %v8713_v61 = vld [vmem:[%s8956_s18 + $0x130] sm:$0xff]  }
 0x1d4   : > { %v8108_v56 = vpop.f32.mrf.mxu0 }
 0x1d5   : > { %v1534_v59 = vadd.f32 %v8108_v56, %v9104_v37  ;;  %8167 = vmatprep.mubr.msk.bf16.mxu0 %vm1311_vm3, %v1769_v54  ;;  %v1717_v2 = vmax.f32 %v1523_v58, 0.0  ;;  %v8712_v58 = vld [vmem:[%s8956_s18 + $0x128] sm:$0xff]  }
 0x1d6   : > { %v1525_v62 = vpop.f32.mrf.mxu0  ;;  %8168 = vmatmul.mubr.msk.bf16.gmra.mxu0 %vm1311_vm3, %v1770_v55 }
 0x1d7   : > { %v1526_v63 = vadd.f32 %v9104_v37, %v1525_v62  ;;  %v1720_v0 = vmax.f32 %v1534_v59, 0.0 }
 0x1d8   : > { %v8111_v1 = vpop.f32.mrf.mxu1  ;;  %8274 = vmatmul.mubr.msk.bf16.gmra.mxu1 %vm807_vm2, %v8704_v57 }
 0x1d9   : > { %v1718_v3 = vmax.f32 %v1526_v63, 0.0  ;;  %8277 = vmatprep.mubr.msk.bf16.mxu1 %vm807_vm2, %v8705_v60  ;;  %v1772_v8 = vpack.c.bf16 %v1720_v0, %v1719_v4  ;;  %v1547_v13 = vadd.f32 %v8111_v1, %v9104_v37 }
 0x1da   : > { %v1538_v5 = vpop.f32.mrf.mxu1 }
 0x1db   : > { %v1771_v6 = vpack.c.bf16 %v1718_v3, %v1717_v2  ;;  %v1539_v11 = vadd.f32 %v9104_v37, %v1538_v5  ;;  %v1723_v20 = vmax.f32 %v1547_v13, 0.0  ;;  %v8716_v13 = vld [vmem:[%s8956_s18 + $0x140] sm:$0xff]  }
 0x1dc   : > { %v8112_v9 = vpop.f32.mrf.mxu1 }
 0x1dd   : > { %v1550_v16 = vadd.f32 %v8112_v9, %v9104_v37  ;;  %8171 = vmatprep.mubr.msk.bf16.mxu0 %vm1311_vm3, %v1771_v6  ;;  %v1721_v42 = vmax.f32 %v1539_v11, 0.0  ;;  %v8714_v11 = vld [vmem:[%s8956_s18 + $0x138] sm:$0xff]  }
 0x1de   : > { %v1541_v14 = vpop.f32.mrf.mxu1  ;;  %8172 = vmatmul.mubr.msk.bf16.gmra.mxu0 %vm1311_vm3, %v1772_v8 }
 0x1df   : > { %v1542_v15 = vadd.f32 %v9104_v37, %v1541_v14  ;;  %v1724_v17 = vmax.f32 %v1550_v16, 0.0 }
 0x1e0   : > { %v8115_v18 = vpop.f32.mrf.mxu1  ;;  %8278 = vmatmul.mubr.msk.bf16.gmra.mxu1 %vm807_vm2, %v8706_v10 }
 0x1e1   : > { %v1722_v19 = vmax.f32 %v1542_v15, 0.0  ;;  %8281 = vmatprep.mubr.msk.bf16.mxu1 %vm807_vm2, %v8707_v12  ;;  %v1774_v23 = vpack.c.bf16 %v1724_v17, %v1723_v20  ;;  %v1563_v29 = vadd.f32 %v8115_v18, %v9104_v37 }
 0x1e2   : > { %v1554_v21 = vpop.f32.mrf.mxu1 }
 0x1e3   : > { %v1773_v22 = vpack.c.bf16 %v1722_v19, %v1721_v42  ;;  %v1555_v26 = vadd.f32 %v9104_v37, %v1554_v21  ;;  %v1727_v7 = vmax.f32 %v1563_v29, 0.0  ;;  %v8718_v29 = vld [vmem:[%s8956_s18 + $0x150] sm:$0xff]  }
 0x1e4   : > { %v8116_v24 = vpop.f32.mrf.mxu1 }
 0x1e5   : > { %v1566_v27 = vadd.f32 %v8116_v24, %v9104_v37  ;;  %8175 = vmatprep.mubr.msk.bf16.mxu0 %vm1311_vm3, %v1773_v22  ;;  %v1725_v34 = vmax.f32 %v1555_v26, 0.0  ;;  %v8717_v26 = vld [vmem:[%s8956_s18 + $0x148] sm:$0xff]  }
 0x1e6   : > { %v1557_v30 = vpop.f32.mrf.mxu1  ;;  %8176 = vmatmul.mubr.msk.bf16.gmra.mxu0 %vm1311_vm3, %v1774_v23 }
 0x1e7   : > { %v1558_v31 = vadd.f32 %v9104_v37, %v1557_v30  ;;  %v1728_v32 = vmax.f32 %v1566_v27, 0.0 }
 0x1e8   : > { %v8119_v33 = vpop.f32.mrf.mxu1  ;;  %8282 = vmatmul.mubr.msk.bf16.gmra.mxu1 %vm807_vm2, %v8708_v25 }
 0x1e9   : > { %v1726_v35 = vmax.f32 %v1558_v31, 0.0  ;;  %8285 = vmatprep.mubr.msk.bf16.mxu1 %vm807_vm2, %v8709_v28  ;;  %v1776_v39 = vpack.c.bf16 %v1728_v32, %v1727_v7  ;;  %v1579_v46 = vadd.f32 %v8119_v33, %v9104_v37 }
 0x1ea   : > { %v1570_v36 = vpop.f32.mrf.mxu1 }
 0x1eb   : > { %v1775_v38 = vpack.c.bf16 %v1726_v35, %v1725_v34  ;;  %v1571_v43 = vadd.f32 %v9104_v37, %v1570_v36  ;;  %v1731_v53 = vmax.f32 %v1579_v46, 0.0  ;;  %v8720_v46 = vld [vmem:[%s8956_s18 + $0x160] sm:$0xff]  }
 0x1ec   : > { %v8120_v40 = vpop.f32.mrf.mxu1 }
 0x1ed   : > { %v1582_v44 = vadd.f32 %v8120_v40, %v9104_v37  ;;  %8179 = vmatprep.mubr.msk.bf16.mxu0 %vm1311_vm3, %v1775_v38  ;;  %v1729_v51 = vmax.f32 %v1571_v43, 0.0  ;;  %v8719_v43 = vld [vmem:[%s8956_s18 + $0x158] sm:$0xff]  }
 0x1ee   : > { %v1573_v47 = vpop.f32.mrf.mxu1  ;;  %8180 = vmatmul.mubr.msk.bf16.gmra.mxu0 %vm1311_vm3, %v1776_v39 }
 0x1ef   : > { %v1574_v48 = vadd.f32 %v9104_v37, %v1573_v47  ;;  %v1732_v49 = vmax.f32 %v1582_v44, 0.0 }
 0x1f0   : > { %v8123_v50 = vpop.f32.mrf.mxu1  ;;  %8286 = vmatmul.mubr.msk.bf16.gmra.mxu1 %vm807_vm2, %v8710_v41 }
 0x1f1   : > { %v1730_v52 = vmax.f32 %v1574_v48, 0.0  ;;  %8289 = vmatprep.mubr.msk.bf16.mxu1 %vm807_vm2, %v8711_v45  ;;  %v1778_v56 = vpack.c.bf16 %v1732_v49, %v1731_v53  ;;  %v1595_v62 = vadd.f32 %v8123_v50, %v9104_v37 }
 0x1f2   : > { %v1586_v54 = vpop.f32.mrf.mxu1 }
 0x1f3   : > { %v1777_v55 = vpack.c.bf16 %v1730_v52, %v1729_v51  ;;  %v1587_v59 = vadd.f32 %v9104_v37, %v1586_v54  ;;  %v1735_v5 = vmax.f32 %v1595_v62, 0.0  ;;  %v8722_v62 = vld [vmem:[%s8956_s18 + $0x170] sm:$0xff]  }
 0x1f4   : > { %v8124_v57 = vpop.f32.mrf.mxu1 }
 0x1f5   : > { %v1598_v60 = vadd.f32 %v8124_v57, %v9104_v37  ;;  %8183 = vmatprep.mubr.msk.bf16.mxu0 %vm1311_vm3, %v1777_v55  ;;  %v1733_v3 = vmax.f32 %v1587_v59, 0.0  ;;  %v8721_v59 = vld [vmem:[%s8956_s18 + $0x168] sm:$0xff]  }
 0x1f6   : > { %v1589_v63 = vpop.f32.mrf.mxu1  ;;  %8184 = vmatmul.mubr.msk.bf16.gmra.mxu0 %vm1311_vm3, %v1778_v56 }
 0x1f7   : > { %v1590_v0 = vadd.f32 %v9104_v37, %v1589_v63  ;;  %v1736_v1 = vmax.f32 %v1598_v60, 0.0 }
 0x1f8   : > { %v8127_v2 = vpop.f32.mrf.mxu1  ;;  %8290 = vmatmul.mubr.msk.bf16.gmra.mxu1 %vm807_vm2, %v8712_v58 }
 0x1f9   : > { %v1734_v4 = vmax.f32 %v1590_v0, 0.0  ;;  %8293 = vmatprep.mubr.msk.bf16.mxu1 %vm807_vm2, %v8713_v61  ;;  %v1780_v9 = vpack.c.bf16 %v1736_v1, %v1735_v5  ;;  %v1611_v14 = vadd.f32 %v8127_v2, %v9104_v37 }
 0x1fa   : > { %v1602_v6 = vpop.f32.mrf.mxu1 }
 0x1fb   : > { %v1779_v8 = vpack.c.bf16 %v1734_v4, %v1733_v3  ;;  %v1603_v16 = vadd.f32 %v9104_v37, %v1602_v6  ;;  %v1739_v21 = vmax.f32 %v1611_v14, 0.0  ;;  %v8724_v14 = vld [vmem:[%s8956_s18 + $0x180] sm:$0xff]  }
 0x1fc   : > { %v8128_v10 = vpop.f32.mrf.mxu1 }
 0x1fd   : > { %v1614_v12 = vadd.f32 %v8128_v10, %v9104_v37  ;;  %8187 = vmatprep.mubr.msk.bf16.mxu0 %vm1311_vm3, %v1779_v8  ;;  %v1737_v19 = vmax.f32 %v1603_v16, 0.0  ;;  %v8723_v16 = vld [vmem:[%s8956_s18 + $0x178] sm:$0xff]  }
 0x1fe   : > { %v1605_v15 = vpop.f32.mrf.mxu1  ;;  %8188 = vmatmul.mubr.msk.bf16.gmra.mxu0 %vm1311_vm3, %v1780_v9 }
 0x1ff   : > { %v1606_v17 = vadd.f32 %v9104_v37, %v1605_v15  ;;  %v1740_v18 = vmax.f32 %v1614_v12, 0.0 }
 0x200   : > { %v8131_v42 = vpop.f32.mrf.mxu1  ;;  %8294 = vmatmul.mubr.msk.bf16.gmra.mxu1 %vm807_vm2, %v8714_v11 }
 0x201   : > { %v1738_v20 = vmax.f32 %v1606_v17, 0.0  ;;  %8297 = vmatprep.mubr.msk.bf16.mxu1 %vm807_vm2, %v8716_v13  ;;  %v1782_v24 = vpack.c.bf16 %v1740_v18, %v1739_v21  ;;  %v1627_v30 = vadd.f32 %v8131_v42, %v9104_v37 }
 0x202   : > { %v1618_v22 = vpop.f32.mrf.mxu1 }
 0x203   : > { %v1781_v23 = vpack.c.bf16 %v1738_v20, %v1737_v19  ;;  %v1619_v27 = vadd.f32 %v9104_v37, %v1618_v22  ;;  %v1743_v36 = vmax.f32 %v1627_v30, 0.0  ;;  %v8726_v30 = vld [vmem:[%s8956_s18 + $0x190] sm:$0xff]  }
 0x204   : > { %v8132_v25 = vpop.f32.mrf.mxu1 }
 0x205   : > { %v1630_v28 = vadd.f32 %v8132_v25, %v9104_v37  ;;  %8191 = vmatprep.mubr.msk.bf16.mxu0 %vm1311_vm3, %v1781_v23  ;;  %v1741_v35 = vmax.f32 %v1619_v27, 0.0  ;;  %v8725_v27 = vld [vmem:[%s8956_s18 + $0x188] sm:$0xff]  }
 0x206   : > { %v1621_v31 = vpop.f32.mrf.mxu1  ;;  %8192 = vmatmul.mubr.msk.bf16.gmra.mxu0 %vm1311_vm3, %v1782_v24 }
 0x207   : > { %v1622_v32 = vadd.f32 %v9104_v37, %v1621_v31  ;;  %v1744_v33 = vmax.f32 %v1630_v28, 0.0 }
 0x208   : > { %v8135_v34 = vpop.f32.mrf.mxu1  ;;  %8298 = vmatmul.mubr.msk.bf16.gmra.mxu1 %vm807_vm2, %v8717_v26 }
 0x209   : > { %v1742_v7 = vmax.f32 %v1622_v32, 0.0  ;;  %8301 = vmatprep.mubr.msk.bf16.mxu1 %vm807_vm2, %v8718_v29  ;;  %v1784_v40 = vpack.c.bf16 %v1744_v33, %v1743_v36  ;;  %v1643_v47 = vadd.f32 %v8135_v34, %v9104_v37 }
 0x20a   : > { %v1634_v38 = vpop.f32.mrf.mxu1 }
 0x20b   : > { %v1783_v39 = vpack.c.bf16 %v1742_v7, %v1741_v35  ;;  %v1635_v44 = vadd.f32 %v9104_v37, %v1634_v38  ;;  %v1747_v54 = vmax.f32 %v1643_v47, 0.0  ;;  %v8728_v47 = vld [vmem:[%s8956_s18 + $0x1a0] sm:$0xff]  }
 0x20c   : > { %v8136_v41 = vpop.f32.mrf.mxu1 }
 0x20d   : > { %v1646_v45 = vadd.f32 %v8136_v41, %v9104_v37  ;;  %8195 = vmatprep.mubr.msk.bf16.mxu0 %vm1311_vm3, %v1783_v39  ;;  %v1745_v52 = vmax.f32 %v1635_v44, 0.0  ;;  %v9268_v41 = vld [vmem:[%s11268_s10] ss:$0 sm:$0xff] }
 0x20e   : > { %v1637_v48 = vpop.f32.mrf.mxu1  ;;  %8196 = vmatmul.mubr.msk.bf16.gmra.mxu0 %vm1311_vm3, %v1784_v40 }
 0x20f   : > { %v1638_v49 = vadd.f32 %v9104_v37, %v1637_v48  ;;  %v1748_v50 = vmax.f32 %v1646_v45, 0.0 }
 0x210   : > { %v8139_v51 = vpop.f32.mrf.mxu1  ;;  %8302 = vmatmul.mubr.msk.bf16.gmra.mxu1 %vm807_vm2, %v8719_v43 }
 0x211   : > { %v1746_v53 = vmax.f32 %v1638_v49, 0.0  ;;  %8305 = vmatprep.mubr.msk.bf16.mxu1 %vm807_vm2, %v8720_v46  ;;  %v1786_v57 = vpack.c.bf16 %v1748_v50, %v1747_v54  ;;  %v1659_v63 = vadd.f32 %v8139_v51, %v9104_v37 }
 0x212   : > { %v1650_v55 = vpop.f32.mrf.mxu1 }
 0x213   : > { %v1785_v56 = vpack.c.bf16 %v1746_v53, %v1745_v52  ;;  %v1651_v60 = vadd.f32 %v9104_v37, %v1650_v55  ;;  %v1751_v6 = vmax.f32 %v1659_v63, 0.0  ;;  %v8730_v63 = vld [vmem:[%s8956_s18 + $0x1b0] sm:$0xff]  }
 0x214   : > { %v8140_v58 = vpop.f32.mrf.mxu1 }
 0x215   : > { %v1662_v61 = vadd.f32 %v8140_v58, %v9104_v37  ;;  %8199 = vmatprep.mubr.msk.bf16.mxu0 %vm1311_vm3, %v1785_v56  ;;  %v1749_v4 = vmax.f32 %v1651_v60, 0.0  ;;  %v8729_v60 = vld [vmem:[%s8956_s18 + $0x1a8] sm:$0xff]  }
 0x216   : > { %v1653_v0 = vpop.f32.mrf.mxu1  ;;  %8200 = vmatmul.mubr.msk.bf16.gmra.mxu0 %vm1311_vm3, %v1786_v57 }
 0x217   : > { %v1654_v1 = vadd.f32 %v9104_v37, %v1653_v0  ;;  %v1752_v2 = vmax.f32 %v1662_v61, 0.0 }
 0x218   : > { %v8143_v3 = vpop.f32.mrf.mxu1  ;;  %8306 = vmatmul.mubr.msk.bf16.gmra.mxu1 %vm807_vm2, %v8721_v59 }
 0x219   : > { %v1750_v5 = vmax.f32 %v1654_v1, 0.0  ;;  %8309 = vmatprep.mubr.msk.bf16.mxu1 %vm807_vm2, %v8722_v62  ;;  %v1788_v10 = vpack.c.bf16 %v1752_v2, %v1751_v6  ;;  %v1675_v15 = vadd.f32 %v8143_v3, %v9104_v37 }
 0x21a   : > { %v1666_v8 = vpop.f32.mrf.mxu1 }
 0x21b   : > { %v1787_v9 = vpack.c.bf16 %v1750_v5, %v1749_v4  ;;  %v1667_v12 = vadd.f32 %v9104_v37, %v1666_v8  ;;  %v1755_v22 = vmax.f32 %v1675_v15, 0.0  ;;  %v8732_v15 = vld [vmem:[%s8956_s18 + $0x1c0] sm:$0xff]  }
 0x21c   : > { %v8144_v11 = vpop.f32.mrf.mxu1 }
 0x21d   : > { %v1678_v13 = vadd.f32 %v8144_v11, %v9104_v37  ;;  %8203 = vmatprep.mubr.msk.bf16.mxu0 %vm1311_vm3, %v1787_v9  ;;  %v1753_v20 = vmax.f32 %v1667_v12, 0.0  ;;  %v8731_v12 = vld [vmem:[%s8956_s18 + $0x1b8] sm:$0xff]  }
 0x21e   : > { %v1669_v17 = vpop.f32.mrf.mxu1  ;;  %8204 = vmatmul.mubr.msk.bf16.gmra.mxu0 %vm1311_vm3, %v1788_v10 }
 0x21f   : > { %v1670_v18 = vadd.f32 %v9104_v37, %v1669_v17  ;;  %v1756_v42 = vmax.f32 %v1678_v13, 0.0 }
 0x220   : > { %v8147_v19 = vpop.f32.mrf.mxu1  ;;  %8310 = vmatmul.mubr.msk.bf16.gmra.mxu1 %vm807_vm2, %v8723_v16 }
 0x221   : > { %v1754_v21 = vmax.f32 %v1670_v18, 0.0  ;;  %8313 = vmatprep.mubr.msk.bf16.mxu1 %vm807_vm2, %v8724_v14  ;;  %v1790_v25 = vpack.c.bf16 %v1756_v42, %v1755_v22  ;;  %v1691_v31 = vadd.f32 %v8147_v19, %v9104_v37 }
 0x222   : > { %v1682_v23 = vpop.f32.mrf.mxu1 }
 0x223   : > { %v1789_v24 = vpack.c.bf16 %v1754_v21, %v1753_v20  ;;  %v1683_v28 = vadd.f32 %v9104_v37, %v1682_v23  ;;  %v1759_v38 = vmax.f32 %v1691_v31, 0.0  ;;  %v8734_v31 = vld [vmem:[%s8956_s18 + $0x1d0] sm:$0xff]  }
 0x224   : > { %v8148_v26 = vpop.f32.mrf.mxu1 }
 0x225   : > { %v1694_v29 = vadd.f32 %v8148_v26, %v9104_v37  ;;  %8207 = vmatprep.mubr.msk.bf16.mxu0 %vm1311_vm3, %v1789_v24  ;;  %v1757_v7 = vmax.f32 %v1683_v28, 0.0  ;;  %v8733_v28 = vld [vmem:[%s8956_s18 + $0x1c8] sm:$0xff]  }
 0x226   : > { %v1685_v32 = vpop.f32.mrf.mxu1  ;;  %8208 = vmatmul.mubr.msk.bf16.gmra.mxu0 %vm1311_vm3, %v1790_v25 }
 0x227   : > { %v1686_v33 = vadd.f32 %v9104_v37, %v1685_v32  ;;  %v1760_v34 = vmax.f32 %v1694_v29, 0.0  ;;  %v8727_v37 = vld [vmem:[%s8956_s18 + $0x198] sm:$0xff]  }
 0x228   : > { %v8219_v35 = vpop.f32.mrf.mxu1  ;;  %8314 = vmatmul.mubr.msk.bf16.gmra.mxu1 %vm807_vm2, %v8725_v27 }
 0x229   : > { %v1758_v36 = vmax.f32 %v1686_v33, 0.0  ;;  %8317 = vmatprep.mubr.msk.bf16.mxu1 %vm807_vm2, %v8726_v30  ;;  %v1792_v43 = vpack.c.bf16 %v1760_v34, %v1759_v38  ;;  %v3468_v48 = vadd.f32 %v8219_v35, %v9268_v41 }
 0x22a   : > { %v3459_v39 = vpop.f32.mrf.mxu1 }
 0x22b   : > { %v1791_v40 = vpack.c.bf16 %v1758_v36, %v1757_v7  ;;  %v3460_v45 = vadd.f32 %v9268_v41, %v3459_v39  ;;  %v3972_v55 = vmax.f32 %v3468_v48, 0.0  ;;  %v8736_v48 = vld [vmem:[%s8956_s18 + $0x1e0] sm:$0xff]  }
 0x22c   : > { %v8220_v44 = vpop.f32.mrf.mxu1 }
 0x22d   : > { %v3471_v46 = vadd.f32 %v8220_v44, %v9268_v41  ;;  %8211 = vmatprep.mubr.msk.bf16.mxu0 %vm1311_vm3, %v1791_v40  ;;  %v3970_v53 = vmax.f32 %v3460_v45, 0.0  ;;  %v8735_v45 = vld [vmem:[%s8956_s18 + $0x1d8] sm:$0xff]  }
 0x22e   : > { %8212 = vmatmul.mubr.msk.bf16.gmra.mxu0 %vm1311_vm3, %v1792_v43  ;;  %v3462_v49 = vpop.f32.mrf.mxu1 }
 0x22f   : > { %v3463_v50 = vadd.f32 %v9268_v41, %v3462_v49  ;;  %v3973_v51 = vmax.f32 %v3471_v46, 0.0 }
 0x230   : > { %v8223_v52 = vpop.f32.mrf.mxu1  ;;  %8318 = vmatmul.mubr.msk.bf16.gmra.mxu1 %vm807_vm2, %v8727_v37 }
 0x231   : > { %v3971_v54 = vmax.f32 %v3463_v50, 0.0  ;;  %8321 = vmatprep.mubr.msk.bf16.mxu1 %vm807_vm2, %v8728_v47  ;;  %v4099_v58 = vpack.c.bf16 %v3973_v51, %v3972_v55  ;;  %v3484_v0 = vadd.f32 %v8223_v52, %v9268_v41 }
 0x232   : > { %v3475_v56 = vpop.f32.mrf.mxu1 }
 0x233   : > { %v4098_v57 = vpack.c.bf16 %v3971_v54, %v3970_v53  ;;  %v3476_v61 = vadd.f32 %v9268_v41, %v3475_v56  ;;  %v3976_v8 = vmax.f32 %v3484_v0, 0.0  ;;  %v8738_v0 = vld [vmem:[%s8956_s18 + $0x1f0] sm:$0xff]  }
 0x234   : > { %v8224_v59 = vpop.f32.mrf.mxu1 }
 0x235   : > { %v3487_v62 = vadd.f32 %v8224_v59, %v9268_v41  ;;  %8347 = vmatprep.mubr.msk.bf16.mxu0 %vm1311_vm3, %v4098_v57  ;;  %v3974_v5 = vmax.f32 %v3476_v61, 0.0  ;;  %v8737_v61 = vld [vmem:[%s8956_s18 + $0x1e8] sm:$0xff]  }
 0x236   : > { %v3478_v1 = vpop.f32.mrf.mxu1  ;;  %8348 = vmatmul.mubr.msk.bf16.vlgmr.msra.gmra.mxu0 %vm1311_vm3, %v4099_v58 }
 0x237   : > { %v3479_v2 = vadd.f32 %v9268_v41, %v3478_v1  ;;  %v3977_v3 = vmax.f32 %v3487_v62, 0.0 }
 0x238   : > { %v8227_v4 = vpop.f32.mrf.mxu1  ;;  %8322 = vmatmul.mubr.msk.bf16.gmra.mxu1 %vm807_vm2, %v8729_v60 }
 0x239   : > { %v3975_v6 = vmax.f32 %v3479_v2, 0.0  ;;  %8325 = vmatprep.mubr.msk.bf16.mxu1 %vm807_vm2, %v8730_v63  ;;  %v4101_v11 = vpack.c.bf16 %v3977_v3, %v3976_v8  ;;  %v3500_v17 = vadd.f32 %v8227_v4, %v9268_v41 }
 0x23a   : > { %v3491_v9 = vpop.f32.mrf.mxu1 }
 0x23b   : > { %v4100_v10 = vpack.c.bf16 %v3975_v6, %v3974_v5  ;;  %v3492_v13 = vadd.f32 %v9268_v41, %v3491_v9  ;;  %v3980_v23 = vmax.f32 %v3500_v17, 0.0 }
 0x23c   : > { %v8228_v16 = vpop.f32.mrf.mxu1 }
 0x23d   : > { %v3503_v14 = vadd.f32 %v8228_v16, %v9268_v41  ;;  %8351 = vmatprep.mubr.msk.bf16.mxu0 %vm1311_vm3, %v4100_v10  ;;  %v3978_v21 = vmax.f32 %v3492_v13, 0.0  ;;  %v8739_v13 = vld [vmem:[%s8956_s18 + $0x1f8] sm:$0xff]  }
 0x23e   : > { %v3494_v18 = vpop.f32.mrf.mxu1  ;;  %8352 = vmatmul.mubr.msk.bf16.gmra.mxu0 %vm1311_vm3, %v4101_v11 }
 0x23f   : > { %v3495_v42 = vadd.f32 %v9268_v41, %v3494_v18  ;;  %v3981_v19 = vmax.f32 %v3503_v14, 0.0 }
 0x240   : > { %v8231_v20 = vpop.f32.mrf.mxu1  ;;  %8326 = vmatmul.mubr.msk.bf16.gmra.mxu1 %vm807_vm2, %v8731_v12 }
 0x241   : > { %v3979_v22 = vmax.f32 %v3495_v42, 0.0  ;;  %8329 = vmatprep.mubr.msk.bf16.mxu1 %vm807_vm2, %v8732_v15  ;;  %v4103_v26 = vpack.c.bf16 %v3981_v19, %v3980_v23  ;;  %v3516_v32 = vadd.f32 %v8231_v20, %v9268_v41 }
 0x242   : > { %v3507_v24 = vpop.f32.mrf.mxu1 }
 0x243   : > { %v4102_v25 = vpack.c.bf16 %v3979_v22, %v3978_v21  ;;  %v3508_v29 = vadd.f32 %v9268_v41, %v3507_v24  ;;  %v3984_v39 = vmax.f32 %v3516_v32, 0.0 }
 0x244   : > { %v8232_v27 = vpop.f32.mrf.mxu1 }
 0x245   : > { %v3519_v30 = vadd.f32 %v8232_v27, %v9268_v41  ;;  %8355 = vmatprep.mubr.msk.bf16.mxu0 %vm1311_vm3, %v4102_v25  ;;  %v3982_v36 = vmax.f32 %v3508_v29, 0.0 }
 0x246   : > { %v3510_v33 = vpop.f32.mrf.mxu1  ;;  %8356 = vmatmul.mubr.msk.bf16.gmra.mxu0 %vm1311_vm3, %v4103_v26 }
 0x247   : > { %v3511_v34 = vadd.f32 %v9268_v41, %v3510_v33  ;;  %v3985_v35 = vmax.f32 %v3519_v30, 0.0 }
 0x248   : > { %v8235_v7 = vpop.f32.mrf.mxu1  ;;  %8330 = vmatmul.mubr.msk.bf16.gmra.mxu1 %vm807_vm2, %v8733_v28 }
 0x249   : > { %v3983_v38 = vmax.f32 %v3511_v34, 0.0  ;;  %8333 = vmatprep.mubr.msk.bf16.mxu1 %vm807_vm2, %v8734_v31  ;;  %v4105_v44 = vpack.c.bf16 %v3985_v35, %v3984_v39  ;;  %v3532_v49 = vadd.f32 %v8235_v7, %v9268_v41 }
 0x24a   : > { %v3523_v40 = vpop.f32.mrf.mxu1 }
 0x24b   : > { %v4104_v43 = vpack.c.bf16 %v3983_v38, %v3982_v36  ;;  %v3524_v46 = vadd.f32 %v9268_v41, %v3523_v40  ;;  %v3988_v56 = vmax.f32 %v3532_v49, 0.0 }
 0x24c   : > { %v8236_v37 = vpop.f32.mrf.mxu1 }
 0x24d   : > { %v3535_v47 = vadd.f32 %v8236_v37, %v9268_v41  ;;  %8359 = vmatprep.mubr.msk.bf16.mxu0 %vm1311_vm3, %v4104_v43  ;;  %v3986_v54 = vmax.f32 %v3524_v46, 0.0 }
 0x24e   : > { %v3526_v50 = vpop.f32.mrf.mxu1  ;;  %8360 = vmatmul.mubr.msk.bf16.gmra.mxu0 %vm1311_vm3, %v4105_v44 }
 0x24f   : > { %v3527_v51 = vadd.f32 %v9268_v41, %v3526_v50  ;;  %v3989_v52 = vmax.f32 %v3535_v47, 0.0 }
 0x250   : > { %v8239_v53 = vpop.f32.mrf.mxu1  ;;  %8334 = vmatmul.mubr.msk.bf16.gmra.mxu1 %vm807_vm2, %v8735_v45 }
 0x251   : > { %v3987_v55 = vmax.f32 %v3527_v51, 0.0  ;;  %8337 = vmatprep.mubr.msk.bf16.mxu1 %vm807_vm2, %v8736_v48  ;;  %v4107_v59 = vpack.c.bf16 %v3989_v52, %v3988_v56  ;;  %v3548_v1 = vadd.f32 %v8239_v53, %v9268_v41 }
 0x252   : > { %v3539_v57 = vpop.f32.mrf.mxu1 }
 0x253   : > { %v4106_v58 = vpack.c.bf16 %v3987_v55, %v3986_v54  ;;  %v3540_v62 = vadd.f32 %v9268_v41, %v3539_v57  ;;  %v3992_v9 = vmax.f32 %v3548_v1, 0.0  ;;  %v9353_v57 = vld [vmem:[%s11264_s6] ss:$0 sm:$0xff] }
 0x254   : > { %v8240_v60 = vpop.f32.mrf.mxu1 }
 0x255   : > { %v3551_v63 = vadd.f32 %v8240_v60, %v9268_v41  ;;  %8363 = vmatprep.mubr.msk.bf16.mxu0 %vm1311_vm3, %v4106_v58  ;;  %v3990_v6 = vmax.f32 %v3540_v62, 0.0 }
 0x256   : > { %v3542_v2 = vpop.f32.mrf.mxu1  ;;  %8364 = vmatmul.mubr.msk.bf16.gmra.mxu0 %vm1311_vm3, %v4107_v59 }
 0x257   : > { %v3543_v3 = vadd.f32 %v9268_v41, %v3542_v2  ;;  %v3993_v4 = vmax.f32 %v3551_v63, 0.0 }
 0x258   : > { %v8243_v5 = vpop.f32.mrf.mxu1  ;;  %8338 = vmatmul.mubr.msk.bf16.gmra.mxu1 %vm807_vm2, %v8737_v61 }
 0x259   : > { %v3991_v8 = vmax.f32 %v3543_v3, 0.0  ;;  %8341 = vmatprep.mubr.msk.bf16.mxu1 %vm807_vm2, %v8738_v0  ;;  %v4109_v16 = vpack.c.bf16 %v3993_v4, %v3992_v9  ;;  %v3564_v17 = vadd.f32 %v8243_v5, %v9268_v41 }
 0x25a   : > { %v3555_v10 = vpop.f32.mrf.mxu1 }
 0x25b   : > { %v4108_v11 = vpack.c.bf16 %v3991_v8, %v3990_v6  ;;  %v3556_v14 = vadd.f32 %v9268_v41, %v3555_v10  ;;  %v3996_v23 = vmax.f32 %v3564_v17, 0.0 }
 0x25c   : > { %v8244_v12 = vpop.f32.mrf.mxu1 }
 0x25d   : > { %v3567_v15 = vadd.f32 %v8244_v12, %v9268_v41  ;;  %8367 = vmatprep.mubr.msk.bf16.mxu0 %vm1311_vm3, %v4108_v11  ;;  %v3994_v21 = vmax.f32 %v3556_v14, 0.0 }
 0x25e   : > { %v3558_v18 = vpop.f32.mrf.mxu1  ;;  %8368 = vmatmul.mubr.msk.bf16.gmra.mxu0 %vm1311_vm3, %v4109_v16 }
 0x25f   : > { %v3559_v42 = vadd.f32 %v9268_v41, %v3558_v18  ;;  %v3997_v19 = vmax.f32 %v3567_v15, 0.0 }
 0x260   : > { %v8247_v20 = vpop.f32.mrf.mxu1  ;;  %8342 = vmatmul.mubr.msk.bf16.gmra.mxu1 %vm807_vm2, %v8739_v13 }
 0x261   : > { %v3995_v22 = vmax.f32 %v3559_v42, 0.0  ;;  %v4111_v26 = vpack.c.bf16 %v3997_v19, %v3996_v23  ;;  %v3580_v30 = vadd.f32 %v8247_v20, %v9268_v41 }
 0x262   : > { %v3571_v24 = vpop.f32.mrf.mxu1 }
 0x263   : > { %v4110_v25 = vpack.c.bf16 %v3995_v22, %v3994_v21  ;;  %v3572_v28 = vadd.f32 %v9268_v41, %v3571_v24  ;;  %v4000_v36 = vmax.f32 %v3580_v30, 0.0 }
 0x264   : > { %v8248_v27 = vpop.f32.mrf.mxu1 }
 0x265   : > { %v3583_v29 = vadd.f32 %v8248_v27, %v9268_v41  ;;  %8371 = vmatprep.mubr.msk.bf16.mxu0 %vm1311_vm3, %v4110_v25  ;;  %v3998_v35 = vmax.f32 %v3572_v28, 0.0 }
 0x266   : > { %v3574_v31 = vpop.f32.mrf.mxu1  ;;  %8372 = vmatmul.mubr.msk.bf16.gmra.mxu0 %vm1311_vm3, %v4111_v26 }
 0x267   : > { %v3575_v32 = vadd.f32 %v9268_v41, %v3574_v31  ;;  %v4001_v33 = vmax.f32 %v3583_v29, 0.0 }
 0x268   : > { %v8251_v34 = vpop.f32.mrf.mxu1 }
 0x269   : > { %v3999_v7 = vmax.f32 %v3575_v32, 0.0  ;;  %v4113_v40 = vpack.c.bf16 %v4001_v33, %v4000_v36  ;;  %v3596_v45 = vadd.f32 %v8251_v34, %v9268_v41 }
 0x26a   : > { %v3587_v38 = vpop.f32.mrf.mxu1 }
 0x26b   : > { %v4112_v39 = vpack.c.bf16 %v3999_v7, %v3998_v35  ;;  %v3588_v44 = vadd.f32 %v9268_v41, %v3587_v38  ;;  %v4004_v52 = vmax.f32 %v3596_v45, 0.0 }
 0x26c   : > { %v8252_v43 = vpop.f32.mrf.mxu1 }
 0x26d   : > { %v3599_v37 = vadd.f32 %v8252_v43, %v9268_v41  ;;  %8375 = vmatprep.mubr.msk.bf16.mxu0 %vm1311_vm3, %v4112_v39  ;;  %v4002_v50 = vmax.f32 %v3588_v44, 0.0 }
 0x26e   : > { %v3590_v46 = vpop.f32.mrf.mxu1  ;;  %8376 = vmatmul.mubr.msk.bf16.gmra.mxu0 %vm1311_vm3, %v4113_v40 }
 0x26f   : > { %v3591_v47 = vadd.f32 %v9268_v41, %v3590_v46  ;;  %v4005_v48 = vmax.f32 %v3599_v37, 0.0 }
 0x270   : > { %v8255_v49 = vpop.f32.mrf.mxu1 }
 0x271   : > { %v4003_v51 = vmax.f32 %v3591_v47, 0.0  ;;  %v4115_v55 = vpack.c.bf16 %v4005_v48, %v4004_v52  ;;  %v3612_v60 = vadd.f32 %v8255_v49, %v9268_v41 }
 0x272   : > { %v3603_v53 = vpop.f32.mrf.mxu1 }
 0x273   : > { %v4114_v54 = vpack.c.bf16 %v4003_v51, %v4002_v50  ;;  %v3604_v58 = vadd.f32 %v9268_v41, %v3603_v53  ;;  %v4008_v9 = vmax.f32 %v3612_v60, 0.0 }
 0x274   : > { %v8256_v56 = vpop.f32.mrf.mxu1 }
 0x275   : > { %v3615_v59 = vadd.f32 %v8256_v56, %v9268_v41  ;;  %8379 = vmatprep.mubr.msk.bf16.mxu0 %vm1311_vm3, %v4114_v54  ;;  %v4006_v4 = vmax.f32 %v3604_v58, 0.0 }
 0x276   : > { %v8153_v61 = vpop.f32.mrf.mxu0  ;;  %v3606_v62 = vpop.f32.mrf.mxu1  ;;  %8380 = vmatmul.mubr.msk.bf16.gmra.mxu0 %vm1311_vm3, %v4115_v55 }
 0x277   : > { %v1947_v63 = vadd.f32 %v8153_v61, %v9353_v57  ;;  %v3607_v0 = vadd.f32 %v9268_v41, %v3606_v62  ;;  %v4009_v1 = vmax.f32 %v3615_v59, 0.0 }
 0x278   : > { %v1938_v2 = vpop.f32.mrf.mxu0  ;;  %v8259_v3 = vpop.f32.mrf.mxu1 }
 0x279   : > { %v2195_v5 = vmax.f32 %v1947_v63, 0.0  ;;  %v4007_v6 = vmax.f32 %v3607_v0, 0.0  ;;  %v1939_v8 = vadd.f32 %v9353_v57, %v1938_v2  ;;  %v4117_v15 = vpack.c.bf16 %v4009_v1, %v4008_v9 }
 0x27a   : > { %v8154_v10 = vpop.f32.mrf.mxu0  ;;  %v3619_v11 = vpop.f32.mrf.mxu1  ;;  %v3628_v27 = vadd.f32 %v8259_v3, %v9268_v41 }
 0x27b   : > { %v2276_v16 = vsel %vm2261_vm4, %v2195_v5, -inf  ;;  %v4116_v12 = vpack.c.bf16 %v4007_v6, %v4006_v4  ;;  %v2193_v13 = vmax.f32 %v1939_v8, 0.0  ;;  %v1950_v14 = vadd.f32 %v8154_v10, %v9353_v57 }
 0x27c   : > { %v2277_v17 = vrot.slane %v2276_v16, 4  ;;  %v1941_v18 = vpop.f32.mrf.mxu0  ;;  %v8260_v42 = vpop.f32.mrf.mxu1  ;;  %v3620_v29 = vadd.f32 %v9268_v41, %v3619_v11  ;;  %v4012_v51 = vmax.f32 %v3628_v27, 0.0 }
 0x27d   : > { %v2262_v19 = vsel %vm2261_vm4, %v2193_v13, -inf  ;;  %v2196_v20 = vmax.f32 %v1950_v14, 0.0  ;;  %v1942_v21 = vadd.f32 %v9353_v57, %v1941_v18  ;;  %v3631_v22 = vadd.f32 %v8260_v42, %v9268_v41  ;;  %8383 = vmatprep.mubr.msk.bf16.mxu0 %vm1311_vm3, %v4116_v12 }
 0x27e   : > { %v2278_v23 = vmax.f32 %v2276_v16, %v2277_v17  ;;  %v2263_v24 = vrot.slane %v2262_v19, 4  ;;  %v9369_v25 = vpop.f32.mrf.mxu0  ;;  %v3622_v26 = vpop.f32.mrf.mxu1  ;;  %8384 = vmatmul.mubr.msk.bf16.gmra.mxu0 %vm1311_vm3, %v4117_v15  ;;  %v4010_v47 = vmax.f32 %v3620_v29, 0.0 }
 0x27f   : > { %11288 = vst [vmem:[#allocation2_spill] sm:$0xff] %v9369_v25  ;;  %v2283_v28 = vsel %vm2261_vm4, %v2196_v20, -inf  ;;  %v2194_v30 = vmax.f32 %v1942_v21, 0.0  ;;  %v3623_v34 = vadd.f32 %v9268_v41, %v3622_v26  ;;  %v4013_v38 = vmax.f32 %v3631_v22, 0.0 }
 0x280   : > { %v2279_v31 = vrot.slane %v2278_v23, 2  ;;  %v2264_v32 = vmax.f32 %v2262_v19, %v2263_v24  ;;  %v2284_v33 = vrot.slane %v2283_v28, 4  ;;  %v1954_v35 = vpop.f32.mrf.mxu0  ;;  %v9376_v7 = vpop.f32.mrf.mxu1 }
 0x281   : > { %v2269_v36 = vsel %vm2261_vm4, %v2194_v30, -inf  ;;  %v1955_v39 = vadd.f32 %v9353_v57, %v1954_v35  ;;  %v4011_v48 = vmax.f32 %v3623_v34, 0.0  ;;  %v4119_v63 = vpack.c.bf16 %v4013_v38, %v4012_v51 }
 0x282   : > { %v2280_v40 = vmax.f32 %v2278_v23, %v2279_v31  ;;  %v2265_v43 = vrot.slane %v2264_v32, 2  ;;  %v2285_v44 = vmax.f32 %v2283_v28, %v2284_v33  ;;  %v2270_v37 = vrot.slane %v2269_v36, 4  ;;  %v9380_v45 = vpop.f32.mrf.mxu0  ;;  %v3635_v46 = vpop.f32.mrf.mxu1 }
 0x283   : > { %11289 = vst [vmem:[#allocation3_spill] sm:$0xff] %v9380_v45  ;;  %v2197_v49 = vmax.f32 %v1955_v39, 0.0  ;;  %v4118_v58 = vpack.c.bf16 %v4011_v48, %v4010_v47  ;;  %v3636_v31 = vadd.f32 %v9268_v41, %v3635_v46  ;;  %v3644_v38 = vadd.f32 %v9376_v7, %v9268_v41 }
 0x284   : > { %v2266_v50 = vmax.f32 %v2264_v32, %v2265_v43  ;;  %v2286_v52 = vrot.slane %v2285_v44, 2  ;;  %v2271_v53 = vmax.f32 %v2269_v36, %v2270_v37  ;;  %v9382_v54 = vpop.f32.mrf.mxu0  ;;  %v8264_v55 = vpop.f32.mrf.mxu1  ;;  %v2281_v56 = vrot.slane %v2280_v40, 1 }
 0x285   : > { %11290 = vst [vmem:[#allocation4_spill] sm:$0xff] %v9382_v54  ;;  %v2290_v59 = vsel %vm2261_vm4, %v2197_v49, -inf  ;;  %8387 = vmatprep.mubr.msk.bf16.mxu0 %vm1311_vm3, %v4118_v58  ;;  %v3647_v28 = vadd.f32 %v8264_v55, %v9268_v41  ;;  %v4014_v7 = vmax.f32 %v3636_v31, 0.0  ;;  %v4016_v58 = vmax.f32 %v3644_v38, 0.0 }
 0x286   : > { %v2267_v60 = vrot.slane %v2266_v50, 1  ;;  %v2287_v61 = vmax.f32 %v2285_v44, %v2286_v52  ;;  %v2272_v62 = vrot.slane %v2271_v53, 2  ;;  %v8161_v0 = vpop.f32.mrf.mxu0  ;;  %v3638_v1 = vpop.f32.mrf.mxu1  ;;  %v2291_v2 = vrot.slane %v2290_v59, 4  ;;  %8388 = vmatmul.mubr.msk.bf16.gmra.mxu0 %vm1311_vm3, %v4119_v63 }
 0x287   : > { %v2282_v9 = vmax.f32 %v2280_v40, %v2281_v56  ;;  %v1979_v23 = vadd.f32 %v8161_v0, %v9353_v57  ;;  %v3639_v39 = vadd.f32 %v9268_v41, %v3638_v1  ;;  %v4017_v49 = vmax.f32 %v3647_v28, 0.0 }
 0x288   : > { %v2268_v3 = vmax.f32 %v2266_v50, %v2267_v60  ;;  %v2288_v4 = vrot.slane %v2287_v61, 1  ;;  %v2273_v5 = vmax.f32 %v2271_v53, %v2272_v62  ;;  %v1970_v6 = vpop.f32.mrf.mxu0  ;;  %v9387_v8 = vpop.f32.mrf.mxu1  ;;  %v2292_v10 = vmax.f32 %v2290_v59, %v2291_v2 }
 0x289   : > { %v2712_v19 = vpack.c.bf16 %v2282_v9, %v2282_v9  ;;  %v2203_v32 = vmax.f32 %v1979_v23, 0.0  ;;  %v4015_v52 = vmax.f32 %v3639_v39, 0.0  ;;  %v1971_v60 = vadd.f32 %v9353_v57, %v1970_v6 }
 0x28a   : > { %v2289_v11 = vmax.f32 %v2287_v61, %v2288_v4  ;;  %v2274_v16 = vrot.slane %v2273_v5, 1  ;;  %v8162_v12 = vpop.f32.mrf.mxu0  ;;  %v9389_v13 = vpop.f32.mrf.mxu1  ;;  %v2293_v14 = vrot.slane %v2292_v10, 2  ;;  %v2710_v15 = vpack.c.bf16 %v2268_v3, %v2268_v3 }
 0x28b   : > { %v6980_v35 = vunpack.c.l.b16 %v2712_v19  ;;  %v2332_v44 = vsel %vm2261_vm4, %v2203_v32, -inf  ;;  %v4120_v61 = vpack.c.bf16 %v4015_v52, %v4014_v7  ;;  %v1982_v62 = vadd.f32 %v8162_v12, %v9353_v57 }
 0x28c   : > { %v2275_v17 = vmax.f32 %v2273_v5, %v2274_v16  ;;  %v1973_v18 = vpop.f32.mrf.mxu0  ;;  %v8268_v42 = vpop.f32.mrf.mxu1  ;;  %v2294_v20 = vmax.f32 %v2292_v10, %v2293_v14  ;;  %v2713_v21 = vpack.c.bf16 %v2289_v11, %v2289_v11  ;;  %v6978_v29 = vunpack.c.l.b16 %v2710_v15 }
 0x28d   : > { %v2333_v50 = vrot.slane %v2332_v44, 4  ;;  %v4121_v2 = vpack.c.bf16 %v4017_v49, %v4016_v58  ;;  %v2201_v4 = vmax.f32 %v1971_v60, 0.0  ;;  %v2204_v5 = vmax.f32 %v1982_v62, 0.0  ;;  %8391 = vmatprep.mubr.msk.bf16.mxu0 %vm1311_vm3, %v4120_v61 }
 0x28e   : > { %v2711_v22 = vpack.c.bf16 %v2275_v17, %v2275_v17  ;;  %v9392_v24 = vpop.f32.mrf.mxu0  ;;  %v9394_v26 = vpop.f32.mrf.mxu1  ;;  %v2295_v27 = vrot.slane %v2294_v20, 1  ;;  %v6981_v40 = vunpack.c.l.b16 %v2713_v21  ;;  %v1974_v11 = vadd.f32 %v9353_v57, %v1973_v18 }
 0x28f   : > { %11291 = vst [vmem:[#allocation5_spill] sm:$0xff] %v9392_v24  ;;  %v2334_v59 = vmax.f32 %v2332_v44, %v2333_v50  ;;  %v2318_v6 = vsel %vm2261_vm4, %v2201_v4, -inf  ;;  %8392 = vmatmul.mubr.msk.bf16.gmra.mxu0 %vm1311_vm3, %v4121_v2  ;;  %v2339_v12 = vsel %vm2261_vm4, %v2204_v5, -inf  ;;  %v3663_v14 = vadd.f32 %v8268_v42, %v9268_v41 }
 0x290   : > { %v6979_v30 = vunpack.c.l.b16 %v2711_v22  ;;  %v9398_v33 = vpop.f32.mrf.mxu0  ;;  %v9400_v34 = vpop.f32.mrf.mxu1  ;;  %v2296_v36 = vmax.f32 %v2294_v20, %v2295_v27  ;;  %v2319_v16 = vrot.slane %v2318_v6, 4  ;;  %v2340_v20 = vrot.slane %v2339_v12, 4 }
 0x291   : > { %v2335_v3 = vrot.slane %v2334_v59, 2  ;;  %v3652_v21 = vadd.f32 %v9268_v41, %v9389_v13  ;;  %v2202_v22 = vmax.f32 %v1974_v11, 0.0  ;;  %v3660_v18 = vadd.f32 %v9387_v8, %v9268_v41 }
 0x292   : > { %v7042_v43 = vsel %vm6758_vm5, %v6979_v30, %v6978_v29  ;;  %v9407_v37 = vpop.f32.mrf.mxu0  ;;  %v9409_v46 = vpop.f32.mrf.mxu1  ;;  %v2714_v48 = vpack.c.bf16 %v2296_v36, %v2296_v36  ;;  %v2320_v23 = vmax.f32 %v2318_v6, %v2319_v16  ;;  %v2341_v29 = vmax.f32 %v2339_v12, %v2340_v20 }
 0x293   : > { %11292 = vst [vmem:[#allocation6_spill] sm:$0xff] %v9407_v37  ;;  %v7043_v47 = vsel %vm6760_vm6, %v6980_v35, %v7042_v43  ;;  %v2336_v19 = vmax.f32 %v2334_v59, %v2335_v3  ;;  %v2325_v42 = vsel %vm2261_vm4, %v2202_v22, -inf  ;;  %v3655_v30 = vadd.f32 %v9268_v41, %v9394_v26 }
 0x294   : > { %v7044_v51 = vsel %vm6762_vm7, %v6981_v40, %v7043_v47  ;;  %v9413_v53 = vpop.f32.mrf.mxu0  ;;  %v9415_v55 = vpop.f32.mrf.mxu1  ;;  %v6982_v56 = vunpack.c.l.b16 %v2714_v48  ;;  %v2321_v31 = vrot.slane %v2320_v23, 2  ;;  %v2326_v32 = vrot.slane %v2325_v42, 4 }
 0x295   : > { %11293 = vst [vmem:[#allocation7_spill] sm:$0xff] %v9413_v53  ;;  %v4021_v35 = vmax.f32 %v3663_v14, 0.0  ;;  %v2337_v38 = vrot.slane %v2336_v19, 1  ;;  %v2342_v39 = vrot.slane %v2341_v29, 2  ;;  %v4018_v8 = vmax.f32 %v3652_v21, 0.0 }
 0x296   : > { %v9419_v63 = vpop.f32.mrf.mxu0  ;;  %v9421_v0 = vpop.f32.mrf.mxu1  ;;  %v9424_v1 = vsel %vm6764_vm8, %v6982_v56, %v7044_v51  ;;  %v4019_v40 = vmax.f32 %v3655_v30, 0.0  ;;  %v2322_v43 = vmax.f32 %v2320_v23, %v2321_v31  ;;  %v4020_v44 = vmax.f32 %v3660_v18, 0.0 }
 0x297   : > { %11294 = vst [vmem:[#allocation8_spill] sm:$0xff] %v9424_v1  ;;  %v2327_v47 = vmax.f32 %v2325_v42, %v2326_v32  ;;  %v1987_v48 = vadd.f32 %v9353_v57, %v9398_v33  ;;  %v2343_v50 = vmax.f32 %v2341_v29, %v2342_v39  ;;  %v2338_v61 = vmax.f32 %v2336_v19, %v2337_v38 }
 0x298   : > { %v9427_v9 = vpop.f32.mrf.mxu0  ;;  %v9429_v10 = vpop.f32.mrf.mxu1  ;;  %v4122_v51 = vpack.c.bf16 %v4019_v40, %v4018_v8  ;;  %v2323_v7 = vrot.slane %v2322_v43, 1  ;;  %v4123_v56 = vpack.c.bf16 %v4021_v35, %v4020_v44  ;;  %v3668_v23 = vadd.f32 %v9268_v41, %v9409_v46 }
 0x299   : > { %v2328_v52 = vrot.slane %v2327_v47, 2  ;;  %v2205_v58 = vmax.f32 %v1987_v48, 0.0  ;;  %v2344_v62 = vrot.slane %v2343_v50, 1  ;;  %v2720_v19 = vpack.c.bf16 %v2338_v61, %v2338_v61 }
 0x29a   : > { %v9436_v15 = vpop.f32.mrf.mxu0  ;;  %v9438_v17 = vpop.f32.mrf.mxu1  ;;  %8395 = vmatprep.mubr.msk.bf16.mxu0 %vm1311_vm3, %v4122_v51  ;;  %v2324_v2 = vmax.f32 %v2322_v43, %v2323_v7  ;;  %v3679_v18 = vadd.f32 %v9415_v55, %v9268_v41  ;;  %v3676_v35 = vadd.f32 %v9400_v34, %v9268_v41  ;;  %v2011_v38 = vadd.f32 %v9419_v63, %v9353_v57 }
 0x29b   : > { %v2329_v33 = vmax.f32 %v2327_v47, %v2328_v52  ;;  %v2346_v3 = vsel %vm2261_vm4, %v2205_v58, -inf  ;;  %8396 = vmatmul.mubr.msk.bf16.gmra.mxu0 %vm1311_vm3, %v4123_v56  ;;  %v2345_v11 = vmax.f32 %v2343_v50, %v2344_v62  ;;  %v6988_v46 = vunpack.c.l.b16 %v2720_v19 }
 0x29c   : > { %v9444_v27 = vpop.f32.mrf.mxu0  ;;  %v9446_v28 = vpop.f32.mrf.mxu1  ;;  %v2347_v6 = vrot.slane %v2346_v3, 4  ;;  %v2718_v21 = vpack.c.bf16 %v2324_v2, %v2324_v2  ;;  %v3671_v55 = vadd.f32 %v9268_v41, %v9421_v0  ;;  %v4022_v47 = vmax.f32 %v3668_v23, 0.0 }
 0x29d   : > { %v2330_v16 = vrot.slane %v2329_v33, 1  ;;  %v2721_v31 = vpack.c.bf16 %v2345_v11, %v2345_v11  ;;  %v4025_v48 = vmax.f32 %v3679_v18, 0.0  ;;  %v2211_v7 = vmax.f32 %v2011_v38, 0.0 }
 0x29e   : > { %v9451_v36 = vpop.f32.mrf.mxu0  ;;  %v9453_v13 = vpop.f32.mrf.mxu1  ;;  %v2348_v20 = vmax.f32 %v2346_v3, %v2347_v6  ;;  %v6986_v43 = vunpack.c.l.b16 %v2718_v21  ;;  %v4023_v63 = vmax.f32 %v3671_v55, 0.0  ;;  %v2003_v52 = vadd.f32 %v9353_v57, %v9427_v9 }
 0x29f   : > { %v2331_v22 = vmax.f32 %v2329_v33, %v2330_v16  ;;  %v6989_v56 = vunpack.c.l.b16 %v2721_v31  ;;  %v4024_v61 = vmax.f32 %v3676_v35, 0.0  ;;  %v2388_v3 = vsel %vm2261_vm4, %v2211_v7, -inf }
 0x2a0   : > { %v9457_v49 = vpop.f32.mrf.mxu0  ;;  %v9459_v26 = vpop.f32.mrf.mxu1  ;;  %v2349_v30 = vrot.slane %v2348_v20, 2  ;;  %v4124_v6 = vpack.c.bf16 %v4023_v63, %v4022_v47  ;;  %v2389_v21 = vrot.slane %v2388_v3, 4  ;;  %v2014_v23 = vadd.f32 %v9436_v15, %v9353_v57 }
 0x2a1   : > { %v2719_v32 = vpack.c.bf16 %v2331_v22, %v2331_v22  ;;  %v4125_v16 = vpack.c.bf16 %v4025_v48, %v4024_v61  ;;  %v2209_v22 = vmax.f32 %v2003_v52, 0.0  ;;  %v2006_v47 = vadd.f32 %v9353_v57, %v9444_v27 }
 0x2a2   : > { %v9461_v59 = vpop.f32.mrf.mxu0  ;;  %v9463_v60 = vpop.f32.mrf.mxu1  ;;  %v2350_v40 = vmax.f32 %v2348_v20, %v2349_v30  ;;  %8399 = vmatprep.mubr.msk.bf16.mxu0 %vm1311_vm3, %v4124_v6  ;;  %v3684_v7 = vadd.f32 %v9268_v41, %v9438_v17  ;;  %v3695_v61 = vadd.f32 %v9446_v28, %v9268_v41  ;;  %v2027_v27 = vadd.f32 %v9451_v36, %v9353_v57 }
 0x2a3   : > { %v6987_v44 = vunpack.c.l.b16 %v2719_v32  ;;  %8400 = vmatmul.mubr.msk.bf16.gmra.mxu0 %vm1311_vm3, %v4125_v16  ;;  %v2390_v32 = vmax.f32 %v2388_v3, %v2389_v21  ;;  %v2374_v35 = vsel %vm2261_vm4, %v2209_v22, -inf  ;;  %v3687_v3 = vadd.f32 %v9268_v41, %v9453_v13 }
 0x2a4   : > { %v9468_v4 = vpop.f32.mrf.mxu0  ;;  %v9470_v5 = vpop.f32.mrf.mxu1  ;;  %v2351_v34 = vrot.slane %v2350_v40, 1  ;;  %v2375_v38 = vrot.slane %v2374_v35, 4  ;;  %v4029_v21 = vmax.f32 %v3695_v61, 0.0 }
 0x2a5   : > { %v7049_v58 = vsel %vm6758_vm5, %v6987_v44, %v6986_v43  ;;  %v2391_v44 = vrot.slane %v2390_v32, 2 }
 0x2a6   : > { %v9472_v12 = vpop.f32.mrf.mxu0  ;;  %v9474_v14 = vpop.f32.mrf.mxu1  ;;  %v7050_v2 = vsel %vm6760_vm6, %v6988_v46, %v7049_v58  ;;  %v2352_v33 = vmax.f32 %v2350_v40, %v2351_v34  ;;  %v3692_v46 = vadd.f32 %v9429_v10, %v9268_v41  ;;  %v2212_v40 = vmax.f32 %v2014_v23, 0.0 }
 0x2a7   : > { %v7051_v11 = vsel %vm6762_vm7, %v6989_v56, %v7050_v2  ;;  %v2376_v48 = vmax.f32 %v2374_v35, %v2375_v38  ;;  %v2392_v52 = vmax.f32 %v2390_v32, %v2391_v44  ;;  %v2210_v58 = vmax.f32 %v2006_v47, 0.0 }
 0x2a8   : > { %v9480_v29 = vpop.f32.mrf.mxu0  ;;  %v9482_v42 = vpop.f32.mrf.mxu1  ;;  %v2722_v20 = vpack.c.bf16 %v2352_v33, %v2352_v33  ;;  %v2395_v34 = vsel %vm2261_vm4, %v2212_v40, -inf  ;;  %v4028_v33 = vmax.f32 %v3692_v46, 0.0  ;;  %v4026_v23 = vmax.f32 %v3684_v7, 0.0 }
 0x2a9   : > { %v2396_v56 = vrot.slane %v2395_v34, 4  ;;  %v2377_v2 = vrot.slane %v2376_v48, 2  ;;  %v4027_v46 = vmax.f32 %v3687_v3, 0.0 }
 0x2aa   : > { %v9488_v39 = vpop.f32.mrf.mxu0  ;;  %v9490_v8 = vpop.f32.mrf.mxu1  ;;  %v6990_v31 = vunpack.c.l.b16 %v2722_v20  ;;  %v2381_v20 = vsel %vm2261_vm4, %v2210_v58, -inf  ;;  %v4127_v13 = vpack.c.bf16 %v4029_v21, %v4028_v33  ;;  %v9563_v33 = vadd.f32 %v9459_v26, %v9268_v41 }
 0x2ab   : > { %v2397_v16 = vmax.f32 %v2395_v34, %v2396_v56  ;;  %v2378_v22 = vmax.f32 %v2376_v48, %v2377_v2  ;;  %v2382_v28 = vrot.slane %v2381_v20, 4  ;;  %v2019_v34 = vadd.f32 %v9353_v57, %v9457_v49 }
 0x2ac   : > { %v9494_v50 = vpop.f32.mrf.mxu0  ;;  %v9496_v51 = vpop.f32.mrf.mxu1  ;;  %v9528_v15 = vsel %vm6764_vm8, %v6990_v31, %v7051_v11  ;;  %v2393_v11 = vrot.slane %v2392_v52, 1  ;;  %v2215_v31 = vmax.f32 %v2027_v27, 0.0  ;;  %v4126_v2 = vpack.c.bf16 %v4027_v46, %v4026_v23 }
 0x2ad   : > { %11295 = vst [vmem:[#allocation9_spill] sm:$0xff] %v9528_v15  ;;  %v2398_v38 = vrot.slane %v2397_v16, 2  ;;  %v2379_v40 = vrot.slane %v2378_v22, 1  ;;  %v2383_v44 = vmax.f32 %v2381_v20, %v2382_v28  ;;  %v2030_v28 = vadd.f32 %v9461_v59, %v9353_v57 }
 0x2ae   : > { %v9501_v62 = vpop.f32.mrf.mxu0  ;;  %v9503_v0 = vpop.f32.mrf.mxu1  ;;  %v2394_v36 = vmax.f32 %v2392_v52, %v2393_v11  ;;  %v2416_v47 = vsel %vm2261_vm4, %v2215_v31, -inf  ;;  %v2213_v11 = vmax.f32 %v2019_v34, 0.0  ;;  %8403 = vmatprep.mubr.msk.bf16.mxu0 %vm1311_vm3, %v4126_v2  ;;  %v4032_v59 = vmax.f32 %v9563_v33, 0.0 }
 0x2af   : > { %v2399_v58 = vmax.f32 %v2397_v16, %v2398_v38  ;;  %v2417_v61 = vrot.slane %v2416_v47, 4  ;;  %v2380_v27 = vmax.f32 %v2378_v22, %v2379_v40  ;;  %v2384_v52 = vrot.slane %v2383_v44, 2  ;;  %8404 = vmatmul.mubr.msk.bf16.gmra.mxu0 %vm1311_vm3, %v4127_v13 }
 0x2b0   : > { %v9508_v19 = vpop.f32.mrf.mxu0  ;;  %v9510_v9 = vpop.f32.mrf.mxu1  ;;  %v2728_v7 = vpack.c.bf16 %v2394_v36, %v2394_v36  ;;  %v2402_v31 = vsel %vm2261_vm4, %v2213_v11, -inf }
 0x2b1   : > { %v2400_v49 = vrot.slane %v2399_v58, 1  ;;  %v2418_v21 = vmax.f32 %v2416_v47, %v2417_v61  ;;  %v2726_v23 = vpack.c.bf16 %v2380_v27, %v2380_v27  ;;  %v2385_v22 = vmax.f32 %v2383_v44, %v2384_v52 }
 0x2b2   : > { %v9516_v18 = vpop.f32.mrf.mxu0  ;;  %v9518_v30 = vpop.f32.mrf.mxu1  ;;  %v6996_v16 = vunpack.c.l.b16 %v2728_v7  ;;  %v2403_v40 = vrot.slane %v2402_v31, 4  ;;  %v2216_v47 = vmax.f32 %v2030_v28, 0.0  ;;  %v3700_v7 = vadd.f32 %v9268_v41, %v9463_v60 }
 0x2b3   : > { %v2401_v38 = vmax.f32 %v2399_v58, %v2400_v49  ;;  %v2419_v46 = vrot.slane %v2418_v21, 2  ;;  %v2386_v34 = vrot.slane %v2385_v22, 1  ;;  %v2022_v44 = vadd.f32 %v9353_v57, %v9468_v4 }
 0x2b4   : > { %v9523_v55 = vpop.f32.mrf.mxu0  ;;  %v9525_v43 = vpop.f32.mrf.mxu1  ;;  %v6994_v2 = vunpack.c.l.b16 %v2726_v23  ;;  %v2404_v52 = vmax.f32 %v2402_v31, %v2403_v40  ;;  %v2423_v58 = vsel %vm2261_vm4, %v2216_v47, -inf  ;;  %v4030_v4 = vmax.f32 %v3700_v7, 0.0 }
 0x2b5   : > { %v2420_v27 = vmax.f32 %v2418_v21, %v2419_v46  ;;  %v2729_v11 = vpack.c.bf16 %v2401_v38, %v2401_v38  ;;  %v2387_v49 = vmax.f32 %v2385_v22, %v2386_v34  ;;  %v2424_v28 = vrot.slane %v2423_v58, 4 }
 0x2b6   : > { %v9535_v63 = vpop.f32.mrf.mxu0  ;;  %v9537_v10 = vpop.f32.mrf.mxu1  ;;  %v2214_v15 = vmax.f32 %v2022_v44, 0.0  ;;  %v2405_v60 = vrot.slane %v2404_v52, 2  ;;  %v2043_v38 = vadd.f32 %v9472_v12, %v9353_v57 }
 0x2b7   : > { %v2421_v41 = vrot.slane %v2420_v27, 1  ;;  %v2727_v23 = vpack.c.bf16 %v2387_v49, %v2387_v49  ;;  %v2425_v31 = vmax.f32 %v2423_v58, %v2424_v28  ;;  %v6997_v49 = vunpack.c.l.b16 %v2729_v11 }
 0x2b8   : > { %v9545_v6 = vpop.f32.mrf.mxu0  ;;  %v9547_v17 = vpop.f32.mrf.mxu1  ;;  %v2409_v22 = vsel %vm2261_vm4, %v2214_v15, -inf  ;;  %v2406_v34 = vmax.f32 %v2404_v52, %v2405_v60  ;;  %v2219_v53 = vmax.f32 %v2043_v38, 0.0 }
 0x2b9   : > { %v2422_v47 = vmax.f32 %v2420_v27, %v2421_v41  ;;  %v2410_v7 = vrot.slane %v2409_v22, 4 }
 0x2ba   : > { %v9550_v32 = vpop.f32.mrf.mxu0  ;;  %v9552_v35 = vpop.f32.mrf.mxu1  ;;  %v2407_v28 = vrot.slane %v2406_v34, 1  ;;  %v2444_v52 = vsel %vm2261_vm4, %v2219_v53, -inf }
 0x2bb   : > { %v2732_v12 = vpack.c.bf16 %v2422_v47, %v2422_v47  ;;  %v2411_v37 = vmax.f32 %v2409_v22, %v2410_v7  ;;  %v2445_v45 = vrot.slane %v2444_v52, 4 }
 0x2bc   : > { %v9557_v56 = vpop.f32.mrf.mxu0  ;;  %v9559_v48 = vpop.f32.mrf.mxu1 }
 0x2bd   : > { %v2412_v38 = vrot.slane %v2411_v37, 2 }
 0x2be   : > { %v9565_v3 = vpop.f32.mrf.mxu0  ;;  %v9567_v20 = vpop.f32.mrf.mxu1 }
 0x2bf   : > { %11296 = vst [vmem:[#allocation10_spill] sm:$0xff] %v9565_v3  ;;  %v2426_v3 = vrot.slane %v2425_v31, 2 }
 0x2c0   : > { %v9574_v26 = vpop.f32.mrf.mxu0  ;;  %v9576_v36 = vpop.f32.mrf.mxu1 }
 0x2c1   : > { %v2427_v27 = vmax.f32 %v2425_v31, %v2426_v3  ;;  %v2046_v31 = vadd.f32 %v9488_v39, %v9353_v57 }
 0x2c2   : > { %v9583_v61 = vpop.f32.mrf.mxu0  ;;  %v9585_v13 = vpop.f32.mrf.mxu1 }
 0x2c3   : > { %11297 = vst [vmem:[#allocation11_spill] sm:$0xff] %v9583_v61  ;;  %v9595_v61 = vld [vmem:[%s11268_s10] ss:$0 sm:$0xff]  ;;  %v2428_v47 = vrot.slane %v2427_v27, 1 }
 0x2c4   : > { %v9588_v33 = vpop.f32.mrf.mxu0  ;;  %v9590_v1 = vpop.f32.mrf.mxu1  ;;  %v3711_v21 = vadd.f32 %v9595_v61, %v9470_v5  ;;  %v3703_v5 = vadd.f32 %v9595_v61, %v9474_v14 }
 0x2c5   : > { %11298 = vst [vmem:[#allocation12_spill] sm:$0xff] %v9588_v33  ;;  %v6995_v33 = vunpack.c.l.b16 %v2727_v23  ;;  %v2408_v23 = vmax.f32 %v2406_v34, %v2407_v28  ;;  %v2220_v28 = vmax.f32 %v2046_v31, 0.0 }
 0x2c6   : > { %v9602_v46 = vpop.f32.mrf.mxu0  ;;  %v9604_v40 = vpop.f32.mrf.mxu1  ;;  %v4033_v44 = vmax.f32 %v3711_v21, 0.0  ;;  %v4031_v41 = vmax.f32 %v3703_v5, 0.0 }
 0x2c7   : > { %v7056_v24 = vsel %vm6758_vm5, %v6995_v33, %v6994_v2  ;;  %v2730_v53 = vpack.c.bf16 %v2408_v23, %v2408_v23  ;;  %v2413_v2 = vmax.f32 %v2411_v37, %v2412_v38  ;;  %v2035_v33 = vadd.f32 %v9353_v57, %v9480_v29 }
 0x2c8   : > { %v9608_v58 = vpop.f32.mrf.mxu0  ;;  %v9610_v15 = vpop.f32.mrf.mxu1  ;;  %v7057_v14 = vsel %vm6760_vm6, %v6996_v16, %v7056_v24  ;;  %v4129_v54 = vpack.c.bf16 %v4033_v44, %v4032_v59  ;;  %v4128_v22 = vpack.c.bf16 %v4031_v41, %v4030_v4  ;;  %v3724_v24 = vadd.f32 %v9595_v61, %v9482_v42 }
 0x2c9   : > { %v7058_v11 = vsel %vm6762_vm7, %v6997_v49, %v7057_v14  ;;  %v2429_v16 = vmax.f32 %v2427_v27, %v2428_v47  ;;  %v2446_v59 = vmax.f32 %v2444_v52, %v2445_v45  ;;  %v3716_v4 = vadd.f32 %v9595_v61, %v9490_v8 }
 0x2ca   : > { %v9614_v60 = vpop.f32.mrf.mxu0  ;;  %v9616_v21 = vpop.f32.mrf.mxu1  ;;  %8407 = vmatprep.mubr.msk.bf16.mxu0 %vm1311_vm3, %v4128_v22  ;;  %v7000_v44 = vunpack.c.l.b16 %v2732_v12  ;;  %v6998_v29 = vunpack.c.l.b16 %v2730_v53  ;;  %v2414_v5 = vrot.slane %v2413_v2, 1  ;;  %v2217_v42 = vmax.f32 %v2035_v33, 0.0 }
 0x2cb   : > { %8408 = vmatmul.mubr.msk.bf16.gmra.mxu0 %vm1311_vm3, %v4129_v54  ;;  %v2733_v45 = vpack.c.bf16 %v2429_v16, %v2429_v16  ;;  %v2447_v49 = vrot.slane %v2446_v59, 2  ;;  %v4036_v39 = vmax.f32 %v3724_v24, 0.0  ;;  %v2038_v14 = vadd.f32 %v9353_v57, %v9494_v50 }
 0x2cc   : > { %v9620_v7 = vpop.f32.mrf.mxu0  ;;  %v9622_v3 = vpop.f32.mrf.mxu1  ;;  %v7059_v52 = vsel %vm6764_vm8, %v6998_v29, %v7058_v11  ;;  %v2415_v41 = vmax.f32 %v2413_v2, %v2414_v5  ;;  %v2430_v12 = vsel %vm2261_vm4, %v2217_v42, -inf  ;;  %v2451_v54 = vsel %vm2261_vm4, %v2220_v28, -inf }
 0x2cd   : > { %v2448_v23 = vmax.f32 %v2446_v59, %v2447_v49  ;;  %v2431_v38 = vrot.slane %v2430_v12, 4  ;;  %v4034_v47 = vmax.f32 %v3716_v4, 0.0  ;;  %v2452_v24 = vrot.slane %v2451_v54, 4 }
 0x2ce   : > { %v9633_v34 = vpop.f32.mrf.mxu0  ;;  %v9635_v37 = vpop.f32.mrf.mxu1  ;;  %v2731_v33 = vpack.c.bf16 %v2415_v41, %v2415_v41  ;;  %v2218_v16 = vmax.f32 %v2038_v14, 0.0  ;;  %v3727_v11 = vadd.f32 %v9595_v61, %v9496_v51  ;;  %v2059_v50 = vadd.f32 %v9501_v62, %v9353_v57 }
 0x2cf   : > { %11299 = vst [vmem:[#allocation13_spill] sm:$0xff] %v9633_v34  ;;  %v2449_v2 = vrot.slane %v2448_v23, 1  ;;  %v2432_v31 = vmax.f32 %v2430_v12, %v2431_v38  ;;  %v3719_v59 = vadd.f32 %v9595_v61, %v9503_v0  ;;  %v2453_v42 = vmax.f32 %v2451_v54, %v2452_v24 }
 0x2d0   : > { %v9638_v27 = vpop.f32.mrf.mxu0  ;;  %v9640_v8 = vpop.f32.mrf.mxu1  ;;  %v6999_v5 = vunpack.c.l.b16 %v2731_v33  ;;  %v2437_v49 = vsel %vm2261_vm4, %v2218_v16, -inf  ;;  %v4037_v28 = vmax.f32 %v3727_v11, 0.0  ;;  %v7001_v62 = vunpack.c.l.b16 %v2733_v45 }
 0x2d1   : > { %v2450_v41 = vmax.f32 %v2448_v23, %v2449_v2  ;;  %v2433_v14 = vrot.slane %v2432_v31, 2  ;;  %v2438_v51 = vrot.slane %v2437_v49, 4  ;;  %v2454_v34 = vrot.slane %v2453_v42, 2 }
 0x2d2   : > { %v9647_v22 = vpop.f32.mrf.mxu0  ;;  %v9649_v53 = vpop.f32.mrf.mxu1  ;;  %v7060_v0 = vsel %vm6766_vm9, %v6999_v5, %v7059_v52  ;;  %v4131_v24 = vpack.c.bf16 %v4037_v28, %v4036_v39  ;;  %v2051_v39 = vadd.f32 %v9353_v57, %v9508_v19 }
 0x2d3   : > { %11300 = vst [vmem:[#allocation14_spill] sm:$0xff] %v9647_v22  ;;  %v2223_v22 = vmax.f32 %v2059_v50, 0.0  ;;  %v7061_v25 = vsel %vm6768_vm10, %v7000_v44, %v7060_v0  ;;  %v2434_v33 = vmax.f32 %v2432_v31, %v2433_v14  ;;  %v2439_v54 = vmax.f32 %v2437_v49, %v2438_v51 }
 0x2d4   : > { %v9657_v29 = vpop.f32.mrf.mxu0  ;;  %v9659_v4 = vpop.f32.mrf.mxu1  ;;  %v9671_v23 = vsel %vm6770_vm11, %v7001_v62, %v7061_v25  ;;  %v2455_v11 = vmax.f32 %v2453_v42, %v2454_v34  ;;  %v9682_v25 = vadd.f32 %v9595_v61, %v9510_v9  ;;  %v2062_v34 = vadd.f32 %v9516_v18, %v9353_v57 }
 0x2d5   : > { %11301 = vst [vmem:[#allocation15_spill] sm:$0xff] %v9657_v29  ;;  %v4035_v29 = vmax.f32 %v3719_v59, 0.0  ;;  %11305 = vst [vmem:[#allocation19_spill] sm:$0xff] %v9671_v23  ;;  %v2472_v2 = vsel %vm2261_vm4, %v2223_v22, -inf  ;;  %v2435_v45 = vrot.slane %v2434_v33, 1  ;;  %v2221_v19 = vmax.f32 %v2051_v39, 0.0 }
 0x2d6   : > { %v9662_v12 = vpop.f32.mrf.mxu0  ;;  %v9664_v38 = vpop.f32.mrf.mxu1  ;;  %v2473_v52 = vrot.slane %v2472_v2, 4  ;;  %v2456_v44 = vrot.slane %v2455_v11, 1  ;;  %v2224_v49 = vmax.f32 %v2062_v34, 0.0 }
 0x2d7   : > { %11302 = vst [vmem:[#allocation16_spill] sm:$0xff] %v9662_v12  ;;  %11303 = vst [vmem:[#allocation17_spill] sm:$0xff] %v9664_v38  ;;  %v4130_v50 = vpack.c.bf16 %v4035_v29, %v4034_v47  ;;  %v2736_v12 = vpack.c.bf16 %v2450_v41, %v2450_v41  ;;  %v2440_v38 = vrot.slane %v2439_v54, 2  ;;  %v2436_v47 = vmax.f32 %v2434_v33, %v2435_v45 }
 0x2d8   : > { %v9668_v16 = vpop.f32.mrf.mxu0  ;;  %v9674_v5 = vpop.f32.mrf.mxu1  ;;  %v2474_v31 = vmax.f32 %v2472_v2, %v2473_v52  ;;  %v3732_v29 = vadd.f32 %v9595_v61, %v9518_v30  ;;  %v2457_v9 = vmax.f32 %v2455_v11, %v2456_v44  ;;  %v2479_v0 = vsel %vm2261_vm4, %v2224_v49, -inf }
 0x2d9   : > { %11304 = vst [vmem:[#allocation18_spill] sm:$0xff] %v9668_v16  ;;  %8411 = vmatprep.mubr.msk.bf16.mxu0 %vm1311_vm3, %v4130_v50  ;;  %v2441_v22 = vmax.f32 %v2439_v54, %v2440_v38  ;;  %v7004_v28 = vunpack.c.l.b16 %v2736_v12  ;;  %v2734_v62 = vpack.c.bf16 %v2436_v47, %v2436_v47  ;;  %v2458_v38 = vsel %vm2261_vm4, %v2221_v19, -inf }
 0x2da   : > { %v9676_v59 = vpop.f32.mrf.mxu0  ;;  %8412 = vmatmul.mubr.msk.bf16.gmra.mxu0 %vm1311_vm3, %v4131_v24  ;;  %v2475_v14 = vrot.slane %v2474_v31, 2  ;;  %v9692_v51 = vpop.f32.mrf.mxu1  ;;  %v2054_v30 = vadd.f32 %v9353_v57, %v9523_v55  ;;  %v2459_v54 = vrot.slane %v2458_v38, 4  ;;  %v4040_v24 = vmax.f32 %v9682_v25, 0.0 }
 0x2db   : > { %11306 = vst [vmem:[#allocation20_spill] sm:$0xff] %v9676_v59  ;;  %v2442_v41 = vrot.slane %v2441_v22, 1  ;;  %v4038_v12 = vmax.f32 %v3732_v29, 0.0  ;;  %v2480_v50 = vrot.slane %v2479_v0, 4  ;;  %v3743_v52 = vadd.f32 %v9595_v61, %v9525_v43 }
 0x2dc   : > { %v9690_v42 = vpop.f32.mrf.mxu0  ;;  %v2476_v2 = vmax.f32 %v2474_v31, %v2475_v14  ;;  %v2222_v45 = vmax.f32 %v2054_v30, 0.0  ;;  %v2737_v44 = vpack.c.bf16 %v2457_v9, %v2457_v9  ;;  %v2460_v34 = vmax.f32 %v2458_v38, %v2459_v54  ;;  %v9707_v55 = vpop.f32.mrf.mxu1 }
 0x2dd   : > { %11307 = vst [vmem:[#allocation21_spill] sm:$0xff] %v9690_v42  ;;  %v2443_v33 = vmax.f32 %v2441_v22, %v2442_v41  ;;  %v2075_v47 = vadd.f32 %v9535_v63, %v9353_v57  ;;  %v7002_v25 = vunpack.c.l.b16 %v2734_v62  ;;  %v2481_v29 = vmax.f32 %v2479_v0, %v2480_v50 }
 0x2de   : > { %v9694_v18 = vpop.f32.mrf.mxu0  ;;  %v2465_v19 = vsel %vm2261_vm4, %v2222_v45, -inf  ;;  %v3735_v31 = vadd.f32 %v9595_v61, %v9537_v10  ;;  %v2461_v41 = vrot.slane %v2460_v34, 2  ;;  %v4041_v9 = vmax.f32 %v3743_v52, 0.0  ;;  %v9717_v50 = vpop.f32.mrf.mxu1 }
 0x2df   : > { %11308 = vst [vmem:[#allocation22_spill] sm:$0xff] %v9694_v18  ;;  %v2735_v39 = vpack.c.bf16 %v2443_v33, %v2443_v33  ;;  %v2466_v43 = vrot.slane %v2465_v19, 4  ;;  %v2477_v38 = vrot.slane %v2476_v2, 1  ;;  %v2482_v30 = vrot.slane %v2481_v29, 2 }
 0x2e0   : > { %v9701_v11 = vpop.f32.mrf.mxu0  ;;  %v2227_v57 = vmax.f32 %v2075_v47, 0.0  ;;  %v4039_v63 = vmax.f32 %v3735_v31, 0.0  ;;  %v7005_v33 = vunpack.c.l.b16 %v2737_v44  ;;  %v2462_v62 = vmax.f32 %v2460_v34, %v2461_v41 }
 0x2e1   : > { %11309 = vst [vmem:[#allocation23_spill] sm:$0xff] %v9701_v11  ;;  %v7003_v49 = vunpack.c.l.b16 %v2735_v39  ;;  %v2467_v0 = vmax.f32 %v2465_v19, %v2466_v43  ;;  %v2483_v39 = vmax.f32 %v2481_v29, %v2482_v30  ;;  %v4133_v31 = vpack.c.bf16 %v4041_v9, %v4040_v24 }
 0x2e2   : > { %v9709_v22 = vpop.f32.mrf.mxu0  ;;  %v2500_v52 = vsel %vm2261_vm4, %v2227_v57, -inf }
 0x2e3   : > { %11310 = vst [vmem:[#allocation24_spill] sm:$0xff] %v9709_v22  ;;  %v7063_v54 = vsel %vm6758_vm5, %v7003_v49, %v7002_v25  ;;  %v4132_v22 = vpack.c.bf16 %v4039_v63, %v4038_v12  ;;  %v2468_v47 = vrot.slane %v2467_v0, 2  ;;  %v2478_v25 = vmax.f32 %v2476_v2, %v2477_v38  ;;  %v9729_v49 = vld [vmem:[%s11264_s6] ss:$0 sm:$0xff]  ;;  %v9737_v2 = vpop.f32.mrf.mxu1 }
 0x2e4   : > { %v9714_v14 = vpop.f32.mrf.mxu0  ;;  %v7064_v10 = vsel %vm6760_vm6, %v7004_v28, %v7063_v54  ;;  %v2484_v34 = vrot.slane %v2483_v39, 1  ;;  %v2501_v19 = vrot.slane %v2500_v52, 4  ;;  %v2067_v28 = vadd.f32 %v9729_v49, %v9545_v6 }
 0x2e5   : > { %11311 = vst [vmem:[#allocation25_spill] sm:$0xff] %v9714_v14  ;;  %v2463_v14 = vrot.slane %v2462_v62, 1  ;;  %v7065_v11 = vsel %vm6762_vm7, %v7005_v33, %v7064_v10  ;;  %8415 = vmatprep.mubr.msk.bf16.mxu0 %vm1311_vm3, %v4132_v22  ;;  %v2469_v29 = vmax.f32 %v2467_v0, %v2468_v47  ;;  %v2078_v24 = vadd.f32 %v9729_v49, %v9550_v32 }
 0x2e6   : > { %v9719_v45 = vpop.f32.mrf.mxu0  ;;  %8416 = vmatmul.mubr.msk.bf16.gmra.mxu0 %vm1311_vm3, %v4133_v31  ;;  %v2502_v43 = vmax.f32 %v2500_v52, %v2501_v19  ;;  %v2225_v9 = vmax.f32 %v2067_v28, 0.0  ;;  %v2485_v30 = vmax.f32 %v2483_v39, %v2484_v34  ;;  %v2740_v22 = vpack.c.bf16 %v2478_v25, %v2478_v25  ;;  %v9747_v52 = vpop.f32.mrf.mxu1 }
 0x2e7   : > { %11312 = vst [vmem:[#allocation26_spill] sm:$0xff] %v9719_v45  ;;  %v2464_v12 = vmax.f32 %v2462_v62, %v2463_v14  ;;  %v2470_v57 = vrot.slane %v2469_v29, 1  ;;  %v2228_v63 = vmax.f32 %v2078_v24, 0.0  ;;  %v2070_v32 = vadd.f32 %v9729_v49, %v9557_v56 }
 0x2e8   : > { %v9724_v44 = vpop.f32.mrf.mxu0  ;;  %v2503_v14 = vrot.slane %v2502_v43, 2  ;;  %v2486_v33 = vsel %vm2261_vm4, %v2225_v9, -inf  ;;  %v2741_v25 = vpack.c.bf16 %v2485_v30, %v2485_v30  ;;  %v7008_v24 = vunpack.c.l.b16 %v2740_v22 }
 0x2e9   : > { %11313 = vst [vmem:[#allocation27_spill] sm:$0xff] %v9724_v44  ;;  %v2738_v38 = vpack.c.bf16 %v2464_v12, %v2464_v12  ;;  %v2471_v62 = vmax.f32 %v2469_v29, %v2470_v57  ;;  %v2487_v0 = vrot.slane %v2486_v33, 4  ;;  %v2507_v10 = vsel %vm2261_vm4, %v2228_v63, -inf }
 0x2ea   : > { %v9739_v41 = vpop.f32.mrf.mxu0  ;;  %v2508_v39 = vrot.slane %v2507_v10, 4  ;;  %v2226_v31 = vmax.f32 %v2070_v32, 0.0  ;;  %v2504_v56 = vmax.f32 %v2502_v43, %v2503_v14  ;;  %v3748_v43 = vadd.f32 %v9595_v61, %v9552_v35 }
 0x2eb   : > { %11314 = vst [vmem:[#allocation28_spill] sm:$0xff] %v9739_v41  ;;  %v7006_v54 = vunpack.c.l.b16 %v2738_v38  ;;  %v2739_v19 = vpack.c.bf16 %v2471_v62, %v2471_v62  ;;  %v2488_v28 = vmax.f32 %v2486_v33, %v2487_v0  ;;  %v3751_v22 = vadd.f32 %v9595_v61, %v9567_v20 }
 0x2ec   : > { %v9741_v6 = vpop.f32.mrf.mxu0  ;;  %v2509_v9 = vmax.f32 %v2507_v10, %v2508_v39  ;;  %v2493_v29 = vsel %vm2261_vm4, %v2226_v31, -inf  ;;  %v7009_v14 = vunpack.c.l.b16 %v2741_v25  ;;  %v2505_v10 = vrot.slane %v2504_v56, 1 }
 0x2ed   : > { %11315 = vst [vmem:[#allocation29_spill] sm:$0xff] %v9741_v6  ;;  %v7066_v34 = vsel %vm6764_vm8, %v7006_v54, %v7065_v11  ;;  %v7007_v38 = vunpack.c.l.b16 %v2739_v19  ;;  %v2489_v57 = vrot.slane %v2488_v28, 2  ;;  %v2494_v63 = vrot.slane %v2493_v29, 4  ;;  %v9757_v6 = vpop.f32.mrf.mxu1 }
 0x2ee   : > { %v9749_v47 = vpop.f32.mrf.mxu0  ;;  %v3756_v11 = vadd.f32 %v9595_v61, %v9547_v17  ;;  %v2510_v30 = vrot.slane %v2509_v9, 2  ;;  %v2115_v23 = vadd.f32 %v9729_v49, %v9638_v27 }
 0x2ef   : > { %11316 = vst [vmem:[#allocation30_spill] sm:$0xff] %v9749_v47  ;;  %v3759_v47 = vadd.f32 %v9595_v61, %v9559_v48  ;;  %v7067_v33 = vsel %vm6766_vm9, %v7007_v38, %v7066_v34  ;;  %v2490_v54 = vmax.f32 %v2488_v28, %v2489_v57  ;;  %v2495_v62 = vmax.f32 %v2493_v29, %v2494_v63 }
 0x2f0   : > { %v9752_v12 = vpop.f32.mrf.mxu0  ;;  %v7068_v0 = vsel %vm6768_vm10, %v7008_v24, %v7067_v33  ;;  %v2511_v39 = vmax.f32 %v2509_v9, %v2510_v30  ;;  %v4042_v28 = vmax.f32 %v3748_v43, 0.0  ;;  %v4043_v29 = vmax.f32 %v3751_v22, 0.0 }
 0x2f1   : > { %11317 = vst [vmem:[#allocation31_spill] sm:$0xff] %v9752_v12  ;;  %v9772_v17 = vsel %vm6770_vm11, %v7009_v14, %v7068_v0  ;;  %v2491_v31 = vrot.slane %v2490_v54, 1  ;;  %v2496_v19 = vrot.slane %v2495_v62, 2  ;;  %v4045_v35 = vmax.f32 %v3759_v47, 0.0 }
 0x2f2   : > { %v9759_v32 = vpop.f32.mrf.mxu0  ;;  %11320 = vst [vmem:[#allocation34_spill] sm:$0xff] %v9772_v17  ;;  %v2512_v25 = vrot.slane %v2511_v39, 1  ;;  %v4044_v24 = vmax.f32 %v3756_v11, 0.0  ;;  %v2083_v9 = vadd.f32 %v9729_v49, %v9574_v26  ;;  %v2506_v30 = vmax.f32 %v2504_v56, %v2505_v10 }
 0x2f3   : > { %11318 = vst [vmem:[#allocation32_spill] sm:$0xff] %v9759_v32  ;;  %v9774_v32 = vpop.f32.mrf.mxu1  ;;  %v2492_v38 = vmax.f32 %v2490_v54, %v2491_v31  ;;  %v2497_v57 = vmax.f32 %v2495_v62, %v2496_v19  ;;  %v4134_v47 = vpack.c.bf16 %v4043_v29, %v4042_v28  ;;  %v3767_v28 = vadd.f32 %v9595_v61, %v9604_v40 }
 0x2f4   : > { %v9768_v48 = vpop.f32.mrf.mxu0  ;;  %v2513_v14 = vmax.f32 %v2511_v39, %v2512_v25  ;;  %v4135_v0 = vpack.c.bf16 %v4045_v35, %v4044_v24  ;;  %v2744_v56 = vpack.c.bf16 %v2506_v30, %v2506_v30  ;;  %v3764_v39 = vadd.f32 %v9595_v61, %v9585_v13 }
 0x2f5   : > { %11319 = vst [vmem:[#allocation33_spill] sm:$0xff] %v9768_v48  ;;  %v2498_v33 = vrot.slane %v2497_v57, 1  ;;  %v2229_v48 = vmax.f32 %v2083_v9, 0.0  ;;  %v9784_v12 = vpop.f32.mrf.mxu1  ;;  %8419 = vmatprep.mubr.msk.bf16.mxu0 %vm1311_vm3, %v4134_v47  ;;  %v2742_v43 = vpack.c.bf16 %v2492_v38, %v2492_v38  ;;  %v3775_v25 = vadd.f32 %v9595_v61, %v9590_v1 }
 0x2f6   : > { %v9776_v20 = vpop.f32.mrf.mxu0  ;;  %8420 = vmatmul.mubr.msk.bf16.gmra.mxu0 %vm1311_vm3, %v4135_v0  ;;  %v2745_v62 = vpack.c.bf16 %v2513_v14, %v2513_v14  ;;  %v3772_v24 = vadd.f32 %v9595_v61, %v9576_v36  ;;  %v4047_v47 = vmax.f32 %v3767_v28, 0.0  ;;  %v2237_v42 = vmax.f32 %v2115_v23, 0.0 }
 0x2f7   : > { %v2499_v11 = vmax.f32 %v2497_v57, %v2498_v33  ;;  %v2514_v22 = vsel %vm2261_vm4, %v2229_v48, -inf  ;;  %v9795_v31 = vpop.f32.mrf.mxu1  ;;  %v2107_v48 = vadd.f32 %v9729_v49, %v9602_v46  ;;  %v7010_v29 = vunpack.c.l.b16 %v2742_v43 }
 0x2f8   : > { %v9782_v63 = vpop.f32.mrf.mxu0  ;;  %v2515_v54 = vrot.slane %v2514_v22, 4  ;;  %v7012_v57 = vunpack.c.l.b16 %v2744_v56  ;;  %v7013_v14 = vunpack.c.l.b16 %v2745_v62  ;;  %v4049_v33 = vmax.f32 %v3775_v25, 0.0 }
 0x2f9   : > { %v2743_v10 = vpack.c.bf16 %v2499_v11, %v2499_v11  ;;  %v2235_v30 = vmax.f32 %v2107_v48, 0.0  ;;  %v9810_v0 = vpop.f32.mrf.mxu1  ;;  %v4046_v11 = vmax.f32 %v3764_v39, 0.0  ;;  %v2099_v25 = vadd.f32 %v9729_v49, %v9608_v58 }
 0x2fa   : > { %v9786_v34 = vpop.f32.mrf.mxu0  ;;  %v2516_v35 = vmax.f32 %v2514_v22, %v2515_v54  ;;  %v4048_v22 = vmax.f32 %v3772_v24, 0.0 }
 0x2fb   : > { %v7011_v38 = vunpack.c.l.b16 %v2743_v10  ;;  %v2556_v56 = vsel %vm2261_vm4, %v2235_v30, -inf  ;;  %v4136_v48 = vpack.c.bf16 %v4047_v47, %v4046_v11 }
 0x2fc   : > { %v9791_v26 = vpop.f32.mrf.mxu0  ;;  %v2517_v9 = vrot.slane %v2516_v35, 2  ;;  %v2557_v62 = vrot.slane %v2556_v56, 4  ;;  %v4137_v28 = vpack.c.bf16 %v4049_v33, %v4048_v22 }
 0x2fd   : > { %v7070_v1 = vsel %vm6758_vm5, %v7011_v38, %v7010_v29  ;;  %v2110_v29 = vadd.f32 %v9729_v49, %v9614_v60  ;;  %v9823_v38 = vpop.f32.mrf.mxu1  ;;  %8423 = vmatprep.mubr.msk.bf16.mxu0 %vm1311_vm3, %v4136_v48 }
 0x2fe   : > { %v9797_v19 = vpop.f32.mrf.mxu0  ;;  %v7071_v40 = vsel %vm6760_vm6, %v7012_v57, %v7070_v1  ;;  %v2518_v43 = vmax.f32 %v2516_v35, %v2517_v9  ;;  %v2558_v24 = vmax.f32 %v2556_v56, %v2557_v62  ;;  %v2233_v57 = vmax.f32 %v2099_v25, 0.0  ;;  %8424 = vmatmul.mubr.msk.bf16.gmra.mxu0 %vm1311_vm3, %v4137_v28 }
 0x2ff   : > { %v7072_v36 = vsel %vm6762_vm7, %v7013_v14, %v7071_v40  ;;  %v2236_v9 = vmax.f32 %v2110_v29, 0.0  ;;  %v2102_v1 = vadd.f32 %v9729_v49, %v9620_v7  ;;  %v9835_v33 = vpop.f32.mrf.mxu1  ;;  %v3780_v28 = vadd.f32 %v9595_v61, %v9616_v21 }
 0x300   : > { %v9807_v13 = vpop.f32.mrf.mxu0  ;;  %v2519_v10 = vrot.slane %v2518_v43, 1  ;;  %v2559_v14 = vrot.slane %v2558_v24, 2  ;;  %v2542_v58 = vsel %vm2261_vm4, %v2233_v57, -inf  ;;  %v3791_v7 = vadd.f32 %v9595_v61, %v9622_v3 }
 0x301   : > { %v2563_v60 = vsel %vm2261_vm4, %v2236_v9, -inf  ;;  %v2543_v11 = vrot.slane %v2542_v58, 4  ;;  %v2234_v56 = vmax.f32 %v2102_v1, 0.0  ;;  %v9849_v57 = vpop.f32.mrf.mxu1  ;;  %v3783_v21 = vadd.f32 %v9595_v61, %v9635_v37 }
 0x302   : > { %v9812_v46 = vpop.f32.mrf.mxu0  ;;  %v2520_v35 = vmax.f32 %v2518_v43, %v2519_v10  ;;  %v2564_v22 = vrot.slane %v2563_v60, 4  ;;  %v2560_v25 = vmax.f32 %v2558_v24, %v2559_v14  ;;  %v4050_v24 = vmax.f32 %v3780_v28, 0.0 }
 0x303   : > { %v2544_v48 = vmax.f32 %v2542_v58, %v2543_v11  ;;  %v9861_v17 = vpop.f32.mrf.mxu1 }
 0x304   : > { %v9817_v54 = vpop.f32.mrf.mxu0  ;;  %v2746_v47 = vpack.c.bf16 %v2520_v35, %v2520_v35  ;;  %v2565_v29 = vmax.f32 %v2563_v60, %v2564_v22  ;;  %v2549_v35 = vsel %vm2261_vm4, %v2234_v56, -inf  ;;  %v4053_v60 = vmax.f32 %v3791_v7, 0.0 }
 0x305   : > { %v2550_v1 = vrot.slane %v2549_v35, 4  ;;  %v2561_v11 = vrot.slane %v2560_v25, 1  ;;  %v4051_v56 = vmax.f32 %v3783_v21, 0.0  ;;  %v9869_v27 = vpop.f32.mrf.mxu1 }
 0x306   : > { %v9825_v39 = vpop.f32.mrf.mxu0  ;;  %v7014_v43 = vunpack.c.l.b16 %v2746_v47  ;;  %v2545_v47 = vrot.slane %v2544_v48, 2  ;;  %v2566_v58 = vrot.slane %v2565_v29, 2 }
 0x307   : > { %v2551_v14 = vmax.f32 %v2549_v35, %v2550_v1  ;;  %v4138_v18 = vpack.c.bf16 %v4051_v56, %v4050_v24  ;;  %v11324_v56 = vld [vmem:[#allocation17_spill] sm:$0xff] }
 0x308   : > { %v9829_v30 = vpop.f32.mrf.mxu0  ;;  %v9842_v62 = vsel %vm6764_vm8, %v7014_v43, %v7072_v36  ;;  %v3788_v36 = vadd.f32 %v9595_v61, %v9610_v15  ;;  %v2546_v3 = vmax.f32 %v2544_v48, %v2545_v47  ;;  %v2567_v22 = vmax.f32 %v2565_v29, %v2566_v58 }
 0x309   : > { %11321 = vst [vmem:[#allocation35_spill] sm:$0xff] %v9842_v62  ;;  %v2552_v45 = vrot.slane %v2551_v14, 2  ;;  %v2562_v29 = vmax.f32 %v2560_v25, %v2561_v11  ;;  %v2570_v47 = vsel %vm2261_vm4, %v2237_v42, -inf  ;;  %8427 = vmatprep.mubr.msk.bf16.mxu0 %vm1311_vm3, %v4138_v18  ;;  %v3796_v42 = vadd.f32 %v9595_v61, %v9649_v53  ;;  %v9880_v25 = vpop.f32.mrf.mxu1 }
 0x30a   : > { %v9837_v40 = vpop.f32.mrf.mxu0  ;;  %v2547_v41 = vrot.slane %v2546_v3, 1  ;;  %v4052_v44 = vmax.f32 %v3788_v36, 0.0  ;;  %v2568_v37 = vrot.slane %v2567_v22, 1  ;;  %v2571_v21 = vrot.slane %v2570_v47, 4 }
 0x30b   : > { %v2553_v7 = vmax.f32 %v2551_v14, %v2552_v45  ;;  %v3807_v18 = vadd.f32 %v9595_v61, %v9659_v4 }
 0x30c   : > { %v9839_v10 = vpop.f32.mrf.mxu0  ;;  %v2548_v28 = vmax.f32 %v2546_v3, %v2547_v41  ;;  %v4139_v35 = vpack.c.bf16 %v4053_v60, %v4052_v44  ;;  %v2569_v58 = vmax.f32 %v2567_v22, %v2568_v37  ;;  %v2572_v45 = vmax.f32 %v2570_v47, %v2571_v21  ;;  %v9890_v21 = vpop.f32.mrf.mxu1 }
 0x30d   : > { %v2554_v36 = vrot.slane %v2553_v7, 1  ;;  %v2752_v44 = vpack.c.bf16 %v2562_v29, %v2562_v29  ;;  %v3804_v22 = vadd.f32 %v9595_v61, %v9640_v8  ;;  %v3799_v37 = vadd.f32 %v9595_v61, %v11324_v56 }
 0x30e   : > { %v9851_v9 = vpop.f32.mrf.mxu0  ;;  %8428 = vmatmul.mubr.msk.bf16.gmra.mxu0 %vm1311_vm3, %v4139_v35  ;;  %v2750_v24 = vpack.c.bf16 %v2548_v28, %v2548_v28  ;;  %v2753_v14 = vpack.c.bf16 %v2569_v58, %v2569_v58  ;;  %v2573_v11 = vrot.slane %v2572_v45, 2  ;;  %v4057_v29 = vmax.f32 %v3807_v18, 0.0 }
 0x30f   : > { %v2555_v41 = vmax.f32 %v2553_v7, %v2554_v36  ;;  %v7020_v4 = vunpack.c.l.b16 %v2752_v44  ;;  %v4054_v47 = vmax.f32 %v3796_v42, 0.0  ;;  %v4055_v36 = vmax.f32 %v3799_v37, 0.0  ;;  %v9900_v42 = vpop.f32.mrf.mxu1 }
 0x310   : > { %v9857_v43 = vpop.f32.mrf.mxu0  ;;  %v7018_v7 = vunpack.c.l.b16 %v2750_v24  ;;  %v2574_v35 = vmax.f32 %v2572_v45, %v2573_v11  ;;  %v4056_v16 = vmax.f32 %v3804_v22, 0.0 }
 0x311   : > { %v2751_v60 = vpack.c.bf16 %v2555_v41, %v2555_v41  ;;  %v7021_v41 = vunpack.c.l.b16 %v2753_v14  ;;  %v4140_v62 = vpack.c.bf16 %v4055_v36, %v4054_v47 }
 0x312   : > { %v9863_v15 = vpop.f32.mrf.mxu0  ;;  %v2575_v8 = vrot.slane %v2574_v35, 1  ;;  %v4141_v44 = vpack.c.bf16 %v4057_v29, %v4056_v16  ;;  %v3820_v29 = vadd.f32 %v9595_v61, %v9674_v5 }
 0x313   : > { %v7019_v53 = vunpack.c.l.b16 %v2751_v60  ;;  %8431 = vmatprep.mubr.msk.bf16.mxu0 %vm1311_vm3, %v4140_v62  ;;  %v3823_v62 = vadd.f32 %v9595_v61, %v9707_v55 }
 0x314   : > { %v9865_v48 = vpop.f32.mrf.mxu0  ;;  %v2576_v24 = vmax.f32 %v2574_v35, %v2575_v8 }
 0x315   : > { %v7077_v59 = vsel %vm6758_vm5, %v7019_v53, %v7018_v7  ;;  %v3812_v7 = vadd.f32 %v9595_v61, %v9692_v51  ;;  %v4061_v36 = vmax.f32 %v3823_v62, 0.0  ;;  %v4060_v51 = vmax.f32 %v3820_v29, 0.0 }
 0x316   : > { %v9871_v1 = vpop.f32.mrf.mxu0  ;;  %v7078_v56 = vsel %vm6760_vm6, %v7020_v4, %v7077_v59  ;;  %v2754_v14 = vpack.c.bf16 %v2576_v24, %v2576_v24  ;;  %8432 = vmatmul.mubr.msk.bf16.gmra.mxu0 %vm1311_vm3, %v4141_v44  ;;  %v9907_v59 = vpop.f32.mrf.mxu1  ;;  %v3815_v4 = vadd.f32 %v9595_v61, %v9717_v50 }
 0x317   : > { %11322 = vst [vmem:[#allocation36_spill] sm:$0xff] %v9871_v1  ;;  %v7079_v45 = vsel %vm6762_vm7, %v7021_v41, %v7078_v56  ;;  %v4058_v41 = vmax.f32 %v3812_v7, 0.0  ;;  %v4143_v44 = vpack.c.bf16 %v4061_v36, %v4060_v51  ;;  %v11339_v7 = vld [vmem:[#allocation3_spill] sm:$0xff]  ;;  %v3828_v36 = vadd.f32 %v9595_v61, %v9747_v52 }
 0x318   : > { %v9874_v23 = vpop.f32.mrf.mxu0  ;;  %v7022_v11 = vunpack.c.l.b16 %v2754_v14  ;;  %v9920_v53 = vpop.f32.mrf.mxu1  ;;  %v4059_v8 = vmax.f32 %v3815_v4, 0.0  ;;  %v1966_v29 = vadd.f32 %v9729_v49, %v11339_v7  ;;  %v3836_v51 = vadd.f32 %v9595_v61, %v9737_v2 }
 0x31a   : > { %v9882_v3 = vpop.f32.mrf.mxu0  ;;  %v9912_v37 = vsel %vm6764_vm8, %v7022_v11, %v7079_v45  ;;  %v9930_v56 = vpop.f32.mrf.mxu1  ;;  %v4142_v24 = vpack.c.bf16 %v4059_v8, %v4058_v41  ;;  %v11338_v11 = vld [vmem:[#allocation2_spill] sm:$0xff]  ;;  %v3839_v8 = vadd.f32 %v9595_v61, %v9757_v6  ;;  %v2200_v7 = vmax.f32 %v1966_v29, 0.0 }
 0x31b   : > { %11323 = vst [vmem:[#allocation37_spill] sm:$0xff] %v9882_v3  ;;  %11330 = vst [vmem:[#allocation42_spill] sm:$0xff] %v9912_v37  ;;  %v1963_v62 = vadd.f32 %v9729_v49, %v11338_v11  ;;  %v3831_v11 = vadd.f32 %v9595_v61, %v9774_v32 }
 0x31c   : > { %v9888_v28 = vpop.f32.mrf.mxu0  ;;  %8435 = vmatprep.mubr.msk.bf16.mxu0 %vm1311_vm3, %v4142_v24  ;;  %v9937_v5 = vpop.f32.mrf.mxu1  ;;  %v4065_v37 = vmax.f32 %v3839_v8, 0.0 }
 0x31d   : > { %v4063_v6 = vmax.f32 %v3831_v11, 0.0 }
 0x31e   : > { %v9892_v58 = vpop.f32.mrf.mxu0  ;;  %8436 = vmatmul.mubr.msk.bf16.gmra.mxu0 %vm1311_vm3, %v4143_v44  ;;  %v9948_v4 = vpop.f32.mrf.mxu1  ;;  %v2199_v44 = vmax.f32 %v1963_v62, 0.0 }
 0x31f   : > { %11325 = vst [vmem:[#allocation17_spill] sm:$0xff] %v9892_v58 }
 0x320   : > { %v9896_v1 = vpop.f32.mrf.mxu0  ;;  %v2304_v2 = vsel %vm2261_vm4, %v2199_v44, -inf }
 0x321   : > { %11326 = vst [vmem:[#allocation38_spill] sm:$0xff] %v9896_v1 }
 0x322   : > { %v9902_v18 = vpop.f32.mrf.mxu0 }
 0x323   : > { %11327 = vst [vmem:[#allocation39_spill] sm:$0xff] %v9902_v18 }
 0x324   : > { %v9905_v60 = vpop.f32.mrf.mxu0 }
 0x325   : > { %11328 = vst [vmem:[#allocation40_spill] sm:$0xff] %v9905_v60 }
 0x326   : > { %v9909_v22 = vpop.f32.mrf.mxu0 }
 0x327   : > { %11329 = vst [vmem:[#allocation41_spill] sm:$0xff] %v9909_v22  ;;  %v4062_v22 = vmax.f32 %v3828_v36, 0.0 }
 0x328   : > { %v9914_v16 = vpop.f32.mrf.mxu0 }
 0x329   : > { %11331 = vst [vmem:[#allocation43_spill] sm:$0xff] %v9914_v16  ;;  %v4144_v62 = vpack.c.bf16 %v4063_v6, %v4062_v22 }
 0x32a   : > { %v9922_v35 = vpop.f32.mrf.mxu0 }
 0x32b   : > { %11332 = vst [vmem:[#allocation44_spill] sm:$0xff] %v9922_v35  ;;  %8439 = vmatprep.mubr.msk.bf16.mxu0 %vm1311_vm3, %v4144_v62 }
 0x32c   : > { %v9928_v47 = vpop.f32.mrf.mxu0 }
 0x32d   : > { %11333 = vst [vmem:[#allocation45_spill] sm:$0xff] %v9928_v47 }
 0x32e   : > { %v9932_v55 = vpop.f32.mrf.mxu0 }
 0x32f   : > { %11334 = vst [vmem:[#allocation46_spill] sm:$0xff] %v9932_v55  ;;  %v9962_v55 = vpop.f32.mrf.mxu1 }
 0x330   : > { %v9934_v45 = vpop.f32.mrf.mxu0 }
 0x331   : > { %11335 = vst [vmem:[#allocation47_spill] sm:$0xff] %v9934_v45  ;;  %v4064_v45 = vmax.f32 %v3836_v51, 0.0  ;;  %v9972_v29 = vpop.f32.mrf.mxu1 }
 0x332   : > { %v9939_v14 = vpop.f32.mrf.mxu0 }
 0x333   : > { %11336 = vst [vmem:[#allocation48_spill] sm:$0xff] %v9939_v14  ;;  %v11343_v14 = vld [vmem:[#allocation4_spill] sm:$0xff]  ;;  %v4145_v32 = vpack.c.bf16 %v4065_v37, %v4064_v45  ;;  %v9982_v22 = vpop.f32.mrf.mxu1 }
 0x334   : > { %v9942_v50 = vpop.f32.mrf.mxu0  ;;  %v1958_v52 = vadd.f32 %v9729_v49, %v11343_v14  ;;  %v2305_v14 = vrot.slane %v2304_v2, 4 }
 0x335   : > { %11337 = vst [vmem:[#allocation49_spill] sm:$0xff] %v9942_v50  ;;  %8440 = vmatmul.mubr.msk.bf16.gmra.mxu0 %vm1311_vm3, %v4145_v32  ;;  %v3852_v32 = vadd.f32 %v9595_v61, %v9784_v12 }
 0x336   : > { %v9950_v41 = vpop.f32.mrf.mxu0  ;;  %v2198_v50 = vmax.f32 %v1958_v52, 0.0  ;;  %v2306_v11 = vmax.f32 %v2304_v2, %v2305_v14  ;;  %v3855_v52 = vadd.f32 %v9595_v61, %v9810_v0 }
 0x337   : > { %11340 = vst [vmem:[#allocation2_spill] sm:$0xff] %v9950_v41  ;;  %v4068_v12 = vmax.f32 %v3852_v32, 0.0  ;;  %v11354_v32 = vld [vmem:[#allocation7_spill] sm:$0xff] }
 0x338   : > { %v9958_v24 = vpop.f32.mrf.mxu0  ;;  %v2297_v37 = vsel %vm2261_vm4, %v2198_v50, -inf  ;;  %v11350_v50 = vld [vmem:[#allocation6_spill] sm:$0xff]  ;;  %v4069_v2 = vmax.f32 %v3855_v52, 0.0 }
 0x339   : > { %11341 = vst [vmem:[#allocation3_spill] sm:$0xff] %v9958_v24  ;;  %v2311_v24 = vsel %vm2261_vm4, %v2200_v7, -inf  ;;  %v2298_v62 = vrot.slane %v2297_v37, 4 }
 0x33a   : > { %v9964_v41 = vpop.f32.mrf.mxu0  ;;  %v2312_v51 = vrot.slane %v2311_v24, 4  ;;  %v4147_v1 = vpack.c.bf16 %v4069_v2, %v4068_v12 }
 0x33b   : > { %11342 = vst [vmem:[#allocation50_spill] sm:$0xff] %v9964_v41  ;;  %v11346_v41 = vld [vmem:[#allocation5_spill] sm:$0xff] }
 0x33c   : > { %v9968_v35 = vpop.f32.mrf.mxu0  ;;  %v1995_v58 = vadd.f32 %v9729_v49, %v11346_v41  ;;  %v2313_v7 = vmax.f32 %v2311_v24, %v2312_v51  ;;  %v3844_v41 = vadd.f32 %v9595_v61, %v9795_v31  ;;  %v3847_v24 = vadd.f32 %v9595_v61, %v9823_v38 }
 0x33d   : > { %11344 = vst [vmem:[#allocation4_spill] sm:$0xff] %v9968_v35  ;;  %v2307_v31 = vrot.slane %v2306_v11, 2 }
 0x33e   : > { %v9974_v8 = vpop.f32.mrf.mxu0  ;;  %v2207_v45 = vmax.f32 %v1995_v58, 0.0  ;;  %v1998_v58 = vadd.f32 %v9729_v49, %v11350_v50  ;;  %v2314_v14 = vrot.slane %v2313_v7, 2  ;;  %v4066_v0 = vmax.f32 %v3844_v41, 0.0 }
 0x33f   : > { %11345 = vst [vmem:[#allocation51_spill] sm:$0xff] %v9974_v8  ;;  %v9995_v8 = vpop.f32.mrf.mxu1  ;;  %v4067_v51 = vmax.f32 %v3847_v24, 0.0  ;;  %v2308_v47 = vmax.f32 %v2306_v11, %v2307_v31  ;;  %v3860_v11 = vadd.f32 %v9595_v61, %v9849_v57  ;;  %v10030_v57 = vld [vmem:[%s11268_s10] ss:$0 sm:$0xff] }
 0x340   : > { %v9980_v36 = vpop.f32.mrf.mxu0  ;;  %v2208_v18 = vmax.f32 %v1998_v58, 0.0  ;;  %v2315_v50 = vmax.f32 %v2313_v7, %v2314_v14  ;;  %v1990_v58 = vadd.f32 %v9729_v49, %v11354_v32 }
 0x341   : > { %11347 = vst [vmem:[#allocation5_spill] sm:$0xff] %v9980_v36  ;;  %v10004_v16 = vpop.f32.mrf.mxu1 }
 0x342   : > { %v9984_v44 = vpop.f32.mrf.mxu0  ;;  %11352 = vst [vmem:[#allocation54_spill] sm:$0xff] %v10004_v16  ;;  %v2316_v24 = vrot.slane %v2315_v50, 1  ;;  %v2206_v12 = vmax.f32 %v1990_v58, 0.0 }
 0x343   : > { %11348 = vst [vmem:[#allocation52_spill] sm:$0xff] %v9984_v44  ;;  %v2360_v44 = vsel %vm2261_vm4, %v2207_v45, -inf  ;;  %v4146_v45 = vpack.c.bf16 %v4067_v51, %v4066_v0  ;;  %v10010_v41 = vpop.f32.mrf.mxu1  ;;  %v3871_v0 = vadd.f32 %v9595_v61, %v9861_v17 }
 0x344   : > { %v9991_v6 = vpop.f32.mrf.mxu0  ;;  %v2361_v35 = vrot.slane %v2360_v44, 4 }
 0x345   : > { %11349 = vst [vmem:[#allocation53_spill] sm:$0xff] %v9991_v6  ;;  %v2299_v6 = vmax.f32 %v2297_v37, %v2298_v62  ;;  %8443 = vmatprep.mubr.msk.bf16.mxu0 %vm1311_vm3, %v4146_v45  ;;  %v2367_v37 = vsel %vm2261_vm4, %v2208_v18, -inf  ;;  %v2309_v62 = vrot.slane %v2308_v47, 1  ;;  %v4070_v45 = vmax.f32 %v3860_v11, 0.0 }
 0x346   : > { %v10002_v36 = vpop.f32.mrf.mxu0  ;;  %v2362_v3 = vmax.f32 %v2360_v44, %v2361_v35  ;;  %8444 = vmatmul.mubr.msk.bf16.gmra.mxu0 %vm1311_vm3, %v4147_v1  ;;  %v2368_v14 = vrot.slane %v2367_v37, 4  ;;  %v3868_v1 = vadd.f32 %v9595_v61, %v9835_v33  ;;  %v10021_v35 = vpop.f32.mrf.mxu1  ;;  %v11356_v44 = vld [vmem:[#allocation10_spill] sm:$0xff]  ;;  %v10036_v33 = vmax.f32 %v2315_v50, %v2316_v24 }
 0x347   : > { %11351 = vst [vmem:[#allocation6_spill] sm:$0xff] %v10002_v36  ;;  %v2300_v52 = vrot.slane %v2299_v6, 2  ;;  %v2091_v18 = vadd.f32 %v9729_v49, %v11356_v44  ;;  %v10034_v51 = vmax.f32 %v2308_v47, %v2309_v62  ;;  %v10048_v62 = vld [vmem:[%s11270_s12] ss:$0 sm:$0xff] }
 0x348   : > { %v10007_v38 = vpop.f32.mrf.mxu0  ;;  %v2363_v2 = vrot.slane %v2362_v3, 2  ;;  %v2369_v17 = vmax.f32 %v2367_v37, %v2368_v14 }
 0x349   : > { %11353 = vst [vmem:[#allocation55_spill] sm:$0xff] %v10007_v38  ;;  %v2301_v31 = vmax.f32 %v2299_v6, %v2300_v52  ;;  %v3863_v6 = vadd.f32 %v10030_v57, %v9869_v27  ;;  %v4073_v52 = vmax.f32 %v3871_v0, 0.0  ;;  %v10040_v38 = vpop.f32.mrf.mxu1  ;;  %v2231_v60 = vmax.f32 %v2091_v18, 0.0 }
 0x34a   : > { %v10017_v7 = vpop.f32.mrf.mxu0  ;;  %v2364_v61 = vmax.f32 %v2362_v3, %v2363_v2  ;;  %v2353_v27 = vsel %vm2261_vm4, %v2206_v12, -inf  ;;  %v2370_v11 = vrot.slane %v2369_v17, 2  ;;  %v4415_v0 = vadd.f32 %v9786_v34, %v10048_v62  ;;  %v11361_v12 = vld [vmem:[#allocation12_spill] sm:$0xff] }
 0x34b   : > { %11355 = vst [vmem:[#allocation7_spill] sm:$0xff] %v10017_v7  ;;  %v4071_v32 = vmax.f32 %v3863_v6, 0.0  ;;  %v2302_v36 = vrot.slane %v2301_v31, 1  ;;  %v4072_v7 = vmax.f32 %v3868_v1, 0.0  ;;  %v2354_v2 = vrot.slane %v2353_v27, 4  ;;  %v11360_v6 = vld [vmem:[#allocation11_spill] sm:$0xff] }
 0x34c   : > { %v10038_v44 = vpop.f32.mrf.mxu0  ;;  %v2365_v24 = vrot.slane %v2364_v61, 1  ;;  %v2528_v14 = vsel %vm2261_vm4, %v2231_v60, -inf  ;;  %v4404_v1 = vadd.f32 %v10048_v62, %v9782_v63  ;;  %v3887_v60 = vadd.f32 %v10030_v57, %v9900_v42 }
 0x34d   : > { %11357 = vst [vmem:[#allocation10_spill] sm:$0xff] %v10038_v44  ;;  %v4148_v16 = vpack.c.bf16 %v4071_v32, %v4070_v45  ;;  %v4149_v47 = vpack.c.bf16 %v4073_v52, %v4072_v7  ;;  %v10055_v58 = vmax.f32 %v2301_v31, %v2302_v36  ;;  %v10058_v7 = vpop.f32.mrf.mxu1  ;;  %v4412_v36 = vadd.f32 %v9776_v20, %v10048_v62 }
 0x34e   : > { %v3884_v31 = vadd.f32 %v10030_v57, %v9880_v25  ;;  %v2094_v63 = vadd.f32 %v9729_v49, %v11360_v6  ;;  %v4407_v45 = vadd.f32 %v10048_v62, %v9791_v26  ;;  %v3879_v20 = vadd.f32 %v10030_v57, %v9907_v59 }
 0x34f   : > { %8447 = vmatprep.mubr.msk.bf16.mxu0 %vm1311_vm3, %v4148_v16  ;;  %v10051_v3 = vpop.f32.mrf.mxu0  ;;  %v3876_v16 = vadd.f32 %v10030_v57, %v9890_v21  ;;  %v2086_v21 = vadd.f32 %v9729_v49, %v11361_v12  ;;  %v10085_v25 = vmax.f32 %v2364_v61, %v2365_v24  ;;  %v10087_v34 = vmax.f32 %v2369_v17, %v2370_v11 }
 0x350   : > { %11358 = vst [vmem:[#allocation56_spill] sm:$0xff] %v10051_v3  ;;  %8448 = vmatmul.mubr.msk.bf16.gmra.mxu0 %vm1311_vm3, %v4149_v47  ;;  %v4917_v32 = vmax.f32 %v4415_v0, 0.0  ;;  %v4077_v42 = vmax.f32 %v3887_v60, 0.0  ;;  %v10089_v47 = vpop.f32.mrf.mxu1  ;;  %v4914_v6 = vmax.f32 %v4404_v1, 0.0  ;;  %v4915_v50 = vmax.f32 %v4407_v45, 0.0 }
 0x351   : > { %v10065_v18 = vpop.f32.mrf.mxu0  ;;  %v4074_v37 = vmax.f32 %v3876_v16, 0.0  ;;  %v4075_v12 = vmax.f32 %v3879_v20, 0.0  ;;  %v10091_v3 = vmax.f32 %v2353_v27, %v2354_v2  ;;  %v2529_v26 = vrot.slane %v2528_v14, 4 }
 0x352   : > { %11359 = vst [vmem:[#allocation57_spill] sm:$0xff] %v10065_v18  ;;  %v4916_v18 = vmax.f32 %v4412_v36, 0.0  ;;  %v4076_v44 = vmax.f32 %v3884_v31, 0.0  ;;  %v2230_v61 = vmax.f32 %v2086_v21, 0.0  ;;  %v5042_v24 = vpack.c.bf16 %v4915_v50, %v4914_v6  ;;  %v10099_v16 = vpop.f32.mrf.mxu1 }
 0x353   : > { %v10083_v52 = vpop.f32.mrf.mxu0  ;;  %v4150_v17 = vpack.c.bf16 %v4075_v12, %v4074_v37  ;;  %v4420_v60 = vadd.f32 %v10048_v62, %v9807_v13  ;;  %v3892_v1 = vadd.f32 %v10030_v57, %v9930_v56  ;;  %v4431_v27 = vadd.f32 %v9812_v46, %v10048_v62 }
 0x354   : > { %11362 = vst [vmem:[#allocation11_spill] sm:$0xff] %v10083_v52  ;;  %v2232_v52 = vmax.f32 %v2094_v63, 0.0  ;;  %v5043_v11 = vpack.c.bf16 %v4917_v32, %v4916_v18  ;;  %v4151_v0 = vpack.c.bf16 %v4077_v42, %v4076_v44  ;;  %8477 = vmatprep.mubr.msk.bf16.mxu1 %vm1311_vm3, %v5042_v24  ;;  %v3903_v2 = vadd.f32 %v10030_v57, %v9937_v5  ;;  %v11363_v44 = vld [vmem:[#allocation13_spill] sm:$0xff]  ;;  %v10129_v21 = vpop.f32.mrf.mxu1 }
 0x355   : > { %v10093_v59 = vpop.f32.mrf.mxu0  ;;  %v4423_v50 = vadd.f32 %v10048_v62, %v9817_v54  ;;  %8451 = vmatprep.mubr.msk.bf16.mxu0 %vm1311_vm3, %v4150_v17  ;;  %v2123_v13 = vadd.f32 %v9729_v49, %v11363_v44  ;;  %v4428_v56 = vadd.f32 %v9797_v19, %v10048_v62  ;;  %v3900_v37 = vadd.f32 %v10030_v57, %v9920_v53 }
 0x356   : > { %8478 = vmatmul.mubr.msk.bf16.vlgmr.msra.gmra.mxu1 %vm1311_vm3, %v5043_v11  ;;  %v10119_v5 = vmax.f32 %v2528_v14, %v2529_v26  ;;  %v4918_v54 = vmax.f32 %v4420_v60, 0.0  ;;  %v3895_v36 = vadd.f32 %v10030_v57, %v9948_v4  ;;  %v10124_v31 = vsel %vm2261_vm4, %v2232_v52, -inf  ;;  %v11364_v26 = vld [vmem:[#allocation15_spill] sm:$0xff] }
 0x357   : > { %v4919_v18 = vmax.f32 %v4423_v50, 0.0  ;;  %v10127_v19 = vsel %vm2261_vm4, %v2230_v61, -inf  ;;  %v4921_v53 = vmax.f32 %v4431_v27, 0.0  ;;  %v4081_v63 = vmax.f32 %v3903_v2, 0.0  ;;  %v11365_v2 = vld [vmem:[#allocation14_spill] sm:$0xff] }
 0x358   : > { %8452 = vmatmul.mubr.msk.bf16.gmra.mxu0 %vm1311_vm3, %v4151_v0  ;;  %v4078_v20 = vmax.f32 %v3892_v1, 0.0  ;;  %v4079_v32 = vmax.f32 %v3895_v36, 0.0  ;;  %v4436_v42 = vadd.f32 %v10048_v62, %v9829_v30  ;;  %v2239_v6 = vmax.f32 %v2123_v13, 0.0  ;;  %v10148_v1 = vpop.f32.mrf.mxu1 }
 0x359   : > { %v5044_v14 = vpack.c.bf16 %v4919_v18, %v4918_v54  ;;  %v4920_v4 = vmax.f32 %v4428_v56, 0.0  ;;  %v4080_v12 = vmax.f32 %v3900_v37, 0.0  ;;  %v3908_v52 = vadd.f32 %v10030_v57, %v9972_v29 }
 0x35a   : > { %v2118_v61 = vadd.f32 %v9729_v49, %v11364_v26  ;;  %v4152_v24 = vpack.c.bf16 %v4079_v32, %v4078_v20  ;;  %v4447_v17 = vadd.f32 %v9837_v40, %v10048_v62  ;;  %v4439_v11 = vadd.f32 %v10048_v62, %v9839_v10 }
 0x35b   : > { %v10117_v46 = vpop.f32.mrf.mxu0  ;;  %8481 = vmatprep.mubr.msk.bf16.mxu1 %vm1311_vm3, %v5044_v14  ;;  %v5045_v0 = vpack.c.bf16 %v4921_v53, %v4920_v4  ;;  %v4153_v30 = vpack.c.bf16 %v4081_v63, %v4080_v12  ;;  %v3919_v60 = vadd.f32 %v10030_v57, %v9982_v22  ;;  %v3911_v29 = vadd.f32 %v10030_v57, %v9995_v8  ;;  %v10168_v63 = vpop.f32.mrf.mxu1 }
 0x35c   : > { %v2126_v40 = vadd.f32 %v9729_v49, %v11365_v2  ;;  %v4444_v50 = vadd.f32 %v9825_v39, %v10048_v62  ;;  %v4922_v44 = vmax.f32 %v4436_v42, 0.0  ;;  %v4923_v10 = vmax.f32 %v4439_v11, 0.0  ;;  %8455 = vmatprep.mubr.msk.bf16.mxu0 %vm1311_vm3, %v4152_v24 }
 0x35d   : > { %v10131_v45 = vpop.f32.mrf.mxu0  ;;  %v3916_v22 = vadd.f32 %v10030_v57, %v9962_v55  ;;  %v4082_v13 = vmax.f32 %v3908_v52, 0.0  ;;  %v4083_v8 = vmax.f32 %v3911_v29, 0.0  ;;  %v4452_v56 = vadd.f32 %v10048_v62, %v9857_v43 }
 0x35e   : > { %8482 = vmatmul.mubr.msk.bf16.gmra.mxu1 %vm1311_vm3, %v5045_v0  ;;  %v2238_v49 = vmax.f32 %v2118_v61, 0.0  ;;  %v4925_v37 = vmax.f32 %v4447_v17, 0.0  ;;  %v5046_v54 = vpack.c.bf16 %v4923_v10, %v4922_v44  ;;  %v3924_v39 = vadd.f32 %v10030_v57, %v10010_v41 }
 0x35f   : > { %v10150_v27 = vpop.f32.mrf.mxu0  ;;  %v2536_v18 = vrot.slane %v10124_v31, 4  ;;  %v4085_v36 = vmax.f32 %v3919_v60, 0.0  ;;  %v4154_v53 = vpack.c.bf16 %v4083_v8, %v4082_v13  ;;  %v4455_v55 = vadd.f32 %v10048_v62, %v9865_v48 }
 0x360   : > { %8456 = vmatmul.mubr.msk.bf16.gmra.mxu0 %vm1311_vm3, %v4153_v30  ;;  %v2522_v14 = vrot.slane %v10127_v19, 4  ;;  %v2584_v43 = vsel %vm2261_vm4, %v2239_v6, -inf  ;;  %v4924_v32 = vmax.f32 %v4444_v50, 0.0  ;;  %8485 = vmatprep.mubr.msk.bf16.mxu1 %vm1311_vm3, %v5046_v54  ;;  %v3927_v41 = vadd.f32 %v10030_v57, %v10040_v38  ;;  %v10183_v38 = vpop.f32.mrf.mxu1 }
 0x361   : > { %v10170_v20 = vpop.f32.mrf.mxu0  ;;  %v2240_v42 = vmax.f32 %v2126_v40, 0.0  ;;  %v4084_v4 = vmax.f32 %v3916_v22, 0.0  ;;  %v4926_v12 = vmax.f32 %v4452_v56, 0.0  ;;  %v4927_v52 = vmax.f32 %v4455_v55, 0.0  ;;  %8459 = vmatprep.mubr.msk.bf16.mxu0 %vm1311_vm3, %v4154_v53 }
 0x362   : > { %v2577_v48 = vsel %vm2261_vm4, %v2238_v49, -inf  ;;  %v5047_v26 = vpack.c.bf16 %v4925_v37, %v4924_v32  ;;  %v4086_v61 = vmax.f32 %v3924_v39, 0.0  ;;  %v4087_v24 = vmax.f32 %v3927_v41, 0.0  ;;  %v3958_v37 = vpop.f32.mrf.mxu1 }
 0x363   : > { %v4155_v17 = vpack.c.bf16 %v4085_v36, %v4084_v4  ;;  %v4463_v6 = vadd.f32 %v9863_v15, %v10048_v62  ;;  %v3935_v11 = vadd.f32 %v10030_v57, %v10021_v35  ;;  %v5048_v0 = vpack.c.bf16 %v4927_v52, %v4926_v12  ;;  %v10185_v30 = vpop.f32.mrf.mxu0  ;;  %v11366_v35 = vld [vmem:[#allocation54_spill] sm:$0xff]  ;;  %v11367_v52 = vld [vmem:[#allocation40_spill] sm:$0xff] }
 0x364   : > { %v4156_v60 = vpack.c.bf16 %v4087_v24, %v4086_v61  ;;  %v4468_v29 = vadd.f32 %v10048_v62, %v9874_v23  ;;  %v3940_v2 = vadd.f32 %v10030_v57, %v10089_v47  ;;  %v4471_v40 = vadd.f32 %v10048_v62, %v9888_v28 }
 0x365   : > { %v2578_v50 = vrot.slane %v2577_v48, 4  ;;  %v4460_v15 = vadd.f32 %v9851_v9, %v10048_v62  ;;  %v3932_v44 = vadd.f32 %v10030_v57, %v11366_v35  ;;  %v3943_v23 = vadd.f32 %v10030_v57, %v10129_v21  ;;  %v10201_v10 = vpop.f32.mrf.mxu0 }
 0x366   : > { %8486 = vmatmul.mubr.msk.bf16.gmra.mxu1 %vm1311_vm3, %v5047_v26  ;;  %v2356_v47 = vrot.slane %v10091_v3, 2  ;;  %v2531_v28 = vrot.slane %v10119_v5, 2  ;;  %v2591_v22 = vsel %vm2261_vm4, %v2240_v42, -inf  ;;  %v4931_v9 = vmax.f32 %v4471_v40, 0.0 }
 0x367   : > { %8489 = vmatprep.mubr.msk.bf16.mxu1 %vm1311_vm3, %v5048_v0  ;;  %v2537_v13 = vmax.f32 %v10124_v31, %v2536_v18  ;;  %v4929_v8 = vmax.f32 %v4463_v6, 0.0  ;;  %v4089_v56 = vmax.f32 %v3935_v11, 0.0  ;;  %v4091_v49 = vmax.f32 %v3943_v23, 0.0  ;;  %v10210_v42 = vpop.f32.mrf.mxu0  ;;  %v11369_v6 = vld [vmem:[#allocation38_spill] sm:$0xff] }
 0x368   : > { %8460 = vmatmul.mubr.msk.bf16.gmra.mxu0 %vm1311_vm3, %v4155_v17  ;;  %v2523_v21 = vmax.f32 %v10127_v19, %v2522_v14  ;;  %v2585_v54 = vrot.slane %v2584_v43, 4  ;;  %v4930_v39 = vmax.f32 %v4468_v29, 0.0  ;;  %v4090_v36 = vmax.f32 %v3940_v2, 0.0  ;;  %v11368_v19 = vld [vmem:[#allocation37_spill] sm:$0xff]  ;;  %v11370_v29 = vld [vmem:[#allocation36_spill] sm:$0xff] }
 0x369   : > { %8463 = vmatprep.mubr.msk.bf16.mxu0 %vm1311_vm3, %v4156_v60  ;;  %v2592_v53 = vrot.slane %v2591_v22, 4  ;;  %v2579_v55 = vmax.f32 %v2577_v48, %v2578_v50  ;;  %v4928_v32 = vmax.f32 %v4460_v15, 0.0  ;;  %v4088_v41 = vmax.f32 %v3932_v44, 0.0 }
 0x36a   : > { %v5050_v4 = vpack.c.bf16 %v4931_v9, %v4930_v39  ;;  %v4158_v12 = vpack.c.bf16 %v4091_v49, %v4090_v36  ;;  %v4487_v31 = vadd.f32 %v10048_v62, %v11367_v52  ;;  %v3959_v18 = vadd.f32 %v10030_v57, %v3958_v37 }
 0x36b   : > { %v5049_v26 = vpack.c.bf16 %v4929_v8, %v4928_v32  ;;  %v4157_v61 = vpack.c.bf16 %v4089_v56, %v4088_v41  ;;  %v4479_v14 = vadd.f32 %v11368_v19, %v10048_v62  ;;  %v3951_v24 = vadd.f32 %v10030_v57, %v10099_v16  ;;  %v10229_v16 = vpop.f32.mrf.mxu0 }
 0x36c   : > { %v2524_v48 = vrot.slane %v2523_v21, 2  ;;  %v2586_v17 = vmax.f32 %v2584_v43, %v2585_v54  ;;  %v4484_v11 = vadd.f32 %v10048_v62, %v11369_v6  ;;  %v3956_v0 = vadd.f32 %v10030_v57, %v10168_v63 }
 0x36d   : > { %v2593_v60 = vmax.f32 %v2591_v22, %v2592_v53  ;;  %v4476_v2 = vadd.f32 %v11370_v29, %v10048_v62  ;;  %v3948_v40 = vadd.f32 %v10030_v57, %v10058_v7  ;;  %v2372_v43 = vrot.slane %v10087_v34, 1 }
 0x36e   : > { %8490 = vmatmul.mubr.msk.bf16.gmra.mxu1 %vm1311_vm3, %v5049_v26  ;;  %v2580_v50 = vrot.slane %v2579_v55, 2  ;;  %v4935_v15 = vmax.f32 %v4487_v31, 0.0  ;;  %v4095_v63 = vmax.f32 %v3959_v18, 0.0  ;;  %v2357_v35 = vmax.f32 %v10091_v3, %v2356_v47  ;;  %v11373_v26 = vld [vmem:[#allocation43_spill] sm:$0xff] }
 0x36f   : > { %8493 = vmatprep.mubr.msk.bf16.mxu1 %vm1311_vm3, %v5050_v4  ;;  %v2532_v44 = vmax.f32 %v10119_v5, %v2531_v28  ;;  %v4933_v7 = vmax.f32 %v4479_v14, 0.0  ;;  %v4093_v23 = vmax.f32 %v3951_v24, 0.0  ;;  %v2538_v22 = vrot.slane %v2537_v13, 2  ;;  %v10236_v36 = vpop.f32.mrf.mxu0  ;;  %v11371_v4 = vld [vmem:[#allocation45_spill] sm:$0xff]  ;;  %v11372_v28 = vld [vmem:[#allocation39_spill] sm:$0xff] }
 0x370   : > { %8464 = vmatmul.mubr.msk.bf16.gmra.mxu0 %vm1311_vm3, %v4157_v61  ;;  %v2525_v9 = vmax.f32 %v2523_v21, %v2524_v48  ;;  %v4934_v8 = vmax.f32 %v4484_v11, 0.0  ;;  %v4094_v56 = vmax.f32 %v3956_v0, 0.0  ;;  %v2587_v49 = vrot.slane %v2586_v17, 2  ;;  %v11374_v14 = vld [vmem:[#allocation17_spill] sm:$0xff] }
 0x371   : > { %8467 = vmatprep.mubr.msk.bf16.mxu0 %vm1311_vm3, %v4158_v12  ;;  %v2594_v37 = vrot.slane %v2593_v60, 2  ;;  %v4932_v54 = vmax.f32 %v4476_v2, 0.0  ;;  %v4092_v39 = vmax.f32 %v3948_v40, 0.0  ;;  %v2581_v53 = vmax.f32 %v2579_v55, %v2580_v50  ;;  %v10246_v55 = vpop.f32.mrf.mxu0 }
 0x372   : > { %v5052_v32 = vpack.c.bf16 %v4935_v15, %v4934_v8  ;;  %v4160_v41 = vpack.c.bf16 %v4095_v63, %v4094_v56  ;;  %v4503_v3 = vadd.f32 %v10048_v62, %v11371_v4  ;;  %v4495_v12 = vadd.f32 %v11372_v28, %v10048_v62 }
 0x373   : > { %v5051_v47 = vpack.c.bf16 %v4933_v7, %v4932_v54  ;;  %v4159_v5 = vpack.c.bf16 %v4093_v23, %v4092_v39  ;;  %v3967_v21 = vadd.f32 %v10030_v57, %v10183_v38  ;;  %v2358_v52 = vrot.slane %v2357_v35, 1  ;;  %v10261_v15 = vpop.f32.mrf.mxu0 }
 0x374   : > { %v2539_v31 = vmax.f32 %v2537_v13, %v2538_v22  ;;  %v2526_v18 = vrot.slane %v2525_v9, 1  ;;  %v4500_v61 = vadd.f32 %v10048_v62, %v11373_v26  ;;  %v2588_v19 = vmax.f32 %v2586_v17, %v2587_v49  ;;  %v11375_v49 = vld [vmem:[#allocation49_spill] sm:$0xff] }
 0x375   : > { %v4492_v24 = vadd.f32 %v11374_v14, %v10048_v62  ;;  %v3964_v48 = vadd.f32 %v10030_v57, %v10148_v1  ;;  %v2715_v38 = vpack.c.bf16 %v10055_v58, %v10055_v58  ;;  %v2533_v13 = vrot.slane %v2532_v44, 1  ;;  %v10269_v4 = vpop.f32.mrf.mxu0 }
 0x376   : > { %8494 = vmatmul.mubr.msk.bf16.gmra.mxu1 %vm1311_vm3, %v5051_v47  ;;  %v2582_v6 = vrot.slane %v2581_v53, 1  ;;  %v4939_v11 = vmax.f32 %v4503_v3, 0.0  ;;  %v2724_v17 = vpack.c.bf16 %v10085_v25, %v10085_v25  ;;  %v2595_v0 = vmax.f32 %v2593_v60, %v2594_v37  ;;  %v11378_v47 = vld [vmem:[#allocation41_spill] sm:$0xff] }
 0x377   : > { %8497 = vmatprep.mubr.msk.bf16.mxu1 %vm1311_vm3, %v5052_v32  ;;  %v4937_v29 = vmax.f32 %v4495_v12, 0.0  ;;  %v4097_v57 = vmax.f32 %v3967_v21, 0.0  ;;  %v2373_v1 = vmax.f32 %v10087_v34, %v2372_v43  ;;  %v2359_v2 = vmax.f32 %v2357_v35, %v2358_v52  ;;  %v11376_v34 = vld [vmem:[#allocation44_spill] sm:$0xff]  ;;  %v11377_v32 = vld [vmem:[#allocation47_spill] sm:$0xff] }
 0x378   : > { %8468 = vmatmul.mubr.msk.bf16.gmra.mxu0 %vm1311_vm3, %v4159_v5  ;;  %v2527_v40 = vmax.f32 %v2525_v9, %v2526_v18  ;;  %v4938_v50 = vmax.f32 %v4500_v61, 0.0  ;;  %v2540_v58 = vrot.slane %v2539_v31, 1  ;;  %v2589_v63 = vrot.slane %v2588_v19, 1 }
 0x379   : > { %8471 = vmatprep.mubr.msk.bf16.mxu0 %vm1311_vm3, %v4160_v41  ;;  %v4936_v7 = vmax.f32 %v4492_v24, 0.0  ;;  %v4096_v23 = vmax.f32 %v3964_v48, 0.0  ;;  %v2534_v22 = vmax.f32 %v2532_v44, %v2533_v13  ;;  %v2583_v8 = vmax.f32 %v2581_v53, %v2582_v6 }
 0x37a   : > { %v5054_v56 = vpack.c.bf16 %v4939_v11, %v4938_v50  ;;  %v4519_v25 = vadd.f32 %v10048_v62, %v11375_v49  ;;  %v2596_v60 = vrot.slane %v2595_v0, 1  ;;  %v4511_v43 = vadd.f32 %v11376_v34, %v10048_v62 }
 0x37b   : > { %v5053_v37 = vpack.c.bf16 %v4937_v29, %v4936_v7  ;;  %v4161_v54 = vpack.c.bf16 %v4097_v57, %v4096_v23  ;;  %v2725_v35 = vpack.c.bf16 %v2373_v1, %v2373_v1  ;;  %v2723_v9 = vpack.c.bf16 %v2359_v2, %v2359_v2  ;;  %v11381_v57 = vld [vmem:[#allocation8_spill] sm:$0xff] }
 0x37c   : > { %v2747_v39 = vpack.c.bf16 %v2527_v40, %v2527_v40  ;;  %v4516_v41 = vadd.f32 %v10048_v62, %v11377_v32  ;;  %v6983_v44 = vunpack.c.l.b16 %v2715_v38  ;;  %v2541_v53 = vmax.f32 %v2539_v31, %v2540_v58  ;;  %v11383_v7 = vld [vmem:[#allocation48_spill] sm:$0xff] }
 0x37d   : > { %v2590_v3 = vmax.f32 %v2588_v19, %v2589_v63  ;;  %v4508_v5 = vadd.f32 %v11378_v47, %v10048_v62  ;;  %v11379_v28 = vpack.c.bf16 %v10034_v51, %v10034_v51  ;;  %v2748_v21 = vpack.c.bf16 %v2534_v22, %v2534_v22 }
 0x37e   : > { %8498 = vmatmul.mubr.msk.bf16.gmra.mxu1 %vm1311_vm3, %v5053_v37  ;;  %v2755_v52 = vpack.c.bf16 %v2583_v8, %v2583_v8  ;;  %v4943_v18 = vmax.f32 %v4519_v25, 0.0  ;;  %v11380_v31 = vpack.c.bf16 %v10036_v33, %v10036_v33  ;;  %v6992_v61 = vunpack.c.l.b16 %v2724_v17  ;;  %v11382_v33 = vld [vmem:[#allocation4_spill] sm:$0xff]  ;;  %v11384_v8 = vld [vmem:[#allocation3_spill] sm:$0xff]  ;;  %v11386_v25 = vld [vmem:[#allocation9_spill] sm:$0xff] }
 0x37f   : > { %v6984_v12 = vunpack.c.l.b16 %v11379_v28  ;;  %8501 = vmatprep.mubr.msk.bf16.mxu1 %vm1311_vm3, %v5054_v56  ;;  %v2597_v19 = vmax.f32 %v2595_v0, %v2596_v60  ;;  %v4941_v14 = vmax.f32 %v4511_v43, 0.0  ;;  %v6993_v24 = vunpack.c.l.b16 %v2725_v35  ;;  %v11387_v37 = vld [vmem:[#allocation35_spill] sm:$0xff]  ;;  %v11388_v35 = vld [vmem:[#allocation46_spill] sm:$0xff] }
 0x380   : > { %8472 = vmatmul.mubr.msk.bf16.gmra.mxu0 %vm1311_vm3, %v4161_v54  ;;  %v6985_v26 = vunpack.c.l.b16 %v11380_v31  ;;  %v6991_v48 = vunpack.c.l.b16 %v2723_v9  ;;  %v7015_v38 = vunpack.c.l.b16 %v2747_v39  ;;  %v4942_v13 = vmax.f32 %v4516_v41, 0.0 }
 0x381   : > { %v2749_v51 = vpack.c.bf16 %v2541_v53, %v2541_v53  ;;  %v2756_v11 = vpack.c.bf16 %v2590_v3, %v2590_v3  ;;  %v4940_v29 = vmax.f32 %v4508_v5, 0.0  ;;  %v7046_v1 = vsel %vm6766_vm9, %v6983_v44, %v11381_v57  ;;  %v11390_v3 = vld [vmem:[#allocation42_spill] sm:$0xff] }
 0x382   : > { %v7016_v2 = vunpack.c.l.b16 %v2748_v21  ;;  %v7023_v40 = vunpack.c.l.b16 %v2755_v52  ;;  %v5056_v50 = vpack.c.bf16 %v4943_v18, %v4942_v13  ;;  %v4535_v17 = vadd.f32 %v10048_v62, %v11382_v33  ;;  %v11394_v13 = vld [vmem:[#allocation50_spill] sm:$0xff] }
 0x383   : > { %v2757_v58 = vpack.c.bf16 %v2597_v19, %v2597_v19  ;;  %v5055_v63 = vpack.c.bf16 %v4941_v14, %v4940_v29  ;;  %v4527_v23 = vadd.f32 %v11383_v7, %v10048_v62  ;;  %v7047_v22 = vsel %vm6768_vm10, %v6984_v12, %v7046_v1  ;;  %v11393_v14 = vld [vmem:[#allocation53_spill] sm:$0xff]  ;;  %v11396_v57 = vld [vmem:[#allocation2_spill] sm:$0xff] }
 0x384   : > { %v4532_v56 = vadd.f32 %v10048_v62, %v11384_v8  ;;  %v10296_v49 = vsel %vm6770_vm11, %v6985_v26, %v7047_v22  ;;  %v7053_v60 = vsel %vm6766_vm9, %v6991_v48, %v11386_v25  ;;  %v7074_v54 = vsel %vm6766_vm9, %v7015_v38, %v11387_v37  ;;  %v11397_v7 = vld [vmem:[#allocation10_spill] sm:$0xff]  ;;  %v11398_v8 = vld [vmem:[#allocation52_spill] sm:$0xff]  ;;  %v11399_v25 = vld [vmem:[#allocation55_spill] sm:$0xff] }
 0x385   : > { %11385 = vst [vmem:[#allocation12_spill] sm:$0xff] %v10296_v49  ;;  %v7017_v34 = vunpack.c.l.b16 %v2749_v51  ;;  %v7024_v43 = vunpack.c.l.b16 %v2756_v11  ;;  %v4524_v9 = vadd.f32 %v11388_v35, %v10048_v62  ;;  %v7054_v32 = vsel %vm6768_vm10, %v6992_v61, %v7053_v60  ;;  %v11395_v11 = vld [vmem:[#allocation5_spill] sm:$0xff]  ;;  %v11400_v37 = vld [vmem:[#allocation51_spill] sm:$0xff] }
 0x386   : > { %8502 = vmatmul.mubr.msk.bf16.gmra.mxu1 %vm1311_vm3, %v5055_v63  ;;  %v4947_v41 = vmax.f32 %v4535_v17, 0.0  ;;  %v10310_v44 = vsel %vm6770_vm11, %v6993_v24, %v7054_v32  ;;  %v7075_v53 = vsel %vm6768_vm10, %v7016_v2, %v7074_v54  ;;  %v7081_v47 = vsel %vm6766_vm9, %v7023_v40, %v11390_v3 }
 0x387   : > { %8505 = vmatprep.mubr.msk.bf16.mxu1 %vm1311_vm3, %v5056_v50  ;;  %11389 = vst [vmem:[#allocation13_spill] sm:$0xff] %v10310_v44  ;;  %v7025_v5 = vunpack.c.l.b16 %v2757_v58  ;;  %v4945_v28 = vmax.f32 %v4527_v23, 0.0  ;;  %v10318_v21 = vsel %vm6770_vm11, %v7017_v34, %v7075_v53  ;;  %v4946_v52 = vmax.f32 %v4532_v56, 0.0 }
 0x388   : > { %11391 = vst [vmem:[#allocation15_spill] sm:$0xff] %v10318_v21  ;;  %v7082_v18 = vsel %vm6768_vm10, %v7024_v43, %v7081_v47  ;;  %v4944_v31 = vmax.f32 %v4524_v9, 0.0  ;;  %v4551_v24 = vadd.f32 %v10048_v62, %v11393_v14  ;;  %v4543_v51 = vadd.f32 %v11394_v13, %v10048_v62 }
 0x389   : > { %v10324_v61 = vsel %vm6770_vm11, %v7025_v5, %v7082_v18  ;;  %v5058_v19 = vpack.c.bf16 %v4947_v41, %v4946_v52  ;;  %v4548_v29 = vadd.f32 %v10048_v62, %v11395_v11  ;;  %v4540_v1 = vadd.f32 %v11396_v57, %v10048_v62  ;;  %v11401_v5 = vld [vmem:[#allocation7_spill] sm:$0xff]  ;;  %v11402_v52 = vld [vmem:[#allocation57_spill] sm:$0xff] }
 0x38a   : > { %11392 = vst [vmem:[#allocation14_spill] sm:$0xff] %v10324_v61  ;;  %v5057_v38 = vpack.c.bf16 %v4945_v28, %v4944_v31  ;;  %v4951_v40 = vmax.f32 %v4551_v24, 0.0  ;;  %v4949_v50 = vmax.f32 %v4543_v51, 0.0  ;;  %v4567_v23 = vadd.f32 %v10048_v62, %v11397_v7  ;;  %v11403_v31 = vld [vmem:[#allocation6_spill] sm:$0xff] }
 0x38b   : > { %v10282_v6 = vpop.f32.mrf.mxu0  ;;  %v4950_v33 = vmax.f32 %v4548_v29, 0.0  ;;  %v4948_v17 = vmax.f32 %v4540_v1, 0.0  ;;  %v4559_v56 = vadd.f32 %v11398_v8, %v10048_v62  ;;  %v4564_v60 = vadd.f32 %v10048_v62, %v11399_v25  ;;  %v11404_v1 = vld [vmem:[#allocation11_spill] sm:$0xff] }
 0x38c   : > { %v4556_v54 = vadd.f32 %v11400_v37, %v10048_v62  ;;  %v4955_v43 = vmax.f32 %v4567_v23, 0.0  ;;  %v4583_v3 = vadd.f32 %v10048_v62, %v10093_v59  ;;  %v4575_v28 = vadd.f32 %v11401_v5, %v10048_v62 }
 0x38d   : > { %v10288_v0 = vpop.f32.mrf.mxu0  ;;  %v5060_v63 = vpack.c.bf16 %v4951_v40, %v4950_v33  ;;  %v5059_v22 = vpack.c.bf16 %v4949_v50, %v4948_v17  ;;  %v4953_v35 = vmax.f32 %v4559_v56, 0.0  ;;  %v4954_v9 = vmax.f32 %v4564_v60, 0.0  ;;  %v11405_v33 = vld [vmem:[#allocation56_spill] sm:$0xff] }
 0x38e   : > { %8506 = vmatmul.mubr.msk.bf16.gmra.mxu1 %vm1311_vm3, %v5057_v38  ;;  %v4952_v32 = vmax.f32 %v4556_v54, 0.0  ;;  %v4580_v18 = vadd.f32 %v10048_v62, %v11402_v52  ;;  %v4959_v24 = vmax.f32 %v4583_v3, 0.0  ;;  %v4957_v38 = vmax.f32 %v4575_v28, 0.0 }
 0x38f   : > { %v10305_v39 = vpop.f32.mrf.mxu0  ;;  %8509 = vmatprep.mubr.msk.bf16.mxu1 %vm1311_vm3, %v5058_v19  ;;  %v5062_v53 = vpack.c.bf16 %v4955_v43, %v4954_v9  ;;  %v4572_v19 = vadd.f32 %v11403_v31, %v10048_v62  ;;  %v4599_v29 = vadd.f32 %v10048_v62, %v10170_v20  ;;  %v4591_v40 = vadd.f32 %v11404_v1, %v10048_v62 }
 0x390   : > { %v5061_v47 = vpack.c.bf16 %v4953_v35, %v4952_v32  ;;  %v4958_v13 = vmax.f32 %v4580_v18, 0.0  ;;  %v4596_v50 = vadd.f32 %v10048_v62, %v10131_v45  ;;  %v4588_v17 = vadd.f32 %v11405_v33, %v10048_v62 }
 0x391   : > { %v10321_v26 = vpop.f32.mrf.mxu0  ;;  %v4956_v59 = vmax.f32 %v4572_v19, 0.0  ;;  %v4963_v7 = vmax.f32 %v4599_v29, 0.0  ;;  %v4961_v23 = vmax.f32 %v4591_v40, 0.0  ;;  %v4615_v25 = vadd.f32 %v10048_v62, %v10229_v16 }
 0x392   : > { %v5064_v11 = vpack.c.bf16 %v4959_v24, %v4958_v13  ;;  %v4960_v20 = vmax.f32 %v4588_v17, 0.0  ;;  %v4607_v45 = vadd.f32 %v10150_v27, %v10048_v62  ;;  %v4612_v37 = vadd.f32 %v10048_v62, %v10201_v10 }
 0x393   : > { %v5063_v57 = vpack.c.bf16 %v4957_v38, %v4956_v59  ;;  %v4604_v54 = vadd.f32 %v10117_v46, %v10048_v62  ;;  %v4967_v35 = vmax.f32 %v4615_v25, 0.0  ;;  %v4631_v10 = vadd.f32 %v10048_v62, %v10269_v4 }
 0x394   : > { %v5065_v60 = vpack.c.bf16 %v4961_v23, %v4960_v20  ;;  %v4965_v9 = vmax.f32 %v4607_v45, 0.0  ;;  %v4966_v16 = vmax.f32 %v4612_v37, 0.0  ;;  %v4623_v46 = vadd.f32 %v10210_v42, %v10048_v62 }
 0x395   : > { %v4628_v5 = vadd.f32 %v10048_v62, %v10246_v55  ;;  %v4620_v28 = vadd.f32 %v10185_v30, %v10048_v62  ;;  %v4971_v18 = vmax.f32 %v4631_v10, 0.0  ;;  %v4647_v42 = vadd.f32 %v10048_v62, %v10321_v26  ;;  %v8740_v30 = vld [vmem:[%s11273_s15 + $0x8] sm:$0xff]  }
 0x396   : > { %8510 = vmatmul.mubr.msk.bf16.gmra.mxu1 %vm1311_vm3, %v5059_v22  ;;  %v4962_v22 = vmax.f32 %v4596_v50, 0.0  ;;  %v5068_v27 = vpack.c.bf16 %v4967_v35, %v4966_v16  ;;  %v4969_v31 = vmax.f32 %v4623_v46, 0.0  ;;  %v4639_v55 = vadd.f32 %v10261_v15, %v10048_v62  ;;  %8605 = vmatprep.subr.bf16.mxu0 %v8740_v30 }
 0x397   : > { %8513 = vmatprep.mubr.msk.bf16.mxu1 %vm1311_vm3, %v5060_v63  ;;  %v4970_v19 = vmax.f32 %v4628_v5, 0.0  ;;  %v4968_v24 = vmax.f32 %v4620_v28, 0.0  ;;  %v4644_v59 = vadd.f32 %v10048_v62, %v10288_v0  ;;  %v4636_v29 = vadd.f32 %v10236_v36, %v10048_v62  ;;  %8606 = vmatpush3.bf16.msra.mxu0 %v8740_v30 }
 0x398   : > { %v5066_v56 = vpack.c.bf16 %v4963_v7, %v4962_v22  ;;  %v4975_v26 = vmax.f32 %v4647_v42, 0.0  ;;  %v4655_v17 = vadd.f32 %v10305_v39, %v10048_v62  ;;  %v4652_v23 = vadd.f32 %v10282_v6, %v10048_v62 }
 0x399   : > { %v5070_v38 = vpack.c.bf16 %v4971_v18, %v4970_v19  ;;  %v5069_v13 = vpack.c.bf16 %v4969_v31, %v4968_v24  ;;  %v4974_v15 = vmax.f32 %v4644_v59, 0.0  ;;  %v4972_v40 = vmax.f32 %v4636_v29, 0.0 }
 0x39a   : > { %v10337_v2 = vpop.f32.mrf.mxu0  ;;  %v4977_v20 = vmax.f32 %v4655_v17, 0.0 }
 0x39b   : > { %v5072_v50 = vpack.c.bf16 %v4975_v26, %v4974_v15  ;;  %v4668_v35 = vadd.f32 %v10337_v2, %v10048_v62 }
 0x39c   : > { %v10340_v58 = vpop.f32.mrf.mxu0 }
 0x39d   : > { %v4660_v36 = vadd.f32 %v10048_v62, %v10340_v58 }
 0x39e   : > { %v10351_v34 = vpop.f32.mrf.mxu0  ;;  %8514 = vmatmul.mubr.msk.bf16.gmra.mxu1 %vm1311_vm3, %v5061_v47 }
 0x39f   : > { %8517 = vmatprep.mubr.msk.bf16.mxu1 %vm1311_vm3, %v5062_v53  ;;  %v4964_v53 = vmax.f32 %v4604_v54, 0.0  ;;  %v4671_v58 = vadd.f32 %v10351_v34, %v10048_v62 }
 0x3a0   : > { %v10354_v41 = vpop.f32.mrf.mxu0 }
 0x3a1   : > { %v5067_v47 = vpack.c.bf16 %v4965_v9, %v4964_v53  ;;  %v4663_v33 = vadd.f32 %v10048_v62, %v10354_v41  ;;  %v4976_v41 = vmax.f32 %v4652_v23, 0.0  ;;  %v4981_v16 = vmax.f32 %v4671_v58, 0.0 }
 0x3a3   : > { %v4979_v22 = vmax.f32 %v4663_v33, 0.0  ;;  %v5073_v37 = vpack.c.bf16 %v4977_v20, %v4976_v41  ;;  %v11407_v20 = vld [vmem:[#allocation18_spill] sm:$0xff] }
 0x3a6   : > { %v10365_v14 = vpop.f32.mrf.mxu0  ;;  %8518 = vmatmul.mubr.msk.bf16.gmra.mxu1 %vm1311_vm3, %v5063_v57  ;;  %v4973_v57 = vmax.f32 %v4639_v55, 0.0 }
 0x3a7   : > { %8521 = vmatprep.mubr.msk.bf16.mxu1 %vm1311_vm3, %v5064_v11  ;;  %v4684_v5 = vadd.f32 %v10365_v14, %v10048_v62 }
 0x3a8   : > { %v10368_v51 = vpop.f32.mrf.mxu0  ;;  %v5071_v0 = vpack.c.bf16 %v4973_v57, %v4972_v40 }
 0x3a9   : > { %v4676_v6 = vadd.f32 %v10048_v62, %v10368_v51  ;;  %v4984_v19 = vmax.f32 %v4684_v5, 0.0 }
 0x3aa   : > { %v10379_v63 = vpop.f32.mrf.mxu0 }
 0x3ab   : > { %v4982_v53 = vmax.f32 %v4676_v6, 0.0  ;;  %v4687_v51 = vadd.f32 %v10379_v63, %v10048_v62 }
 0x3ac   : > { %v4678_v8 = vpop.f32.mrf.mxu0 }
 0x3ad   : > { %v4679_v39 = vadd.f32 %v10048_v62, %v4678_v8  ;;  %v4985_v18 = vmax.f32 %v4687_v51, 0.0 }
 0x3ae   : > { %8522 = vmatmul.mubr.msk.bf16.gmra.mxu1 %vm1311_vm3, %v5065_v60 }
 0x3af   : > { %8525 = vmatprep.mubr.msk.bf16.mxu1 %vm1311_vm3, %v5066_v56  ;;  %v4978_v56 = vmax.f32 %v4660_v36, 0.0  ;;  %v4983_v9 = vmax.f32 %v4679_v39, 0.0 }
 0x3b1   : > { %v5074_v60 = vpack.c.bf16 %v4979_v22, %v4978_v56  ;;  %v5076_v10 = vpack.c.bf16 %v4983_v9, %v4982_v53  ;;  %v11408_v9 = vld [vmem:[#allocation20_spill] sm:$0xff] }
 0x3b6   : > { %v10391_v43 = vpop.f32.mrf.mxu0  ;;  %8526 = vmatmul.mubr.msk.bf16.gmra.mxu1 %vm1311_vm3, %v5067_v47 }
 0x3b7   : > { %8529 = vmatprep.mubr.msk.bf16.mxu1 %vm1311_vm3, %v5068_v27  ;;  %v4980_v27 = vmax.f32 %v4668_v35, 0.0  ;;  %v4700_v14 = vadd.f32 %v10391_v43, %v10048_v62  ;;  %v11406_v43 = vld [vmem:[#allocation16_spill] sm:$0xff] }
 0x3b8   : > { %v10394_v32 = vpop.f32.mrf.mxu0 }
 0x3b9   : > { %v5075_v34 = vpack.c.bf16 %v4981_v16, %v4980_v27  ;;  %v4692_v46 = vadd.f32 %v10048_v62, %v10394_v32  ;;  %v4988_v26 = vmax.f32 %v4700_v14, 0.0 }
 0x3ba   : > { %v10396_v3 = vpop.f32.mrf.mxu0 }
 0x3bb   : > { %v4986_v31 = vmax.f32 %v4692_v46, 0.0  ;;  %v4703_v32 = vadd.f32 %v10396_v3, %v10048_v62 }
 0x3bc   : > { %v4694_v52 = vpop.f32.mrf.mxu0 }
 0x3bd   : > { %v4695_v47 = vadd.f32 %v10048_v62, %v4694_v52  ;;  %v4989_v30 = vmax.f32 %v4703_v32, 0.0 }
 0x3be   : > { %v10408_v4 = vpop.f32.mrf.mxu0  ;;  %8530 = vmatmul.mubr.msk.bf16.gmra.mxu1 %vm1311_vm3, %v5069_v13 }
 0x3bf   : > { %8533 = vmatprep.mubr.msk.bf16.mxu1 %vm1311_vm3, %v5070_v38  ;;  %v4987_v28 = vmax.f32 %v4695_v47, 0.0  ;;  %v5077_v38 = vpack.c.bf16 %v4985_v18, %v4984_v19  ;;  %v5079_v40 = vpack.c.bf16 %v4989_v30, %v4988_v26  ;;  %v4716_v17 = vadd.f32 %v10408_v4, %v10048_v62  ;;  %v11409_v47 = vld [vmem:[#allocation21_spill] sm:$0xff] }
 0x3c0   : > { %v4707_v11 = vpop.f32.mrf.mxu0 }
 0x3c1   : > { %v5078_v24 = vpack.c.bf16 %v4987_v28, %v4986_v31  ;;  %v4708_v42 = vadd.f32 %v10048_v62, %v4707_v11  ;;  %v10468_v11 = vld [vmem:[%s11264_s6] ss:$0 sm:$0xff]  ;;  %v4992_v41 = vmax.f32 %v4716_v17, 0.0 }
 0x3c2   : > { %v8426_v1 = vpop.f32.mrf.mxu0  ;;  %v2131_v56 = vadd.f32 %v10468_v11, %v11407_v20  ;;  %v2142_v16 = vadd.f32 %v10468_v11, %v11408_v9  ;;  %v11413_v9 = vld [vmem:[#allocation26_spill] sm:$0xff] }
 0x3c3   : > { %v4990_v59 = vmax.f32 %v4708_v42, 0.0  ;;  %v4719_v3 = vadd.f32 %v8426_v1, %v10048_v62 }
 0x3c4   : > { %v4710_v7 = vpop.f32.mrf.mxu0  ;;  %v2241_v35 = vmax.f32 %v2131_v56, 0.0  ;;  %v2244_v5 = vmax.f32 %v2142_v16, 0.0  ;;  %v2171_v16 = vadd.f32 %v10468_v11, %v11413_v9 }
 0x3c5   : > { %v4711_v63 = vadd.f32 %v10048_v62, %v4710_v7  ;;  %v4993_v7 = vmax.f32 %v4719_v3, 0.0 }
 0x3c6   : > { %8534 = vmatmul.mubr.msk.bf16.gmra.mxu1 %vm1311_vm3, %v5071_v0  ;;  %v2598_v46 = vsel %vm2261_vm4, %v2241_v35, -inf  ;;  %v2619_v14 = vsel %vm2261_vm4, %v2244_v5, -inf }
 0x3c7   : > { %8537 = vmatprep.mubr.msk.bf16.mxu1 %vm1311_vm3, %v5072_v50  ;;  %v4991_v55 = vmax.f32 %v4711_v63, 0.0  ;;  %v2139_v50 = vadd.f32 %v10468_v11, %v11406_v43  ;;  %v2599_v32 = vrot.slane %v2598_v46, 4  ;;  %v11410_v43 = vld [vmem:[#allocation22_spill] sm:$0xff] }
 0x3c9   : > { %v5080_v57 = vpack.c.bf16 %v4991_v55, %v4990_v59  ;;  %v2243_v23 = vmax.f32 %v2139_v50, 0.0  ;;  %v2155_v50 = vadd.f32 %v10468_v11, %v11410_v43 }
 0x3cb   : > { %v2612_v58 = vsel %vm2261_vm4, %v2243_v23, -inf }
 0x3ce   : > { %v10433_v25 = vpop.f32.mrf.mxu0  ;;  %8538 = vmatmul.mubr.msk.bf16.gmra.mxu1 %vm1311_vm3, %v5073_v37  ;;  %v5081_v37 = vpack.c.bf16 %v4993_v7, %v4992_v41 }
 0x3cf   : > { %8541 = vmatprep.mubr.msk.bf16.mxu1 %vm1311_vm3, %v5074_v60  ;;  %v4732_v53 = vadd.f32 %v10433_v25, %v10048_v62 }
 0x3d0   : > { %v4723_v45 = vpop.f32.mrf.mxu0 }
 0x3d1   : > { %v4724_v33 = vadd.f32 %v10048_v62, %v4723_v45  ;;  %v4996_v28 = vmax.f32 %v4732_v53, 0.0 }
 0x3d2   : > { %v8430_v54 = vpop.f32.mrf.mxu0 }
 0x3d3   : > { %v4994_v22 = vmax.f32 %v4724_v33, 0.0  ;;  %v4735_v4 = vadd.f32 %v8430_v54, %v10048_v62  ;;  %v2134_v54 = vadd.f32 %v10468_v11, %v11409_v47  ;;  %v11411_v33 = vld [vmem:[#allocation23_spill] sm:$0xff] }
 0x3d4   : > { %v4726_v8 = vpop.f32.mrf.mxu0 }
 0x3d5   : > { %v4727_v15 = vadd.f32 %v10048_v62, %v4726_v8  ;;  %v2242_v19 = vmax.f32 %v2134_v54, 0.0 }
 0x3d6   : > { %v10449_v2 = vpop.f32.mrf.mxu0  ;;  %8542 = vmatmul.mubr.msk.bf16.gmra.mxu1 %vm1311_vm3, %v5075_v34  ;;  %v4997_v34 = vmax.f32 %v4735_v4, 0.0 }
 0x3d7   : > { %8545 = vmatprep.mubr.msk.bf16.mxu1 %vm1311_vm3, %v5076_v10  ;;  %v4995_v1 = vmax.f32 %v4727_v15, 0.0  ;;  %v2613_v10 = vrot.slane %v2612_v58, 4  ;;  %v4748_v55 = vadd.f32 %v10449_v2, %v10048_v62  ;;  %v2605_v26 = vsel %vm2261_vm4, %v2242_v19, -inf }
 0x3d8   : > { %v4739_v52 = vpop.f32.mrf.mxu0  ;;  %v2600_v15 = vmax.f32 %v2598_v46, %v2599_v32  ;;  %v2606_v17 = vrot.slane %v2605_v26, 4 }
 0x3d9   : > { %v5082_v39 = vpack.c.bf16 %v4995_v1, %v4994_v22  ;;  %v4740_v6 = vadd.f32 %v10048_v62, %v4739_v52  ;;  %v2614_v52 = vmax.f32 %v2612_v58, %v2613_v10  ;;  %v5000_v2 = vmax.f32 %v4748_v55, 0.0 }
 0x3da   : > { %v8434_v13 = vpop.f32.mrf.mxu0  ;;  %v2601_v56 = vrot.slane %v2600_v15, 2  ;;  %v2607_v58 = vmax.f32 %v2605_v26, %v2606_v17 }
 0x3db   : > { %v4998_v51 = vmax.f32 %v4740_v6, 0.0  ;;  %v4751_v63 = vadd.f32 %v8434_v13, %v10048_v62  ;;  %v11412_v6 = vld [vmem:[#allocation25_spill] sm:$0xff] }
 0x3dc   : > { %v4742_v29 = vpop.f32.mrf.mxu0  ;;  %v2150_v35 = vadd.f32 %v10468_v11, %v11412_v6  ;;  %v2602_v10 = vmax.f32 %v2600_v15, %v2601_v56 }
 0x3dd   : > { %v4743_v45 = vadd.f32 %v10048_v62, %v4742_v29  ;;  %v2615_v29 = vrot.slane %v2614_v52, 2 }
 0x3de   : > { %8546 = vmatmul.mubr.msk.bf16.gmra.mxu1 %vm1311_vm3, %v5077_v38  ;;  %v10473_v0 = vpop.f32.mrf.mxu0 }
 0x3df   : > { %8549 = vmatprep.mubr.msk.bf16.mxu1 %vm1311_vm3, %v5078_v24  ;;  %v4999_v27 = vmax.f32 %v4743_v45, 0.0  ;;  %v5083_v24 = vpack.c.bf16 %v4997_v34, %v4996_v28  ;;  %v2616_v23 = vmax.f32 %v2614_v52, %v2615_v29  ;;  %v2247_v45 = vmax.f32 %v2155_v50, 0.0  ;;  %v11415_v50 = vld [vmem:[#allocation27_spill] sm:$0xff] }
 0x3e0   : > { %v4755_v36 = vpop.f32.mrf.mxu0  ;;  %v2251_v52 = vmax.f32 %v2171_v16, 0.0 }
 0x3e1   : > { %v5084_v31 = vpack.c.bf16 %v4999_v27, %v4998_v51  ;;  %v4756_v42 = vadd.f32 %v10048_v62, %v4755_v36  ;;  %v10512_v36 = vld [vmem:[%s11270_s12] ss:$0 sm:$0xff]  ;;  %v2617_v53 = vrot.slane %v2616_v23, 1  ;;  %v11414_v51 = vld [vmem:[#allocation24_spill] sm:$0xff] }
 0x3e2   : > { %v8438_v60 = vpop.f32.mrf.mxu0  ;;  %v4764_v4 = vadd.f32 %v10512_v36, %v10473_v0  ;;  %v2640_v0 = vsel %vm2261_vm4, %v2247_v45, -inf  ;;  %v2158_v46 = vadd.f32 %v10468_v11, %v11414_v51 }
 0x3e3   : > { %v5002_v3 = vmax.f32 %v4756_v42, 0.0  ;;  %v4767_v20 = vadd.f32 %v10512_v36, %v8438_v60  ;;  %v2641_v29 = vrot.slane %v2640_v0, 4 }
 0x3e4   : > { %v4758_v8 = vpop.f32.mrf.mxu0  ;;  %v5004_v5 = vmax.f32 %v4764_v4, 0.0  ;;  %v2248_v26 = vmax.f32 %v2158_v46, 0.0 }
 0x3e5   : > { %v4759_v25 = vadd.f32 %v10048_v62, %v4758_v8  ;;  %v2147_v62 = vadd.f32 %v10468_v11, %v11411_v33  ;;  %v5005_v8 = vmax.f32 %v4767_v20, 0.0  ;;  %v2163_v33 = vadd.f32 %v10468_v11, %v11415_v50  ;;  %v10567_v50 = vld [vmem:[%s11272_s14] ss:$0 sm:$0xff] }
 0x3e6   : > { %8550 = vmatmul.mubr.msk.bf16.gmra.mxu1 %vm1311_vm3, %v5079_v40  ;;  %v2620_v40 = vrot.slane %v2619_v14, 4 }
 0x3e7   : > { %8553 = vmatprep.mubr.msk.bf16.mxu1 %vm1311_vm3, %v5080_v57  ;;  %v5003_v59 = vmax.f32 %v4759_v25, 0.0  ;;  %v5001_v57 = vmax.f32 %v4751_v63, 0.0  ;;  %v2246_v25 = vmax.f32 %v2150_v35, 0.0  ;;  %v5087_v63 = vpack.c.bf16 %v5005_v8, %v5004_v5 }
 0x3e8   : > { %v2621_v41 = vmax.f32 %v2619_v14, %v2620_v40 }
 0x3e9   : > { %v5086_v1 = vpack.c.bf16 %v5003_v59, %v5002_v3  ;;  %v5085_v22 = vpack.c.bf16 %v5001_v57, %v5000_v2  ;;  %v2603_v59 = vrot.slane %v2602_v10, 1  ;;  %v2633_v40 = vsel %vm2261_vm4, %v2246_v25, -inf }
 0x3ea   : > { %v2622_v47 = vrot.slane %v2621_v41, 2  ;;  %v2668_v3 = vsel %vm2261_vm4, %v2251_v52, -inf  ;;  %v2634_v20 = vrot.slane %v2633_v40, 4 }
 0x3eb   : > { %v2669_v56 = vrot.slane %v2668_v3, 4 }
 0x3ec   : > { %v2623_v42 = vmax.f32 %v2621_v41, %v2622_v47  ;;  %v2635_v47 = vmax.f32 %v2633_v40, %v2634_v20 }
 0x3ee   : > { %8554 = vmatmul.mubr.msk.bf16.gmra.mxu1 %vm1311_vm3, %v5081_v37  ;;  %v2245_v37 = vmax.f32 %v2147_v62, 0.0  ;;  %v11416_v62 = vld [vmem:[#allocation28_spill] sm:$0xff]  ;;  %v2624_v17 = vrot.slane %v2623_v42, 1 }
 0x3ef   : > { %8557 = vmatprep.mubr.msk.bf16.mxu1 %vm1311_vm3, %v5082_v39  ;;  %v2174_v2 = vadd.f32 %v10468_v11, %v11416_v62 }
 0x3f0   : > { %v2626_v34 = vsel %vm2261_vm4, %v2245_v37, -inf  ;;  %v2642_v37 = vmax.f32 %v2640_v0, %v2641_v29 }
 0x3f1   : > { %v2627_v14 = vrot.slane %v2626_v34, 4  ;;  %v2252_v6 = vmax.f32 %v2174_v2, 0.0 }
 0x3f3   : > { %v2675_v52 = vsel %vm2261_vm4, %v2252_v6, -inf }
 0x3f5   : > { %v10494_v18 = vpop.f32.mrf.mxu0 }
 0x3f6   : > { %8558 = vmatmul.mubr.msk.bf16.gmra.mxu1 %vm1311_vm3, %v5083_v24  ;;  %v2618_v24 = vmax.f32 %v2616_v23, %v2617_v53  ;;  %v4780_v57 = vadd.f32 %v10512_v36, %v10494_v18 }
 0x3f7   : > { %v4771_v38 = vpop.f32.mrf.mxu0  ;;  %8561 = vmatprep.mubr.msk.bf16.mxu1 %vm1311_vm3, %v5084_v31  ;;  %v2608_v31 = vrot.slane %v2607_v58, 2 }
 0x3f8   : > { %v4772_v39 = vadd.f32 %v10512_v36, %v4771_v38  ;;  %v2760_v43 = vpack.c.bf16 %v2618_v24, %v2618_v24  ;;  %v5008_v41 = vmax.f32 %v4780_v57, 0.0 }
 0x3f9   : > { %v8442_v30 = vpop.f32.mrf.mxu0  ;;  %v2609_v15 = vmax.f32 %v2607_v58, %v2608_v31  ;;  %v2249_v58 = vmax.f32 %v2163_v33, 0.0 }
 0x3fa   : > { %v5006_v54 = vmax.f32 %v4772_v39, 0.0  ;;  %v4783_v38 = vadd.f32 %v10512_v36, %v8442_v30  ;;  %v2604_v39 = vmax.f32 %v2602_v10, %v2603_v59  ;;  %v10550_v46 = vunpack.c.l.b16 %v2760_v43 }
 0x3fb   : > { %v4774_v13 = vpop.f32.mrf.mxu0  ;;  %v2610_v45 = vrot.slane %v2609_v15, 1  ;;  %v2654_v25 = vsel %vm2261_vm4, %v2249_v58, -inf  ;;  %v11419_v58 = vld [vmem:[#allocation30_spill] sm:$0xff] }
 0x3fc   : > { %v4775_v7 = vadd.f32 %v10512_v36, %v4774_v13  ;;  %v5009_v18 = vmax.f32 %v4783_v38, 0.0  ;;  %v2758_v5 = vpack.c.bf16 %v2604_v39, %v2604_v39  ;;  %v2655_v57 = vrot.slane %v2654_v25, 4 }
 0x3fd   : > { %v2611_v31 = vmax.f32 %v2609_v15, %v2610_v45  ;;  %v2187_v6 = vadd.f32 %v10468_v11, %v11419_v58 }
 0x3fe   : > { %8562 = vmatmul.mubr.msk.bf16.gmra.mxu1 %vm1311_vm3, %v5085_v22  ;;  %v5007_v60 = vmax.f32 %v4775_v7, 0.0  ;;  %v2647_v22 = vsel %vm2261_vm4, %v2248_v26, -inf  ;;  %v5089_v35 = vpack.c.bf16 %v5009_v18, %v5008_v41  ;;  %v10561_v40 = vunpack.c.l.b16 %v2758_v5 }
 0x3ff   : > { %8565 = vmatprep.mubr.msk.bf16.mxu1 %vm1311_vm3, %v5086_v1  ;;  %v2628_v1 = vmax.f32 %v2626_v34, %v2627_v14  ;;  %v2648_v8 = vrot.slane %v2647_v22, 4  ;;  %v11418_v34 = vld [vmem:[#allocation29_spill] sm:$0xff] }
 0x400   : > { %v5088_v19 = vpack.c.bf16 %v5007_v60, %v5006_v54  ;;  %v10544_v60 = vmax.f32 %v2623_v42, %v2624_v17  ;;  %v2670_v54 = vmax.f32 %v2668_v3, %v2669_v56  ;;  %v2166_v51 = vadd.f32 %v10468_v11, %v11418_v34 }
 0x401   : > { %v2629_v53 = vrot.slane %v2628_v1, 2  ;;  %v2649_v38 = vmax.f32 %v2647_v22, %v2648_v8  ;;  %v2636_v42 = vrot.slane %v2635_v47, 2  ;;  %v2759_v3 = vpack.c.bf16 %v2611_v31, %v2611_v31 }
 0x402   : > { %11417 = vst [vmem:[#allocation54_spill] sm:$0xff] %v10544_v60  ;;  %v2671_v14 = vrot.slane %v2670_v54, 2  ;;  %v10576_v56 = vmax.f32 %v2654_v25, %v2655_v57 }
 0x403   : > { %v2650_v62 = vrot.slane %v2649_v38, 2  ;;  %v10569_v17 = vmax.f32 %v2635_v47, %v2636_v42 }
 0x404   : > { %v2657_v25 = vrot.slane %v10576_v56, 2 }
 0x405   : > { %v10588_v8 = vmax.f32 %v2649_v38, %v2650_v62 }
 0x406   : > { %v8445_v27 = vpop.f32.mrf.mxu0  ;;  %8566 = vmatmul.mubr.msk.bf16.gmra.mxu1 %vm1311_vm3, %v5087_v63 }
 0x407   : > { %8569 = vmatprep.mubr.msk.bf16.mxu1 %vm1311_vm3, %v5088_v19  ;;  %v4796_v10 = vadd.f32 %v10512_v36, %v8445_v27  ;;  %v2630_v27 = vmax.f32 %v2628_v1, %v2629_v53  ;;  %v10571_v1 = vmax.f32 %v2670_v54, %v2671_v14 }
 0x408   : > { %v4787_v28 = vpop.f32.mrf.mxu0 }
 0x409   : > { %v4788_v55 = vadd.f32 %v10512_v36, %v4787_v28  ;;  %v2643_v28 = vrot.slane %v2642_v37, 2  ;;  %v5012_v59 = vmax.f32 %v4796_v10, 0.0  ;;  %v2631_v33 = vrot.slane %v2630_v27, 1 }
 0x40a   : > { %v8446_v32 = vpop.f32.mrf.mxu0 }
 0x40b   : > { %v5010_v7 = vmax.f32 %v4788_v55, 0.0  ;;  %v4799_v9 = vadd.f32 %v10512_v36, %v8446_v32  ;;  %v2250_v55 = vmax.f32 %v2166_v51, 0.0  ;;  %v10558_v26 = vmax.f32 %v2642_v37, %v2643_v28 }
 0x40c   : > { %v4790_v13 = vpop.f32.mrf.mxu0  ;;  %v10581_v37 = vunpack.c.l.b16 %v2759_v3  ;;  %v10586_v53 = vmax.f32 %v2630_v27, %v2631_v33 }
 0x40d   : > { %v4791_v30 = vadd.f32 %v10512_v36, %v4790_v13  ;;  %v5013_v19 = vmax.f32 %v4799_v9, 0.0  ;;  %v2676_v13 = vrot.slane %v2675_v52, 4 }
 0x40e   : > { %8570 = vmatmul.mubr.msk.bf16.gmra.mxu1 %vm1311_vm3, %v5089_v35 }
 0x40f   : > { %v5011_v23 = vmax.f32 %v4791_v30, 0.0  ;;  %v5091_v30 = vpack.c.bf16 %v5013_v19, %v5012_v59  ;;  %v10578_v41 = vmax.f32 %v2675_v52, %v2676_v13  ;;  %v11420_v13 = vld [vmem:[#allocation31_spill] sm:$0xff] }
 0x410   : > { %v8449_v16 = vpop.f32.mrf.mxu0 }
 0x411   : > { %v5090_v4 = vpack.c.bf16 %v5011_v23, %v5010_v7  ;;  %v2661_v7 = vsel %vm2261_vm4, %v2250_v55, -inf  ;;  %v4812_v23 = vadd.f32 %v10512_v36, %v8449_v16 }
 0x412   : > { %v4803_v0 = vpop.f32.mrf.mxu0  ;;  %v2662_v47 = vrot.slane %v2661_v7, 4 }
 0x413   : > { %8573 = vmatprep.mubr.msk.bf16.mxu1 %vm1311_vm3, %v5090_v4  ;;  %v4804_v32 = vadd.f32 %v10512_v36, %v4803_v0  ;;  %v5016_v51 = vmax.f32 %v4812_v23, 0.0 }
 0x414   : > { %v8450_v24 = vpop.f32.mrf.mxu0  ;;  %v10599_v55 = vmax.f32 %v2661_v7, %v2662_v47 }
 0x415   : > { %v4815_v43 = vadd.f32 %v10512_v36, %v8450_v24  ;;  %v5014_v2 = vmax.f32 %v4804_v32, 0.0  ;;  %v2255_v24 = vmax.f32 %v2187_v6, 0.0 }
 0x416   : > { %v4806_v29 = vpop.f32.mrf.mxu0  ;;  %v8479_v22 = vpop.f32.mrf.mxu1  ;;  %8574 = vmatmul.mubr.msk.bf16.gmra.mxu1 %vm1311_vm3, %v5091_v30 }
 0x417   : > { %v4807_v15 = vadd.f32 %v10512_v36, %v4806_v29  ;;  %v5356_v45 = vadd.f32 %v8479_v22, %v10567_v50  ;;  %v5017_v35 = vmax.f32 %v4815_v43, 0.0 }
 0x418   : > { %v8453_v20 = vpop.f32.mrf.mxu0  ;;  %v5347_v9 = vpop.f32.mrf.mxu1 }
 0x419   : > { %v5015_v18 = vmax.f32 %v4807_v15, 0.0  ;;  %v5348_v54 = vadd.f32 %v10567_v50, %v5347_v9  ;;  %v5860_v10 = vmax.f32 %v5356_v45, 0.0  ;;  %v5093_v27 = vpack.c.bf16 %v5017_v35, %v5016_v51 }
 0x41a   : > { %v4819_v16 = vpop.f32.mrf.mxu0  ;;  %v8480_v5 = vpop.f32.mrf.mxu1  ;;  %v10605_v15 = vadd.f32 %v10468_v11, %v11420_v13  ;;  %v4828_v30 = vadd.f32 %v10512_v36, %v8453_v20 }
 0x41b   : > { %v5092_v39 = vpack.c.bf16 %v5015_v18, %v5014_v2  ;;  %v4820_v0 = vadd.f32 %v10512_v36, %v4819_v16  ;;  %v5359_v19 = vadd.f32 %v8480_v5, %v10567_v50  ;;  %v5858_v38 = vmax.f32 %v5348_v54, 0.0 }
 0x41c   : > { %v8454_v28 = vpop.f32.mrf.mxu0  ;;  %v5350_v42 = vpop.f32.mrf.mxu1  ;;  %v5999_v3 = vsel %vm2261_vm4, %v5860_v10, -inf  ;;  %v5020_v47 = vmax.f32 %v4828_v30, 0.0 }
 0x41d   : > { %8577 = vmatprep.mubr.msk.bf16.mxu1 %vm1311_vm3, %v5092_v39  ;;  %v4831_v32 = vadd.f32 %v10512_v36, %v8454_v28  ;;  %v5861_v59 = vmax.f32 %v5359_v19, 0.0  ;;  %v5351_v29 = vadd.f32 %v10567_v50, %v5350_v42  ;;  %v5018_v43 = vmax.f32 %v4820_v0, 0.0 }
 0x41e   : > { %v4822_v14 = vpop.f32.mrf.mxu0  ;;  %v8483_v33 = vpop.f32.mrf.mxu1  ;;  %8578 = vmatmul.mubr.msk.bf16.gmra.mxu1 %vm1311_vm3, %v5093_v27  ;;  %v5990_v22 = vsel %vm2261_vm4, %v5858_v38, -inf  ;;  %v10618_v28 = vsel %vm2261_vm4, %v2255_v24, -inf }
 0x41f   : > { %v4823_v57 = vadd.f32 %v10512_v36, %v4822_v14  ;;  %v6000_v2 = vsel %vm2261_vm4, %v5861_v59, -inf  ;;  %v5859_v18 = vmax.f32 %v5351_v29, 0.0  ;;  %v5372_v23 = vadd.f32 %v8483_v33, %v10567_v50 }
 0x420   : > { %v8457_v62 = vpop.f32.mrf.mxu0  ;;  %v6001_v39 = vmax.f32 %v5999_v3, %v6000_v2  ;;  %v5021_v11 = vmax.f32 %v4831_v32, 0.0  ;;  %v5363_v58 = vpop.f32.mrf.mxu1 }
 0x421   : > { %v5019_v7 = vmax.f32 %v4823_v57, 0.0  ;;  %v4844_v45 = vadd.f32 %v10512_v36, %v8457_v62  ;;  %v5991_v20 = vsel %vm2261_vm4, %v5859_v18, -inf  ;;  %v5864_v9 = vmax.f32 %v5372_v23, 0.0 }
 0x422   : > { %v4835_v6 = vpop.f32.mrf.mxu0  ;;  %v5364_v16 = vadd.f32 %v10567_v50, %v5363_v58  ;;  %v6002_v54 = vrot.slane %v6001_v39, 4  ;;  %v5992_v51 = vmax.f32 %v5990_v22, %v5991_v20  ;;  %v8484_v0 = vpop.f32.mrf.mxu1  ;;  %v5095_v42 = vpack.c.bf16 %v5021_v11, %v5020_v47 }
 0x423   : > { %v5094_v35 = vpack.c.bf16 %v5019_v7, %v5018_v43  ;;  %v4836_v10 = vadd.f32 %v10512_v36, %v4835_v6  ;;  %v5375_v27 = vadd.f32 %v8484_v0, %v10567_v50  ;;  %v5024_v59 = vmax.f32 %v4844_v45, 0.0 }
 0x424   : > { %v8458_v5 = vpop.f32.mrf.mxu0  ;;  %v5862_v19 = vmax.f32 %v5364_v16, 0.0  ;;  %v6003_v32 = vmax.f32 %v6001_v39, %v6002_v54  ;;  %v5993_v14 = vrot.slane %v5992_v51, 4  ;;  %v5366_v29 = vpop.f32.mrf.mxu1  ;;  %v6017_v13 = vsel %vm2261_vm4, %v5864_v9, -inf }
 0x425   : > { %v4847_v38 = vadd.f32 %v10512_v36, %v8458_v5  ;;  %8581 = vmatprep.mubr.msk.bf16.mxu1 %vm1311_vm3, %v5094_v35  ;;  %v5022_v3 = vmax.f32 %v4836_v10, 0.0  ;;  %v5865_v30 = vmax.f32 %v5375_v27, 0.0  ;;  %v5367_v24 = vadd.f32 %v10567_v50, %v5366_v29 }
 0x426   : > { %v4838_v57 = vpop.f32.mrf.mxu0  ;;  %v6004_v43 = vrot.slane %v6003_v32, 2  ;;  %v5994_v33 = vmax.f32 %v5992_v51, %v5993_v14  ;;  %v6008_v62 = vsel %vm2261_vm4, %v5862_v19, -inf  ;;  %v8487_v18 = vpop.f32.mrf.mxu1  ;;  %8582 = vmatmul.mubr.msk.bf16.gmra.mxu1 %vm1311_vm3, %v5095_v42 }
 0x427   : > { %v4839_v2 = vadd.f32 %v10512_v36, %v4838_v57  ;;  %v6018_v23 = vsel %vm2261_vm4, %v5865_v30, -inf  ;;  %v5025_v22 = vmax.f32 %v4847_v38, 0.0  ;;  %v5863_v39 = vmax.f32 %v5367_v24, 0.0 }
 0x428   : > { %v8461_v7 = vpop.f32.mrf.mxu0  ;;  %v5388_v11 = vadd.f32 %v8487_v18, %v10567_v50  ;;  %v6005_v45 = vmax.f32 %v6003_v32, %v6004_v43  ;;  %v5995_v58 = vrot.slane %v5994_v33, 2  ;;  %v6019_v6 = vmax.f32 %v6017_v13, %v6018_v23  ;;  %v5379_v35 = vpop.f32.mrf.mxu1 }
 0x429   : > { %v5023_v20 = vmax.f32 %v4839_v2, 0.0  ;;  %v6009_v16 = vsel %vm2261_vm4, %v5863_v39, -inf  ;;  %v4860_v54 = vadd.f32 %v10512_v36, %v8461_v7  ;;  %v5380_v51 = vadd.f32 %v10567_v50, %v5379_v35 }
 0x42a   : > { %v4851_v9 = vpop.f32.mrf.mxu0  ;;  %v5868_v47 = vmax.f32 %v5388_v11, 0.0  ;;  %v6006_v10 = vrot.slane %v6005_v45, 1  ;;  %v5996_v0 = vmax.f32 %v5994_v33, %v5995_v58  ;;  %v6020_v5 = vrot.slane %v6019_v6, 4  ;;  %v8488_v27 = vpop.f32.mrf.mxu1 }
 0x42b   : > { %v6010_v19 = vmax.f32 %v6008_v62, %v6009_v16  ;;  %v5097_v42 = vpack.c.bf16 %v5025_v22, %v5024_v59  ;;  %v5096_v32 = vpack.c.bf16 %v5023_v20, %v5022_v3  ;;  %v5866_v29 = vmax.f32 %v5380_v51, 0.0 }
 0x42c   : > { %v8462_v38 = vpop.f32.mrf.mxu0  ;;  %v6035_v14 = vsel %vm2261_vm4, %v5868_v47, -inf  ;;  %v6007_v57 = vmax.f32 %v6005_v45, %v6006_v10  ;;  %v5997_v13 = vrot.slane %v5996_v0, 1  ;;  %v6021_v30 = vmax.f32 %v6019_v6, %v6020_v5  ;;  %v5382_v43 = vpop.f32.mrf.mxu1 }
 0x42d   : > { %v6011_v24 = vrot.slane %v6010_v19, 4  ;;  %v5028_v18 = vmax.f32 %v4860_v54, 0.0  ;;  %v4852_v7 = vadd.f32 %v10512_v36, %v4851_v9  ;;  %v5391_v33 = vadd.f32 %v8488_v27, %v10567_v50  ;;  %8585 = vmatprep.mubr.msk.bf16.mxu1 %vm1311_vm3, %v5096_v32 }
 0x42e   : > { %v4854_v2 = vpop.f32.mrf.mxu0  ;;  %v4863_v62 = vadd.f32 %v10512_v36, %v8462_v38  ;;  %v6567_v59 = vpack.c.bf16 %v6007_v57, %v6007_v57  ;;  %v5998_v3 = vmax.f32 %v5996_v0, %v5997_v13  ;;  %v6022_v23 = vrot.slane %v6021_v30, 2  ;;  %v8491_v39 = vpop.f32.mrf.mxu1  ;;  %8586 = vmatmul.mubr.msk.bf16.gmra.mxu1 %vm1311_vm3, %v5097_v42 }
 0x42f   : > { %v6012_v22 = vmax.f32 %v6010_v19, %v6011_v24  ;;  %v6026_v45 = vsel %vm2261_vm4, %v5866_v29, -inf  ;;  %v5026_v58 = vmax.f32 %v4852_v7, 0.0  ;;  %v5869_v6 = vmax.f32 %v5391_v33, 0.0 }
 0x430   : > { %v8465_v11 = vpop.f32.mrf.mxu0  ;;  %v5383_v20 = vadd.f32 %v10567_v50, %v5382_v43  ;;  %v6566_v35 = vpack.c.bf16 %v5998_v3, %v5998_v3  ;;  %v6023_v9 = vmax.f32 %v6021_v30, %v6022_v23  ;;  %v5029_v47 = vmax.f32 %v4863_v62, 0.0  ;;  %v5395_v54 = vpop.f32.mrf.mxu1 }
 0x431   : > { %v6013_v16 = vrot.slane %v6012_v22, 2  ;;  %v6695_v10 = vunpack.c.l.b16 %v6567_v59  ;;  %v6036_v0 = vsel %vm2261_vm4, %v5869_v6, -inf  ;;  %v4855_v19 = vadd.f32 %v10512_v36, %v4854_v2 }
 0x432   : > { %v4867_v51 = vpop.f32.mrf.mxu0  ;;  %v5867_v5 = vmax.f32 %v5383_v20, 0.0  ;;  %v6694_v27 = vunpack.c.l.b16 %v6566_v35  ;;  %v6024_v38 = vrot.slane %v6023_v9, 1  ;;  %v6037_v32 = vmax.f32 %v6035_v14, %v6036_v0  ;;  %v8492_v29 = vpop.f32.mrf.mxu1 }
 0x433   : > { %v6014_v42 = vmax.f32 %v6012_v22, %v6013_v16  ;;  %v5027_v24 = vmax.f32 %v4855_v19, 0.0  ;;  %v5404_v30 = vadd.f32 %v8491_v39, %v10567_v50  ;;  %v10646_v43 = vadd.f32 %v10512_v36, %v8465_v11 }
 0x434   : > { %v8466_v57 = vpop.f32.mrf.mxu0  ;;  %v6027_v13 = vsel %vm2261_vm4, %v5867_v5, -inf  ;;  %v10649_v7 = vsel %vm6758_vm5, %v6695_v10, %v6694_v27  ;;  %v6025_v33 = vmax.f32 %v6023_v9, %v6024_v38  ;;  %v6038_v2 = vrot.slane %v6037_v32, 4  ;;  %v5398_v59 = vpop.f32.mrf.mxu1 }
 0x435   : > { %v6015_v62 = vrot.slane %v6014_v42, 1  ;;  %v2664_v14 = vrot.slane %v10599_v55, 2  ;;  %v5099_v23 = vpack.c.bf16 %v5029_v47, %v5028_v18  ;;  %v6028_v22 = vmax.f32 %v6026_v45, %v6027_v13 }
 0x436   : > { %v4870_v3 = vpop.f32.mrf.mxu0  ;;  %v5098_v6 = vpack.c.bf16 %v5027_v24, %v5026_v58  ;;  %v6039_v35 = vmax.f32 %v6037_v32, %v6038_v2  ;;  %v5872_v16 = vmax.f32 %v5404_v30, 0.0  ;;  %v5396_v39 = vadd.f32 %v10567_v50, %v5395_v54  ;;  %v8495_v11 = vpop.f32.mrf.mxu1 }
 0x437   : > { %v6016_v20 = vmax.f32 %v6014_v42, %v6015_v62  ;;  %v6029_v5 = vrot.slane %v6028_v22, 4  ;;  %v4868_v9 = vadd.f32 %v10512_v36, %v4867_v51  ;;  %v5407_v19 = vadd.f32 %v8492_v29, %v10567_v50 }
 0x438   : > { %v8469_v0 = vpop.f32.mrf.mxu0  ;;  %8589 = vmatprep.mubr.msk.bf16.mxu1 %vm1311_vm3, %v5098_v6  ;;  %v6569_v27 = vpack.c.bf16 %v6025_v33, %v6025_v33  ;;  %v6040_v45 = vrot.slane %v6039_v35, 2  ;;  %v5032_v58 = vmax.f32 %v10646_v43, 0.0  ;;  %v5411_v47 = vpop.f32.mrf.mxu1  ;;  %v5870_v42 = vmax.f32 %v5396_v39, 0.0 }
 0x439   : > { %v6568_v18 = vpack.c.bf16 %v6016_v20, %v6016_v20  ;;  %8590 = vmatmul.mubr.msk.bf16.gmra.mxu1 %vm1311_vm3, %v5099_v23  ;;  %v6030_v38 = vmax.f32 %v6028_v22, %v6029_v5  ;;  %v5873_v32 = vmax.f32 %v5407_v19, 0.0  ;;  %v4879_v13 = vadd.f32 %v10512_v36, %v8466_v57 }
 0x43a   : > { %v4883_v54 = vpop.f32.mrf.mxu0  ;;  %v6041_v24 = vmax.f32 %v6039_v35, %v6040_v45  ;;  %v6053_v51 = vsel %vm2261_vm4, %v5872_v16, -inf  ;;  %v5030_v29 = vmax.f32 %v4868_v9, 0.0  ;;  %v5399_v30 = vadd.f32 %v10567_v50, %v5398_v59  ;;  %v8496_v33 = vpop.f32.mrf.mxu1 }
 0x43b   : > { %v6696_v2 = vunpack.c.l.b16 %v6568_v18  ;;  %v6031_v6 = vrot.slane %v6030_v38, 2  ;;  %v6054_v43 = vsel %vm2261_vm4, %v5873_v32, -inf  ;;  %v4871_v23 = vadd.f32 %v10512_v36, %v4870_v3 }
 0x43c   : > { %v8470_v62 = vpop.f32.mrf.mxu0  ;;  %v6042_v20 = vrot.slane %v6041_v24, 1  ;;  %v6055_v22 = vmax.f32 %v6053_v51, %v6054_v43  ;;  %v5033_v39 = vmax.f32 %v4879_v13, 0.0  ;;  %v5871_v5 = vmax.f32 %v5399_v30, 0.0  ;;  %v5414_v19 = vpop.f32.mrf.mxu1 }
 0x43d   : > { %v6032_v35 = vmax.f32 %v6030_v38, %v6031_v6  ;;  %v6044_v16 = vsel %vm2261_vm4, %v5870_v42, -inf  ;;  %v5031_v9 = vmax.f32 %v4871_v23, 0.0  ;;  %v5420_v59 = vadd.f32 %v8495_v11, %v10567_v50 }
 0x43e   : > { %v4886_v57 = vpop.f32.mrf.mxu0  ;;  %v6043_v45 = vmax.f32 %v6041_v24, %v6042_v20  ;;  %v6056_v48 = vrot.slane %v6055_v22, 4  ;;  %v6045_v18 = vsel %vm2261_vm4, %v5871_v5, -inf  ;;  %v4892_v32 = vadd.f32 %v10512_v36, %v8469_v0  ;;  %v8499_v12 = vpop.f32.mrf.mxu1 }
 0x43f   : > { %v6033_v3 = vrot.slane %v6032_v35, 1  ;;  %v6046_v63 = vmax.f32 %v6044_v16, %v6045_v18  ;;  %v5100_v51 = vpack.c.bf16 %v5031_v9, %v5030_v29  ;;  %v5876_v13 = vmax.f32 %v5420_v59, 0.0 }
 0x440   : > { %v10668_v30 = vunpack.c.l.b16 %v6569_v27  ;;  %v6057_v43 = vmax.f32 %v6055_v22, %v6056_v48  ;;  %v5101_v38 = vpack.c.bf16 %v5033_v39, %v5032_v58  ;;  %v5412_v42 = vadd.f32 %v10567_v50, %v5411_v47  ;;  %v8473_v6 = vpop.f32.mrf.mxu0  ;;  %v5427_v23 = vpop.f32.mrf.mxu1 }
 0x441   : > { %v10673_v11 = vsel %vm6760_vm6, %v6696_v2, %v10649_v7  ;;  %v6034_v24 = vmax.f32 %v6032_v35, %v6033_v3  ;;  %v6047_v20 = vrot.slane %v6046_v63, 4  ;;  %v4884_v0 = vadd.f32 %v10512_v36, %v4883_v54  ;;  %8593 = vmatprep.mubr.msk.bf16.mxu1 %vm1311_vm3, %v5100_v51 }
 0x442   : > { %v6571_v29 = vpack.c.bf16 %v6043_v45, %v6043_v45  ;;  %v6058_v5 = vrot.slane %v6057_v43, 2  ;;  %v5036_v27 = vmax.f32 %v4892_v32, 0.0  ;;  %v5423_v48 = vadd.f32 %v8496_v33, %v10567_v50  ;;  %8594 = vmatmul.mubr.msk.bf16.gmra.mxu1 %vm1311_vm3, %v5101_v38  ;;  %v8500_v58 = vpop.f32.mrf.mxu1  ;;  %v4899_v9 = vpop.f32.mrf.mxu0  ;;  %v8741_v33 = vld [vmem:[%s11273_s15] sm:$0xff]  }
 0x443   : > { %v6048_v47 = vmax.f32 %v6046_v63, %v6047_v20  ;;  %v6071_v22 = vsel %vm2261_vm4, %v5876_v13, -inf  ;;  %v5874_v39 = vmax.f32 %v5412_v42, 0.0  ;;  %v4895_v7 = vadd.f32 %v10512_v36, %v8470_v62  ;;  %8607 = vmatprep.subr.bf16.mxu0 %v8741_v33 }
 0x444   : > { %v6570_v2 = vpack.c.bf16 %v6034_v24, %v6034_v24  ;;  %v6059_v35 = vmax.f32 %v6057_v43, %v6058_v5  ;;  %v5877_v16 = vmax.f32 %v5423_v48, 0.0  ;;  %v5415_v54 = vadd.f32 %v10567_v50, %v5414_v19  ;;  %v5430_v59 = vpop.f32.mrf.mxu1  ;;  %8608 = vmatpush3.bf16.msra.mxu0 %v8741_v33  ;;  %v8474_v48 = vpop.f32.mrf.mxu0 }
 0x445   : > { %v6049_v45 = vrot.slane %v6048_v47, 2  ;;  %v5034_v18 = vmax.f32 %v4884_v0, 0.0  ;;  %v5037_v32 = vmax.f32 %v4895_v7, 0.0  ;;  %v4887_v63 = vadd.f32 %v10512_v36, %v4886_v57 }
 0x446   : > { %v6060_v3 = vrot.slane %v6059_v35, 1  ;;  %v6072_v51 = vsel %vm2261_vm4, %v5877_v16, -inf  ;;  %v5875_v62 = vmax.f32 %v5415_v54, 0.0  ;;  %v5436_v13 = vadd.f32 %v8499_v12, %v10567_v50  ;;  %v8503_v43 = vpop.f32.mrf.mxu1 }
 0x447   : > { %v6050_v19 = vmax.f32 %v6048_v47, %v6049_v45  ;;  %v6062_v38 = vsel %vm2261_vm4, %v5874_v39, -inf  ;;  %v6073_v42 = vmax.f32 %v6071_v22, %v6072_v51  ;;  %v5035_v24 = vmax.f32 %v4887_v63, 0.0 }
 0x448   : > { %v6061_v20 = vmax.f32 %v6059_v35, %v6060_v3  ;;  %v6063_v0 = vsel %vm2261_vm4, %v5875_v62, -inf  ;;  %v5880_v5 = vmax.f32 %v5436_v13, 0.0  ;;  %v4908_v57 = vadd.f32 %v10512_v36, %v8473_v6  ;;  %v5443_v7 = vpop.f32.mrf.mxu1  ;;  %v4902_v62 = vpop.f32.mrf.mxu0 }
 0x449   : > { %v6051_v16 = vrot.slane %v6050_v19, 1  ;;  %v6074_v54 = vrot.slane %v6073_v42, 4  ;;  %v6064_v4 = vmax.f32 %v6062_v38, %v6063_v0  ;;  %v5102_v12 = vpack.c.bf16 %v5035_v24, %v5034_v18 }
 0x44a   : > { %v10691_v31 = vunpack.c.l.b16 %v6571_v29  ;;  %v6573_v47 = vpack.c.bf16 %v6061_v20, %v6061_v20  ;;  %v5103_v45 = vpack.c.bf16 %v5037_v32, %v5036_v27  ;;  %v5428_v22 = vadd.f32 %v10567_v50, %v5427_v23  ;;  %v8504_v39 = vpop.f32.mrf.mxu1 }
 0x44b   : > { %v10694_v33 = vunpack.c.l.b16 %v6570_v2  ;;  %v6075_v35 = vmax.f32 %v6073_v42, %v6074_v54  ;;  %v6065_v63 = vrot.slane %v6064_v4, 4  ;;  %v4900_v3 = vadd.f32 %v10512_v36, %v4899_v9  ;;  %8597 = vmatprep.mubr.msk.bf16.mxu1 %vm1311_vm3, %v5102_v12 }
 0x44c   : > { %v6089_v6 = vsel %vm2261_vm4, %v5880_v5, -inf  ;;  %v5878_v51 = vmax.f32 %v5428_v22, 0.0  ;;  %v5439_v18 = vadd.f32 %v8500_v58, %v10567_v50  ;;  %v4911_v29 = vadd.f32 %v10512_v36, %v8474_v48  ;;  %8598 = vmatmul.mubr.msk.bf16.gmra.mxu1 %vm1311_vm3, %v5103_v45  ;;  %v5446_v23 = vpop.f32.mrf.mxu1 }
 0x44d   : > { %v10702_v27 = vmax.f32 %v6050_v19, %v6051_v16  ;;  %v6076_v2 = vrot.slane %v6075_v35, 2  ;;  %v6066_v32 = vmax.f32 %v6064_v4, %v6065_v63  ;;  %v5040_v13 = vmax.f32 %v4908_v57, 0.0 }
 0x44e   : > { %v10704_v38 = vunpack.c.l.b16 %v6573_v47  ;;  %v5038_v9 = vmax.f32 %v4900_v3, 0.0  ;;  %v5881_v42 = vmax.f32 %v5439_v18, 0.0  ;;  %v5431_v24 = vadd.f32 %v10567_v50, %v5430_v59  ;;  %v8507_v20 = vpop.f32.mrf.mxu1 }
 0x44f   : > { %v6077_v0 = vmax.f32 %v6075_v35, %v6076_v2  ;;  %v6067_v58 = vrot.slane %v6066_v32, 2  ;;  %v6080_v5 = vsel %vm2261_vm4, %v5878_v51, -inf  ;;  %v4903_v48 = vadd.f32 %v10512_v36, %v4902_v62 }
 0x450   : > { %v6090_v54 = vsel %vm2261_vm4, %v5881_v42, -inf  ;;  %v5041_v19 = vmax.f32 %v4911_v29, 0.0  ;;  %v5879_v16 = vmax.f32 %v5431_v24, 0.0  ;;  %v5452_v4 = vadd.f32 %v8503_v43, %v10567_v50  ;;  %v5459_v57 = vpop.f32.mrf.mxu1 }
 0x451   : > { %v6078_v12 = vrot.slane %v6077_v0, 1  ;;  %v6068_v47 = vmax.f32 %v6066_v32, %v6067_v58  ;;  %v6091_v45 = vmax.f32 %v6089_v6, %v6090_v54  ;;  %v5039_v22 = vmax.f32 %v4903_v48, 0.0 }
 0x452   : > { %v6081_v59 = vsel %vm2261_vm4, %v5879_v16, -inf  ;;  %v5884_v63 = vmax.f32 %v5452_v4, 0.0  ;;  %v5444_v35 = vadd.f32 %v10567_v50, %v5443_v7  ;;  %v5455_v3 = vadd.f32 %v8504_v39, %v10567_v50  ;;  %v8508_v51 = vpop.f32.mrf.mxu1 }
 0x453   : > { %v6079_v36 = vmax.f32 %v6077_v0, %v6078_v12  ;;  %v6069_v18 = vrot.slane %v6068_v47, 1  ;;  %v6092_v62 = vrot.slane %v6091_v45, 4  ;;  %v6082_v29 = vmax.f32 %v6080_v5, %v6081_v59 }
 0x454   : > { %v6572_v43 = vpack.c.bf16 %v10702_v27, %v10702_v27  ;;  %v5105_v2 = vpack.c.bf16 %v5041_v19, %v5040_v13  ;;  %v5104_v42 = vpack.c.bf16 %v5039_v22, %v5038_v9  ;;  %v5885_v32 = vmax.f32 %v5455_v3, 0.0  ;;  %v5462_v6 = vpop.f32.mrf.mxu1 }
 0x455   : > { %v6070_v24 = vmax.f32 %v6068_v47, %v6069_v18  ;;  %v6093_v58 = vmax.f32 %v6091_v45, %v6092_v62  ;;  %v6083_v48 = vrot.slane %v6082_v29, 4  ;;  %v5882_v54 = vmax.f32 %v5444_v35, 0.0 }
 0x456   : > { %v6575_v16 = vpack.c.bf16 %v6079_v36, %v6079_v36  ;;  %v6108_v7 = vsel %vm2261_vm4, %v5885_v32, -inf  ;;  %v5447_v39 = vadd.f32 %v10567_v50, %v5446_v23  ;;  %8601 = vmatprep.mubr.msk.bf16.mxu1 %vm1311_vm3, %v5104_v42  ;;  %v5468_v0 = vadd.f32 %v8507_v20, %v10567_v50  ;;  %v8511_v5 = vpop.f32.mrf.mxu1 }
 0x457   : > { %v6574_v4 = vpack.c.bf16 %v6070_v24, %v6070_v24  ;;  %v6094_v27 = vrot.slane %v6093_v58, 2  ;;  %v6084_v13 = vmax.f32 %v6082_v29, %v6083_v48  ;;  %v6107_v9 = vsel %vm2261_vm4, %v5884_v63, -inf  ;;  %8602 = vmatmul.mubr.msk.bf16.gmra.mxu1 %vm1311_vm3, %v5105_v2 }
 0x458   : > { %v6109_v19 = vmax.f32 %v6107_v9, %v6108_v7  ;;  %v5883_v12 = vmax.f32 %v5447_v39, 0.0  ;;  %v5888_v47 = vmax.f32 %v5468_v0, 0.0  ;;  %v5460_v45 = vadd.f32 %v10567_v50, %v5459_v57  ;;  %v5475_v22 = vpop.f32.mrf.mxu1 }
 0x459   : > { %v6095_v59 = vmax.f32 %v6093_v58, %v6094_v27  ;;  %v6085_v23 = vrot.slane %v6084_v13, 2  ;;  %v6098_v35 = vsel %vm2261_vm4, %v5882_v54, -inf  ;;  %v5471_v20 = vadd.f32 %v8508_v51, %v10567_v50 }
 0x45a   : > { %v6703_v3 = vunpack.c.l.b16 %v6575_v16  ;;  %v6702_v36 = vunpack.c.l.b16 %v6574_v4  ;;  %v6110_v18 = vrot.slane %v6109_v19, 4  ;;  %v6099_v62 = vsel %vm2261_vm4, %v5883_v12, -inf  ;;  %v8512_v63 = vpop.f32.mrf.mxu1 }
 0x45b   : > { %v6096_v29 = vrot.slane %v6095_v59, 1  ;;  %v6086_v2 = vmax.f32 %v6084_v13, %v6085_v23  ;;  %v6100_v42 = vmax.f32 %v6098_v35, %v6099_v62  ;;  %v6125_v32 = vsel %vm2261_vm4, %v5888_v47, -inf }
 0x45c   : > { %v6111_v24 = vmax.f32 %v6109_v19, %v6110_v18  ;;  %v5886_v57 = vmax.f32 %v5460_v45, 0.0  ;;  %v5889_v48 = vmax.f32 %v5471_v20, 0.0  ;;  %v5463_v58 = vadd.f32 %v10567_v50, %v5462_v6  ;;  %v5478_v7 = vpop.f32.mrf.mxu1 }
 0x45d   : > { %v6097_v54 = vmax.f32 %v6095_v59, %v6096_v29  ;;  %v6087_v39 = vrot.slane %v6086_v2, 1  ;;  %v6101_v51 = vrot.slane %v6100_v42, 4  ;;  %v5484_v16 = vadd.f32 %v8511_v5, %v10567_v50 }
 0x45e   : > { %v6112_v0 = vrot.slane %v6111_v24, 2  ;;  %v6126_v4 = vsel %vm2261_vm4, %v5889_v48, -inf  ;;  %v5887_v27 = vmax.f32 %v5463_v58, 0.0  ;;  %v5476_v13 = vadd.f32 %v10567_v50, %v5475_v22  ;;  %v8515_v9 = vpop.f32.mrf.mxu1 }
 0x45f   : > { %v10731_v12 = vunpack.c.l.b16 %v6572_v43  ;;  %v6088_v19 = vmax.f32 %v6086_v2, %v6087_v39  ;;  %v6102_v47 = vmax.f32 %v6100_v42, %v6101_v51  ;;  %v6127_v45 = vmax.f32 %v6125_v32, %v6126_v4 }
 0x460   : > { %v6772_v6 = vsel %vm6758_vm5, %v6703_v3, %v6702_v36  ;;  %v6113_v23 = vmax.f32 %v6111_v24, %v6112_v0  ;;  %v6117_v59 = vsel %vm2261_vm4, %v5887_v27, -inf  ;;  %v5892_v35 = vmax.f32 %v5484_v16, 0.0  ;;  %v5491_v20 = vpop.f32.mrf.mxu1 }
 0x461   : > { %v6576_v5 = vpack.c.bf16 %v6088_v19, %v6088_v19  ;;  %v6103_v18 = vrot.slane %v6102_v47, 2  ;;  %v6116_v62 = vsel %vm2261_vm4, %v5886_v57, -inf  ;;  %v6128_v29 = vrot.slane %v6127_v45, 4 }
 0x462   : > { %v6577_v48 = vpack.c.bf16 %v6097_v54, %v6097_v54  ;;  %v6114_v22 = vrot.slane %v6113_v23, 1  ;;  %v6118_v58 = vmax.f32 %v6116_v62, %v6117_v59  ;;  %v5890_v43 = vmax.f32 %v5476_v13, 0.0  ;;  %v8516_v52 = vpop.f32.mrf.mxu1 }
 0x463   : > { %v6104_v2 = vmax.f32 %v6102_v47, %v6103_v18  ;;  %v6129_v42 = vmax.f32 %v6127_v45, %v6128_v29  ;;  %v6143_v32 = vsel %vm2261_vm4, %v5892_v35, -inf  ;;  %v5487_v3 = vadd.f32 %v8512_v63, %v10567_v50 }
 0x464   : > { %v6115_v36 = vmax.f32 %v6113_v23, %v6114_v22  ;;  %v6119_v24 = vrot.slane %v6118_v58, 4  ;;  %v5479_v39 = vadd.f32 %v10567_v50, %v5478_v7  ;;  %v5500_v51 = vadd.f32 %v8515_v9, %v10567_v50  ;;  %v5494_v16 = vpop.f32.mrf.mxu1 }
 0x465   : > { %v6704_v57 = vunpack.c.l.b16 %v6576_v5  ;;  %v6105_v0 = vrot.slane %v6104_v2, 1  ;;  %v6130_v54 = vrot.slane %v6129_v42, 2  ;;  %v5893_v4 = vmax.f32 %v5487_v3, 0.0 }
 0x466   : > { %v6579_v27 = vpack.c.bf16 %v6115_v36, %v6115_v36  ;;  %v6120_v13 = vmax.f32 %v6118_v58, %v6119_v24  ;;  %v6134_v19 = vsel %vm2261_vm4, %v5890_v43, -inf  ;;  %v5891_v47 = vmax.f32 %v5479_v39, 0.0  ;;  %v8519_v45 = vpop.f32.mrf.mxu1 }
 0x467   : > { %v6106_v59 = vmax.f32 %v6104_v2, %v6105_v0  ;;  %v6131_v35 = vmax.f32 %v6129_v42, %v6130_v54  ;;  %v6144_v63 = vsel %vm2261_vm4, %v5893_v4, -inf  ;;  %v5492_v23 = vadd.f32 %v10567_v50, %v5491_v20 }
 0x468   : > { %v6121_v7 = vrot.slane %v6120_v13, 2  ;;  %v6145_v18 = vmax.f32 %v6143_v32, %v6144_v63  ;;  %v6135_v9 = vsel %vm2261_vm4, %v5891_v47, -inf  ;;  %v5896_v5 = vmax.f32 %v5500_v51, 0.0  ;;  %v5507_v62 = vpop.f32.mrf.mxu1 }
 0x469   : > { %v10744_v29 = vunpack.c.l.b16 %v6577_v48  ;;  %v10747_v22 = vsel %vm6760_vm6, %v6704_v57, %v6772_v6  ;;  %v6132_v58 = vrot.slane %v6131_v35, 1  ;;  %v6136_v43 = vmax.f32 %v6134_v19, %v6135_v9 }
 0x46a   : > { %v10749_v3 = vunpack.c.l.b16 %v6579_v27  ;;  %v6122_v2 = vmax.f32 %v6120_v13, %v6121_v7  ;;  %v6146_v42 = vrot.slane %v6145_v18, 4  ;;  %v5503_v36 = vadd.f32 %v8516_v52, %v10567_v50  ;;  %v8520_v20 = vpop.f32.mrf.mxu1 }
 0x46b   : > { %v6578_v24 = vpack.c.bf16 %v6106_v59, %v6106_v59  ;;  %v6137_v32 = vrot.slane %v6136_v43, 4  ;;  %v5894_v39 = vmax.f32 %v5492_v23, 0.0  ;;  %v5495_v51 = vadd.f32 %v10567_v50, %v5494_v16 }
 0x46c   : > { %v6123_v0 = vrot.slane %v6122_v2, 1  ;;  %v6147_v48 = vmax.f32 %v6145_v18, %v6146_v42  ;;  %v6161_v54 = vsel %vm2261_vm4, %v5896_v5, -inf  ;;  %v5897_v6 = vmax.f32 %v5503_v36, 0.0  ;;  %v5510_v57 = vpop.f32.mrf.mxu1 }
 0x46d   : > { %v6133_v4 = vmax.f32 %v6131_v35, %v6132_v58  ;;  %v6138_v19 = vmax.f32 %v6136_v43, %v6137_v32  ;;  %v5895_v27 = vmax.f32 %v5495_v51, 0.0  ;;  %v5516_v13 = vadd.f32 %v8519_v45, %v10567_v50 }
 0x46e   : > { %v6124_v47 = vmax.f32 %v6122_v2, %v6123_v0  ;;  %v6148_v63 = vrot.slane %v6147_v48, 2  ;;  %v6162_v52 = vsel %vm2261_vm4, %v5897_v6, -inf  ;;  %v5508_v59 = vadd.f32 %v10567_v50, %v5507_v62  ;;  %v8523_v23 = vpop.f32.mrf.mxu1 }
 0x46f   : > { %v6139_v7 = vrot.slane %v6138_v19, 2  ;;  %v6152_v16 = vsel %vm2261_vm4, %v5894_v39, -inf  ;;  %v6163_v18 = vmax.f32 %v6161_v54, %v6162_v52  ;;  %v6153_v9 = vsel %vm2261_vm4, %v5895_v27, -inf }
 0x470   : > { %v10759_v5 = vunpack.c.l.b16 %v6578_v24  ;;  %v6149_v35 = vmax.f32 %v6147_v48, %v6148_v63  ;;  %v6154_v58 = vmax.f32 %v6152_v16, %v6153_v9  ;;  %v5900_v43 = vmax.f32 %v5516_v13, 0.0  ;;  %v5523_v42 = vpop.f32.mrf.mxu1 }
 0x471   : > { %v6581_v45 = vpack.c.bf16 %v6133_v4, %v6133_v4  ;;  %v6140_v2 = vmax.f32 %v6138_v19, %v6139_v7  ;;  %v6164_v36 = vrot.slane %v6163_v18, 4  ;;  %v5519_v32 = vadd.f32 %v8520_v20, %v10567_v50 }
 0x472   : > { %v6580_v51 = vpack.c.bf16 %v6124_v47, %v6124_v47  ;;  %v6150_v62 = vrot.slane %v6149_v35, 1  ;;  %v6155_v0 = vrot.slane %v6154_v58, 4  ;;  %v5898_v6 = vmax.f32 %v5508_v59, 0.0  ;;  %v8524_v34 = vpop.f32.mrf.mxu1 }
 0x473   : > { %v6141_v39 = vrot.slane %v6140_v2, 1  ;;  %v6165_v54 = vmax.f32 %v6163_v18, %v6164_v36  ;;  %v6179_v27 = vsel %vm2261_vm4, %v5900_v43, -inf  ;;  %v5901_v24 = vmax.f32 %v5519_v32, 0.0 }
 0x474   : > { %v6151_v52 = vmax.f32 %v6149_v35, %v6150_v62  ;;  %v6156_v48 = vmax.f32 %v6154_v58, %v6155_v0  ;;  %v5511_v13 = vadd.f32 %v10567_v50, %v5510_v57  ;;  %v5532_v4 = vadd.f32 %v8523_v23, %v10567_v50  ;;  %v5526_v19 = vpop.f32.mrf.mxu1 }
 0x475   : > { %v6142_v63 = vmax.f32 %v6140_v2, %v6141_v39  ;;  %v6166_v7 = vrot.slane %v6165_v54, 2  ;;  %v6180_v20 = vsel %vm2261_vm4, %v5901_v24, -inf  ;;  %v5524_v47 = vadd.f32 %v10567_v50, %v5523_v42 }
 0x476   : > { %v6583_v59 = vpack.c.bf16 %v6151_v52, %v6151_v52  ;;  %v6157_v16 = vrot.slane %v6156_v48, 2  ;;  %v6181_v9 = vmax.f32 %v6179_v27, %v6180_v20  ;;  %v5899_v18 = vmax.f32 %v5511_v13, 0.0  ;;  %v8527_v36 = vpop.f32.mrf.mxu1 }
 0x477   : > { %v6709_v43 = vunpack.c.l.b16 %v6581_v45  ;;  %v6708_v32 = vunpack.c.l.b16 %v6580_v51  ;;  %v6582_v35 = vpack.c.bf16 %v6142_v63, %v6142_v63  ;;  %v6167_v58 = vmax.f32 %v6165_v54, %v6166_v7 }
 0x478   : > { %v6158_v62 = vmax.f32 %v6156_v48, %v6157_v16  ;;  %v6170_v57 = vsel %vm2261_vm4, %v5898_v6, -inf  ;;  %v6182_v23 = vrot.slane %v6181_v9, 4  ;;  %v6171_v2 = vsel %vm2261_vm4, %v5899_v18, -inf  ;;  %v5539_v0 = vpop.f32.mrf.mxu1 }
 0x479   : > { %v6168_v39 = vrot.slane %v6167_v58, 1  ;;  %v6172_v24 = vmax.f32 %v6170_v57, %v6171_v2  ;;  %v5904_v10 = vmax.f32 %v5532_v4, 0.0  ;;  %v5902_v50 = vmax.f32 %v5524_v47, 0.0 }
 0x47a   : > { %v6711_v42 = vunpack.c.l.b16 %v6583_v59  ;;  %v6159_v52 = vrot.slane %v6158_v62, 1  ;;  %v6183_v27 = vmax.f32 %v6181_v9, %v6182_v23  ;;  %v6763_v45 = vsel %vm6762_vm7, %v10668_v30, %v10673_v11  ;;  %v8528_v51 = vpop.f32.mrf.mxu1 }
 0x47b   : > { %v6710_v54 = vunpack.c.l.b16 %v6582_v35  ;;  %v6169_v48 = vmax.f32 %v6167_v58, %v6168_v39  ;;  %v6173_v13 = vrot.slane %v6172_v24, 4  ;;  %v6765_v6 = vsel %vm6764_vm8, %v10694_v33, %v6763_v45 }
 0x47c   : > { %v6160_v63 = vmax.f32 %v6158_v62, %v6159_v52  ;;  %v6184_v7 = vrot.slane %v6183_v27, 2  ;;  %v6767_v4 = vsel %vm6766_vm9, %v10691_v31, %v6765_v6  ;;  %v6774_v20 = vsel %vm6762_vm7, %v10744_v29, %v10747_v22  ;;  %v5542_v47 = vpop.f32.mrf.mxu1 }
 0x47d   : > { %v6174_v59 = vmax.f32 %v6172_v24, %v6173_v13  ;;  %v6197_v30 = vsel %vm2261_vm4, %v5904_v10, -inf  ;;  %v6769_v11 = vsel %vm6768_vm10, %v10731_v12, %v6767_v4  ;;  %v6775_v16 = vsel %vm6764_vm8, %v10759_v5, %v6774_v20  ;;  %v10792_v10 = vld [vmem:[%s11272_s14] ss:$0 sm:$0xff] }
 0x47e   : > { %v6585_v33 = vpack.c.bf16 %v6169_v48, %v6169_v48  ;;  %v6584_v9 = vpack.c.bf16 %v6160_v63, %v6160_v63  ;;  %v6185_v18 = vmax.f32 %v6183_v27, %v6184_v7  ;;  %v6776_v31 = vsel %vm6766_vm9, %v10749_v3, %v6775_v16  ;;  %v8531_v35 = vpop.f32.mrf.mxu1 }
 0x47f   : > { %v6175_v58 = vrot.slane %v6174_v59, 2  ;;  %v6771_v29 = vsel %vm6770_vm11, %v10704_v38, %v6769_v11  ;;  %v6777_v22 = vsel %vm6768_vm10, %v6708_v32, %v6776_v31  ;;  %v5535_v12 = vadd.f32 %v10792_v10, %v8524_v34 }
 0x480   : > { %v6712_v5 = vunpack.c.l.b16 %v6584_v9  ;;  %v6186_v62 = vrot.slane %v6185_v18, 1  ;;  %v6778_v57 = vsel %vm6770_vm11, %v6709_v43, %v6777_v22  ;;  %v5527_v3 = vadd.f32 %v10792_v10, %v5526_v19  ;;  %v5555_v23 = vpop.f32.mrf.mxu1 }
 0x481   : > { %v6176_v2 = vmax.f32 %v6174_v59, %v6175_v58  ;;  %v6821_v39 = vpack.c.b16 %v6778_v57, %v6771_v29  ;;  %v5905_v24 = vmax.f32 %v5535_v12, 0.0  ;;  %v5548_v38 = vadd.f32 %v10792_v10, %v8527_v36 }
 0x482   : > { %v6187_v32 = vmax.f32 %v6185_v18, %v6186_v62  ;;  %v6188_v52 = vsel %vm2261_vm4, %v5902_v50, -inf  ;;  %v5903_v27 = vmax.f32 %v5527_v3, 0.0  ;;  %v5540_v45 = vadd.f32 %v10792_v10, %v5539_v0  ;;  %v8532_v48 = vpop.f32.mrf.mxu1 }
 0x483   : > { %v6779_v34 = vsel %vm6758_vm5, %v6711_v42, %v6710_v54  ;;  %v6177_v13 = vrot.slane %v6176_v2, 1  ;;  %8609 = vmatprep.mubr.msk.bf16.mxu0 %vm2261_vm4, %v6821_v39  ;;  %v6198_v19 = vsel %vm2261_vm4, %v5905_v24, -inf  ;;  %v5908_v43 = vmax.f32 %v5548_v38, 0.0 }
 0x484   : > { %v6713_v6 = vunpack.c.l.b16 %v6585_v33  ;;  %v6199_v63 = vmax.f32 %v6197_v30, %v6198_v19  ;;  %v6189_v7 = vsel %vm2261_vm4, %v5903_v27, -inf  ;;  %v5906_v36 = vmax.f32 %v5540_v45, 0.0  ;;  %v5558_v4 = vpop.f32.mrf.mxu1 }
 0x485   : > { %v6780_v50 = vsel %vm6760_vm6, %v6712_v5, %v6779_v34  ;;  %v6178_v20 = vmax.f32 %v6176_v2, %v6177_v13  ;;  %v6190_v59 = vmax.f32 %v6188_v52, %v6189_v7  ;;  %v5551_v0 = vadd.f32 %v10792_v10, %v8528_v51 }
 0x486   : > { %v6587_v11 = vpack.c.bf16 %v6187_v32, %v6187_v32  ;;  %v6200_v42 = vrot.slane %v6199_v63, 4  ;;  %v6215_v54 = vsel %vm2261_vm4, %v5908_v43, -inf  ;;  %v5543_v16 = vadd.f32 %v10792_v10, %v5542_v47  ;;  %v8535_v9 = vpop.f32.mrf.mxu1 }
 0x487   : > { %v6586_v18 = vpack.c.bf16 %v6178_v20, %v6178_v20  ;;  %v6191_v33 = vrot.slane %v6190_v59, 4  ;;  %v5909_v30 = vmax.f32 %v5551_v0, 0.0  ;;  %v5564_v31 = vadd.f32 %v10792_v10, %v8531_v35 }
 0x488   : > { %v6201_v58 = vmax.f32 %v6199_v63, %v6200_v42  ;;  %v6206_v29 = vsel %vm2261_vm4, %v5906_v36, -inf  ;;  %v5907_v22 = vmax.f32 %v5543_v16, 0.0  ;;  %v5556_v12 = vadd.f32 %v10792_v10, %v5555_v23  ;;  %v5571_v5 = vpop.f32.mrf.mxu1 }
 0x489   : > { %v6714_v51 = vunpack.c.l.b16 %v6586_v18  ;;  %v6192_v62 = vmax.f32 %v6190_v59, %v6191_v33  ;;  %v6216_v57 = vsel %vm2261_vm4, %v5909_v30, -inf  ;;  %v5567_v3 = vadd.f32 %v10792_v10, %v8532_v48 }
 0x48a   : > { %v6202_v47 = vrot.slane %v6201_v58, 2  ;;  %v6217_v2 = vmax.f32 %v6215_v54, %v6216_v57  ;;  %v6207_v39 = vsel %vm2261_vm4, %v5907_v22, -inf  ;;  %v5912_v24 = vmax.f32 %v5564_v31, 0.0  ;;  %v8536_v38 = vpop.f32.mrf.mxu1 }
 0x48b   : > { %v6715_v35 = vunpack.c.l.b16 %v6587_v11  ;;  %v6781_v32 = vsel %vm6762_vm7, %v6713_v6, %v6780_v50  ;;  %v6193_v52 = vrot.slane %v6192_v62, 2  ;;  %v6208_v27 = vmax.f32 %v6206_v29, %v6207_v39 }
 0x48c   : > { %v6782_v23 = vsel %vm6764_vm8, %v6714_v51, %v6781_v32  ;;  %v6203_v45 = vmax.f32 %v6201_v58, %v6202_v47  ;;  %v6218_v34 = vrot.slane %v6217_v2, 4  ;;  %v5910_v13 = vmax.f32 %v5556_v12, 0.0  ;;  %v5574_v19 = vpop.f32.mrf.mxu1  ;;  %v11421_v12 = vld [vmem:[#allocation32_spill] sm:$0xff] }
 0x48d   : > { %v6194_v43 = vmax.f32 %v6192_v62, %v6193_v52  ;;  %v6209_v63 = vrot.slane %v6208_v27, 4  ;;  %v5913_v48 = vmax.f32 %v5567_v3, 0.0  ;;  %v5559_v7 = vadd.f32 %v10792_v10, %v5558_v4 }
 0x48e   : > { %v6204_v36 = vrot.slane %v6203_v45, 1  ;;  %v6219_v20 = vmax.f32 %v6217_v2, %v6218_v34  ;;  %v6233_v59 = vsel %vm2261_vm4, %v5912_v24, -inf  ;;  %v5580_v0 = vadd.f32 %v10792_v10, %v8535_v9  ;;  %v8539_v6 = vpop.f32.mrf.mxu1  ;;  %v10826_v9 = vld [vmem:[%s11264_s6] ss:$0 sm:$0xff] }
 0x48f   : > { %v6195_v50 = vrot.slane %v6194_v43, 1  ;;  %v6210_v11 = vmax.f32 %v6208_v27, %v6209_v63  ;;  %v6234_v42 = vsel %vm2261_vm4, %v5913_v48, -inf  ;;  %v5911_v54 = vmax.f32 %v5559_v7, 0.0 }
 0x490   : > { %v6220_v16 = vrot.slane %v6219_v20, 2  ;;  %v6224_v18 = vsel %vm2261_vm4, %v5910_v13, -inf  ;;  %v6235_v33 = vmax.f32 %v6233_v59, %v6234_v42  ;;  %v5572_v30 = vadd.f32 %v10792_v10, %v5571_v5  ;;  %v5587_v31 = vpop.f32.mrf.mxu1 }
 0x491   : > { %v6205_v4 = vmax.f32 %v6203_v45, %v6204_v36  ;;  %v6196_v58 = vmax.f32 %v6194_v43, %v6195_v50  ;;  %v6211_v29 = vrot.slane %v6210_v11, 2  ;;  %v6225_v22 = vsel %vm2261_vm4, %v5911_v54, -inf }
 0x492   : > { %v10830_v51 = vadd.f32 %v10826_v9, %v11421_v12  ;;  %v6221_v62 = vmax.f32 %v6219_v20, %v6220_v16  ;;  %v6236_v57 = vrot.slane %v6235_v33, 4  ;;  %v6226_v3 = vmax.f32 %v6224_v18, %v6225_v22  ;;  %v8540_v47 = vpop.f32.mrf.mxu1 }
 0x493   : > { %v6588_v5 = vpack.c.bf16 %v6196_v58, %v6196_v58  ;;  %v6783_v2 = vsel %vm6766_vm9, %v6715_v35, %v6782_v23  ;;  %v6212_v39 = vmax.f32 %v6210_v11, %v6211_v29  ;;  %v5916_v24 = vmax.f32 %v5580_v0, 0.0 }
 0x494   : > { %v6222_v32 = vrot.slane %v6221_v62, 1  ;;  %v6237_v52 = vmax.f32 %v6235_v33, %v6236_v57  ;;  %v6227_v27 = vrot.slane %v6226_v3, 4  ;;  %v5914_v45 = vmax.f32 %v5572_v30, 0.0  ;;  %v5590_v34 = vpop.f32.mrf.mxu1 }
 0x495   : > { %v6589_v13 = vpack.c.bf16 %v6205_v4, %v6205_v4  ;;  %v6213_v43 = vrot.slane %v6212_v39, 1  ;;  %v5583_v63 = vadd.f32 %v10792_v10, %v8536_v38  ;;  %v5575_v48 = vadd.f32 %v10792_v10, %v5574_v19 }
 0x496   : > { %v6223_v7 = vmax.f32 %v6221_v62, %v6222_v32  ;;  %v6238_v36 = vrot.slane %v6237_v52, 2  ;;  %v6228_v20 = vmax.f32 %v6226_v3, %v6227_v27  ;;  %v5596_v59 = vadd.f32 %v10792_v10, %v8539_v6  ;;  %v8543_v50 = vpop.f32.mrf.mxu1 }
 0x497   : > { %v6716_v35 = vunpack.c.l.b16 %v6588_v5  ;;  %v6214_v23 = vmax.f32 %v6212_v39, %v6213_v43  ;;  %v5917_v0 = vmax.f32 %v5583_v63, 0.0  ;;  %v5915_v11 = vmax.f32 %v5575_v48, 0.0 }
 0x498   : > { %v6591_v42 = vpack.c.bf16 %v6223_v7, %v6223_v7  ;;  %v6239_v54 = vmax.f32 %v6237_v52, %v6238_v36  ;;  %v6229_v16 = vrot.slane %v6228_v20, 2  ;;  %v6251_v18 = vsel %vm2261_vm4, %v5916_v24, -inf  ;;  %v5603_v33 = vpop.f32.mrf.mxu1 }
 0x499   : > { %v6590_v30 = vpack.c.bf16 %v6214_v23, %v6214_v23  ;;  %v6242_v38 = vsel %vm2261_vm4, %v5914_v45, -inf  ;;  %v6252_v19 = vsel %vm2261_vm4, %v5917_v0, -inf  ;;  %v6243_v4 = vsel %vm2261_vm4, %v5915_v11, -inf }
 0x49a   : > { %v10840_v58 = vunpack.c.l.b16 %v6589_v13  ;;  %v6230_v6 = vmax.f32 %v6228_v20, %v6229_v16  ;;  %v6253_v29 = vmax.f32 %v6251_v18, %v6252_v19  ;;  %v5920_v22 = vmax.f32 %v5596_v59, 0.0  ;;  %v8544_v12 = vpop.f32.mrf.mxu1 }
 0x49b   : > { %v10843_v62 = vsel %vm6768_vm10, %v6716_v35, %v6783_v2  ;;  %v6240_v57 = vrot.slane %v6239_v54, 1  ;;  %v6244_v3 = vmax.f32 %v6242_v38, %v6243_v4  ;;  %v5588_v5 = vadd.f32 %v10792_v10, %v5587_v31 }
 0x49c   : > { %v6719_v39 = vunpack.c.l.b16 %v6591_v42  ;;  %v6231_v24 = vrot.slane %v6230_v6, 1  ;;  %v6254_v32 = vrot.slane %v6253_v29, 4  ;;  %v5599_v52 = vadd.f32 %v10792_v10, %v8540_v47  ;;  %v5606_v27 = vpop.f32.mrf.mxu1 }
 0x49d   : > { %v6718_v45 = vunpack.c.l.b16 %v6590_v30  ;;  %v6245_v13 = vrot.slane %v6244_v3, 4  ;;  %v5918_v43 = vmax.f32 %v5588_v5, 0.0  ;;  %v5591_v63 = vadd.f32 %v10792_v10, %v5590_v34 }
 0x49e   : > { %v6232_v48 = vmax.f32 %v6230_v6, %v6231_v24  ;;  %v6255_v7 = vmax.f32 %v6253_v29, %v6254_v32  ;;  %v6269_v2 = vsel %vm2261_vm4, %v5920_v22, -inf  ;;  %v5921_v36 = vmax.f32 %v5599_v52, 0.0  ;;  %v8547_v20 = vpop.f32.mrf.mxu1 }
 0x49f   : > { %v6241_v59 = vmax.f32 %v6239_v54, %v6240_v57  ;;  %v6246_v35 = vmax.f32 %v6244_v3, %v6245_v13  ;;  %v5919_v31 = vmax.f32 %v5591_v63, 0.0  ;;  %v5612_v23 = vadd.f32 %v10792_v10, %v8543_v50 }
 0x4a0   : > { %v6592_v0 = vpack.c.bf16 %v6232_v48, %v6232_v48  ;;  %v6256_v11 = vrot.slane %v6255_v7, 2  ;;  %v6260_v47 = vsel %vm2261_vm4, %v5918_v43, -inf  ;;  %v6270_v42 = vsel %vm2261_vm4, %v5921_v36, -inf  ;;  %v5619_v16 = vpop.f32.mrf.mxu1 }
 0x4a1   : > { %v6247_v18 = vrot.slane %v6246_v35, 2  ;;  %v6271_v34 = vmax.f32 %v6269_v2, %v6270_v42  ;;  %v6261_v30 = vsel %vm2261_vm4, %v5919_v31, -inf  ;;  %v5924_v38 = vmax.f32 %v5612_v23, 0.0 }
 0x4a2   : > { %v6720_v19 = vunpack.c.l.b16 %v6592_v0  ;;  %v6257_v4 = vmax.f32 %v6255_v7, %v6256_v11  ;;  %v6262_v6 = vmax.f32 %v6260_v47, %v6261_v30  ;;  %v5604_v54 = vadd.f32 %v10792_v10, %v5603_v33  ;;  %v8548_v29 = vpop.f32.mrf.mxu1 }
 0x4a3   : > { %v6786_v50 = vsel %vm6758_vm5, %v6719_v39, %v6718_v45  ;;  %v6248_v22 = vmax.f32 %v6246_v35, %v6247_v18  ;;  %v6272_v57 = vrot.slane %v6271_v34, 4  ;;  %v5615_v3 = vadd.f32 %v10792_v10, %v8544_v12 }
 0x4a4   : > { %v6593_v5 = vpack.c.bf16 %v6241_v59, %v6241_v59  ;;  %v6258_v24 = vrot.slane %v6257_v4, 1  ;;  %v6263_v32 = vrot.slane %v6262_v6, 4  ;;  %v5922_v52 = vmax.f32 %v5604_v54, 0.0  ;;  %v5622_v13 = vpop.f32.mrf.mxu1 }
 0x4a5   : > { %v6249_v43 = vrot.slane %v6248_v22, 1  ;;  %v6273_v63 = vmax.f32 %v6271_v34, %v6272_v57  ;;  %v6287_v48 = vsel %vm2261_vm4, %v5924_v38, -inf  ;;  %v5925_v7 = vmax.f32 %v5615_v3, 0.0 }
 0x4a6   : > { %v6787_v2 = vsel %vm6760_vm6, %v6720_v19, %v6786_v50  ;;  %v6259_v33 = vmax.f32 %v6257_v4, %v6258_v24  ;;  %v6264_v36 = vmax.f32 %v6262_v6, %v6263_v32  ;;  %v5607_v39 = vadd.f32 %v10792_v10, %v5606_v27  ;;  %v8551_v45 = vpop.f32.mrf.mxu1 }
 0x4a7   : > { %v6250_v35 = vmax.f32 %v6248_v22, %v6249_v43  ;;  %v6274_v31 = vrot.slane %v6273_v63, 2  ;;  %v6288_v12 = vsel %vm2261_vm4, %v5925_v7, -inf  ;;  %v5628_v59 = vadd.f32 %v10792_v10, %v8547_v20 }
 0x4a8   : > { %v6265_v23 = vrot.slane %v6264_v36, 2  ;;  %v6278_v0 = vsel %vm2261_vm4, %v5922_v52, -inf  ;;  %v6289_v11 = vmax.f32 %v6287_v48, %v6288_v12  ;;  %v5923_v47 = vmax.f32 %v5607_v39, 0.0  ;;  %v10862_v42 = vpop.f32.mrf.mxu1 }
 0x4a9   : > { %v6595_v18 = vpack.c.bf16 %v6259_v33, %v6259_v33  ;;  %v6594_v34 = vpack.c.bf16 %v6250_v35, %v6250_v35  ;;  %v6275_v30 = vmax.f32 %v6273_v63, %v6274_v31  ;;  %v5620_v38 = vadd.f32 %v10792_v10, %v5619_v16 }
 0x4aa   : > { %v6266_v27 = vmax.f32 %v6264_v36, %v6265_v23  ;;  %v6290_v19 = vrot.slane %v6289_v11, 4  ;;  %v6279_v4 = vsel %vm2261_vm4, %v5923_v47, -inf  ;;  %v5928_v6 = vmax.f32 %v5628_v59, 0.0  ;;  %v8552_v54 = vpop.f32.mrf.mxu1 }
 0x4ab   : > { %v6721_v50 = vunpack.c.l.b16 %v6593_v5  ;;  %v6722_v20 = vunpack.c.l.b16 %v6594_v34  ;;  %v6276_v22 = vrot.slane %v6275_v30, 1  ;;  %v6280_v57 = vmax.f32 %v6278_v0, %v6279_v4 }
 0x4ac   : > { %v6267_v3 = vrot.slane %v6266_v27, 1  ;;  %v6291_v24 = vmax.f32 %v6289_v11, %v6290_v19  ;;  %v5926_v32 = vmax.f32 %v5620_v38, 0.0  ;;  %v5631_v52 = vadd.f32 %v10792_v10, %v8548_v29  ;;  %v5638_v43 = vpop.f32.mrf.mxu1 }
 0x4ad   : > { %v6788_v63 = vsel %vm6762_vm7, %v6721_v50, %v6787_v2  ;;  %v6277_v48 = vmax.f32 %v6275_v30, %v6276_v22  ;;  %v6281_v16 = vrot.slane %v6280_v57, 4  ;;  %v5623_v7 = vadd.f32 %v10792_v10, %v5622_v13 }
 0x4ae   : > { %v6723_v33 = vunpack.c.l.b16 %v6595_v18  ;;  %v6268_v36 = vmax.f32 %v6266_v27, %v6267_v3  ;;  %v6292_v39 = vrot.slane %v6291_v24, 2  ;;  %v6305_v5 = vsel %vm2261_vm4, %v5928_v6, -inf  ;;  %v10870_v35 = vpop.f32.mrf.mxu1  ;;  %v8742_v3 = vld [vmem:[%s11265_s7 + $0x8] sm:$0xff]  }
 0x4af   : > { %v6597_v31 = vpack.c.bf16 %v6277_v48, %v6277_v48  ;;  %v6282_v12 = vmax.f32 %v6280_v57, %v6281_v16  ;;  %v5929_v59 = vmax.f32 %v5631_v52, 0.0  ;;  %v5927_v23 = vmax.f32 %v5623_v7, 0.0  ;;  %v11422_v48 = vld [vmem:[#allocation33_spill] sm:$0xff]  ;;  %8617 = vmatprep.subr.bf16.mxu0 %v8742_v3 }
 0x4b0   : > { %v6789_v29 = vsel %vm6764_vm8, %v6722_v20, %v6788_v63  ;;  %v6596_v0 = vpack.c.bf16 %v6268_v36, %v6268_v36  ;;  %v6293_v11 = vmax.f32 %v6291_v24, %v6292_v39  ;;  %v6296_v2 = vsel %vm2261_vm4, %v5926_v32, -inf  ;;  %v10874_v47 = vpop.f32.mrf.mxu1 }
 0x4b1   : > { %v6283_v13 = vrot.slane %v6282_v12, 2  ;;  %v6306_v18 = vsel %vm2261_vm4, %v5929_v59, -inf  ;;  %v6297_v34 = vsel %vm2261_vm4, %v5927_v23, -inf  ;;  %v5644_v30 = vadd.f32 %v10792_v10, %v8551_v45  ;;  %v8743_v59 = vld [vmem:[%s11265_s7] sm:$0xff]  }
 0x4b2   : > { %v6724_v38 = vunpack.c.l.b16 %v6596_v0  ;;  %v6294_v27 = vrot.slane %v6293_v11, 1  ;;  %v6307_v19 = vmax.f32 %v6305_v5, %v6306_v18  ;;  %v6298_v4 = vmax.f32 %v6296_v2, %v6297_v34  ;;  %v10879_v6 = vpop.f32.mrf.mxu1 }
 0x4b3   : > { %v6725_v50 = vunpack.c.l.b16 %v6597_v31  ;;  %v6790_v20 = vsel %vm6766_vm9, %v6723_v33, %v6789_v29  ;;  %v6284_v22 = vmax.f32 %v6282_v12, %v6283_v13  ;;  %v5647_v57 = vadd.f32 %v10792_v10, %v8552_v54 }
 0x4b4   : > { %v6791_v24 = vsel %vm6768_vm10, %v6724_v38, %v6790_v20  ;;  %v6295_v32 = vmax.f32 %v6293_v11, %v6294_v27  ;;  %v6308_v45 = vrot.slane %v6307_v19, 4  ;;  %v6299_v52 = vrot.slane %v6298_v4, 4  ;;  %v10887_v63 = vpop.f32.mrf.mxu1 }
 0x4b5   : > { %v2182_v16 = vadd.f32 %v10826_v9, %v11422_v48  ;;  %v6785_v7 = vsel %vm6770_vm11, %v10840_v58, %v10843_v62  ;;  %v6792_v54 = vsel %vm6770_vm11, %v6725_v50, %v6791_v24  ;;  %v6285_v33 = vrot.slane %v6284_v22, 1 }
 0x4b6   : > { %v6822_v36 = vpack.c.b16 %v6792_v54, %v6785_v7  ;;  %v6599_v39 = vpack.c.bf16 %v6295_v32, %v6295_v32  ;;  %v6309_v5 = vmax.f32 %v6307_v19, %v6308_v45  ;;  %v5932_v31 = vmax.f32 %v5644_v30, 0.0  ;;  %v10895_v12 = vpop.f32.mrf.mxu1 }
 0x4b7   : > { %v6286_v23 = vmax.f32 %v6284_v22, %v6285_v33  ;;  %v6300_v9 = vmax.f32 %v6298_v4, %v6299_v52  ;;  %v5933_v29 = vmax.f32 %v5647_v57, 0.0  ;;  %v5639_v0 = vadd.f32 %v10792_v10, %v5638_v43 }
 0x4b8   : > { %v2658_v58 = vmax.f32 %v10576_v56, %v2657_v25  ;;  %v2665_v62 = vmax.f32 %v10599_v55, %v2664_v14  ;;  %v2697_v11 = vrot.slane %v10618_v28, 4  ;;  %v5636_v2 = vadd.f32 %v10792_v10, %v10862_v42  ;;  %8610 = vmatmul.mubr.msk.bf16.vlgmr.msra.gmra.mxu0 %vm2261_vm4, %v6822_v36  ;;  %v10911_v13 = vpop.f32.mrf.mxu1 }
 0x4b9   : > { %v11423_v18 = vmax.f32 %v10605_v15, 0.0  ;;  %v2256_v34 = vmax.f32 %v10830_v51, 0.0  ;;  %v6598_v56 = vpack.c.bf16 %v6286_v23, %v6286_v23  ;;  %v6324_v25 = vsel %vm2261_vm4, %v5933_v29, -inf  ;;  %8618 = vmatpush3.bf16.msra.mxu0 %v8742_v3 }
 0x4ba   : > { %v2254_v55 = vmax.f32 %v2182_v16, 0.0  ;;  %v6310_v14 = vrot.slane %v6309_v5, 2  ;;  %v6323_v30 = vsel %vm2261_vm4, %v5932_v31, -inf  ;;  %v5931_v38 = vmax.f32 %v5639_v0, 0.0  ;;  %v10919_v42 = vpop.f32.mrf.mxu1  ;;  %8619 = vmatprep.subr.bf16.mxu0 %v8743_v59 }
 0x4bb   : > { %v2682_v43 = vsel %vm2261_vm4, %v11423_v18, -inf  ;;  %v6727_v27 = vunpack.c.l.b16 %v6599_v39  ;;  %v6726_v19 = vunpack.c.l.b16 %v6598_v56  ;;  %v6301_v4 = vrot.slane %v6300_v9, 2 }
 0x4bc   : > { %v6325_v15 = vmax.f32 %v6323_v30, %v6324_v25  ;;  %v11424_v50 = vrot.slane %v10569_v17, 1  ;;  %v11425_v20 = vrot.slane %v10578_v41, 2  ;;  %v2683_v57 = vrot.slane %v2682_v43, 4  ;;  %v5670_v24 = vpop.f32.mrf.mxu1 }
 0x4bd   : > { %v5930_v3 = vmax.f32 %v5636_v2, 0.0  ;;  %v2659_v32 = vrot.slane %v2658_v58, 1  ;;  %v2698_v45 = vmax.f32 %v10618_v28, %v2697_v11  ;;  %v2703_v52 = vsel %vm2261_vm4, %v2256_v34, -inf  ;;  %8620 = vmatpush3.bf16.msra.mxu0 %v8743_v59 }
 0x4be   : > { %v10924_v51 = vmax.f32 %v10569_v17, %v11424_v50  ;;  %v2679_v22 = vmax.f32 %v10578_v41, %v11425_v20  ;;  %v10932_v48 = vsel %vm6758_vm5, %v6727_v27, %v6726_v19  ;;  %v11426_v16 = vrot.slane %v10571_v1, 1  ;;  %v8563_v33 = vpop.f32.mrf.mxu1 }
 0x4bf   : > { %v2666_v7 = vrot.slane %v2665_v62, 1  ;;  %v6311_v54 = vmax.f32 %v6309_v5, %v6310_v14  ;;  %v6315_v41 = vsel %vm2261_vm4, %v5931_v38, -inf  ;;  %v2689_v36 = vsel %vm2261_vm4, %v2254_v55, -inf }
 0x4c0   : > { %v10937_v17 = vmax.f32 %v10571_v1, %v11426_v16  ;;  %v6302_v39 = vmax.f32 %v6300_v9, %v6301_v4  ;;  %v6326_v28 = vrot.slane %v6325_v15, 4  ;;  %v5663_v31 = vadd.f32 %v10792_v10, %v10879_v6  ;;  %v5683_v11 = vpop.f32.mrf.mxu1 }
 0x4c1   : > { %v2680_v23 = vrot.slane %v2679_v22, 1  ;;  %v2684_v29 = vmax.f32 %v2682_v43, %v2683_v57  ;;  %v2704_v59 = vrot.slane %v2703_v52, 4  ;;  %v6314_v0 = vsel %vm2261_vm4, %v5930_v3, -inf }
 0x4c2   : > { %v10944_v1 = vmax.f32 %v2658_v58, %v2659_v32  ;;  %v2699_v2 = vrot.slane %v2698_v45, 2  ;;  %v6316_v5 = vmax.f32 %v6314_v0, %v6315_v41  ;;  %v5660_v18 = vadd.f32 %v10792_v10, %v10870_v35  ;;  %v8564_v25 = vpop.f32.mrf.mxu1 }
 0x4c3   : > { %v10950_v34 = vmax.f32 %v2665_v62, %v2666_v7  ;;  %v2690_v56 = vrot.slane %v2689_v36, 4  ;;  %v6312_v6 = vrot.slane %v6311_v54, 1  ;;  %v6303_v43 = vrot.slane %v6302_v39, 1 }
 0x4c4   : > { %v6327_v55 = vmax.f32 %v6325_v15, %v6326_v28  ;;  %v5937_v14 = vmax.f32 %v5663_v31, 0.0  ;;  %v5655_v58 = vadd.f32 %v10792_v10, %v10887_v63  ;;  %v10954_v30 = vmax.f32 %v2679_v22, %v2680_v23  ;;  %v5686_v19 = vpop.f32.mrf.mxu1 }
 0x4c5   : > { %v2685_v38 = vrot.slane %v2684_v29, 2  ;;  %v10956_v27 = vmax.f32 %v2703_v52, %v2704_v59  ;;  %v5652_v35 = vadd.f32 %v10792_v10, %v10874_v47  ;;  %v10962_v4 = vmax.f32 %v2698_v45, %v2699_v2 }
 0x4c6   : > { %v6317_v50 = vrot.slane %v6316_v5, 4  ;;  %v5936_v15 = vmax.f32 %v5660_v18, 0.0  ;;  %v10966_v63 = vmax.f32 %v2689_v36, %v2690_v56  ;;  %v6313_v22 = vmax.f32 %v6311_v54, %v6312_v6  ;;  %v8567_v3 = vpop.f32.mrf.mxu1 }
 0x4c7   : > { %v5671_v57 = vadd.f32 %v10792_v10, %v5670_v24  ;;  %v6304_v32 = vmax.f32 %v6302_v39, %v6303_v43  ;;  %v6328_v52 = vrot.slane %v6327_v55, 2  ;;  %v6342_v47 = vsel %vm2261_vm4, %v5937_v14, -inf }
 0x4c8   : > { %v5935_v16 = vmax.f32 %v5655_v58, 0.0  ;;  %v10970_v7 = vmax.f32 %v2684_v29, %v2685_v38  ;;  %v5934_v41 = vmax.f32 %v5652_v35, 0.0  ;;  %v5668_v28 = vadd.f32 %v10792_v10, %v10911_v13  ;;  %v5699_v31 = vpop.f32.mrf.mxu1 }
 0x4c9   : > { %v6318_v36 = vmax.f32 %v6316_v5, %v6317_v50  ;;  %v6341_v54 = vsel %vm2261_vm4, %v5936_v15, -inf  ;;  %v5676_v24 = vadd.f32 %v10792_v10, %v10895_v12  ;;  %v5679_v39 = vadd.f32 %v10792_v10, %v10919_v42 }
 0x4ca   : > { %v6601_v29 = vpack.c.bf16 %v6313_v22, %v6313_v22  ;;  %v6343_v59 = vmax.f32 %v6341_v54, %v6342_v47  ;;  %v5939_v0 = vmax.f32 %v5671_v57, 0.0  ;;  %v8568_v2 = vpop.f32.mrf.mxu1  ;;  %v6600_v18 = vpack.c.bf16 %v6304_v32, %v6304_v32 }
 0x4cb   : > { %v6329_v56 = vmax.f32 %v6327_v55, %v6328_v52  ;;  %v6333_v13 = vsel %vm2261_vm4, %v5935_v16, -inf  ;;  %v5684_v5 = vadd.f32 %v10792_v10, %v5683_v11  ;;  %v5938_v6 = vmax.f32 %v5668_v28, 0.0 }
 0x4cc   : > { %v5692_v43 = vadd.f32 %v10792_v10, %v8563_v33  ;;  %v5695_v12 = vadd.f32 %v10792_v10, %v8564_v25  ;;  %v5687_v14 = vadd.f32 %v10792_v10, %v5686_v19  ;;  %v5702_v42 = vpop.f32.mrf.mxu1  ;;  %v6319_v58 = vrot.slane %v6318_v36, 2 }
 0x4cd   : > { %v6332_v38 = vsel %vm2261_vm4, %v5934_v41, -inf  ;;  %v5940_v35 = vmax.f32 %v5676_v24, 0.0  ;;  %v5941_v50 = vmax.f32 %v5679_v39, 0.0  ;;  %v6344_v15 = vrot.slane %v6343_v59, 4 }
 0x4ce   : > { %v6334_v22 = vmax.f32 %v6332_v38, %v6333_v13  ;;  %v6351_v55 = vsel %vm2261_vm4, %v5939_v0, -inf  ;;  %v5943_v57 = vmax.f32 %v5687_v14, 0.0  ;;  %v8571_v32 = vpop.f32.mrf.mxu1  ;;  %v10988_v11 = vunpack.c.l.b16 %v6601_v29 }
 0x4cf   : > { %v6330_v52 = vrot.slane %v6329_v56, 1  ;;  %v5942_v33 = vmax.f32 %v5684_v5, 0.0  ;;  %v5945_v47 = vmax.f32 %v5695_v12, 0.0  ;;  %v6728_v25 = vunpack.c.l.b16 %v6600_v18 }
 0x4d0   : > { %v6350_v19 = vsel %vm2261_vm4, %v5938_v6, -inf  ;;  %v5944_v16 = vmax.f32 %v5692_v43, 0.0  ;;  %v5700_v28 = vadd.f32 %v10792_v10, %v5699_v31  ;;  %v5715_v41 = vpop.f32.mrf.mxu1  ;;  %v6360_v54 = vsel %vm2261_vm4, %v5941_v50, -inf }
 0x4d1   : > { %v6352_v24 = vmax.f32 %v6350_v19, %v6351_v55  ;;  %v6369_v39 = vsel %vm2261_vm4, %v5943_v57, -inf  ;;  %v5708_v0 = vadd.f32 %v10792_v10, %v8567_v3  ;;  %v6320_v13 = vmax.f32 %v6318_v36, %v6319_v58 }
 0x4d2   : > { %v6345_v29 = vmax.f32 %v6343_v59, %v6344_v15  ;;  %v6335_v14 = vrot.slane %v6334_v22, 4  ;;  %v6359_v5 = vsel %vm2261_vm4, %v5940_v35, -inf  ;;  %v8572_v12 = vpop.f32.mrf.mxu1  ;;  %v6331_v18 = vmax.f32 %v6329_v56, %v6330_v52 }
 0x4d3   : > { %v6368_v6 = vsel %vm2261_vm4, %v5942_v33, -inf  ;;  %v6378_v43 = vsel %vm2261_vm4, %v5945_v47, -inf  ;;  %v5711_v31 = vadd.f32 %v10792_v10, %v8568_v2  ;;  %v6361_v38 = vmax.f32 %v6359_v5, %v6360_v54 }
 0x4d4   : > { %v6370_v50 = vmax.f32 %v6368_v6, %v6369_v39  ;;  %v5946_v55 = vmax.f32 %v5700_v28, 0.0  ;;  %v5703_v57 = vadd.f32 %v10792_v10, %v5702_v42  ;;  %v5718_v19 = vpop.f32.mrf.mxu1  ;;  %v6353_v3 = vrot.slane %v6352_v24, 4 }
 0x4d5   : > { %v6377_v36 = vsel %vm2261_vm4, %v5944_v16, -inf  ;;  %v5948_v59 = vmax.f32 %v5708_v0, 0.0  ;;  %v5949_v58 = vmax.f32 %v5711_v31, 0.0  ;;  %v6321_v35 = vrot.slane %v6320_v13, 1 }
 0x4d6   : > { %v6379_v15 = vmax.f32 %v6377_v36, %v6378_v43  ;;  %v5947_v56 = vmax.f32 %v5703_v57, 0.0  ;;  %v5724_v52 = vadd.f32 %v10792_v10, %v8571_v32  ;;  %v8575_v33 = vpop.f32.mrf.mxu1  ;;  %v6346_v47 = vrot.slane %v6345_v29, 2 }
 0x4d7   : > { %v6336_v9 = vmax.f32 %v6334_v22, %v6335_v14  ;;  %v6396_v2 = vsel %vm2261_vm4, %v5949_v58, -inf  ;;  %v5716_v28 = vadd.f32 %v10792_v10, %v5715_v41  ;;  %v6362_v54 = vrot.slane %v6361_v38, 4 }
 0x4d8   : > { %v6371_v42 = vrot.slane %v6370_v50, 4  ;;  %v6386_v39 = vsel %vm2261_vm4, %v5946_v55, -inf  ;;  %v6387_v16 = vsel %vm2261_vm4, %v5947_v56, -inf  ;;  %v5731_v0 = vpop.f32.mrf.mxu1  ;;  %v11008_v5 = vsel %vm6760_vm6, %v6728_v25, %v10932_v48 }
 0x4d9   : > { %v6354_v6 = vmax.f32 %v6352_v24, %v6353_v3  ;;  %v6395_v32 = vsel %vm2261_vm4, %v5948_v59, -inf  ;;  %v6388_v43 = vmax.f32 %v6386_v39, %v6387_v16  ;;  %v6603_v22 = vpack.c.bf16 %v6331_v18, %v6331_v18 }
 0x4da   : > { %v6380_v14 = vrot.slane %v6379_v15, 4  ;;  %v6397_v31 = vmax.f32 %v6395_v32, %v6396_v2  ;;  %v5952_v57 = vmax.f32 %v5724_v52, 0.0  ;;  %v8576_v41 = vpop.f32.mrf.mxu1  ;;  %v6322_v36 = vmax.f32 %v6320_v13, %v6321_v35 }
 0x4db   : > { %v5950_v58 = vmax.f32 %v5716_v28, 0.0  ;;  %v5727_v55 = vadd.f32 %v10792_v10, %v8572_v12  ;;  %v5719_v56 = vadd.f32 %v10792_v10, %v5718_v19  ;;  %v6347_v45 = vmax.f32 %v6345_v29, %v6346_v47 }
 0x4dc   : > { %v6337_v62 = vrot.slane %v6336_v9, 2  ;;  %v6363_v20 = vmax.f32 %v6361_v38, %v6362_v54  ;;  %v6372_v48 = vmax.f32 %v6370_v50, %v6371_v42  ;;  %v5734_v25 = vpop.f32.mrf.mxu1  ;;  %v6355_v24 = vrot.slane %v6354_v6, 2 }
 0x4dd   : > { %v6389_v3 = vrot.slane %v6388_v43, 4  ;;  %v5953_v59 = vmax.f32 %v5727_v55, 0.0  ;;  %v5951_v39 = vmax.f32 %v5719_v56, 0.0  ;;  %v11013_v18 = vunpack.c.l.b16 %v6603_v22 }
 0x4de   : > { %v6381_v2 = vmax.f32 %v6379_v15, %v6380_v14  ;;  %v6398_v52 = vrot.slane %v6397_v31, 4  ;;  %v6413_v13 = vsel %vm2261_vm4, %v5952_v57, -inf  ;;  %v8579_v35 = vpop.f32.mrf.mxu1  ;;  %v6404_v12 = vsel %vm2261_vm4, %v5950_v58, -inf }
 0x4df   : > { %v6414_v19 = vsel %vm2261_vm4, %v5953_v59, -inf  ;;  %v6405_v29 = vsel %vm2261_vm4, %v5951_v39, -inf  ;;  %v5740_v38 = vadd.f32 %v10792_v10, %v8575_v33  ;;  %v6373_v50 = vrot.slane %v6372_v48, 2 }
 0x4e0   : > { %v6415_v47 = vmax.f32 %v6413_v13, %v6414_v19  ;;  %v6406_v28 = vmax.f32 %v6404_v12, %v6405_v29  ;;  %v5732_v54 = vadd.f32 %v10792_v10, %v5731_v0  ;;  %v5747_v42 = vpop.f32.mrf.mxu1  ;;  %v6602_v16 = vpack.c.bf16 %v6322_v36, %v6322_v36 }
 0x4e1   : > { %v6364_v15 = vrot.slane %v6363_v20, 2  ;;  %v6356_v32 = vmax.f32 %v6354_v6, %v6355_v24  ;;  %v6390_v22 = vmax.f32 %v6388_v43, %v6389_v3  ;;  %v6382_v14 = vrot.slane %v6381_v2, 2 }
 0x4e2   : > { %v6399_v57 = vmax.f32 %v6397_v31, %v6398_v52  ;;  %v6416_v55 = vrot.slane %v6415_v47, 4  ;;  %v6407_v58 = vrot.slane %v6406_v28, 4  ;;  %v8580_v56 = vpop.f32.mrf.mxu1  ;;  %v6348_v59 = vrot.slane %v6347_v45, 1 }
 0x4e3   : > { %v5956_v23 = vmax.f32 %v5740_v38, 0.0  ;;  %v5743_v39 = vadd.f32 %v10792_v10, %v8576_v41  ;;  %v5735_v33 = vadd.f32 %v10792_v10, %v5734_v25  ;;  %v6338_v13 = vmax.f32 %v6336_v9, %v6337_v62 }
 0x4e4   : > { %v6374_v12 = vmax.f32 %v6372_v48, %v6373_v50  ;;  %v6408_v19 = vmax.f32 %v6406_v28, %v6407_v58  ;;  %v5954_v0 = vmax.f32 %v5732_v54, 0.0  ;;  %v5750_v29 = vpop.f32.mrf.mxu1  ;;  %v6365_v36 = vmax.f32 %v6363_v20, %v6364_v15 }
 0x4e5   : > { %v6391_v21 = vrot.slane %v6390_v22, 2  ;;  %v5957_v6 = vmax.f32 %v5743_v39, 0.0  ;;  %v5955_v43 = vmax.f32 %v5735_v33, 0.0  ;;  %v6357_v24 = vrot.slane %v6356_v32, 1 }
 0x4e6   : > { %v6383_v31 = vmax.f32 %v6381_v2, %v6382_v14  ;;  %v6400_v3 = vrot.slane %v6399_v57, 2  ;;  %v6417_v52 = vmax.f32 %v6415_v47, %v6416_v55  ;;  %v11023_v61 = vpop.f32.mrf.mxu1  ;;  %v6409_v38 = vrot.slane %v6408_v19, 2 }
 0x4e7   : > { %v6431_v41 = vsel %vm2261_vm4, %v5956_v23, -inf  ;;  %v6432_v25 = vsel %vm2261_vm4, %v5957_v6, -inf  ;;  %v6423_v9 = vsel %vm2261_vm4, %v5955_v43, -inf  ;;  %v11028_v62 = vunpack.c.l.b16 %v6602_v16 }
 0x4e8   : > { %v6375_v48 = vrot.slane %v6374_v12, 1  ;;  %v6422_v20 = vsel %vm2261_vm4, %v5954_v0, -inf  ;;  %v6433_v50 = vmax.f32 %v6431_v41, %v6432_v25  ;;  %v11031_v28 = vpop.f32.mrf.mxu1  ;;  %v6349_v2 = vmax.f32 %v6347_v45, %v6348_v59 }
 0x4e9   : > { %v6366_v54 = vrot.slane %v6365_v36, 1  ;;  %v6392_v47 = vmax.f32 %v6390_v22, %v6391_v21  ;;  %v6424_v15 = vmax.f32 %v6422_v20, %v6423_v9  ;;  %v6339_v14 = vrot.slane %v6338_v13, 1 }
 0x4ea   : > { %v6358_v55 = vmax.f32 %v6356_v32, %v6357_v24  ;;  %v6418_v58 = vrot.slane %v6417_v52, 2  ;;  %v5759_v23 = vadd.f32 %v10792_v10, %v8580_v56  ;;  %v8584_v39 = vpop.f32.mrf.mxu1  ;;  %v6384_v33 = vrot.slane %v6383_v31, 1 }
 0x4eb   : > { %v6401_v6 = vmax.f32 %v6399_v57, %v6400_v3  ;;  %v6410_v16 = vmax.f32 %v6408_v19, %v6409_v38  ;;  %v5751_v43 = vadd.f32 %v10792_v10, %v5750_v29  ;;  %v6376_v49 = vmax.f32 %v6374_v12, %v6375_v48 }
 0x4ec   : > { %v6434_v0 = vrot.slane %v6433_v50, 4  ;;  %v6425_v41 = vrot.slane %v6424_v15, 4  ;;  %v5756_v25 = vadd.f32 %v10792_v10, %v8579_v35  ;;  %v5766_v45 = vpop.f32.mrf.mxu1  ;;  %v6605_v59 = vpack.c.bf16 %v6349_v2, %v6349_v2 }
 0x4ed   : > { %v6367_v21 = vmax.f32 %v6365_v36, %v6366_v54  ;;  %v6393_v22 = vrot.slane %v6392_v47, 1  ;;  %v5748_v32 = vadd.f32 %v10792_v10, %v5747_v42  ;;  %v6340_v24 = vmax.f32 %v6338_v13, %v6339_v14 }
 0x4ee   : > { %v6606_v9 = vpack.c.bf16 %v6358_v55, %v6358_v55  ;;  %v6419_v56 = vmax.f32 %v6417_v52, %v6418_v58  ;;  %v5961_v20 = vmax.f32 %v5759_v23, 0.0  ;;  %v11037_v44 = vpop.f32.mrf.mxu1  ;;  %v6385_v57 = vmax.f32 %v6383_v31, %v6384_v33 }
 0x4ef   : > { %v6402_v19 = vrot.slane %v6401_v6, 1  ;;  %v6411_v29 = vrot.slane %v6410_v16, 1  ;;  %v5959_v12 = vmax.f32 %v5751_v43, 0.0  ;;  %v6608_v3 = vpack.c.bf16 %v6376_v49, %v6376_v49 }
 0x4f0   : > { %v6435_v38 = vmax.f32 %v6433_v50, %v6434_v0  ;;  %v6426_v48 = vmax.f32 %v6424_v15, %v6425_v41  ;;  %v5960_v35 = vmax.f32 %v5756_v25, 0.0  ;;  %v11039_v60 = vpop.f32.mrf.mxu1  ;;  %v11041_v36 = vunpack.c.l.b16 %v6605_v59 }
 0x4f1   : > { %v6607_v2 = vpack.c.bf16 %v6367_v21, %v6367_v21  ;;  %v6394_v10 = vmax.f32 %v6392_v47, %v6393_v22  ;;  %v5958_v42 = vmax.f32 %v5748_v32, 0.0  ;;  %v6604_v13 = vpack.c.bf16 %v6340_v24, %v6340_v24 }
 0x4f2   : > { %v6734_v52 = vunpack.c.l.b16 %v6606_v9  ;;  %v6420_v54 = vrot.slane %v6419_v56, 1  ;;  %v6450_v14 = vsel %vm2261_vm4, %v5961_v20, -inf  ;;  %v11044_v31 = vpop.f32.mrf.mxu1  ;;  %v6609_v55 = vpack.c.bf16 %v6385_v57, %v6385_v57 }
 0x4f3   : > { %v6403_v58 = vmax.f32 %v6401_v6, %v6402_v19  ;;  %v6412_v49 = vmax.f32 %v6410_v16, %v6411_v29  ;;  %v6441_v50 = vsel %vm2261_vm4, %v5959_v12, -inf  ;;  %v6736_v15 = vunpack.c.l.b16 %v6608_v3  ;;  %v11054_v6 = vld [vmem:[%s11272_s14] ss:$0 sm:$0xff] }
 0x4f4   : > { %v6436_v23 = vrot.slane %v6435_v38, 2  ;;  %v6427_v33 = vrot.slane %v6426_v48, 2  ;;  %v6449_v43 = vsel %vm2261_vm4, %v5960_v35, -inf  ;;  %v11048_v0 = vpop.f32.mrf.mxu1  ;;  %v6735_v47 = vunpack.c.l.b16 %v6607_v2 }
 0x4f5   : > { %v6610_v41 = vpack.c.bf16 %v6394_v10, %v6394_v10  ;;  %v6440_v25 = vsel %vm2261_vm4, %v5958_v42, -inf  ;;  %v6451_v59 = vmax.f32 %v6449_v43, %v6450_v14  ;;  %v6732_v21 = vunpack.c.l.b16 %v6604_v13 }
 0x4f6   : > { %v6421_v22 = vmax.f32 %v6419_v56, %v6420_v54  ;;  %v6442_v32 = vmax.f32 %v6440_v25, %v6441_v50  ;;  %v5772_v16 = vadd.f32 %v11054_v6, %v11023_v61  ;;  %v6800_v24 = vsel %vm6758_vm5, %v6735_v47, %v6734_v52 }
 0x4f7   : > { %v6611_v9 = vpack.c.bf16 %v6403_v58, %v6403_v58  ;;  %v6612_v20 = vpack.c.bf16 %v6412_v49, %v6412_v49  ;;  %v5775_v57 = vadd.f32 %v11054_v6, %v8584_v39  ;;  %v6737_v19 = vunpack.c.l.b16 %v6609_v55 }
 0x4f8   : > { %v6801_v29 = vsel %vm6760_vm6, %v6736_v15, %v6800_v24  ;;  %v6437_v12 = vmax.f32 %v6435_v38, %v6436_v23  ;;  %v6428_v56 = vmax.f32 %v6426_v48, %v6427_v33  ;;  %v6738_v35 = vunpack.c.l.b16 %v6610_v41 }
 0x4f9   : > { %v8591_v3 = vpop.f32.mrf.mxu1  ;;  %v6452_v2 = vrot.slane %v6451_v59, 4  ;;  %v5767_v10 = vadd.f32 %v11054_v6, %v5766_v45  ;;  %v6795_v61 = vsel %vm6762_vm7, %v10988_v11, %v11008_v5  ;;  %v6613_v42 = vpack.c.bf16 %v6421_v22, %v6421_v22 }
 0x4fa   : > { %v6443_v13 = vrot.slane %v6442_v32, 4  ;;  %v5964_v52 = vmax.f32 %v5772_v16, 0.0  ;;  %v6796_v39 = vsel %vm6764_vm8, %v11028_v62, %v6795_v61  ;;  %v6739_v14 = vunpack.c.l.b16 %v6611_v9 }
 0x4fb   : > { %v5795_v54 = vpop.f32.mrf.mxu1  ;;  %v6740_v55 = vunpack.c.l.b16 %v6612_v20  ;;  %v5764_v38 = vadd.f32 %v11054_v6, %v11031_v28  ;;  %v5965_v48 = vmax.f32 %v5775_v57, 0.0  ;;  %v6438_v58 = vrot.slane %v6437_v12, 1 }
 0x4fc   : > { %v6429_v49 = vrot.slane %v6428_v56, 1  ;;  %v6797_v45 = vsel %vm6766_vm9, %v11013_v18, %v6796_v39  ;;  %v6802_v11 = vsel %vm6762_vm7, %v6737_v19, %v6801_v29  ;;  %v6453_v50 = vmax.f32 %v6451_v59, %v6452_v2 }
 0x4fd   : > { %v8592_v5 = vpop.f32.mrf.mxu1  ;;  %v5963_v15 = vmax.f32 %v5767_v10, 0.0  ;;  %v6798_v23 = vsel %vm6768_vm10, %v6732_v21, %v6797_v45  ;;  %v6803_v62 = vsel %vm6764_vm8, %v6738_v35, %v6802_v11  ;;  %v6741_v33 = vunpack.c.l.b16 %v6613_v42 }
 0x4fe   : > { %v6444_v43 = vmax.f32 %v6442_v32, %v6443_v13  ;;  %v6467_v47 = vsel %vm2261_vm4, %v5964_v52, -inf  ;;  %v6804_v28 = vsel %vm6766_vm9, %v6739_v14, %v6803_v62  ;;  %v5962_v25 = vmax.f32 %v5764_v38, 0.0 }
 0x4ff   : > { %v5798_v41 = vpop.f32.mrf.mxu1  ;;  %v6468_v22 = vsel %vm2261_vm4, %v5965_v48, -inf  ;;  %v11079_v18 = vadd.f32 %v11054_v6, %v11037_v44  ;;  %v6805_v59 = vsel %vm6768_vm10, %v6740_v55, %v6804_v28  ;;  %v11082_v16 = vmax.f32 %v6437_v12, %v6438_v58 }
 0x500   : > { %v6430_v21 = vmax.f32 %v6428_v56, %v6429_v49  ;;  %v6799_v32 = vsel %vm6770_vm11, %v11041_v36, %v6798_v23  ;;  %v6806_v24 = vsel %vm6770_vm11, %v6741_v33, %v6805_v59  ;;  %v6454_v9 = vrot.slane %v6453_v50, 2 }
 0x501   : > { %v6459_v20 = vsel %vm2261_vm4, %v5963_v15, -inf  ;;  %v6823_v57 = vpack.c.b16 %v6806_v24, %v6799_v32  ;;  %v5804_v19 = vadd.f32 %v11054_v6, %v8591_v3  ;;  %v6445_v29 = vrot.slane %v6444_v43, 2 }
 0x502   : > { %v6469_v35 = vmax.f32 %v6467_v47, %v6468_v22  ;;  %v5780_v44 = vadd.f32 %v11054_v6, %v11039_v60  ;;  %v5796_v12 = vadd.f32 %v11054_v6, %v5795_v54  ;;  %v8595_v2 = vpop.f32.mrf.mxu1  ;;  %v2687_v56 = vrot.slane %v10970_v7, 1 }
 0x503   : > { %v11427_v36 = vrot.slane %v10966_v63, 2  ;;  %v6458_v61 = vsel %vm2261_vm4, %v5962_v25, -inf  ;;  %8613 = vmatprep.mubr.msk.bf16.mxu0 %vm2261_vm4, %v6823_v57  ;;  %v5783_v3 = vadd.f32 %v11054_v6, %v11048_v0  ;;  %v6615_v60 = vpack.c.bf16 %v11082_v16, %v11082_v16 }
 0x504   : > { %v6614_v42 = vpack.c.bf16 %v6430_v21, %v6430_v21  ;;  %v6460_v13 = vmax.f32 %v6458_v61, %v6459_v20  ;;  %v5968_v52 = vmax.f32 %v11079_v18, 0.0  ;;  %v5811_v39 = vpop.f32.mrf.mxu1  ;;  %v5972_v54 = vmax.f32 %v5804_v19, 0.0 }
 0x505   : > { %v11096_v10 = vmax.f32 %v10966_v63, %v11427_v36  ;;  %v5970_v14 = vmax.f32 %v5796_v12, 0.0  ;;  %v5807_v63 = vadd.f32 %v11054_v6, %v8592_v5  ;;  %v5799_v55 = vadd.f32 %v11054_v6, %v5798_v41 }
 0x506   : > { %v6455_v38 = vmax.f32 %v6453_v50, %v6454_v9  ;;  %v6446_v48 = vmax.f32 %v6444_v43, %v6445_v29  ;;  %v6470_v58 = vrot.slane %v6469_v35, 4  ;;  %v5966_v49 = vmax.f32 %v5780_v44, 0.0  ;;  %v8596_v45 = vpop.f32.mrf.mxu1 }
 0x507   : > { %v5791_v0 = vadd.f32 %v11054_v6, %v11044_v31  ;;  %v5967_v11 = vmax.f32 %v5783_v3, 0.0  ;;  %v5973_v15 = vmax.f32 %v5807_v63, 0.0  ;;  %v5971_v23 = vmax.f32 %v5799_v55, 0.0 }
 0x508   : > { %v6461_v62 = vrot.slane %v6460_v13, 4  ;;  %v5820_v33 = vadd.f32 %v11054_v6, %v8595_v2  ;;  %v5812_v47 = vadd.f32 %v11054_v6, %v5811_v39  ;;  %v5823_v5 = vadd.f32 %v11054_v6, %v8596_v45  ;;  %v5814_v28 = vpop.f32.mrf.mxu1 }
 0x509   : > { %v6503_v50 = vsel %vm2261_vm4, %v5972_v54, -inf  ;;  %v6494_v43 = vsel %vm2261_vm4, %v5970_v14, -inf  ;;  %v6504_v41 = vsel %vm2261_vm4, %v5973_v15, -inf  ;;  %v6495_v25 = vsel %vm2261_vm4, %v5971_v23, -inf }
 0x50a   : > { %v6742_v31 = vunpack.c.l.b16 %v6614_v42  ;;  %v6505_v22 = vmax.f32 %v6503_v50, %v6504_v41  ;;  %v6496_v18 = vmax.f32 %v6494_v43, %v6495_v25  ;;  %v5976_v59 = vmax.f32 %v5820_v33, 0.0 }
 0x50b   : > { %v5969_v16 = vmax.f32 %v5791_v0, 0.0  ;;  %v6477_v21 = vsel %vm2261_vm4, %v5967_v11, -inf  ;;  %v5977_v32 = vmax.f32 %v5823_v5, 0.0  ;;  %v5815_v24 = vadd.f32 %v11054_v6, %v5814_v28 }
 0x50c   : > { %v6462_v9 = vmax.f32 %v6460_v13, %v6461_v62  ;;  %v6506_v20 = vrot.slane %v6505_v22, 4  ;;  %v6497_v57 = vrot.slane %v6496_v18, 4  ;;  %v5974_v19 = vmax.f32 %v5812_v47, 0.0  ;;  %v8599_v29 = vpop.f32.mrf.mxu1 }
 0x50d   : > { %v6476_v44 = vsel %vm2261_vm4, %v5966_v49, -inf  ;;  %v6521_v12 = vsel %vm2261_vm4, %v5976_v59, -inf  ;;  %v6522_v2 = vsel %vm2261_vm4, %v5977_v32, -inf  ;;  %v5975_v36 = vmax.f32 %v5815_v24, 0.0 }
 0x50e   : > { %v6456_v61 = vrot.slane %v6455_v38, 1  ;;  %v6447_v3 = vrot.slane %v6446_v48, 1  ;;  %v6478_v42 = vmax.f32 %v6476_v44, %v6477_v21  ;;  %v6523_v39 = vmax.f32 %v6521_v12, %v6522_v2  ;;  %v5827_v54 = vpop.f32.mrf.mxu1 }
 0x50f   : > { %v6471_v14 = vmax.f32 %v6469_v35, %v6470_v58  ;;  %v6486_v63 = vsel %vm2261_vm4, %v5969_v16, -inf  ;;  %v6498_v13 = vmax.f32 %v6496_v18, %v6497_v57  ;;  %v6513_v55 = vsel %vm2261_vm4, %v5975_v36, -inf }
 0x510   : > { %v6463_v45 = vrot.slane %v6462_v9, 2  ;;  %v6507_v0 = vmax.f32 %v6505_v22, %v6506_v20  ;;  %v6512_v49 = vsel %vm2261_vm4, %v5974_v19, -inf  ;;  %v5836_v11 = vadd.f32 %v11054_v6, %v8599_v29  ;;  %v8600_v15 = vpop.f32.mrf.mxu1 }
 0x511   : > { %v6743_v23 = vunpack.c.l.b16 %v6615_v60  ;;  %v6485_v62 = vsel %vm2261_vm4, %v5968_v52, -inf  ;;  %v6524_v33 = vrot.slane %v6523_v39, 4  ;;  %v6514_v47 = vmax.f32 %v6512_v49, %v6513_v55 }
 0x512   : > { %v11126_v5 = vmax.f32 %v6446_v48, %v6447_v3  ;;  %v6487_v35 = vmax.f32 %v6485_v62, %v6486_v63  ;;  %v6479_v58 = vrot.slane %v6478_v42, 4  ;;  %v5828_v28 = vadd.f32 %v11054_v6, %v5827_v54  ;;  %v5830_v50 = vpop.f32.mrf.mxu1 }
 0x513   : > { %v11130_v43 = vsel %vm6758_vm5, %v6743_v23, %v6742_v31  ;;  %v11132_v41 = vmax.f32 %v6455_v38, %v6456_v61  ;;  %v6499_v25 = vrot.slane %v6498_v13, 2  ;;  %v6515_v22 = vrot.slane %v6514_v47, 4 }
 0x514   : > { %v6472_v18 = vrot.slane %v6471_v14, 2  ;;  %v6464_v60 = vmax.f32 %v6462_v9, %v6463_v45  ;;  %v6508_v59 = vrot.slane %v6507_v0, 2  ;;  %v5980_v52 = vmax.f32 %v5836_v11, 0.0 }
 0x515   : > { %v6525_v16 = vmax.f32 %v6523_v39, %v6524_v33  ;;  %v6516_v21 = vmax.f32 %v6514_v47, %v6515_v22  ;;  %v5839_v48 = vadd.f32 %v11054_v6, %v8600_v15  ;;  %v5831_v32 = vadd.f32 %v11054_v6, %v5830_v50 }
 0x516   : > { %v6616_v24 = vpack.c.bf16 %v11126_v5, %v11126_v5  ;;  %v6488_v20 = vrot.slane %v6487_v35, 4  ;;  %v6480_v31 = vmax.f32 %v6478_v42, %v6479_v58  ;;  %v5978_v57 = vmax.f32 %v5828_v28, 0.0 }
 0x517   : > { %v6500_v38 = vmax.f32 %v6498_v13, %v6499_v25  ;;  %v6517_v19 = vrot.slane %v6516_v21, 2  ;;  %v5981_v29 = vmax.f32 %v5839_v48, 0.0  ;;  %v5979_v44 = vmax.f32 %v5831_v32, 0.0  ;;  %v8603_v12 = vpop.f32.mrf.mxu1 }
 0x518   : > { %v6465_v9 = vrot.slane %v6464_v60, 1  ;;  %v6509_v2 = vmax.f32 %v6507_v0, %v6508_v59  ;;  %v6539_v36 = vsel %vm2261_vm4, %v5980_v52, -inf  ;;  %v5852_v61 = vadd.f32 %v11054_v6, %v8603_v12 }
 0x519   : > { %v6526_v3 = vrot.slane %v6525_v16, 2  ;;  %v6518_v39 = vmax.f32 %v6516_v21, %v6517_v19  ;;  %v6540_v54 = vsel %vm2261_vm4, %v5981_v29, -inf  ;;  %v6531_v63 = vsel %vm2261_vm4, %v5979_v44, -inf  ;;  %v5843_v55 = vpop.f32.mrf.mxu1 }
 0x51a   : > { %v6473_v42 = vmax.f32 %v6471_v14, %v6472_v18  ;;  %v6489_v45 = vmax.f32 %v6487_v35, %v6488_v20  ;;  %v6530_v13 = vsel %vm2261_vm4, %v5978_v57, -inf  ;;  %v6541_v49 = vmax.f32 %v6539_v36, %v6540_v54 }
 0x51b   : > { %v6481_v11 = vrot.slane %v6480_v31, 2  ;;  %v6501_v15 = vrot.slane %v6500_v38, 1  ;;  %v6532_v23 = vmax.f32 %v6530_v13, %v6531_v63  ;;  %v5844_v0 = vadd.f32 %v11054_v6, %v5843_v55  ;;  %v8604_v62 = vpop.f32.mrf.mxu1 }
 0x51c   : > { %v6466_v33 = vmax.f32 %v6464_v60, %v6465_v9  ;;  %v6542_v47 = vrot.slane %v6541_v49, 4  ;;  %v5984_v5 = vmax.f32 %v5852_v61, 0.0  ;;  %v5855_v58 = vadd.f32 %v11054_v6, %v8604_v62 }
 0x51d   : > { %v6510_v28 = vrot.slane %v6509_v2, 1  ;;  %v6527_v50 = vmax.f32 %v6525_v16, %v6526_v3  ;;  %v6519_v25 = vrot.slane %v6518_v39, 1  ;;  %v6533_v22 = vrot.slane %v6532_v23, 4  ;;  %v5846_v14 = vpop.f32.mrf.mxu1 }
 0x51e   : > { %v6543_v35 = vmax.f32 %v6541_v49, %v6542_v47  ;;  %v5982_v18 = vmax.f32 %v5844_v0, 0.0  ;;  %v5985_v59 = vmax.f32 %v5855_v58, 0.0  ;;  %v5847_v52 = vadd.f32 %v11054_v6, %v5846_v14 }
 0x51f   : > { %v6490_v21 = vrot.slane %v6489_v45, 2  ;;  %v6482_v48 = vmax.f32 %v6480_v31, %v6481_v11  ;;  %v6502_v32 = vmax.f32 %v6500_v38, %v6501_v15  ;;  %v6534_v20 = vmax.f32 %v6532_v23, %v6533_v22 }
 0x520   : > { %v6544_v57 = vrot.slane %v6543_v35, 2  ;;  %v6557_v60 = vsel %vm2261_vm4, %v5984_v5, -inf  ;;  %v6558_v19 = vsel %vm2261_vm4, %v5985_v59, -inf  ;;  %v5983_v29 = vmax.f32 %v5847_v52, 0.0 }
 0x521   : > { %v6511_v44 = vmax.f32 %v6509_v2, %v6510_v28  ;;  %v6520_v16 = vmax.f32 %v6518_v39, %v6519_v25  ;;  %v6535_v12 = vrot.slane %v6534_v20, 2  ;;  %v6559_v9 = vmax.f32 %v6557_v60, %v6558_v19 }
 0x522   : > { %v6528_v36 = vrot.slane %v6527_v50, 1  ;;  %v6545_v61 = vmax.f32 %v6543_v35, %v6544_v57  ;;  %v6548_v3 = vsel %vm2261_vm4, %v5982_v18, -inf  ;;  %v6549_v6 = vsel %vm2261_vm4, %v5983_v29, -inf }
 0x523   : > { %v6483_v54 = vrot.slane %v6482_v48, 1  ;;  %v6536_v31 = vmax.f32 %v6534_v20, %v6535_v12  ;;  %v6560_v38 = vrot.slane %v6559_v9, 4  ;;  %v6550_v63 = vmax.f32 %v6548_v3, %v6549_v6 }
 0x524   : > { %v6744_v55 = vunpack.c.l.b16 %v6616_v24  ;;  %v6474_v13 = vrot.slane %v6473_v42, 1  ;;  %v6491_v49 = vmax.f32 %v6489_v45, %v6490_v21  ;;  %v6622_v11 = vpack.c.bf16 %v6502_v32, %v6502_v32 }
 0x525   : > { %v6624_v15 = vpack.c.bf16 %v6520_v16, %v6520_v16  ;;  %v6537_v23 = vrot.slane %v6536_v31, 1  ;;  %v6561_v2 = vmax.f32 %v6559_v9, %v6560_v38  ;;  %v6551_v39 = vrot.slane %v6550_v63, 4 }
 0x526   : > { %v6618_v0 = vpack.c.bf16 %v6466_v33, %v6466_v33  ;;  %v6623_v62 = vpack.c.bf16 %v6511_v44, %v6511_v44  ;;  %v6529_v47 = vmax.f32 %v6527_v50, %v6528_v36  ;;  %v6546_v5 = vrot.slane %v6545_v61, 1 }
 0x527   : > { %v6484_v58 = vmax.f32 %v6482_v48, %v6483_v54  ;;  %v6538_v28 = vmax.f32 %v6536_v31, %v6537_v23  ;;  %v6562_v25 = vrot.slane %v6561_v2, 2  ;;  %v6552_v22 = vmax.f32 %v6550_v63, %v6551_v39 }
 0x528   : > { %v6617_v14 = vpack.c.bf16 %v11132_v41, %v11132_v41  ;;  %v6475_v35 = vmax.f32 %v6473_v42, %v6474_v13  ;;  %v6492_v24 = vrot.slane %v6491_v49, 1  ;;  %v6750_v18 = vunpack.c.l.b16 %v6622_v11 }
 0x529   : > { %v6752_v45 = vunpack.c.l.b16 %v6624_v15  ;;  %v6626_v59 = vpack.c.bf16 %v6538_v28, %v6538_v28  ;;  %v6563_v52 = vmax.f32 %v6561_v2, %v6562_v25  ;;  %v6553_v21 = vrot.slane %v6552_v22, 2 }
 0x52a   : > { %v6808_v33 = vsel %vm6760_vm6, %v6744_v55, %v11130_v43  ;;  %v6751_v32 = vunpack.c.l.b16 %v6623_v62  ;;  %v6625_v50 = vpack.c.bf16 %v6529_v47, %v6529_v47  ;;  %v6547_v20 = vmax.f32 %v6545_v61, %v6546_v5 }
 0x52b   : > { %v6746_v48 = vunpack.c.l.b16 %v6618_v0  ;;  %v6620_v57 = vpack.c.bf16 %v6484_v58, %v6484_v58  ;;  %v6564_v60 = vrot.slane %v6563_v52, 1  ;;  %v6554_v19 = vmax.f32 %v6552_v22, %v6553_v21 }
 0x52c   : > { %v6745_v29 = vunpack.c.l.b16 %v6617_v14  ;;  %v6619_v44 = vpack.c.bf16 %v6475_v35, %v6475_v35  ;;  %v6493_v41 = vmax.f32 %v6491_v49, %v6492_v24  ;;  %v6814_v42 = vsel %vm6758_vm5, %v6751_v32, %v6750_v18 }
 0x52d   : > { %v6815_v16 = vsel %vm6760_vm6, %v6752_v45, %v6814_v42  ;;  %v6754_v12 = vunpack.c.l.b16 %v6626_v59  ;;  %v6565_v9 = vmax.f32 %v6563_v52, %v6564_v60  ;;  %v6555_v36 = vrot.slane %v6554_v19, 1 }
 0x52e   : > { %v2694_v3 = vrot.slane %v11096_v10, 1  ;;  %v6809_v43 = vsel %vm6762_vm7, %v6745_v29, %v6808_v33  ;;  %v6753_v6 = vunpack.c.l.b16 %v6625_v50  ;;  %v6627_v61 = vpack.c.bf16 %v6547_v20, %v6547_v20 }
 0x52f   : > { %v11428_v54 = vpack.c.bf16 %v10950_v34, %v10950_v34  ;;  %v6810_v38 = vsel %vm6764_vm8, %v6746_v48, %v6809_v43  ;;  %v6748_v63 = vunpack.c.l.b16 %v6620_v57  ;;  %v6556_v55 = vmax.f32 %v6554_v19, %v6555_v36 }
 0x530   : > { %v6747_v13 = vunpack.c.l.b16 %v6619_v44  ;;  %v6621_v49 = vpack.c.bf16 %v6493_v41, %v6493_v41  ;;  %v6816_v11 = vsel %vm6762_vm7, %v6753_v6, %v6815_v16  ;;  %v6629_v15 = vpack.c.bf16 %v6565_v9, %v6565_v9 }
 0x531   : > { %v7035_v31 = vunpack.c.l.b16 %v11428_v54  ;;  %v11429_v23 = vpack.c.bf16 %v10944_v1, %v10944_v1  ;;  %v2688_v39 = vmax.f32 %v10970_v7, %v2687_v56  ;;  %v6817_v34 = vsel %vm6764_vm8, %v6754_v12, %v6816_v11  ;;  %v11436_v12 = vld [vmem:[#allocation12_spill] sm:$0xff]  ;;  %v11438_v11 = vld [vmem:[#allocation34_spill] sm:$0xff] }
 0x532   : > { %v6628_v0 = vpack.c.bf16 %v6556_v55, %v6556_v55  ;;  %v11430_v62 = vrot.slane %v10956_v27, 2  ;;  %v2695_v5 = vmax.f32 %v11096_v10, %v2694_v3  ;;  %v6755_v58 = vunpack.c.l.b16 %v6627_v61 }
 0x533   : > { %v7034_v2 = vunpack.c.l.b16 %v11429_v23  ;;  %v6811_v28 = vsel %vm6766_vm9, %v6747_v13, %v6810_v38  ;;  %v2769_v1 = vpack.c.bf16 %v10954_v30, %v10954_v30  ;;  %v2701_v25 = vrot.slane %v10962_v4, 1 }
 0x534   : > { %v2707_v47 = vmax.f32 %v10956_v27, %v11430_v62  ;;  %v6756_v22 = vunpack.c.l.b16 %v6628_v0  ;;  %v6812_v7 = vsel %vm6768_vm10, %v6748_v63, %v6811_v28  ;;  %v6749_v14 = vunpack.c.l.b16 %v6621_v49 }
 0x535   : > { %v7091_v56 = vsel %vm6758_vm5, %v7035_v31, %v7034_v2  ;;  %v6757_v35 = vunpack.c.l.b16 %v6629_v15  ;;  %v6818_v24 = vsel %vm6766_vm9, %v6755_v58, %v6817_v34  ;;  %v7084_v27 = vsel %vm6758_vm5, %v10581_v37, %v10561_v40  ;;  %v11439_v15 = vld [vmem:[#allocation19_spill] sm:$0xff] }
 0x536   : > { %v11431_v10 = vpack.c.bf16 %v10937_v17, %v10937_v17  ;;  %v2770_v30 = vpack.c.bf16 %v2688_v39, %v2688_v39  ;;  %v6819_v45 = vsel %vm6768_vm10, %v6756_v22, %v6818_v24  ;;  %v2708_v59 = vrot.slane %v2707_v47, 1  ;;  %v11441_v39 = vld [vmem:[#allocation14_spill] sm:$0xff]  ;;  %v11442_v34 = vld [vmem:[#allocation15_spill] sm:$0xff] }
 0x537   : > { %v2771_v52 = vpack.c.bf16 %v2695_v5, %v2695_v5  ;;  %v6813_v21 = vsel %vm6770_vm11, %v6749_v14, %v6812_v7  ;;  %v6820_v33 = vsel %vm6770_vm11, %v6757_v35, %v6819_v45  ;;  %v2762_v32 = vpack.c.bf16 %v10586_v53, %v10586_v53  ;;  %v11433_v53 = vld [vmem:[#allocation54_spill] sm:$0xff] }
 0x538   : > { %v7036_v18 = vunpack.c.l.b16 %v11431_v10  ;;  %v2702_v40 = vmax.f32 %v10962_v4, %v2701_v25  ;;  %v6824_v37 = vpack.c.b16 %v6820_v33, %v6813_v21  ;;  %v2652_v17 = vrot.slane %v10588_v8, 1  ;;  %v7708_v10 = vld [vmem:[%s11274_s16] ss:$0 sm:$0xff] }
 0x539   : > { %v2763_v20 = vpack.c.bf16 %v10924_v51, %v10924_v51  ;;  %v7037_v48 = vunpack.c.l.b16 %v2769_v1  ;;  %v7085_v57 = vsel %vm6760_vm6, %v10550_v46, %v7084_v27  ;;  %v11432_v60 = vrot.slane %v10558_v26, 1  ;;  %v11435_v51 = vld [vmem:[#allocation13_spill] sm:$0xff] }
 0x53a   : > { %v7092_v50 = vsel %vm6760_vm6, %v7036_v18, %v7091_v56  ;;  %v7038_v29 = vunpack.c.l.b16 %v2770_v30  ;;  %8614 = vmatmul.mubr.msk.bf16.gmra.mxu0 %vm2261_vm4, %v6824_v37  ;;  %v11434_v4 = vpack.c.bf16 %v11433_v53, %v11433_v53  ;;  %v2709_v42 = vmax.f32 %v2707_v47, %v2708_v59 }
 0x53b   : > { %v2646_v19 = vmax.f32 %v10558_v26, %v11432_v60  ;;  %v7093_v41 = vsel %vm6762_vm7, %v7037_v48, %v7092_v50  ;;  %v7039_v16 = vunpack.c.l.b16 %v2771_v52  ;;  %v11437_v9 = vpack.c.b16 %v11435_v51, %v11436_v12 }
 0x53c   : > { %v7029_v44 = vunpack.c.l.b16 %v11434_v4  ;;  %v7030_v46 = vunpack.c.l.b16 %v2762_v32  ;;  %v2772_v36 = vpack.c.bf16 %v2702_v40, %v2702_v40  ;;  %v2653_v3 = vmax.f32 %v10588_v8, %v2652_v17 }
 0x53d   : > { %8621 = vmatprep.mubr.msk.bf16.mxu0 %vm2261_vm4, %v11437_v9  ;;  %v7031_v43 = vunpack.c.l.b16 %v2763_v20  ;;  %v2764_v6 = vpack.c.bf16 %v2646_v19, %v2646_v19  ;;  %v7094_v61 = vsel %vm6764_vm8, %v7038_v29, %v7093_v41  ;;  %v2773_v54 = vpack.c.bf16 %v2709_v42, %v2709_v42 }
 0x53e   : > { %v7086_v26 = vsel %vm6762_vm7, %v7029_v44, %v7085_v57  ;;  %v7095_v31 = vsel %vm6766_vm9, %v7039_v16, %v7094_v61  ;;  %v7040_v63 = vunpack.c.l.b16 %v2772_v36  ;;  %v2765_v55 = vpack.c.bf16 %v2653_v3, %v2653_v3 }
 0x53f   : > { %v7087_v38 = vsel %vm6764_vm8, %v7030_v46, %v7086_v26  ;;  %v7032_v49 = vunpack.c.l.b16 %v2764_v6  ;;  %v11440_v23 = vpack.c.b16 %v11438_v11, %v11439_v15  ;;  %v7041_v2 = vunpack.c.l.b16 %v2773_v54 }
 0x540   : > { %v7088_v13 = vsel %vm6766_vm9, %v7031_v43, %v7087_v38  ;;  %v7096_v8 = vsel %vm6768_vm10, %v7040_v63, %v7095_v31  ;;  %v11443_v0 = vpack.c.b16 %v11441_v39, %v11442_v34  ;;  %v7033_v47 = vunpack.c.l.b16 %v2765_v55 }
 0x541   : > { %v7089_v62 = vsel %vm6768_vm10, %v7032_v49, %v7088_v13  ;;  %v7097_v5 = vsel %vm6770_vm11, %v7041_v2, %v7096_v8 }
 0x542   : > { %8622 = vmatmul.mubr.msk.bf16.vlgmr.msra.gmra.mxu0 %vm2261_vm4, %v11440_v23  ;;  %v7090_v58 = vsel %vm6770_vm11, %v7033_v47, %v7089_v62 }
 0x543   : > { %8625 = vmatprep.mubr.msk.bf16.mxu0 %vm2261_vm4, %v11443_v0  ;;  %v7101_v28 = vpack.c.b16 %v7097_v5, %v7090_v58 }
 0x54a   : > { %8626 = vmatmul.mubr.msk.bf16.gmra.mxu0 %vm2261_vm4, %v7101_v28 }
 0x578   : > { %v8611_v1 = vpop.f32.mrf.mxu0 }
 0x57a   : > { %v6883_v25 = vpop.f32.mrf.mxu0 }
 0x57c   : > { %v8612_v22 = vpop.f32.mrf.mxu0 }
 0x57e   : > { %v6886_v7 = vpop.f32.mrf.mxu0 }
 0x5fa   : > { %v8615_v56 = vpop.f32.mrf.mxu0 }
 0x5fc   : > { %v6899_v14 = vpop.f32.mrf.mxu0 }
 0x5fe   : > { %v8616_v35 = vpop.f32.mrf.mxu0 }
 0x600   : > { %v6902_v24 = vpop.f32.mrf.mxu0 }
 0x602   : > { %v8623_v27 = vpop.f32.mrf.mxu0 }
 0x603   : > { %v7169_v18 = vadd.f32 %v8623_v27, %v8611_v1 }
 0x604   : > { %v7160_v30 = vpop.f32.mrf.mxu0 }
 0x605   : > { %v7200_v45 = vadd.f32 %v7708_v10, %v7169_v18  ;;  %v7161_v59 = vadd.f32 %v7160_v30, %v6883_v25 }
 0x606   : > { %v8624_v52 = vpop.f32.mrf.mxu0 }
 0x607   : > { %v7208_v21 = vmax.f32 %v7200_v45, 0.0  ;;  %v7198_v33 = vadd.f32 %v7708_v10, %v7161_v59  ;;  %v7172_v32 = vadd.f32 %v8624_v52, %v8612_v22 }
 0x608   : > { %v7163_v50 = vpop.f32.mrf.mxu0 }
 0x609   : > { %7217 = vst.msk [vmem:[%s11237_s25 + $0x10] sm:$0xff] %vm7214_vm12, %v7208_v21  ;;  %v7206_v40 = vmax.f32 %v7198_v33, 0.0  ;;  %v7201_v37 = vadd.f32 %v7708_v10, %v7172_v32  ;;  %v7164_v17 = vadd.f32 %v7163_v50, %v6886_v7 }
 0x60a   : > { %v8627_v20 = vpop.f32.mrf.mxu0 }
 0x60b   : > { %7215 = vst.msk [vmem:[%s11237_s25] sm:$0xff] %vm7214_vm12, %v7206_v40  ;;  %v7209_v48 = vmax.f32 %v7201_v37, 0.0  ;;  %v7199_v57 = vadd.f32 %v7708_v10, %v7164_v17  ;;  %v7185_v60 = vadd.f32 %v8627_v20, %v8615_v56 }
 0x60c   : > { %v7176_v19 = vpop.f32.mrf.mxu0 }
 0x60d   : > { %7218 = vst.msk [vmem:[%s11237_s25 + $0x18] sm:$0xff] %vm7214_vm12, %v7209_v48  ;;  %v7207_v29 = vmax.f32 %v7199_v57, 0.0  ;;  %v7204_v53 = vadd.f32 %v7708_v10, %v7185_v60  ;;  %v7177_v4 = vadd.f32 %v7176_v19, %v6899_v14 }
 0x60e   : > { %v8628_v44 = vpop.f32.mrf.mxu0 }
 0x60f   : > { %7216 = vst.msk [vmem:[%s11237_s25 + $0x8] sm:$0xff] %vm7214_vm12, %v7207_v29  ;;  %v7212_v41 = vmax.f32 %v7204_v53, 0.0  ;;  %v7202_v42 = vadd.f32 %v7708_v10, %v7177_v4  ;;  %v7188_v16 = vadd.f32 %v8628_v44, %v8616_v35 }
 0x610   : > { %v7179_v51 = vpop.f32.mrf.mxu0 }
 0x611   : > { %7221 = vst.msk [vmem:[%s11237_s25 + $0x30] sm:$0xff] %vm7214_vm12, %v7212_v41  ;;  %v7210_v12 = vmax.f32 %v7202_v42, 0.0  ;;  %v7205_v9 = vadd.f32 %v7708_v10, %v7188_v16  ;;  %v7180_v46 = vadd.f32 %v7179_v51, %v6902_v24 }
 0x613   : > { %7219 = vst.msk [vmem:[%s11237_s25 + $0x20] sm:$0xff] %vm7214_vm12, %v7210_v12  ;;  %v7213_v36 = vmax.f32 %v7205_v9, 0.0  ;;  %v7203_v26 = vadd.f32 %v7708_v10, %v7180_v46 }
 0x615   : > { %7222 = vst.msk [vmem:[%s11237_s25 + $0x38] sm:$0xff] %vm7214_vm12, %v7213_v36  ;;  %v7211_v3 = vmax.f32 %v7203_v26, 0.0 }
 0x617   : > { %7220 = vst.msk [vmem:[%s11237_s25 + $0x28] sm:$0xff] %vm7214_vm12, %v7211_v3 }
 0x618 PF: > { %s27_s24 = sadd.s32 1, %s8758_s24  }
 0x619   : > { %p24_p6 = scmp.ge.s32.totalorder %s27_s24, 4  }
 0x61b   :  { %26 = sbr.rel (!%p24_p6) target bundleno = 3 (0x3), region = 121 }

// kernel: ia_ssd_encoder_forward.5
= control target key start
LH: loop header
LB: loop body
LE: loop exit
PB: predicated region body
PF: predicated region fallthrough
CT: control target
= control target key end

     0   :  { %12 = vsyncpa [#allocation3], 0  ;;  %s3199_s0 = inlined_call_operand.vmem [shape: bf16[1024,67], index: 0, kind: input, shape index: {}]   ;;  %s3200_s1 = inlined_call_operand.vmem [shape: bf16[67,64], index: 1, kind: input, shape index: {}]   ;;  %s3201_s2 = inlined_call_operand.vmem [shape: f32[1,64], index: 2, kind: input, shape index: {}]   ;;  %s3202_s3 = inlined_call_operand.vmem [shape: bf16[64,64], index: 3, kind: input, shape index: {}]   ;;  %s3203_s4 = inlined_call_operand.vmem [shape: f32[1,64], index: 4, kind: input, shape index: {}]   ;;  %s3204_s5 = inlined_call_operand.vmem [shape: bf16[64,128], index: 5, kind: input, shape index: {}]   ;;  %s3205_s6 = inlined_call_operand.vmem [shape: f32[1,128], index: 6, kind: input, shape index: {}]   ;;  %s3206_s7 = inlined_call_operand.hbm [shape: f32[64,128], index: 7, kind: output, shape index: {}]  }
   0x1   :  { %14 = vsyncpa [#allocation3 + $0x1], 0  ;;  %s2682_s24 = smov 0   ;;  %s2684_s25 = smov 0  }
   0x2   :  { %s2686_s26 = smov 0   ;;  %s2688_s27 = smov 0  }
   0x3 LB: > { %s2703_s28 = sadd.s32 4294967295, %s2636_s27   ;;  %s2125_s29 = sadd.s32 4294967294, %s2636_s27   ;;  %s2636_s27 = sphi %s2688_s27, %s3212_s27   ;;  %s2632_s26 = sphi %s2686_s26, %s3211_s26   ;;  %s2628_s25 = sphi %s2684_s25, %s3210_s25   ;;  %s2624_s24 = sphi %s2682_s24, %s3209_s24  }
   0x4   : > { %s2707_s30 = sadd.s32 1, %s2636_s27   ;;  %s179_s8 = sadd.s32 1, %s2632_s26 }
   0x5   : > { %s176_s9 = ssub.s32 %s2636_s27, %s2707_s30  ;;  %p189_p0 = scmp.ne.s32.totalorder %s2632_s26, %s2628_s25 }
   0x6   : > { %p177_p1 = scmp.eq.s32.totalorder %s176_s9, 0  ;;  %p190_p2 = scmp.eq.s32.totalorder %s2703_s28, 1 }
   0x7   : > { %p195_p3 = scmp.ne.s32.totalorder %s2628_s25, %s2624_s24  ;;  %p196_p4 = scmp.eq.s32.totalorder %s2125_s29, 1 }
   0x8   : > { %s2718_s10 = scalar_select %p177_p1, %s2632_s26, %s179_s8  }
   0x9   : > { %p2720_p5 = por %p190_p2, %p189_p0  ;;  %p2724_p6 = por %p196_p4, %p195_p3 }
   0xa   : > { %p2128_p7 = scmp.ge.s32.totalorder %s2636_s27, 1  ;;  %p241_p8 = scmp.lt.s32.totalorder %s2636_s27, 3 }
   0xc   : > { %p242_p9 = pnand %p2128_p7, %p241_p8 }
   0xd   : > { %s2130_s17 = sshll.u32 (!%p242_p9), %s2703_s28, 6  ;;  %s2251_s9 = sshll.u32 (!%p242_p9), %s2703_s28, 9 }
   0xe   : > { %245 = sbr.rel (%p242_p9) target bundleno = 813 (0x32d), region = 48  ;;  %p274_p10 = scmp.lt.s32.totalorder (!%p242_p9), %s2130_s17, 127 }
   0xf   : > { %s3157_s15 = scalar_lea.hbm (!%p242_p9), %s3206_s7, %s2251_s9  ;;  %s2639_s28 = smov (!%p242_p9), [#allocation2]  }
  0x10   : > { %s2580_s18 = sshll.u32 (!%p242_p9), %s2639_s28, 4  ;;  %s2581_s18 = int_to_ptr.vmem [resolvable:$false] %s2580_s18 }
  0x11   : > { %s2582_s19 = scalar_lea.vmem (!%p242_p9), %s2581_s18, 1024 }
  0x13   : > { %v2531_v0 = vld [vmem:[%s3200_s1 + $0x20] ss:$0 sps:$4 sm:$0x33]   ;;  %vm645_vm0 = vcmask 1040384   ;;  %vm646_vm1 = vcmask 1041408   ;;  %v2638_v1 = vmov 65535  }
  0x14   : > { %v647_v2 = vsel %vm645_vm0, 4294967295, %v2638_v1  ;;  %v2532_v5 = vld [vmem:[%s3200_s1 + $0x18] sm:$0xff]   ;;  %v2533_v6 = vld [vmem:[%s3200_s1 + $0x10] sm:$0xff]   ;;  %s3214_s17 = smov (!%p274_p10, %s2130_s17), 127  ;;  %vm548_vm2 = vcmask 547840   ;;  %v2534_v8 = vld [vmem:[%s3200_s1 + $0x8] sm:$0xff]  }
  0x15   : > { %v648_v3 = vsel %vm646_vm1, %v647_v2, 0  ;;  %s2131_s20 = sshll.u32 %s3214_s17, 2  ;;  %v2535_v9 = vld [vmem:[%s3200_s1] sm:$0xff]   ;;  %v2568_v16 = vld [vmem:[%s3202_s3 + $0x18] sm:$0xff]   ;;  %v2569_v29 = vld [vmem:[%s3202_s3 + $0x10] sm:$0xff]   ;;  %vm1076_vm3 = vcmask 523264  }
  0x16   : > { %v650_v4 = vand.u32 %v2531_v0, %v648_v3  ;;  %s2743_s23 = scalar_lea.vmem %s3199_s0, %s2131_s20  ;;  %2405 = vmatprep.subr.bf16.mxu1 %v2568_v16  ;;  %v2570_v31 = vld [vmem:[%s3202_s3 + $0x8] sm:$0xff]   ;;  %v2571_v33 = vld [vmem:[%s3202_s3] sm:$0xff]   ;;  %vm1925_vm4 = vcmask 1041409   ;;  %vm1927_vm5 = vcmask 1042434   ;;  %vm1929_vm6 = vcmask 1043459   ;;  %s270_s20 = sand.u32 1, %s2628_s25  }
  0x17   : > { %v2536_v7 = vld [vmem:[%s2743_s23] sm:$0xff]   ;;  %v2537_v10 = vld [vmem:[%s2743_s23 + $0x8] sm:$0xff]   ;;  %v2538_v11 = vld [vmem:[%s2743_s23 + $0x10] sm:$0xff]   ;;  %2406 = vmatpush3.bf16.msra.mxu1 %v2568_v16  ;;  %vm1931_vm7 = vcmask 1044484   ;;  %vm1933_vm8 = vcmask 1045509   ;;  %vm1935_vm9 = vcmask 1046534  }
  0x18   : > { %2331 = vmatprep.subr.bf16.mxu0 %v650_v4  ;;  %2341 = vmatprep.mubr.msk.bf16.mxu0 %vm548_vm2, %v2536_v7  ;;  %v2539_v12 = vld [vmem:[%s2743_s23 + $0x18] sm:$0xff]   ;;  %v2540_v13 = vld [vmem:[%s2743_s23 + $0x20] sm:$0xff]   ;;  %v2541_v14 = vld [vmem:[%s2743_s23 + $0x28] sm:$0xff]   ;;  %vm1937_vm10 = vcmask 1047559   ;;  %s2129_s29 = sshll.u32 %s270_s20, 5  ;;  %s3159_s16 = scalar_lea.sflag [#allocation3], %s270_s20 }
  0x19   : > { %2332 = vmatpush3.bf16.msra.mxu0 %v650_v4  ;;  %v2542_v15 = vld [vmem:[%s2743_s23 + $0x30] sm:$0xff]   ;;  %v2543_v17 = vld [vmem:[%s2743_s23 + $0x38] sm:$0xff]   ;;  %v2544_v18 = vld [vmem:[%s2743_s23 + $0x40] sm:$0xff]   ;;  %2407 = vmatprep.subr.bf16.mxu1 %v2569_v29 }
  0x1a   : > { %2333 = vmatprep.subr.bf16.mxu0 %v2532_v5  ;;  %v2545_v19 = vld [vmem:[%s2743_s23 + $0x48] sm:$0xff]   ;;  %v2546_v20 = vld [vmem:[%s2743_s23 + $0x50] sm:$0xff]   ;;  %v2547_v21 = vld [vmem:[%s2743_s23 + $0x58] sm:$0xff]  }
  0x1b   : > { %v2548_v22 = vld [vmem:[%s2743_s23 + $0x60] sm:$0xff]   ;;  %v2549_v23 = vld [vmem:[%s2743_s23 + $0x68] sm:$0xff]   ;;  %v2550_v24 = vld [vmem:[%s2743_s23 + $0x70] sm:$0xff]   ;;  %2408 = vmatpush3.bf16.msra.mxu1 %v2569_v29 }
  0x1c   : > { %v2551_v25 = vld [vmem:[%s2743_s23 + $0x78] sm:$0xff]   ;;  %v2552_v26 = vld [vmem:[%s2743_s23 + $0x80] sm:$0xff]   ;;  %v2553_v27 = vld [vmem:[%s2743_s23 + $0x88] sm:$0xff]   ;;  %2409 = vmatprep.subr.bf16.mxu1 %v2570_v31 }
  0x1d   : > { %2334 = vmatpush3.bf16.msra.mxu0 %v2532_v5  ;;  %v2554_v28 = vld [vmem:[%s2743_s23 + $0x90] sm:$0xff]   ;;  %v2555_v30 = vld [vmem:[%s2743_s23 + $0x98] sm:$0xff]   ;;  %v2556_v32 = vld [vmem:[%s2743_s23 + $0xa0] sm:$0xff]  }
  0x1e   : > { %2335 = vmatprep.subr.bf16.mxu0 %v2533_v6  ;;  %v2557_v34 = vld [vmem:[%s2743_s23 + $0xa8] sm:$0xff]   ;;  %v2558_v35 = vld [vmem:[%s2743_s23 + $0xb0] sm:$0xff]   ;;  %v2559_v36 = vld [vmem:[%s2743_s23 + $0xb8] sm:$0xff]  }
  0x1f   : > { %2410 = vmatpush3.bf16.msra.mxu1 %v2570_v31  ;;  %v2560_v37 = vld [vmem:[%s2743_s23 + $0xc0] sm:$0xff]   ;;  %v2561_v38 = vld [vmem:[%s2743_s23 + $0xc8] sm:$0xff]   ;;  %v2562_v39 = vld [vmem:[%s2743_s23 + $0xd0] sm:$0xff]  }
  0x20   : > { %2411 = vmatprep.subr.bf16.mxu1 %v2571_v33  ;;  %v2563_v40 = vld [vmem:[%s2743_s23 + $0xd8] sm:$0xff]   ;;  %v2564_v41 = vld [vmem:[%s2743_s23 + $0xe0] sm:$0xff]   ;;  %v2565_v42 = vld [vmem:[%s2743_s23 + $0xe8] sm:$0xff]  }
  0x21   : > { %2336 = vmatpush3.bf16.msra.mxu0 %v2533_v6  ;;  %v2566_v43 = vld [vmem:[%s2743_s23 + $0xf0] sm:$0xff]   ;;  %v2567_v44 = vld [vmem:[%s2743_s23 + $0xf8] sm:$0xff]   ;;  %v2830_v47 = vld [vmem:[%s3201_s2] ss:$0 sm:$0xff]  ;;  %s272_s23 = scalar_lea.vmem [#allocation2], %s2129_s29 }
  0x22   : > { %2337 = vmatprep.subr.bf16.mxu0 %v2534_v8  ;;  %s2063_s8 = sshll.u32 %s272_s23, 4  ;;  %s3152_s8 = int_to_ptr.vmem [resolvable:$true] %s2063_s8 }
  0x23   : > { %2412 = vmatpush3.bf16.msra.mxu1 %v2571_v33  ;;  %s2576_s17 = scalar_lea.vmem %s3152_s8, 512  ;;  %p2583_p0 = scmp.lt.s32.totalorder %s3152_s8, %s2581_s18 }
  0x24   : > { %p2577_p11 = scmp.ne.s32.totalorder %s3152_s8, %s2576_s17  ;;  %p2584_p1 = scmp.lt.s32.totalorder %s2582_s19, %s2576_s17 }
  0x25   : > { %2338 = vmatpush3.bf16.msra.mxu0 %v2534_v8 }
  0x26   : > { %2339 = vmatprep.subr.bf16.mxu0 %v2535_v9  ;;  %p2578_p12 = pnand %p2577_p11, %p2720_p5  ;;  %p2585_p2 = por %p2584_p1, %p2583_p0 }
  0x28   : > { %p2579_p13 = pneg %p2578_p12 }
  0x29   : > { %2340 = vmatpush3.bf16.msra.mxu0 %v2535_v9 }
  0x2a   : > { %p2586_p3 = pnand %p2585_p2, %p2579_p13 }
  0x2c   : > { %2342 = vmatmul.mubr.msk.bf16.vlgmr.msra.gmra.mxu0 %vm548_vm2, %v2537_v10 }
  0x2d   : > { %2345 = vmatprep.mubr.msk.bf16.mxu0 %vm548_vm2, %v2538_v11 }
  0x34   : > { %2346 = vmatmul.mubr.msk.bf16.gmra.mxu0 %vm548_vm2, %v2539_v12 }
  0x35   : > { %2349 = vmatprep.mubr.msk.bf16.mxu0 %vm548_vm2, %v2540_v13 }
  0x3c   : > { %2350 = vmatmul.mubr.msk.bf16.gmra.mxu0 %vm548_vm2, %v2541_v14 }
  0x3d   : > { %2353 = vmatprep.mubr.msk.bf16.mxu0 %vm548_vm2, %v2542_v15 }
  0x44   : > { %2354 = vmatmul.mubr.msk.bf16.gmra.mxu0 %vm548_vm2, %v2543_v17 }
  0x45   : > { %2357 = vmatprep.mubr.msk.bf16.mxu0 %vm548_vm2, %v2544_v18 }
  0x4c   : > { %2358 = vmatmul.mubr.msk.bf16.gmra.mxu0 %vm548_vm2, %v2545_v19 }
  0x4d   : > { %2361 = vmatprep.mubr.msk.bf16.mxu0 %vm548_vm2, %v2546_v20 }
  0x54   : > { %2362 = vmatmul.mubr.msk.bf16.gmra.mxu0 %vm548_vm2, %v2547_v21 }
  0x55   : > { %2365 = vmatprep.mubr.msk.bf16.mxu0 %vm548_vm2, %v2548_v22 }
  0x5c   : > { %2366 = vmatmul.mubr.msk.bf16.gmra.mxu0 %vm548_vm2, %v2549_v23 }
  0x5d   : > { %2369 = vmatprep.mubr.msk.bf16.mxu0 %vm548_vm2, %v2550_v24 }
  0x64   : > { %2370 = vmatmul.mubr.msk.bf16.gmra.mxu0 %vm548_vm2, %v2551_v25 }
  0x65   : > { %2373 = vmatprep.mubr.msk.bf16.mxu0 %vm548_vm2, %v2552_v26 }
  0x6c   : > { %2374 = vmatmul.mubr.msk.bf16.gmra.mxu0 %vm548_vm2, %v2553_v27 }
  0x6d   : > { %2377 = vmatprep.mubr.msk.bf16.mxu0 %vm548_vm2, %v2554_v28 }
  0x74   : > { %2378 = vmatmul.mubr.msk.bf16.gmra.mxu0 %vm548_vm2, %v2555_v30 }
  0x75   : > { %2381 = vmatprep.mubr.msk.bf16.mxu0 %vm548_vm2, %v2556_v32 }
  0x7c   : > { %2382 = vmatmul.mubr.msk.bf16.gmra.mxu0 %vm548_vm2, %v2557_v34 }
  0x7d   : > { %2385 = vmatprep.mubr.msk.bf16.mxu0 %vm548_vm2, %v2558_v35 }
  0x84   : > { %2386 = vmatmul.mubr.msk.bf16.gmra.mxu0 %vm548_vm2, %v2559_v36 }
  0x85   : > { %2389 = vmatprep.mubr.msk.bf16.mxu0 %vm548_vm2, %v2560_v37 }
  0x8c   : > { %2390 = vmatmul.mubr.msk.bf16.gmra.mxu0 %vm548_vm2, %v2561_v38 }
  0x8d   : > { %2393 = vmatprep.mubr.msk.bf16.mxu0 %vm548_vm2, %v2562_v39 }
  0x94   : > { %2394 = vmatmul.mubr.msk.bf16.gmra.mxu0 %vm548_vm2, %v2563_v40 }
  0x95   : > { %2397 = vmatprep.mubr.msk.bf16.mxu0 %vm548_vm2, %v2564_v41 }
  0x9c   : > { %2398 = vmatmul.mubr.msk.bf16.gmra.mxu0 %vm548_vm2, %v2565_v42 }
  0x9d   : > { %2401 = vmatprep.mubr.msk.bf16.mxu0 %vm548_vm2, %v2566_v43 }
  0xa4   : > { %2402 = vmatmul.mubr.msk.bf16.gmra.mxu0 %vm548_vm2, %v2567_v44 }
  0xec   : > { %v2343_v45 = vpop.f32.mrf.mxu0 }
  0xed   : > { %v695_v51 = vadd.f32 %v2343_v45, %v2830_v47 }
  0xee   : > { %v686_v46 = vpop.f32.mrf.mxu0 }
  0xef   : > { %v687_v49 = vadd.f32 %v2830_v47, %v686_v46  ;;  %v943_v58 = vmax.f32 %v695_v51, 0.0 }
  0xf0   : > { %v2344_v48 = vpop.f32.mrf.mxu0 }
  0xf1   : > { %v698_v50 = vadd.f32 %v2344_v48, %v2830_v47  ;;  %v941_v56 = vmax.f32 %v687_v49, 0.0 }
  0xf2   : > { %v689_v52 = vpop.f32.mrf.mxu0 }
  0xf3   : > { %v690_v53 = vadd.f32 %v2830_v47, %v689_v52  ;;  %v944_v54 = vmax.f32 %v698_v50, 0.0 }
  0xf4   : > { %v2347_v55 = vpop.f32.mrf.mxu0 }
  0xf5   : > { %v942_v57 = vmax.f32 %v690_v53, 0.0  ;;  %v1006_v61 = vpack.c.bf16 %v944_v54, %v943_v58  ;;  %v711_v1 = vadd.f32 %v2347_v55, %v2830_v47 }
  0xf6   : > { %v702_v59 = vpop.f32.mrf.mxu0 }
  0xf7   : > { %v1005_v60 = vpack.c.bf16 %v942_v57, %v941_v56  ;;  %v703_v63 = vadd.f32 %v2830_v47, %v702_v59  ;;  %v947_v8 = vmax.f32 %v711_v1, 0.0 }
  0xf8   : > { %v2348_v62 = vpop.f32.mrf.mxu0 }
  0xf9   : > { %v714_v0 = vadd.f32 %v2348_v62, %v2830_v47  ;;  %2413 = vmatprep.mubr.msk.bf16.mxu1 %vm1076_vm3, %v1005_v60  ;;  %v945_v6 = vmax.f32 %v703_v63, 0.0 }
  0xfa   : > { %v705_v2 = vpop.f32.mrf.mxu0  ;;  %2414 = vmatmul.mubr.msk.bf16.vlgmr.msra.gmra.mxu1 %vm1076_vm3, %v1006_v61 }
  0xfb   : > { %v706_v3 = vadd.f32 %v2830_v47, %v705_v2  ;;  %v948_v4 = vmax.f32 %v714_v0, 0.0 }
  0xfc   : > { %v2351_v5 = vpop.f32.mrf.mxu0 }
  0xfd   : > { %v946_v7 = vmax.f32 %v706_v3, 0.0  ;;  %v1008_v11 = vpack.c.bf16 %v948_v4, %v947_v8  ;;  %v727_v15 = vadd.f32 %v2351_v5, %v2830_v47 }
  0xfe   : > { %v718_v9 = vpop.f32.mrf.mxu0 }
  0xff   : > { %v1007_v10 = vpack.c.bf16 %v946_v7, %v945_v6  ;;  %v719_v13 = vadd.f32 %v2830_v47, %v718_v9  ;;  %v951_v22 = vmax.f32 %v727_v15, 0.0 }
 0x100   : > { %v2352_v12 = vpop.f32.mrf.mxu0 }
 0x101   : > { %v730_v14 = vadd.f32 %v2352_v12, %v2830_v47  ;;  %2417 = vmatprep.mubr.msk.bf16.mxu1 %vm1076_vm3, %v1007_v10  ;;  %v949_v20 = vmax.f32 %v719_v13, 0.0 }
 0x102   : > { %v721_v16 = vpop.f32.mrf.mxu0  ;;  %2418 = vmatmul.mubr.msk.bf16.gmra.mxu1 %vm1076_vm3, %v1008_v11 }
 0x103   : > { %v722_v17 = vadd.f32 %v2830_v47, %v721_v16  ;;  %v952_v18 = vmax.f32 %v730_v14, 0.0 }
 0x104   : > { %v2355_v19 = vpop.f32.mrf.mxu0 }
 0x105   : > { %v950_v21 = vmax.f32 %v722_v17, 0.0  ;;  %v1010_v25 = vpack.c.bf16 %v952_v18, %v951_v22  ;;  %v743_v29 = vadd.f32 %v2355_v19, %v2830_v47 }
 0x106   : > { %v734_v23 = vpop.f32.mrf.mxu0 }
 0x107   : > { %v1009_v24 = vpack.c.bf16 %v950_v21, %v949_v20  ;;  %v735_v27 = vadd.f32 %v2830_v47, %v734_v23  ;;  %v955_v36 = vmax.f32 %v743_v29, 0.0 }
 0x108   : > { %v2356_v26 = vpop.f32.mrf.mxu0 }
 0x109   : > { %v746_v28 = vadd.f32 %v2356_v26, %v2830_v47  ;;  %2421 = vmatprep.mubr.msk.bf16.mxu1 %vm1076_vm3, %v1009_v24  ;;  %v953_v34 = vmax.f32 %v735_v27, 0.0 }
 0x10a   : > { %v737_v30 = vpop.f32.mrf.mxu0  ;;  %2422 = vmatmul.mubr.msk.bf16.gmra.mxu1 %vm1076_vm3, %v1010_v25 }
 0x10b   : > { %v738_v31 = vadd.f32 %v2830_v47, %v737_v30  ;;  %v956_v32 = vmax.f32 %v746_v28, 0.0 }
 0x10c   : > { %v2359_v33 = vpop.f32.mrf.mxu0 }
 0x10d   : > { %v954_v35 = vmax.f32 %v738_v31, 0.0  ;;  %v1012_v39 = vpack.c.bf16 %v956_v32, %v955_v36  ;;  %v759_v43 = vadd.f32 %v2359_v33, %v2830_v47 }
 0x10e   : > { %v750_v37 = vpop.f32.mrf.mxu0 }
 0x10f   : > { %v1011_v38 = vpack.c.bf16 %v954_v35, %v953_v34  ;;  %v751_v41 = vadd.f32 %v2830_v47, %v750_v37  ;;  %v959_v51 = vmax.f32 %v759_v43, 0.0 }
 0x110   : > { %v2360_v40 = vpop.f32.mrf.mxu0 }
 0x111   : > { %v762_v42 = vadd.f32 %v2360_v40, %v2830_v47  ;;  %2425 = vmatprep.mubr.msk.bf16.mxu1 %vm1076_vm3, %v1011_v38  ;;  %v957_v49 = vmax.f32 %v751_v41, 0.0 }
 0x112   : > { %v753_v44 = vpop.f32.mrf.mxu0  ;;  %2426 = vmatmul.mubr.msk.bf16.gmra.mxu1 %vm1076_vm3, %v1012_v39 }
 0x113   : > { %v754_v45 = vadd.f32 %v2830_v47, %v753_v44  ;;  %v960_v46 = vmax.f32 %v762_v42, 0.0 }
 0x114   : > { %v2363_v48 = vpop.f32.mrf.mxu0 }
 0x115   : > { %v958_v50 = vmax.f32 %v754_v45, 0.0  ;;  %v1014_v54 = vpack.c.bf16 %v960_v46, %v959_v51  ;;  %v775_v58 = vadd.f32 %v2363_v48, %v2830_v47 }
 0x116   : > { %v766_v52 = vpop.f32.mrf.mxu0 }
 0x117   : > { %v1013_v53 = vpack.c.bf16 %v958_v50, %v957_v49  ;;  %v767_v56 = vadd.f32 %v2830_v47, %v766_v52  ;;  %v963_v1 = vmax.f32 %v775_v58, 0.0 }
 0x118   : > { %v2364_v55 = vpop.f32.mrf.mxu0 }
 0x119   : > { %v778_v57 = vadd.f32 %v2364_v55, %v2830_v47  ;;  %2429 = vmatprep.mubr.msk.bf16.mxu1 %vm1076_vm3, %v1013_v53  ;;  %v961_v63 = vmax.f32 %v767_v56, 0.0 }
 0x11a   : > { %v769_v59 = vpop.f32.mrf.mxu0  ;;  %2430 = vmatmul.mubr.msk.bf16.gmra.mxu1 %vm1076_vm3, %v1014_v54 }
 0x11b   : > { %v770_v60 = vadd.f32 %v2830_v47, %v769_v59  ;;  %v964_v61 = vmax.f32 %v778_v57, 0.0 }
 0x11c   : > { %v2367_v62 = vpop.f32.mrf.mxu0 }
 0x11d   : > { %v962_v0 = vmax.f32 %v770_v60, 0.0  ;;  %v1016_v4 = vpack.c.bf16 %v964_v61, %v963_v1  ;;  %v791_v8 = vadd.f32 %v2367_v62, %v2830_v47 }
 0x11e   : > { %v782_v2 = vpop.f32.mrf.mxu0 }
 0x11f   : > { %v1015_v3 = vpack.c.bf16 %v962_v0, %v961_v63  ;;  %v783_v6 = vadd.f32 %v2830_v47, %v782_v2  ;;  %v967_v15 = vmax.f32 %v791_v8, 0.0 }
 0x120   : > { %v2368_v5 = vpop.f32.mrf.mxu0 }
 0x121   : > { %v794_v7 = vadd.f32 %v2368_v5, %v2830_v47  ;;  %2433 = vmatprep.mubr.msk.bf16.mxu1 %vm1076_vm3, %v1015_v3  ;;  %v965_v13 = vmax.f32 %v783_v6, 0.0 }
 0x122   : > { %v785_v9 = vpop.f32.mrf.mxu0  ;;  %2434 = vmatmul.mubr.msk.bf16.gmra.mxu1 %vm1076_vm3, %v1016_v4 }
 0x123   : > { %v786_v10 = vadd.f32 %v2830_v47, %v785_v9  ;;  %v968_v11 = vmax.f32 %v794_v7, 0.0 }
 0x124   : > { %v2371_v12 = vpop.f32.mrf.mxu0 }
 0x125   : > { %v966_v14 = vmax.f32 %v786_v10, 0.0  ;;  %v1018_v18 = vpack.c.bf16 %v968_v11, %v967_v15  ;;  %v807_v22 = vadd.f32 %v2371_v12, %v2830_v47 }
 0x126   : > { %v798_v16 = vpop.f32.mrf.mxu0 }
 0x127   : > { %v1017_v17 = vpack.c.bf16 %v966_v14, %v965_v13  ;;  %v799_v20 = vadd.f32 %v2830_v47, %v798_v16  ;;  %v971_v29 = vmax.f32 %v807_v22, 0.0 }
 0x128   : > { %v2372_v19 = vpop.f32.mrf.mxu0 }
 0x129   : > { %v810_v21 = vadd.f32 %v2372_v19, %v2830_v47  ;;  %2437 = vmatprep.mubr.msk.bf16.mxu1 %vm1076_vm3, %v1017_v17  ;;  %v969_v27 = vmax.f32 %v799_v20, 0.0 }
 0x12a   : > { %v801_v23 = vpop.f32.mrf.mxu0  ;;  %2438 = vmatmul.mubr.msk.bf16.gmra.mxu1 %vm1076_vm3, %v1018_v18 }
 0x12b   : > { %v802_v24 = vadd.f32 %v2830_v47, %v801_v23  ;;  %v972_v25 = vmax.f32 %v810_v21, 0.0 }
 0x12c   : > { %v2375_v26 = vpop.f32.mrf.mxu0 }
 0x12d   : > { %v970_v28 = vmax.f32 %v802_v24, 0.0  ;;  %v1020_v32 = vpack.c.bf16 %v972_v25, %v971_v29  ;;  %v823_v36 = vadd.f32 %v2375_v26, %v2830_v47 }
 0x12e   : > { %v814_v30 = vpop.f32.mrf.mxu0 }
 0x12f   : > { %v1019_v31 = vpack.c.bf16 %v970_v28, %v969_v27  ;;  %v815_v34 = vadd.f32 %v2830_v47, %v814_v30  ;;  %v975_v43 = vmax.f32 %v823_v36, 0.0 }
 0x130   : > { %v2376_v33 = vpop.f32.mrf.mxu0 }
 0x131   : > { %v826_v35 = vadd.f32 %v2376_v33, %v2830_v47  ;;  %2441 = vmatprep.mubr.msk.bf16.mxu1 %vm1076_vm3, %v1019_v31  ;;  %v973_v41 = vmax.f32 %v815_v34, 0.0 }
 0x132   : > { %v817_v37 = vpop.f32.mrf.mxu0  ;;  %2442 = vmatmul.mubr.msk.bf16.gmra.mxu1 %vm1076_vm3, %v1020_v32 }
 0x133   : > { %v818_v38 = vadd.f32 %v2830_v47, %v817_v37  ;;  %v976_v39 = vmax.f32 %v826_v35, 0.0 }
 0x134   : > { %v2379_v40 = vpop.f32.mrf.mxu0 }
 0x135   : > { %v974_v42 = vmax.f32 %v818_v38, 0.0  ;;  %v1022_v46 = vpack.c.bf16 %v976_v39, %v975_v43  ;;  %v839_v51 = vadd.f32 %v2379_v40, %v2830_v47 }
 0x136   : > { %v830_v44 = vpop.f32.mrf.mxu0 }
 0x137   : > { %v1021_v45 = vpack.c.bf16 %v974_v42, %v973_v41  ;;  %v831_v49 = vadd.f32 %v2830_v47, %v830_v44  ;;  %v979_v58 = vmax.f32 %v839_v51, 0.0 }
 0x138   : > { %v2380_v48 = vpop.f32.mrf.mxu0 }
 0x139   : > { %v842_v50 = vadd.f32 %v2380_v48, %v2830_v47  ;;  %2445 = vmatprep.mubr.msk.bf16.mxu1 %vm1076_vm3, %v1021_v45  ;;  %v977_v56 = vmax.f32 %v831_v49, 0.0 }
 0x13a   : > { %v833_v52 = vpop.f32.mrf.mxu0  ;;  %2446 = vmatmul.mubr.msk.bf16.gmra.mxu1 %vm1076_vm3, %v1022_v46 }
 0x13b   : > { %v834_v53 = vadd.f32 %v2830_v47, %v833_v52  ;;  %v980_v54 = vmax.f32 %v842_v50, 0.0 }
 0x13c   : > { %v2383_v55 = vpop.f32.mrf.mxu0 }
 0x13d   : > { %v978_v57 = vmax.f32 %v834_v53, 0.0  ;;  %v1024_v61 = vpack.c.bf16 %v980_v54, %v979_v58  ;;  %v855_v1 = vadd.f32 %v2383_v55, %v2830_v47 }
 0x13e   : > { %v846_v59 = vpop.f32.mrf.mxu0 }
 0x13f   : > { %v1023_v60 = vpack.c.bf16 %v978_v57, %v977_v56  ;;  %v847_v63 = vadd.f32 %v2830_v47, %v846_v59  ;;  %v983_v8 = vmax.f32 %v855_v1, 0.0 }
 0x140   : > { %v2384_v62 = vpop.f32.mrf.mxu0 }
 0x141   : > { %v858_v0 = vadd.f32 %v2384_v62, %v2830_v47  ;;  %2449 = vmatprep.mubr.msk.bf16.mxu1 %vm1076_vm3, %v1023_v60  ;;  %v981_v6 = vmax.f32 %v847_v63, 0.0 }
 0x142   : > { %v849_v2 = vpop.f32.mrf.mxu0  ;;  %2450 = vmatmul.mubr.msk.bf16.gmra.mxu1 %vm1076_vm3, %v1024_v61 }
 0x143   : > { %v850_v3 = vadd.f32 %v2830_v47, %v849_v2  ;;  %v984_v4 = vmax.f32 %v858_v0, 0.0 }
 0x144   : > { %v2387_v5 = vpop.f32.mrf.mxu0 }
 0x145   : > { %v982_v7 = vmax.f32 %v850_v3, 0.0  ;;  %v1026_v11 = vpack.c.bf16 %v984_v4, %v983_v8  ;;  %v871_v15 = vadd.f32 %v2387_v5, %v2830_v47  ;;  %v2572_v3 = vld [vmem:[%s3204_s5 + $0x18] sm:$0xff]  }
 0x146   : > { %v862_v9 = vpop.f32.mrf.mxu0  ;;  %2477 = vmatprep.subr.bf16.mxu1 %v2572_v3 }
 0x147   : > { %v1025_v10 = vpack.c.bf16 %v982_v7, %v981_v6  ;;  %v863_v13 = vadd.f32 %v2830_v47, %v862_v9  ;;  %v987_v22 = vmax.f32 %v871_v15, 0.0  ;;  %2478 = vmatpush3.bf16.msra.mxu1 %v2572_v3 }
 0x148   : > { %v2388_v12 = vpop.f32.mrf.mxu0 }
 0x149   : > { %v874_v14 = vadd.f32 %v2388_v12, %v2830_v47  ;;  %2453 = vmatprep.mubr.msk.bf16.mxu1 %vm1076_vm3, %v1025_v10  ;;  %v985_v20 = vmax.f32 %v863_v13, 0.0 }
 0x14a   : > { %v865_v16 = vpop.f32.mrf.mxu0  ;;  %2454 = vmatmul.mubr.msk.bf16.gmra.mxu1 %vm1076_vm3, %v1026_v11 }
 0x14b   : > { %v866_v17 = vadd.f32 %v2830_v47, %v865_v16  ;;  %v988_v18 = vmax.f32 %v874_v14, 0.0 }
 0x14c   : > { %v2391_v19 = vpop.f32.mrf.mxu0 }
 0x14d   : > { %v986_v21 = vmax.f32 %v866_v17, 0.0  ;;  %v1028_v25 = vpack.c.bf16 %v988_v18, %v987_v22  ;;  %v887_v29 = vadd.f32 %v2391_v19, %v2830_v47  ;;  %v2573_v18 = vld [vmem:[%s3204_s5 + $0x10] sm:$0xff]   ;;  %v2940_v19 = vld [vmem:[%s3203_s4] ss:$0 sm:$0xff] }
 0x14e   : > { %v878_v23 = vpop.f32.mrf.mxu0  ;;  %2479 = vmatprep.subr.bf16.mxu1 %v2573_v18 }
 0x14f   : > { %v1027_v24 = vpack.c.bf16 %v986_v21, %v985_v20  ;;  %v879_v27 = vadd.f32 %v2830_v47, %v878_v23  ;;  %v991_v36 = vmax.f32 %v887_v29, 0.0  ;;  %2480 = vmatpush3.bf16.msra.mxu1 %v2573_v18 }
 0x150   : > { %v2392_v26 = vpop.f32.mrf.mxu0 }
 0x151   : > { %v890_v28 = vadd.f32 %v2392_v26, %v2830_v47  ;;  %2457 = vmatprep.mubr.msk.bf16.mxu1 %vm1076_vm3, %v1027_v24  ;;  %v989_v34 = vmax.f32 %v879_v27, 0.0 }
 0x152   : > { %v881_v30 = vpop.f32.mrf.mxu0  ;;  %2458 = vmatmul.mubr.msk.bf16.gmra.mxu1 %vm1076_vm3, %v1028_v25 }
 0x153   : > { %v882_v31 = vadd.f32 %v2830_v47, %v881_v30  ;;  %v992_v32 = vmax.f32 %v890_v28, 0.0 }
 0x154   : > { %v2395_v33 = vpop.f32.mrf.mxu0 }
 0x155   : > { %v990_v35 = vmax.f32 %v882_v31, 0.0  ;;  %v1030_v39 = vpack.c.bf16 %v992_v32, %v991_v36  ;;  %v903_v43 = vadd.f32 %v2395_v33, %v2830_v47 }
 0x156   : > { %v894_v37 = vpop.f32.mrf.mxu0 }
 0x157   : > { %v1029_v38 = vpack.c.bf16 %v990_v35, %v989_v34  ;;  %v895_v41 = vadd.f32 %v2830_v47, %v894_v37  ;;  %v995_v51 = vmax.f32 %v903_v43, 0.0 }
 0x158   : > { %v2396_v40 = vpop.f32.mrf.mxu0 }
 0x159   : > { %v906_v42 = vadd.f32 %v2396_v40, %v2830_v47  ;;  %2461 = vmatprep.mubr.msk.bf16.mxu1 %vm1076_vm3, %v1029_v38  ;;  %v993_v49 = vmax.f32 %v895_v41, 0.0 }
 0x15a   : > { %v897_v44 = vpop.f32.mrf.mxu0  ;;  %2462 = vmatmul.mubr.msk.bf16.gmra.mxu1 %vm1076_vm3, %v1030_v39 }
 0x15b   : > { %v898_v45 = vadd.f32 %v2830_v47, %v897_v44  ;;  %v996_v46 = vmax.f32 %v906_v42, 0.0 }
 0x15c   : > { %v2399_v48 = vpop.f32.mrf.mxu0 }
 0x15d   : > { %v994_v50 = vmax.f32 %v898_v45, 0.0  ;;  %v1032_v54 = vpack.c.bf16 %v996_v46, %v995_v51  ;;  %v919_v58 = vadd.f32 %v2399_v48, %v2830_v47 }
 0x15e   : > { %v910_v52 = vpop.f32.mrf.mxu0 }
 0x15f   : > { %v1031_v53 = vpack.c.bf16 %v994_v50, %v993_v49  ;;  %v911_v56 = vadd.f32 %v2830_v47, %v910_v52  ;;  %v999_v1 = vmax.f32 %v919_v58, 0.0  ;;  %v2575_v50 = vld [vmem:[%s3204_s5] sm:$0xff]  }
 0x160   : > { %v2400_v55 = vpop.f32.mrf.mxu0 }
 0x161   : > { %v922_v57 = vadd.f32 %v2400_v55, %v2830_v47  ;;  %2465 = vmatprep.mubr.msk.bf16.mxu1 %vm1076_vm3, %v1031_v53  ;;  %v997_v63 = vmax.f32 %v911_v56, 0.0 }
 0x162   : > { %v913_v59 = vpop.f32.mrf.mxu0  ;;  %2466 = vmatmul.mubr.msk.bf16.gmra.mxu1 %vm1076_vm3, %v1032_v54 }
 0x163   : > { %v914_v60 = vadd.f32 %v2830_v47, %v913_v59  ;;  %v1000_v61 = vmax.f32 %v922_v57, 0.0 }
 0x164   : > { %v2403_v62 = vpop.f32.mrf.mxu0 }
 0x165   : > { %v998_v0 = vmax.f32 %v914_v60, 0.0  ;;  %v1034_v5 = vpack.c.bf16 %v1000_v61, %v999_v1  ;;  %v935_v9 = vadd.f32 %v2403_v62, %v2830_v47 }
 0x166   : > { %v926_v2 = vpop.f32.mrf.mxu0 }
 0x167   : > { %v1033_v4 = vpack.c.bf16 %v998_v0, %v997_v63  ;;  %v927_v7 = vadd.f32 %v2830_v47, %v926_v2  ;;  %v1003_v15 = vmax.f32 %v935_v9, 0.0 }
 0x168   : > { %v2404_v6 = vpop.f32.mrf.mxu0 }
 0x169   : > { %v938_v8 = vadd.f32 %v2404_v6, %v2830_v47  ;;  %2469 = vmatprep.mubr.msk.bf16.mxu1 %vm1076_vm3, %v1033_v4  ;;  %v1001_v13 = vmax.f32 %v927_v7, 0.0 }
 0x16a   : > { %v929_v10 = vpop.f32.mrf.mxu0  ;;  %2470 = vmatmul.mubr.msk.bf16.gmra.mxu1 %vm1076_vm3, %v1034_v5 }
 0x16b   : > { %v930_v11 = vadd.f32 %v2830_v47, %v929_v10  ;;  %v1004_v12 = vmax.f32 %v938_v8, 0.0  ;;  %v2574_v47 = vld [vmem:[%s3204_s5 + $0x8] sm:$0xff]  }
 0x16c   : > { %2481 = vmatprep.subr.bf16.mxu1 %v2574_v47 }
 0x16d   : > { %v1002_v14 = vmax.f32 %v930_v11, 0.0  ;;  %v1036_v17 = vpack.c.bf16 %v1004_v12, %v1003_v15  ;;  %2482 = vmatpush3.bf16.msra.mxu1 %v2574_v47 }
 0x16e   : > { %2483 = vmatprep.subr.bf16.mxu1 %v2575_v50 }
 0x16f   : > { %v1035_v16 = vpack.c.bf16 %v1002_v14, %v1001_v13 }
 0x171   : > { %2473 = vmatprep.mubr.msk.bf16.mxu1 %vm1076_vm3, %v1035_v16  ;;  %2484 = vmatpush3.bf16.msra.mxu1 %v2575_v50 }
 0x172   : > { %2474 = vmatmul.mubr.msk.bf16.gmra.mxu1 %vm1076_vm3, %v1036_v17 }
 0x1ba   : > { %v2415_v20 = vpop.f32.mrf.mxu1 }
 0x1bb   : > { %v1216_v21 = vadd.f32 %v2415_v20, %v2940_v19 }
 0x1bc   : > { %v1207_v22 = vpop.f32.mrf.mxu1 }
 0x1bd   : > { %v1208_v23 = vadd.f32 %v2940_v19, %v1207_v22  ;;  %v1464_v25 = vmax.f32 %v1216_v21, 0.0 }
 0x1be   : > { %v2416_v24 = vpop.f32.mrf.mxu1 }
 0x1bf   : > { %v1219_v26 = vadd.f32 %v2416_v24, %v2940_v19  ;;  %v1462_v28 = vmax.f32 %v1208_v23, 0.0  ;;  %v1543_v32 = vsel %vm1076_vm3, %v1464_v25, -inf }
 0x1c0   : > { %v1210_v27 = vpop.f32.mrf.mxu1 }
 0x1c1   : > { %v1465_v29 = vmax.f32 %v1219_v26, 0.0  ;;  %v1211_v30 = vadd.f32 %v2940_v19, %v1210_v27  ;;  %v1534_v38 = vsel %vm1076_vm3, %v1462_v28, -inf }
 0x1c2   : > { %v2419_v31 = vpop.f32.mrf.mxu1 }
 0x1c3   : > { %v1544_v33 = vsel %vm1076_vm3, %v1465_v29, -inf  ;;  %v1463_v34 = vmax.f32 %v1211_v30, 0.0  ;;  %v1232_v35 = vadd.f32 %v2419_v31, %v2940_v19 }
 0x1c4   : > { %v1545_v36 = vmax.f32 %v1543_v32, %v1544_v33  ;;  %v1223_v37 = vpop.f32.mrf.mxu1 }
 0x1c5   : > { %v1535_v39 = vsel %vm1076_vm3, %v1463_v34, -inf  ;;  %v1224_v40 = vadd.f32 %v2940_v19, %v1223_v37  ;;  %v1468_v44 = vmax.f32 %v1232_v35, 0.0 }
 0x1c6   : > { %v1546_v41 = vrot.slane %v1545_v36, 4  ;;  %v1536_v42 = vmax.f32 %v1534_v38, %v1535_v39  ;;  %v2420_v43 = vpop.f32.mrf.mxu1 }
 0x1c7   : > { %v1235_v45 = vadd.f32 %v2420_v43, %v2940_v19  ;;  %v1466_v51 = vmax.f32 %v1224_v40, 0.0  ;;  %v1561_v57 = vsel %vm1076_vm3, %v1468_v44, -inf }
 0x1c8   : > { %v1547_v46 = vmax.f32 %v1545_v36, %v1546_v41  ;;  %v1537_v48 = vrot.slane %v1536_v42, 4  ;;  %v1226_v49 = vpop.f32.mrf.mxu1 }
 0x1c9   : > { %v1469_v52 = vmax.f32 %v1235_v45, 0.0  ;;  %v1227_v53 = vadd.f32 %v2940_v19, %v1226_v49  ;;  %v1552_v62 = vsel %vm1076_vm3, %v1466_v51, -inf }
 0x1ca   : > { %v1538_v54 = vmax.f32 %v1536_v42, %v1537_v48  ;;  %v2423_v55 = vpop.f32.mrf.mxu1  ;;  %v1548_v56 = vrot.slane %v1547_v46, 2 }
 0x1cb   : > { %v1562_v58 = vsel %vm1076_vm3, %v1469_v52, -inf  ;;  %v1467_v59 = vmax.f32 %v1227_v53, 0.0  ;;  %v1248_v8 = vadd.f32 %v2423_v55, %v2940_v19 }
 0x1cc   : > { %v1563_v60 = vmax.f32 %v1561_v57, %v1562_v58  ;;  %v1239_v61 = vpop.f32.mrf.mxu1  ;;  %v1539_v0 = vrot.slane %v1538_v54, 2  ;;  %v1549_v3 = vmax.f32 %v1547_v46, %v1548_v56 }
 0x1cd   : > { %v1553_v63 = vsel %vm1076_vm3, %v1467_v59, -inf  ;;  %v1240_v13 = vadd.f32 %v2940_v19, %v1239_v61  ;;  %v1472_v18 = vmax.f32 %v1248_v8, 0.0 }
 0x1ce   : > { %v1554_v1 = vmax.f32 %v1552_v62, %v1553_v63  ;;  %v2424_v2 = vpop.f32.mrf.mxu1  ;;  %v1564_v5 = vrot.slane %v1563_v60, 4  ;;  %v1540_v10 = vmax.f32 %v1538_v54, %v1539_v0  ;;  %v1550_v12 = vrot.slane %v1549_v3, 1 }
 0x1cf   : > { %v1251_v4 = vadd.f32 %v2424_v2, %v2940_v19  ;;  %v1470_v23 = vmax.f32 %v1240_v13, 0.0  ;;  %v1579_v28 = vsel %vm1076_vm3, %v1472_v18, -inf }
 0x1d0   : > { %v1555_v6 = vrot.slane %v1554_v1, 4  ;;  %v1242_v7 = vpop.f32.mrf.mxu1  ;;  %v1565_v15 = vmax.f32 %v1563_v60, %v1564_v5  ;;  %v1541_v20 = vrot.slane %v1540_v10, 1  ;;  %v1551_v22 = vmax.f32 %v1549_v3, %v1550_v12 }
 0x1d1   : > { %v1243_v9 = vadd.f32 %v2940_v19, %v1242_v7  ;;  %v1473_v14 = vmax.f32 %v1251_v4, 0.0  ;;  %v1570_v36 = vsel %vm1076_vm3, %v1470_v23, -inf }
 0x1d2   : > { %v2427_v11 = vpop.f32.mrf.mxu1  ;;  %v1556_v16 = vmax.f32 %v1554_v1, %v1555_v6  ;;  %v1566_v25 = vrot.slane %v1565_v15, 2  ;;  %v1542_v31 = vmax.f32 %v1540_v10, %v1541_v20  ;;  %v1823_v35 = vpack.c.bf16 %v1551_v22, %v1551_v22 }
 0x1d3   : > { %v1471_v47 = vmax.f32 %v1243_v9, 0.0  ;;  %v1580_v24 = vsel %vm1076_vm3, %v1473_v14, -inf  ;;  %v1264_v41 = vadd.f32 %v2427_v11, %v2940_v19 }
 0x1d4   : > { %v1255_v17 = vpop.f32.mrf.mxu1  ;;  %v1557_v26 = vrot.slane %v1556_v16, 2  ;;  %v1581_v32 = vmax.f32 %v1579_v28, %v1580_v24  ;;  %v1567_v38 = vmax.f32 %v1565_v15, %v1566_v25  ;;  %v1822_v45 = vpack.c.bf16 %v1542_v31, %v1542_v31 }
 0x1d5   : > { %v1571_v29 = vsel %vm1076_vm3, %v1471_v47, -inf  ;;  %v1256_v33 = vadd.f32 %v2940_v19, %v1255_v17  ;;  %v1894_v51 = vunpack.c.l.b16 %v1823_v35  ;;  %v1476_v57 = vmax.f32 %v1264_v41, 0.0 }
 0x1d6   : > { %v2428_v21 = vpop.f32.mrf.mxu1  ;;  %v1558_v39 = vmax.f32 %v1556_v16, %v1557_v26  ;;  %v1572_v40 = vmax.f32 %v1570_v36, %v1571_v29  ;;  %v1582_v46 = vrot.slane %v1581_v32, 4  ;;  %v1568_v54 = vrot.slane %v1567_v38, 1 }
 0x1d7   : > { %v1267_v43 = vadd.f32 %v2428_v21, %v2940_v19  ;;  %v1474_v48 = vmax.f32 %v1256_v33, 0.0  ;;  %v1893_v63 = vunpack.c.l.b16 %v1822_v45  ;;  %v1597_v23 = vsel %vm1076_vm3, %v1476_v57, -inf }
 0x1d8   : > { %v1258_v27 = vpop.f32.mrf.mxu1  ;;  %v1559_v55 = vrot.slane %v1558_v39, 1  ;;  %v1573_v56 = vrot.slane %v1572_v40, 4  ;;  %v1583_v0 = vmax.f32 %v1581_v32, %v1582_v46  ;;  %v1569_v13 = vmax.f32 %v1567_v38, %v1568_v54 }
 0x1d9   : > { %v1259_v30 = vadd.f32 %v2940_v19, %v1258_v27  ;;  %v1477_v59 = vmax.f32 %v1267_v43, 0.0  ;;  %v1588_v1 = vsel %vm1076_vm3, %v1474_v48, -inf  ;;  %v1926_v22 = vsel %vm1925_vm4, %v1894_v51, %v1893_v63 }
 0x1da   : > { %v2431_v34 = vpop.f32.mrf.mxu1  ;;  %v1560_v8 = vmax.f32 %v1558_v39, %v1559_v55  ;;  %v1574_v9 = vmax.f32 %v1572_v40, %v1573_v56  ;;  %v1584_v17 = vrot.slane %v1583_v0, 2  ;;  %v1825_v35 = vpack.c.bf16 %v1569_v13, %v1569_v13 }
 0x1db   : > { %v1280_v37 = vadd.f32 %v2431_v34, %v2940_v19  ;;  %v1475_v44 = vmax.f32 %v1259_v30, 0.0  ;;  %v1598_v14 = vsel %vm1076_vm3, %v1477_v59, -inf }
 0x1dc   : > { %v1271_v42 = vpop.f32.mrf.mxu1  ;;  %v1824_v26 = vpack.c.bf16 %v1560_v8, %v1560_v8  ;;  %v1575_v27 = vrot.slane %v1574_v9, 2  ;;  %v1599_v28 = vmax.f32 %v1597_v23, %v1598_v14  ;;  %v2990_v36 = vmax.f32 %v1583_v0, %v1584_v17 }
 0x1dd   : > { %v1272_v49 = vadd.f32 %v2940_v19, %v1271_v42  ;;  %v1480_v52 = vmax.f32 %v1280_v37, 0.0  ;;  %v1589_v60 = vsel %vm1076_vm3, %v1475_v44, -inf  ;;  %v2998_v59 = vunpack.c.l.b16 %v1825_v35 }
 0x1de   : > { %v2432_v50 = vpop.f32.mrf.mxu1  ;;  %v1590_v10 = vmax.f32 %v1588_v1, %v1589_v60  ;;  %v1895_v44 = vunpack.c.l.b16 %v1824_v26  ;;  %v1576_v45 = vmax.f32 %v1574_v9, %v1575_v27  ;;  %v1600_v46 = vrot.slane %v1599_v28, 4 }
 0x1df   : > { %v1283_v53 = vadd.f32 %v2432_v50, %v2940_v19  ;;  %v1478_v2 = vmax.f32 %v1272_v49, 0.0  ;;  %v1615_v4 = vsel %vm1076_vm3, %v1480_v52, -inf  ;;  %v1586_v60 = vrot.slane %v2990_v36, 1 }
 0x1e0   : > { %v1274_v58 = vpop.f32.mrf.mxu1  ;;  %v1591_v29 = vrot.slane %v1590_v10, 4  ;;  %v3003_v63 = vsel %vm1927_vm5, %v1895_v44, %v1926_v22  ;;  %v1601_v0 = vmax.f32 %v1599_v28, %v1600_v46  ;;  %v1577_v8 = vrot.slane %v1576_v45, 1 }
 0x1e1   : > { %v1481_v61 = vmax.f32 %v1283_v53, 0.0  ;;  %v1275_v62 = vadd.f32 %v2940_v19, %v1274_v58  ;;  %v1606_v18 = vsel %vm1076_vm3, %v1478_v2, -inf }
 0x1e2   : > { %v2435_v3 = vpop.f32.mrf.mxu1  ;;  %v1592_v50 = vmax.f32 %v1590_v10, %v1591_v29  ;;  %v1602_v17 = vrot.slane %v1601_v0, 2 }
 0x1e3   : > { %v1616_v5 = vsel %vm1076_vm3, %v1481_v61, -inf  ;;  %v1479_v6 = vmax.f32 %v1275_v62, 0.0  ;;  %v1296_v7 = vadd.f32 %v2435_v3, %v2940_v19 }
 0x1e4   : > { %v1617_v11 = vmax.f32 %v1615_v4, %v1616_v5  ;;  %v1287_v12 = vpop.f32.mrf.mxu1  ;;  %v1593_v4 = vrot.slane %v1592_v50, 2 }
 0x1e5   : > { %v1607_v15 = vsel %vm1076_vm3, %v1479_v6, -inf  ;;  %v1288_v16 = vadd.f32 %v2940_v19, %v1287_v12  ;;  %v1484_v20 = vmax.f32 %v1296_v7, 0.0 }
 0x1e6   : > { %v1618_v47 = vrot.slane %v1617_v11, 4  ;;  %v2436_v21 = vpop.f32.mrf.mxu1  ;;  %v1608_v24 = vmax.f32 %v1606_v18, %v1607_v15  ;;  %v3009_v22 = vmax.f32 %v1592_v50, %v1593_v4 }
 0x1e7   : > { %v1299_v25 = vadd.f32 %v2436_v21, %v2940_v19  ;;  %v1482_v32 = vmax.f32 %v1288_v16, 0.0  ;;  %v1633_v38 = vsel %vm1076_vm3, %v1484_v20, -inf }
 0x1e8   : > { %v1290_v30 = vpop.f32.mrf.mxu1  ;;  %v1609_v31 = vrot.slane %v1608_v24, 4  ;;  %v1619_v37 = vmax.f32 %v1617_v11, %v1618_v47  ;;  %v1595_v46 = vrot.slane %v3009_v22, 1 }
 0x1e9   : > { %v1485_v33 = vmax.f32 %v1299_v25, 0.0  ;;  %v1291_v34 = vadd.f32 %v2940_v19, %v1290_v30  ;;  %v1624_v51 = vsel %vm1076_vm3, %v1482_v32, -inf }
 0x1ea   : > { %v2439_v39 = vpop.f32.mrf.mxu1  ;;  %v1610_v40 = vmax.f32 %v1608_v24, %v1609_v31  ;;  %v1620_v54 = vrot.slane %v1619_v37, 2  ;;  %v3014_v31 = vmax.f32 %v1576_v45, %v1577_v8 }
 0x1eb   : > { %v1634_v41 = vsel %vm1076_vm3, %v1485_v33, -inf  ;;  %v1483_v42 = vmax.f32 %v1291_v34, 0.0  ;;  %v1312_v43 = vadd.f32 %v2439_v39, %v2940_v19 }
 0x1ec   : > { %v1635_v48 = vmax.f32 %v1633_v38, %v1634_v41  ;;  %v1303_v49 = vpop.f32.mrf.mxu1  ;;  %v1611_v55 = vrot.slane %v1610_v40, 2  ;;  %v1621_v9 = vmax.f32 %v1619_v37, %v1620_v54  ;;  %v3017_v41 = vmax.f32 %v1601_v0, %v1602_v17 }
 0x1ed   : > { %v1625_v52 = vsel %vm1076_vm3, %v1483_v42, -inf  ;;  %v1304_v53 = vadd.f32 %v2940_v19, %v1303_v49  ;;  %v1488_v61 = vmax.f32 %v1312_v43, 0.0 }
 0x1ee   : > { %v1636_v56 = vrot.slane %v1635_v48, 4  ;;  %v1626_v57 = vmax.f32 %v1624_v51, %v1625_v52  ;;  %v2440_v58 = vpop.f32.mrf.mxu1  ;;  %v1612_v10 = vmax.f32 %v1610_v40, %v1611_v55  ;;  %v1622_v32 = vrot.slane %v1621_v9, 1 }
 0x1ef   : > { %v1315_v62 = vadd.f32 %v2440_v58, %v2940_v19  ;;  %v1486_v5 = vmax.f32 %v1304_v53, 0.0  ;;  %v1651_v14 = vsel %vm1076_vm3, %v1488_v61, -inf }
 0x1f0   : > { %v1637_v1 = vmax.f32 %v1635_v48, %v1636_v56  ;;  %v1627_v2 = vrot.slane %v1626_v57, 4  ;;  %v1306_v3 = vpop.f32.mrf.mxu1  ;;  %v1613_v26 = vrot.slane %v1612_v10, 1  ;;  %v1623_v51 = vmax.f32 %v1621_v9, %v1622_v32 }
 0x1f1   : > { %v1489_v6 = vmax.f32 %v1315_v62, 0.0  ;;  %v1307_v7 = vadd.f32 %v2940_v19, %v1306_v3  ;;  %v1642_v23 = vsel %vm1076_vm3, %v1486_v5, -inf }
 0x1f2   : > { %v1628_v11 = vmax.f32 %v1626_v57, %v1627_v2  ;;  %v2443_v12 = vpop.f32.mrf.mxu1  ;;  %v1638_v13 = vrot.slane %v1637_v1, 2  ;;  %v1614_v48 = vmax.f32 %v1612_v10, %v1613_v26  ;;  %v1831_v8 = vpack.c.bf16 %v1623_v51, %v1623_v51 }
 0x1f3   : > { %v1652_v15 = vsel %vm1076_vm3, %v1489_v6, -inf  ;;  %v1487_v16 = vmax.f32 %v1307_v7, 0.0  ;;  %v1328_v20 = vadd.f32 %v2443_v12, %v2940_v19  ;;  %v1826_v51 = vpack.c.bf16 %v3014_v31, %v3014_v31 }
 0x1f4   : > { %v1629_v18 = vrot.slane %v1628_v11, 2  ;;  %v1653_v47 = vmax.f32 %v1651_v14, %v1652_v15  ;;  %v1319_v21 = vpop.f32.mrf.mxu1  ;;  %v1639_v33 = vmax.f32 %v1637_v1, %v1638_v13  ;;  %v1830_v3 = vpack.c.bf16 %v1614_v48, %v1614_v48 }
 0x1f5   : > { %v1643_v24 = vsel %vm1076_vm3, %v1487_v16, -inf  ;;  %v1320_v25 = vadd.f32 %v2940_v19, %v1319_v21  ;;  %v1492_v39 = vmax.f32 %v1328_v20, 0.0 }
 0x1f6   : > { %v1630_v27 = vmax.f32 %v1628_v11, %v1629_v18  ;;  %v1654_v28 = vrot.slane %v1653_v47, 4  ;;  %v1644_v29 = vmax.f32 %v1642_v23, %v1643_v24  ;;  %v2444_v30 = vpop.f32.mrf.mxu1  ;;  %v1640_v55 = vrot.slane %v1639_v33, 1 }
 0x1f7   : > { %v1331_v34 = vadd.f32 %v2444_v30, %v2940_v19  ;;  %v1490_v42 = vmax.f32 %v1320_v25, 0.0  ;;  %v1669_v58 = vsel %vm1076_vm3, %v1492_v39, -inf  ;;  %v1901_v21 = vunpack.c.l.b16 %v1830_v3 }
 0x1f8   : > { %v1631_v35 = vrot.slane %v1630_v27, 1  ;;  %v1655_v37 = vmax.f32 %v1653_v47, %v1654_v28  ;;  %v1645_v38 = vrot.slane %v1644_v29, 4  ;;  %v1322_v40 = vpop.f32.mrf.mxu1  ;;  %v1641_v12 = vmax.f32 %v1639_v33, %v1640_v55 }
 0x1f9   : > { %v1493_v43 = vmax.f32 %v1331_v34, 0.0  ;;  %v1323_v44 = vadd.f32 %v2940_v19, %v1322_v40  ;;  %v1660_v62 = vsel %vm1076_vm3, %v1490_v42, -inf  ;;  %v1897_v3 = vunpack.c.l.b16 %v1826_v51 }
 0x1fa   : > { %v1656_v45 = vrot.slane %v1655_v37, 2  ;;  %v1646_v49 = vmax.f32 %v1644_v29, %v1645_v38  ;;  %v2447_v50 = vpop.f32.mrf.mxu1  ;;  %v1632_v56 = vmax.f32 %v1630_v27, %v1631_v35  ;;  %v1833_v32 = vpack.c.bf16 %v1641_v12, %v1641_v12 }
 0x1fb   : > { %v1670_v52 = vsel %vm1076_vm3, %v1493_v43, -inf  ;;  %v1491_v53 = vmax.f32 %v1323_v44, 0.0  ;;  %v1344_v54 = vadd.f32 %v2447_v50, %v2940_v19  ;;  %v1902_v43 = vunpack.c.l.b16 %v1831_v8 }
 0x1fc   : > { %v1647_v57 = vrot.slane %v1646_v49, 2  ;;  %v1335_v61 = vpop.f32.mrf.mxu1  ;;  %v1671_v0 = vmax.f32 %v1669_v58, %v1670_v52  ;;  %v1657_v4 = vmax.f32 %v1655_v37, %v1656_v45  ;;  %v1832_v13 = vpack.c.bf16 %v1632_v56, %v1632_v56 }
 0x1fd   : > { %v1661_v1 = vsel %vm1076_vm3, %v1491_v53, -inf  ;;  %v1336_v2 = vadd.f32 %v2940_v19, %v1335_v61  ;;  %v1496_v10 = vmax.f32 %v1344_v54, 0.0  ;;  %v1587_v50 = vmax.f32 %v2990_v36, %v1586_v60 }
 0x1fe   : > { %v1648_v5 = vmax.f32 %v1646_v49, %v1647_v57  ;;  %v1662_v6 = vmax.f32 %v1660_v62, %v1661_v1  ;;  %v2448_v7 = vpop.f32.mrf.mxu1  ;;  %v1672_v9 = vrot.slane %v1671_v0, 4  ;;  %v1658_v23 = vrot.slane %v1657_v4, 1 }
 0x1ff   : > { %v1347_v11 = vadd.f32 %v2448_v7, %v2940_v19  ;;  %v1494_v18 = vmax.f32 %v1336_v2, 0.0  ;;  %v1687_v28 = vsel %vm1076_vm3, %v1496_v10, -inf  ;;  %v1903_v33 = vunpack.c.l.b16 %v1832_v13 }
 0x200   : > { %v1649_v14 = vrot.slane %v1648_v5, 1  ;;  %v1663_v15 = vrot.slane %v1662_v6, 4  ;;  %v1338_v16 = vpop.f32.mrf.mxu1  ;;  %v1673_v17 = vmax.f32 %v1671_v0, %v1672_v9  ;;  %v1659_v44 = vmax.f32 %v1657_v4, %v1658_v23 }
 0x201   : > { %v1497_v47 = vmax.f32 %v1347_v11, 0.0  ;;  %v1339_v20 = vadd.f32 %v2940_v19, %v1338_v16  ;;  %v1678_v40 = vsel %vm1076_vm3, %v1494_v18, -inf  ;;  %v1596_v52 = vmax.f32 %v3009_v22, %v1595_v46 }
 0x202   : > { %v1650_v24 = vmax.f32 %v1648_v5, %v1649_v14  ;;  %v1664_v25 = vmax.f32 %v1662_v6, %v1663_v15  ;;  %v2451_v26 = vpop.f32.mrf.mxu1  ;;  %v1674_v27 = vrot.slane %v1673_v17, 2  ;;  %v1604_v54 = vrot.slane %v3017_v41, 1 }
 0x203   : > { %v1688_v29 = vsel %vm1076_vm3, %v1497_v47, -inf  ;;  %v1495_v30 = vmax.f32 %v1339_v20, 0.0  ;;  %v1939_v55 = vsel %vm1925_vm4, %v1902_v43, %v1901_v21  ;;  %v1904_v61 = vunpack.c.l.b16 %v1833_v32 }
 0x204   : > { %v1665_v34 = vrot.slane %v1664_v25, 2  ;;  %v1689_v35 = vmax.f32 %v1687_v28, %v1688_v29  ;;  %v1351_v37 = vpop.f32.mrf.mxu1  ;;  %v1834_v38 = vpack.c.bf16 %v1650_v24, %v1650_v24  ;;  %v1675_v39 = vmax.f32 %v1673_v17, %v1674_v27 }
 0x205   : > { %v1679_v42 = vsel %vm1076_vm3, %v1495_v30, -inf  ;;  %v1940_v36 = vsel %vm1927_vm5, %v1903_v33, %v1939_v55  ;;  %v1835_v62 = vpack.c.bf16 %v1659_v44, %v1659_v44  ;;  %v1827_v2 = vpack.c.bf16 %v1587_v50, %v1587_v50 }
 0x206   : > { %v1666_v48 = vmax.f32 %v1664_v25, %v1665_v34  ;;  %v1680_v45 = vmax.f32 %v1678_v40, %v1679_v42  ;;  %v2452_v49 = vpop.f32.mrf.mxu1  ;;  %v1676_v53 = vrot.slane %v1675_v39, 1  ;;  %v1690_v57 = vrot.slane %v1689_v35, 4 }
 0x207   : > { %v1905_v60 = vunpack.c.l.b16 %v1834_v38  ;;  %v1363_v31 = vadd.f32 %v2452_v49, %v2940_v19  ;;  %v1828_v4 = vpack.c.bf16 %v1596_v52, %v1596_v52  ;;  %v1360_v5 = vadd.f32 %v2451_v26, %v2940_v19 }
 0x208   : > { %v1667_v56 = vrot.slane %v1666_v48, 1  ;;  %v1354_v58 = vpop.f32.mrf.mxu1  ;;  %v1677_v0 = vmax.f32 %v1675_v39, %v1676_v53  ;;  %v1681_v22 = vrot.slane %v1680_v45, 4  ;;  %v1605_v6 = vmax.f32 %v3017_v41, %v1604_v54 }
 0x209   : > { %v1691_v8 = vmax.f32 %v1689_v35, %v1690_v57  ;;  %v1941_v10 = vsel %vm1929_vm6, %v1904_v61, %v1940_v36  ;;  %v1501_v11 = vmax.f32 %v1363_v31, 0.0  ;;  %v1355_v12 = vadd.f32 %v2940_v19, %v1354_v58 }
 0x20a   : > { %v1668_v1 = vmax.f32 %v1666_v48, %v1667_v56  ;;  %v2455_v46 = vpop.f32.mrf.mxu1  ;;  %v1930_v13 = vsel %vm1929_vm6, %v2998_v59, %v3003_v63  ;;  %v1942_v14 = vsel %vm1931_vm7, %v1905_v60, %v1941_v10  ;;  %v1906_v15 = vunpack.c.l.b16 %v1835_v62 }
 0x20b   : > { %v1837_v16 = vpack.c.bf16 %v1677_v0, %v1677_v0  ;;  %v1682_v18 = vmax.f32 %v1680_v45, %v1681_v22  ;;  %v1899_v41 = vunpack.c.l.b16 %v1828_v4  ;;  %v1500_v20 = vmax.f32 %v1360_v5, 0.0 }
 0x20c   : > { %v1836_v7 = vpack.c.bf16 %v1668_v1, %v1668_v1  ;;  %v1367_v9 = vpop.f32.mrf.mxu1  ;;  %v1352_v21 = vadd.f32 %v2940_v19, %v1351_v37  ;;  %v1932_v23 = vsel %vm1931_vm7, %v1897_v3, %v1930_v13  ;;  %v1898_v24 = vunpack.c.l.b16 %v1827_v2 }
 0x20d   : > { %v1829_v25 = vpack.c.bf16 %v1605_v6, %v1605_v6  ;;  %v1692_v26 = vrot.slane %v1691_v8, 2  ;;  %v1943_v28 = vsel %vm1933_vm8, %v1906_v15, %v1942_v14  ;;  %v1706_v59 = vsel %vm1076_vm3, %v1501_v11, -inf }
 0x20e   : > { %v1907_v17 = vunpack.c.l.b16 %v1836_v7  ;;  %v2456_v47 = vpop.f32.mrf.mxu1  ;;  %v1499_v63 = vmax.f32 %v1355_v12, 0.0  ;;  %v1908_v30 = vunpack.c.l.b16 %v1837_v16  ;;  %v1683_v32 = vrot.slane %v1682_v18, 2 }
 0x20f   : > { %v1934_v34 = vsel %vm1933_vm8, %v1898_v24, %v1932_v23  ;;  %v1705_v35 = vsel %vm1076_vm3, %v1500_v20, -inf  ;;  %v1498_v37 = vmax.f32 %v1352_v21, 0.0  ;;  %v1900_v39 = vunpack.c.l.b16 %v1829_v25 }
 0x210   : > { %v1370_v27 = vpop.f32.mrf.mxu1  ;;  %v1944_v29 = vsel %vm1935_vm9, %v1907_v17, %v1943_v28  ;;  %v1936_v38 = vsel %vm1935_vm9, %v1899_v41, %v1934_v34  ;;  %v1693_v40 = vmax.f32 %v1691_v8, %v1692_v26  ;;  %v1707_v42 = vmax.f32 %v1705_v35, %v1706_v59 }
 0x211   : > { %v1945_v44 = vsel %vm1937_vm10, %v1908_v30, %v1944_v29  ;;  %v1697_v48 = vsel %vm1076_vm3, %v1499_v63, -inf  ;;  %v1684_v45 = vmax.f32 %v1682_v18, %v1683_v32  ;;  %v1376_v49 = vadd.f32 %v2455_v46, %v2940_v19 }
 0x212   : > { %v2459_v33 = vpop.f32.mrf.mxu1  ;;  %v1368_v50 = vadd.f32 %v2940_v19, %v1367_v9  ;;  %v1938_v51 = vsel %vm1937_vm10, %v1900_v39, %v1936_v38  ;;  %v1696_v53 = vsel %vm1076_vm3, %v1498_v37, -inf  ;;  %v1379_v54 = vadd.f32 %v2456_v47, %v2940_v19 }
 0x213   : > { %v1960_v55 = vpack.c.b16 %v1945_v44, %v1938_v51  ;;  %v1694_v56 = vrot.slane %v1693_v40, 1  ;;  %v1708_v57 = vrot.slane %v1707_v42, 4  ;;  %v1698_v58 = vmax.f32 %v1696_v53, %v1697_v48 }
 0x214   : > { %v1383_v43 = vpop.f32.mrf.mxu1  ;;  %v1685_v36 = vrot.slane %v1684_v45, 1  ;;  %v1504_v60 = vmax.f32 %v1376_v49, 0.0  ;;  %v1502_v31 = vmax.f32 %v1368_v50, 0.0  ;;  %v1371_v62 = vadd.f32 %v2940_v19, %v1370_v27 }
 0x215   : > { %2485 = vmatprep.mubr.msk.bf16.mxu1 %vm1076_vm3, %v1960_v55  ;;  %v1505_v1 = vmax.f32 %v1379_v54, 0.0  ;;  %v1695_v46 = vmax.f32 %v1693_v40, %v1694_v56  ;;  %v1709_v2 = vmax.f32 %v1707_v42, %v1708_v57  ;;  %v1699_v3 = vrot.slane %v1698_v58, 4 }
 0x216   : > { %v2460_v52 = vpop.f32.mrf.mxu1  ;;  %v1686_v5 = vmax.f32 %v1684_v45, %v1685_v36  ;;  %v1723_v6 = vsel %vm1076_vm3, %v1504_v60, -inf  ;;  %v1714_v7 = vsel %vm1076_vm3, %v1502_v31, -inf  ;;  %v1503_v8 = vmax.f32 %v1371_v62, 0.0 }
 0x217   : > { %v1724_v10 = vsel %vm1076_vm3, %v1505_v1, -inf  ;;  %v1839_v14 = vpack.c.bf16 %v1695_v46, %v1695_v46  ;;  %v1710_v15 = vrot.slane %v1709_v2, 2  ;;  %v1700_v16 = vmax.f32 %v1698_v58, %v1699_v3 }
 0x218   : > { %v1386_v61 = vpop.f32.mrf.mxu1  ;;  %v1392_v17 = vadd.f32 %v2459_v33, %v2940_v19  ;;  %v1838_v23 = vpack.c.bf16 %v1686_v5, %v1686_v5  ;;  %v1725_v24 = vmax.f32 %v1723_v6, %v1724_v10  ;;  %v1715_v25 = vsel %vm1076_vm3, %v1503_v8, -inf }
 0x219   : > { %v1387_v47 = vadd.f32 %v2940_v19, %v1386_v61  ;;  %v1384_v26 = vadd.f32 %v2940_v19, %v1383_v43  ;;  %v1395_v28 = vadd.f32 %v2460_v52, %v2940_v19  ;;  %v1711_v30 = vmax.f32 %v1709_v2, %v1710_v15 }
 0x21a   : > { %v2463_v0 = vpop.f32.mrf.mxu1  ;;  %v1701_v32 = vrot.slane %v1700_v16, 2  ;;  %v1508_v33 = vmax.f32 %v1392_v17, 0.0  ;;  %v1726_v42 = vrot.slane %v1725_v24, 4  ;;  %v1716_v43 = vmax.f32 %v1714_v7, %v1715_v25 }
 0x21b   : > { %v1408_v22 = vadd.f32 %v2463_v0, %v2940_v19  ;;  %v1507_v37 = vmax.f32 %v1387_v47, 0.0  ;;  %v1506_v45 = vmax.f32 %v1384_v26, 0.0  ;;  %v1509_v49 = vmax.f32 %v1395_v28, 0.0 }
 0x21c   : > { %v1399_v4 = vpop.f32.mrf.mxu1  ;;  %v3089_v52 = vunpack.c.l.b16 %v1839_v14  ;;  %v3091_v53 = vunpack.c.l.b16 %v1838_v23  ;;  %v1712_v57 = vrot.slane %v1711_v30, 1  ;;  %v1702_v58 = vmax.f32 %v1700_v16, %v1701_v32 }
 0x21d   : > { %v1512_v11 = vmax.f32 %v1408_v22, 0.0  ;;  %v1400_v12 = vadd.f32 %v2940_v19, %v1399_v4  ;;  %v1741_v61 = vsel %vm1076_vm3, %v1508_v33, -inf  ;;  %v1733_v36 = vsel %vm1076_vm3, %v1507_v37, -inf }
 0x21e   : > { %v2464_v9 = vpop.f32.mrf.mxu1  ;;  %v3095_v60 = vmax.f32 %v1725_v24, %v1726_v42  ;;  %v1717_v31 = vrot.slane %v1716_v43, 4  ;;  %v1732_v22 = vsel %vm1076_vm3, %v1506_v45, -inf  ;;  %v1742_v46 = vsel %vm1076_vm3, %v1509_v49, -inf }
 0x21f   : > { %v1411_v13 = vadd.f32 %v2464_v9, %v2940_v19  ;;  %v1510_v41 = vmax.f32 %v1400_v12, 0.0  ;;  %v1759_v59 = vsel %vm1076_vm3, %v1512_v11, -inf  ;;  %v1734_v4 = vmax.f32 %v1732_v22, %v1733_v36 }
 0x220   : > { %v1402_v18 = vpop.f32.mrf.mxu1  ;;  %v3102_v9 = vmax.f32 %v1711_v30, %v1712_v57  ;;  %v1718_v14 = vmax.f32 %v1716_v43, %v1717_v31 }
 0x221   : > { %v1513_v20 = vmax.f32 %v1411_v13, 0.0  ;;  %v1403_v21 = vadd.f32 %v2940_v19, %v1402_v18  ;;  %v1750_v38 = vsel %vm1076_vm3, %v1510_v41, -inf  ;;  %v1703_v13 = vrot.slane %v1702_v58, 1 }
 0x222   : > { %v2467_v27 = vpop.f32.mrf.mxu1  ;;  %v1743_v18 = vmax.f32 %v1741_v61, %v1742_v46  ;;  %v1735_v23 = vrot.slane %v1734_v4, 4  ;;  %v1719_v30 = vrot.slane %v1718_v14, 2 }
 0x223   : > { %v1760_v63 = vsel %vm1076_vm3, %v1513_v20, -inf  ;;  %v1511_v29 = vmax.f32 %v1403_v21, 0.0  ;;  %v1424_v40 = vadd.f32 %v2467_v27, %v2940_v19  ;;  %v1728_v21 = vrot.slane %v3095_v60, 2 }
 0x224   : > { %v1761_v34 = vmax.f32 %v1759_v59, %v1760_v63  ;;  %v1415_v35 = vpop.f32.mrf.mxu1  ;;  %v1720_v61 = vmax.f32 %v1718_v14, %v1719_v30 }
 0x225   : > { %v1751_v39 = vsel %vm1076_vm3, %v1511_v29, -inf  ;;  %v1416_v50 = vadd.f32 %v2940_v19, %v1415_v35  ;;  %v1516_v55 = vmax.f32 %v1424_v40, 0.0  ;;  %v3111_v29 = vmax.f32 %v1702_v58, %v1703_v13 }
 0x226   : > { %v1752_v44 = vmax.f32 %v1750_v38, %v1751_v39  ;;  %v2468_v48 = vpop.f32.mrf.mxu1  ;;  %v1762_v54 = vrot.slane %v1761_v34, 4  ;;  %v1744_v35 = vrot.slane %v1743_v18, 4  ;;  %v1736_v40 = vmax.f32 %v1734_v4, %v1735_v23 }
 0x227   : > { %v1427_v51 = vadd.f32 %v2468_v48, %v2940_v19  ;;  %v1514_v2 = vmax.f32 %v1416_v50, 0.0  ;;  %v1777_v6 = vsel %vm1076_vm3, %v1516_v55, -inf }
 0x228   : > { %v1418_v56 = vpop.f32.mrf.mxu1  ;;  %v1753_v62 = vrot.slane %v1752_v44, 4  ;;  %v1763_v5 = vmax.f32 %v1761_v34, %v1762_v54  ;;  %v1737_v4 = vrot.slane %v1736_v40, 2 }
 0x229   : > { %v1517_v0 = vmax.f32 %v1427_v51, 0.0  ;;  %v1419_v3 = vadd.f32 %v2940_v19, %v1418_v56  ;;  %v1768_v47 = vsel %vm1076_vm3, %v1514_v2, -inf }
 0x22a   : > { %v2471_v1 = vpop.f32.mrf.mxu1  ;;  %v1754_v15 = vmax.f32 %v1752_v44, %v1753_v62  ;;  %v1764_v24 = vrot.slane %v1763_v5, 2  ;;  %v1738_v23 = vmax.f32 %v1736_v40, %v1737_v4 }
 0x22b   : > { %v1778_v7 = vsel %vm1076_vm3, %v1517_v0, -inf  ;;  %v1515_v11 = vmax.f32 %v1419_v3, 0.0  ;;  %v1440_v12 = vadd.f32 %v2471_v1, %v2940_v19  ;;  %v1745_v3 = vmax.f32 %v1743_v18, %v1744_v35 }
 0x22c   : > { %v1431_v8 = vpop.f32.mrf.mxu1  ;;  %v1779_v10 = vmax.f32 %v1777_v6, %v1778_v7  ;;  %v1755_v32 = vrot.slane %v1754_v15, 2  ;;  %v1765_v42 = vmax.f32 %v1763_v5, %v1764_v24  ;;  %v1729_v18 = vmax.f32 %v3095_v60, %v1728_v21 }
 0x22d   : > { %v1432_v16 = vadd.f32 %v2940_v19, %v1431_v8  ;;  %v1769_v20 = vsel %vm1076_vm3, %v1515_v11, -inf  ;;  %v1520_v27 = vmax.f32 %v1440_v12, 0.0  ;;  %v1840_v60 = vpack.c.bf16 %v3111_v29, %v3111_v29 }
 0x22e   : > { %v2472_v17 = vpop.f32.mrf.mxu1  ;;  %v1780_v41 = vrot.slane %v1779_v10, 4  ;;  %v1770_v25 = vmax.f32 %v1768_v47, %v1769_v20  ;;  %v1756_v54 = vmax.f32 %v1754_v15, %v1755_v32  ;;  %v1766_v5 = vrot.slane %v1765_v42, 1 }
 0x22f   : > { %v1518_v28 = vmax.f32 %v1432_v16, 0.0  ;;  %v1443_v59 = vadd.f32 %v2472_v17, %v2940_v19  ;;  %v1795_v45 = vsel %vm1076_vm3, %v1520_v27, -inf  ;;  %v1721_v20 = vrot.slane %v1720_v61, 1 }
 0x230   : > { %v1434_v26 = vpop.f32.mrf.mxu1  ;;  %v1771_v33 = vrot.slane %v1770_v25, 4  ;;  %v1781_v37 = vmax.f32 %v1779_v10, %v1780_v41  ;;  %v1757_v7 = vrot.slane %v1756_v54, 1 }
 0x231   : > { %v1435_v63 = vadd.f32 %v2940_v19, %v1434_v26  ;;  %v1521_v38 = vmax.f32 %v1443_v59, 0.0  ;;  %v1786_v49 = vsel %vm1076_vm3, %v1518_v28, -inf  ;;  %v1722_v21 = vmax.f32 %v1720_v61, %v1721_v20 }
 0x232   : > { %v2475_v34 = vpop.f32.mrf.mxu1  ;;  %v1772_v43 = vmax.f32 %v1770_v25, %v1771_v33  ;;  %v1782_v36 = vrot.slane %v1781_v37, 2  ;;  %v1746_v25 = vrot.slane %v1745_v3, 2  ;;  %v1758_v26 = vmax.f32 %v1756_v54, %v1757_v7 }
 0x233   : > { %v1519_v39 = vmax.f32 %v1435_v63, 0.0  ;;  %v1456_v44 = vadd.f32 %v2475_v34, %v2940_v19  ;;  %v1796_v50 = vsel %vm1076_vm3, %v1521_v38, -inf }
 0x234   : > { %v1447_v48 = vpop.f32.mrf.mxu1  ;;  %v1773_v55 = vrot.slane %v1772_v43, 2  ;;  %v1797_v56 = vmax.f32 %v1795_v45, %v1796_v50  ;;  %v1783_v12 = vmax.f32 %v1781_v37, %v1782_v36  ;;  %v1739_v37 = vrot.slane %v1738_v23, 1 }
 0x235   : > { %v1787_v51 = vsel %vm1076_vm3, %v1519_v39, -inf  ;;  %v1524_v31 = vmax.f32 %v1456_v44, 0.0  ;;  %v1448_v46 = vadd.f32 %v2940_v19, %v1447_v48  ;;  %v1730_v39 = vrot.slane %v1729_v18, 1 }
 0x236   : > { %v1788_v57 = vmax.f32 %v1786_v49, %v1787_v51  ;;  %v2476_v58 = vpop.f32.mrf.mxu1  ;;  %v1774_v0 = vmax.f32 %v1772_v43, %v1773_v55  ;;  %v1798_v1 = vrot.slane %v1797_v56, 4  ;;  %v1784_v59 = vrot.slane %v1783_v12, 1 }
 0x237   : > { %v1459_v62 = vadd.f32 %v2476_v58, %v2940_v19  ;;  %v1813_v14 = vsel %vm1076_vm3, %v1524_v31, -inf  ;;  %v1522_v47 = vmax.f32 %v1448_v46, 0.0  ;;  %v1747_v40 = vmax.f32 %v1745_v3, %v1746_v25 }
 0x238   : > { %v1789_v22 = vrot.slane %v1788_v57, 4  ;;  %v1450_v2 = vpop.f32.mrf.mxu1  ;;  %v1799_v8 = vmax.f32 %v1797_v56, %v1798_v1  ;;  %v1775_v13 = vrot.slane %v1774_v0, 1  ;;  %v1846_v43 = vpack.c.bf16 %v1758_v26, %v1758_v26 }
 0x239   : > { %v1525_v6 = vmax.f32 %v1459_v62, 0.0  ;;  %v1451_v11 = vadd.f32 %v2940_v19, %v1450_v2  ;;  %v1767_v19 = vmax.f32 %v1765_v42, %v1766_v5  ;;  %v1804_v34 = vsel %vm1076_vm3, %v1522_v47, -inf }
 0x23a   : > { %v1790_v10 = vmax.f32 %v1788_v57, %v1789_v22  ;;  %v1800_v16 = vrot.slane %v1799_v8, 2  ;;  %v1776_v63 = vmax.f32 %v1774_v0, %v1775_v13  ;;  %v1841_v42 = vpack.c.bf16 %v3102_v9, %v3102_v9 }
 0x23b   : > { %v1814_v15 = vsel %vm1076_vm3, %v1525_v6, -inf  ;;  %v1523_v24 = vmax.f32 %v1451_v11, 0.0  ;;  %v1847_v50 = vpack.c.bf16 %v1767_v19, %v1767_v19  ;;  %v1785_v51 = vmax.f32 %v1783_v12, %v1784_v59 }
 0x23c   : > { %v1791_v17 = vrot.slane %v1790_v10, 2  ;;  %v1815_v41 = vmax.f32 %v1813_v14, %v1814_v15  ;;  %v1801_v32 = vmax.f32 %v1799_v8, %v1800_v16  ;;  %v1848_v48 = vpack.c.bf16 %v1776_v63, %v1776_v63 }
 0x23d   : > { %v1805_v30 = vsel %vm1076_vm3, %v1523_v24, -inf  ;;  %v1911_v56 = vunpack.c.l.b16 %v1840_v60  ;;  %v1842_v57 = vpack.c.bf16 %v1722_v21, %v1722_v21  ;;  %v1740_v29 = vmax.f32 %v1738_v23, %v1739_v37  ;;  %v2239_v37 = vld [vmem:[%s3205_s6] ss:$0 sm:$0xff] }
 0x23e   : > { %v1792_v27 = vmax.f32 %v1790_v10, %v1791_v17  ;;  %v1816_v28 = vrot.slane %v1815_v41, 4  ;;  %v1806_v38 = vmax.f32 %v1804_v34, %v1805_v30  ;;  %v1802_v54 = vrot.slane %v1801_v32, 1 }
 0x23f   : > { %v1731_v61 = vmax.f32 %v1729_v18, %v1730_v39  ;;  %v1748_v36 = vrot.slane %v1747_v40, 1  ;;  %v1917_v31 = vunpack.c.l.b16 %v1846_v43  ;;  %v1946_v0 = vsel %vm1925_vm4, %v3089_v52, %v3091_v53 }
 0x240   : > { %v1793_v33 = vrot.slane %v1792_v27, 1  ;;  %v1817_v35 = vmax.f32 %v1815_v41, %v1816_v28  ;;  %v1807_v49 = vrot.slane %v1806_v38, 4  ;;  %v1919_v9 = vunpack.c.l.b16 %v1848_v48 }
 0x241   : > { %v1912_v46 = vunpack.c.l.b16 %v1841_v42  ;;  %v1918_v2 = vunpack.c.l.b16 %v1847_v50  ;;  %v1849_v3 = vpack.c.bf16 %v1785_v51, %v1785_v51  ;;  %v1803_v4 = vmax.f32 %v1801_v32, %v1802_v54 }
 0x242   : > { %v1818_v44 = vrot.slane %v1817_v35, 2  ;;  %v1794_v45 = vmax.f32 %v1792_v27, %v1793_v33  ;;  %v1808_v58 = vmax.f32 %v1806_v38, %v1807_v49  ;;  %v1947_v5 = vsel %vm1927_vm5, %v1911_v56, %v1946_v0 }
 0x243   : > { %v1913_v6 = vunpack.c.l.b16 %v1842_v57  ;;  %v1844_v7 = vpack.c.bf16 %v1740_v29, %v1740_v29  ;;  %v1843_v10 = vpack.c.bf16 %v1731_v61, %v1731_v61  ;;  %v1749_v11 = vmax.f32 %v1747_v40, %v1748_v36 }
 0x244   : > { %v1819_v55 = vmax.f32 %v1817_v35, %v1818_v44  ;;  %v1850_v1 = vpack.c.bf16 %v1794_v45, %v1794_v45  ;;  %v1809_v22 = vrot.slane %v1808_v58, 2  ;;  %v1953_v12 = vsel %vm1925_vm4, %v1918_v2, %v1917_v31 }
 0x245   : > { %v1954_v14 = vsel %vm1927_vm5, %v1919_v9, %v1953_v12  ;;  %v1948_v15 = vsel %vm1929_vm6, %v1912_v46, %v1947_v5  ;;  %v1920_v16 = vunpack.c.l.b16 %v1849_v3  ;;  %v1851_v17 = vpack.c.bf16 %v1803_v4, %v1803_v4 }
 0x246   : > { %v1820_v62 = vrot.slane %v1819_v55, 1  ;;  %v1810_v8 = vmax.f32 %v1808_v58, %v1809_v22  ;;  %v1921_v52 = vunpack.c.l.b16 %v1850_v1  ;;  %v1949_v47 = vsel %vm1931_vm7, %v1913_v6, %v1948_v15 }
 0x247   : > { %v1915_v41 = vunpack.c.l.b16 %v1844_v7  ;;  %v1914_v20 = vunpack.c.l.b16 %v1843_v10  ;;  %v1845_v23 = vpack.c.bf16 %v1749_v11, %v1749_v11  ;;  %v1955_v24 = vsel %vm1929_vm6, %v1920_v16, %v1954_v14 }
 0x248   : > { %v1821_v13 = vmax.f32 %v1819_v55, %v1820_v62  ;;  %v1811_v53 = vrot.slane %v1810_v8, 1  ;;  %v1956_v26 = vsel %vm1931_vm7, %v1921_v52, %v1955_v24  ;;  %v1922_v19 = vunpack.c.l.b16 %v1851_v17 }
 0x249   : > { %v1950_v28 = vsel %vm1933_vm8, %v1914_v20, %v1949_v47  ;;  %v1916_v30 = vunpack.c.l.b16 %v1845_v23 }
 0x24a   : > { %v1812_v18 = vmax.f32 %v1810_v8, %v1811_v53  ;;  %v1853_v25 = vpack.c.bf16 %v1821_v13, %v1821_v13  ;;  %v1951_v59 = vsel %vm1935_vm9, %v1915_v41, %v1950_v28  ;;  %v1957_v33 = vsel %vm1933_vm8, %v1922_v19, %v1956_v26 }
 0x24b   : > { %v1952_v35 = vsel %vm1937_vm10, %v1916_v30, %v1951_v59 }
 0x24c   : > { %v1852_v27 = vpack.c.bf16 %v1812_v18, %v1812_v18  ;;  %v1924_v32 = vunpack.c.l.b16 %v1853_v25 }
 0x24e   : > { %v1923_v63 = vunpack.c.l.b16 %v1852_v27 }
 0x250   : > { %v1958_v34 = vsel %vm1935_vm9, %v1923_v63, %v1957_v33 }
 0x251   : > { %v1959_v60 = vsel %vm1937_vm10, %v1924_v32, %v1958_v34 }
 0x252   : > { %v1961_v21 = vpack.c.b16 %v1959_v60, %v1952_v35 }
 0x254   : > { %2486 = vmatmul.mubr.msk.bf16.vlgmr.msra.gmra.mxu1 %vm1076_vm3, %v1961_v21 }
 0x314   : > { %v2487_v38 = vpop.f32.mrf.mxu1 }
 0x315   : > { %v2035_v39 = vadd.f32 %v2487_v38, %v2239_v37 }
 0x316   : > { %v2026_v40 = vpop.f32.mrf.mxu1 }
 0x317   : > { %v2043_v43 = vmax.f32 %v2035_v39, 0.0  ;;  %v2027_v44 = vadd.f32 %v2239_v37, %v2026_v40 }
 0x318   : > { %v2488_v42 = vpop.f32.mrf.mxu1 }
 0x319   : > { %2047 = vst [vmem:[%s272_s23 + $0x10] sm:$0xff] %v2043_v43  ;;  %v2041_v48 = vmax.f32 %v2027_v44, 0.0  ;;  %v2038_v45 = vadd.f32 %v2488_v42, %v2239_v37 }
 0x31a   : > { %v2029_v49 = vpop.f32.mrf.mxu1 }
 0x31b   : > { %2045 = vst [vmem:[%s272_s23] sm:$0xff] %v2041_v48  ;;  %v2044_v50 = vmax.f32 %v2038_v45, 0.0  ;;  %v2030_v51 = vadd.f32 %v2239_v37, %v2029_v49 }
 0x31d   : > { %2048 = vst [vmem:[%s272_s23 + $0x18] sm:$0xff] %v2044_v50  ;;  %v2042_v54 = vmax.f32 %v2030_v51, 0.0 }
 0x31f   : > { %2046 = vst [vmem:[%s272_s23 + $0x8] sm:$0xff] %v2042_v54 }
 0x320   : > { %2589 = shalt.err (!%p2586_p3)
}
 0x321   : > { %s2590_s20 = scalar_lea.hbm %s3157_s15, 512  ;;  %s2594_s29 = scalar_lea.hbm %s3206_s7, 1024 }
 0x322   : > { %p2591_p4 = scmp.ne.s32.totalorder %s3157_s15, %s2590_s20  ;;  %p2595_p9 = scmp.lt.s32.totalorder %s3157_s15, %s3206_s7 }
 0x323   : > { %p2596_p10 = scmp.lt.s32.totalorder %s2594_s29, %s2590_s20 }
 0x324   : > { %p2592_p7 = pnand %p2591_p4, %p2720_p5 }
 0x325   : > { %p2597_p11 = por %p2596_p10, %p2595_p9 }
 0x326   : > { %p2593_p8 = pneg %p2592_p7 }
 0x328   : > { %p2598_p12 = pnand %p2597_p11, %p2593_p8 }
 0x32a   : > { %2601 = shalt.err (!%p2598_p12)
}
 0x32b   : > { %s2640_s13 = smov 128   ;;  %s2641_s14 = smov 8  }
 0x32c   : > { %2489 = dma.vmem_to_hbm [thread:$0]  (%p2720_p5), %s3152_s8, 512, %s3157_s15, %s3159_s16, %s2640_s13, %s2640_s13, %s2641_s14  }
 0x32d PF: > { %p2495_p13 = scmp.ge.s32.totalorder %s2636_s27, 2  ;;  %s2078_s17 = sand.u32 1, %s2624_s24  }
 0x32e   : > { %s2079_s28 = scalar_lea.sflag [#allocation3], %s2078_s17 }
 0x32f   : > { %p2492_p0 = pnand %p2495_p13, %p2724_p6 }
 0x331   : > { %p2493_p1 = pneg %p2492_p0 }
 0x333   : > { %2619 = dma.done.wait (%p2493_p1), %s2079_s28, 512  }
 0x334   : > { %2621 = vsyncadd (%p2493_p1), %s2079_s28, 4294966784  ;;  %p17_p2 = scmp.ge.s32.totalorder %s2707_s30, 4   ;;  %s3209_s24 = smov %s2628_s25 }
 0x335   : > { %s3210_s25 = smov %s2632_s26  ;;  %s3211_s26 = smov %s2718_s10 }
 0x336   : > { %s3212_s27 = smov %s2707_s30  ;;  %19 = sbr.rel (!%p17_p2) target bundleno = 3 (0x3), region = 83 }
 0x33b   :  { %2084 = vsyncpa [#allocation3], 1 }
 0x33c   :  { %2086 = vsyncpa [#allocation3 + $0x1], 1 }

</bundles_post_ra>
